<compile_context>
chip_gen: v6e
topology: v6e:2x2x1
jax: 0.10.0
libtpu: 0.0.40
codegen_flags: <defaults>
</compile_context>

<pallas_src>
import functools

import jax
import jax.numpy as jnp
from jax.experimental import pallas as pl
from jax.experimental.pallas import tpu as pltpu

RATES = (6, 12, 18)
PAD = max(RATES)          # halo that covers every dilated 3x3 tap
BN_EPS = 1e-5
LANE = 128


def _round_up(x, m):
    return (x + m - 1) // m * m


def _vmem_budget_bytes():
    """Usable VMEM per kernel, derived from the hardware with headroom."""
    cap = None
    try:
        info = pltpu.get_tpu_info()
        for name in ("vmem_capacity_bytes", "vmem_size_bytes", "vmem_bytes"):
            v = getattr(info, name, None)
            if v:
                cap = int(v)
                break
    except Exception:
        cap = None
    if not cap:
        cap = 64 * 1024 * 1024          # conservative: smallest current VMEM (v7x)
    return int(cap * 0.8)               # leave room for compiler-internal scratch


def aspp_kernel(obias_ref, x_hbm, wpt_ref, bpt_ref, bn1s_ref, bn1b_ref,
                wdr_ref, bd_ref, bnds_ref, bndb_ref,
                wo_ref, bnos_ref, bnob_ref,
                o_ref, xband, col, ybuf, sem,
                *, band_h, width, n_bands, c_in_p, c_out_p, compute_dtype):
    f32 = jnp.float32
    n = pl.program_id(0)
    b = pl.program_id(1)
    rows = band_h + 2 * PAD
    slot = b % 2
    m = band_h * width

    def band_copy(band_idx, slot_idx):
        return pltpu.make_async_copy(
            x_hbm.at[n, pl.ds(band_idx * band_h, rows)],
            xband.at[slot_idx], sem.at[slot_idx])

    # Prime on the first band of each image; prefetch the next band while the
    # current one computes. The band axis is "arbitrary", so all bands of an
    # image run consecutively on one core and the slot logic is safe (do NOT
    # parallelize the band axis without reworking this).
    @pl.when(b == 0)
    def _():
        band_copy(0, 0).start()

    @pl.when(b + 1 < n_bands)
    def _():
        band_copy(b + 1, (b + 1) % 2).start()

    band_copy(b, slot).wait()

    def window(h0, w0):
        # static (band_h, width, Cin_p) window of the current band buffer
        return xband[slot, h0:h0 + band_h, w0:w0 + width, :]

    # --- branch 1: shared conv_block (1x1 conv -> ReLU -> BN) on the band.
    xc = window(PAD, PAD)
    # centre tap is identical for all three dilation rates: write it once.
    col[:, :, 4 * c_in_p:5 * c_in_p] = xc
    y1 = jnp.dot(xc.reshape(m, c_in_p), wpt_ref[...],
                 preferred_element_type=f32) + bpt_ref[...]
    y1 = jnp.maximum(y1, 0.0) * bn1s_ref[...] + bn1b_ref[...]
    ybuf[:, 0:c_out_p] = y1.astype(compute_dtype)

    # --- branches 2..4: dilated 3x3 convs, one im2col matmul per rate.
    # Taps are stored as 3-D windows (no per-tap reshape copy); `col` is
    # reshaped once (contiguous) right before the dot.
    for ri, rate in enumerate(RATES):
        t = 0
        for dy in (-1, 0, 1):
            for dx in (-1, 0, 1):
                if (dy, dx) != (0, 0):
                    col[:, :, t * c_in_p:(t + 1) * c_in_p] = window(
                        PAD + dy * rate, PAD + dx * rate)
                t += 1
        d = jnp.dot(col[...].reshape(m, 9 * c_in_p), wdr_ref[ri],
                    preferred_element_type=f32) + bd_ref[ri:ri + 1, :]
        d = jnp.maximum(d, 0.0) * bnds_ref[ri:ri + 1, :] + bndb_ref[ri:ri + 1, :]
        ybuf[:, (1 + ri) * c_out_p:(2 + ri) * c_out_p] = d.astype(compute_dtype)

    # --- fused concat + output 1x1 conv: one matmul over all four spatial
    # branches; the global-pool branch is pre-folded into obias (per image).
    out = jnp.dot(ybuf[...], wo_ref[...], preferred_element_type=f32)
    out = out + obias_ref[0]
    out = jnp.maximum(out, 0.0) * bnos_ref[...] + bnob_ref[...]
    o_ref[0, 0] = out.astype(o_ref.dtype)


def aspp_pallas(x_nchw, p, *, band_h=None, compute_dtype=jnp.bfloat16,
                out_dtype=None):
    """ASPP forward pass. `p` holds PyTorch-layout parameters (see init_params)."""
    N, C_in, H, W = x_nchw.shape
    C_out = p["w_pt"].shape[0]
    Cip = _round_up(C_in, LANE)
    Cop = _round_up(C_out, LANE)
    if out_dtype is None:
        out_dtype = compute_dtype            # bf16 writeback halves output HBM traffic
    Wp = W + 2 * PAD

    # ---- VMEM budgeting: pick the largest band_h (divisor of H) that fits.
    budget = _vmem_budget_bytes()
    bpe = jnp.dtype(compute_dtype).itemsize
    obpe = jnp.dtype(out_dtype).itemsize
    w_bytes = (Cip * Cop + 27 * Cip * Cop + 4 * Cop * Cop) * bpe + 16 * Cop * 4

    def est_bytes(bh):
        rows_ = bh + 2 * PAD
        m = bh * W
        return (2 * rows_ * Wp * Cip * bpe        # double-buffered input band
                + m * 9 * Cip * bpe               # im2col scratch
                + m * 4 * Cop * bpe               # branch-concat buffer
                + 2 * m * Cop * obpe              # double-buffered output block
                + 3 * m * Cop * 4                 # live f32 temporaries
                + w_bytes)                        # single-buffered constants

    if band_h is None:
        divisors = [d for d in range(H, 0, -1) if H % d == 0]
        band_h = next((d for d in divisors if est_bytes(d) <= budget), 1)
    assert H % band_h == 0, "band_h must divide H"
    n_bands = H // band_h
    rows = band_h + 2 * PAD
    vmem_limit = int(min(max(int(1.25 * est_bytes(band_h)), 32 * 1024 * 1024),
                         budget))

    # ---- activation prep: NCHW -> NHWC, halo + channel pad, cast.
    x_nhwc = jnp.transpose(x_nchw, (0, 2, 3, 1))
    x_pad = jnp.pad(x_nhwc, ((0, 0), (PAD, PAD), (PAD, PAD), (0, Cip - C_in)))
    x_pad = x_pad.astype(compute_dtype)

    # ---- global-pool branch, computed ONCE per image here (f32) and folded
    # into the output bias (bilinear upsample of a 1x1 map is a constant).
    w_pt2d = jnp.transpose(p["w_pt"][:, :, 0, 0])                 # (C_in, C_out)
    w_out2d = jnp.transpose(p["w_out"][:, :, 0, 0])               # (5*C_out, C_out)
    x_mean = jnp.mean(x_nhwc, axis=(1, 2))                        # (N, C_in)
    y0 = x_mean @ w_pt2d + p["b_pt"][None, :]
    y0 = jnp.maximum(y0, 0.0) * p["bn1_s"][None, :] + p["bn1_b"][None, :]
    obias = p["b_out"][None, :] + y0 @ w_out2d[:C_out]            # (N, C_out)
    obias = jnp.pad(obias, ((0, 0), (0, Cop - C_out))).reshape(N, 1, Cop)

    # ---- parameter prep: kernel layouts, channels padded to lane multiples
    # (padded bias / BN scale / shift are zero so padded channels stay 0).
    def pad_c(v):                                    # (..., C_out) -> (..., Cop)
        return jnp.pad(v, [(0, 0)] * (v.ndim - 1) + [(0, Cop - C_out)])

    w_pt = jnp.pad(w_pt2d, ((0, Cip - C_in), (0, Cop - C_out))).astype(compute_dtype)
    b_pt = pad_c(p["b_pt"]).reshape(1, Cop)
    bn1_s = pad_c(p["bn1_s"]).reshape(1, Cop)
    bn1_b = pad_c(p["bn1_b"]).reshape(1, Cop)

    # (3, O, I, kh, kw) -> (3, kh, kw, I_pad, O_pad) -> (3, 9*Cip, Cop)
    w_dil = jnp.transpose(p["w_dil"], (0, 3, 4, 2, 1))
    w_dil = jnp.pad(w_dil, ((0, 0), (0, 0), (0, 0),
                            (0, Cip - C_in), (0, Cop - C_out)))
    w_dil = w_dil.reshape(3, 9 * Cip, Cop).astype(compute_dtype)
    b_dil = pad_c(p["b_dil"])
    bnd_s = pad_c(p["bnd_s"])
    bnd_b = pad_c(p["bnd_b"])

    # output 1x1 conv weights for branches 1..4 (pool branch lives in obias),
    # concatenated along K with per-branch channel padding to Cop.
    w_out_blocks = w_out2d.reshape(5, C_out, C_out)[1:]           # (4, C_out, C_out)
    w_out_cat = jnp.pad(w_out_blocks, ((0, 0), (0, Cop - C_out), (0, Cop - C_out)))
    w_out_cat = w_out_cat.reshape(4 * Cop, Cop).astype(compute_dtype)
    bno_s = pad_c(p["bno_s"]).reshape(1, Cop)
    bno_b = pad_c(p["bno_b"]).reshape(1, Cop)

    kern = functools.partial(aspp_kernel, band_h=band_h, width=W,
                             n_bands=n_bands, c_in_p=Cip, c_out_p=Cop,
                             compute_dtype=compute_dtype)

    # constants: whole-array, single-buffered VMEM residents.
    const = pl.BlockSpec(memory_space=pltpu.MemorySpace.VMEM)

    out = pl.pallas_call(
        kern,
        out_shape=jax.ShapeDtypeStruct((N, n_bands, band_h * W, Cop), out_dtype),
        grid=(N, n_bands),
        in_specs=[
            pl.BlockSpec((1, 1, Cop), lambda n, b: (n, 0, 0)),   # per-image out bias
            pl.BlockSpec(memory_space=pl.ANY),                   # haloed input (HBM)
            const, const, const, const,                          # w_pt, b_pt, bn1
            const, const, const, const,                          # w_dil, b_dil, bnd
            const, const, const,                                 # w_out_cat, bno
        ],
        out_specs=pl.BlockSpec((1, 1, band_h * W, Cop),
                               lambda n, b: (n, b, 0, 0)),
        scratch_shapes=[
            pltpu.VMEM((2, rows, Wp, Cip), compute_dtype),       # band double buffer
            pltpu.VMEM((band_h, W, 9 * Cip), compute_dtype),     # 3-D im2col scratch
            pltpu.VMEM((band_h * W, 4 * Cop), compute_dtype),    # branch-concat buffer
            pltpu.SemaphoreType.DMA((2,)),
        ],
        compiler_params=pltpu.CompilerParams(
            dimension_semantics=("parallel", "arbitrary"),
            vmem_limit_bytes=vmem_limit),
    )(obias, x_pad, w_pt, b_pt, bn1_s, bn1_b,
      w_dil, b_dil, bnd_s, bnd_b,
      w_out_cat, bno_s, bno_b)

    out = out.reshape(N, H, W, Cop)[..., :C_out].astype(jnp.float32)
    return jnp.transpose(out, (0, 3, 1, 2))      # back to NCHW


# ----------------------- parameters & plain-JAX reference -------------------

def init_params(key, C_in, C_out):
    ks = iter(jax.random.split(key, 32))

    def nrm(shape, s=0.1):
        return s * jax.random.normal(next(ks), shape, jnp.float32)

    def bn_params():
        gamma = 1.0 + nrm((C_out,))
        beta = nrm((C_out,))
        mean = nrm((C_out,))
        var = 0.5 + jax.random.uniform(next(ks), (C_out,), jnp.float32)
        scale = gamma / jnp.sqrt(var + BN_EPS)
        shift = beta - mean * scale
        return scale, shift

    w_pt = nrm((C_out, C_in, 1, 1))
    b_pt = nrm((C_out,))
    bn1_s, bn1_b = bn_params()

    w_dil = nrm((3, C_out, C_in, 3, 3))
    b_dil = nrm((3, C_out))
    bnd = [bn_params() for _ in range(3)]
    bnd_s = jnp.stack([s for s, _ in bnd])
    bnd_b = jnp.stack([b for _, b in bnd])

    w_out = nrm((C_out, 5 * C_out, 1, 1))
    b_out = nrm((C_out,))
    bno_s, bno_b = bn_params()

    return dict(w_pt=w_pt, b_pt=b_pt, bn1_s=bn1_s, bn1_b=bn1_b,
                w_dil=w_dil, b_dil=b_dil, bnd_s=bnd_s, bnd_b=bnd_b,
                w_out=w_out, b_out=b_out, bno_s=bno_s, bno_b=bno_b)


def conv_nchw(x, w, b, dilation=1, padding=0):
    y = jax.lax.conv_general_dilated(
        x, w, window_strides=(1, 1),
        padding=[(padding, padding), (padding, padding)],
        rhs_dilation=(dilation, dilation),
        dimension_numbers=('NCHW', 'OIHW', 'NCHW'),
        precision=jax.lax.Precision.HIGHEST)
    return y + b[None, :, None, None]


def aspp_reference(x, p):
    def bn(y, s, b):
        return y * s[None, :, None, None] + b[None, :, None, None]

    def conv_block(y):
        y = conv_nchw(y, p["w_pt"], p["b_pt"])
        return bn(jnp.maximum(y, 0.0), p["bn1_s"], p["bn1_b"])

    n, _, h, w = x.shape
    y_pool = jnp.mean(x, axis=(2, 3), keepdims=True)
    y0 = conv_block(y_pool)
    y0 = jnp.broadcast_to(y0, (n, y0.shape[1], h, w))  # bilinear up of 1x1 == const
    y1 = conv_block(x)
    ys = []
    for i, r in enumerate(RATES):
        yi = conv_nchw(x, p["w_dil"][i], p["b_dil"][i], dilation=r, padding=r)
        ys.append(bn(jnp.maximum(yi, 0.0), p["bnd_s"][i], p["bnd_b"][i]))
    y = jnp.concatenate([y0, y1] + ys, axis=1)
    y = conv_nchw(y, p["w_out"], p["b_out"])
    y = jnp.maximum(y, 0.0)
    return bn(y, p["bno_s"], p["bno_b"])


if __name__ == "__main__":
    key = jax.random.PRNGKey(0)
    kx, kp = jax.random.split(key)
    N, C_in, C_out, H, W = 2, 4, 8, 16, 16

    x = jax.random.normal(kx, (N, C_in, H, W), jnp.float32)
    params = init_params(kp, C_in, C_out)
    ref = aspp_reference(x, params)

    # f32 MXU path with 2 bands: validates banding / halo DMA / im2col /
    # fused-output structure at full precision.
    out_f32 = jax.block_until_ready(
        aspp_pallas(x, params, band_h=8, compute_dtype=jnp.float32))
    assert out_f32.shape == (N, C_out, H, W)
    err32 = float(jnp.max(jnp.abs(out_f32 - ref)))
    assert err32 < 5e-3, f"f32 max abs err {err32}"

    # bf16 MXU path (default: bf16 compute + bf16 writeback, auto band_h).
    out_bf16 = jax.block_until_ready(aspp_pallas(x, params))
    err16 = float(jnp.max(jnp.abs(out_bf16 - ref)))
    assert err16 < 4e-2, f"bf16 max abs err {err16}"

    print("KERNEL_OK")
</pallas_src>

<mosaic_0001>
module attributes {stable_mosaic.version = 11 : i64} {
  func.func @aspp_kernel(%arg0: i32, %arg1: i32, %arg2: memref<1x1x128xf32, #tpu.memory_space<vmem>>, %arg3: memref<2x52x52x128xf32, #tpu.memory_space<any>>, %arg4: memref<128x128xf32, #tpu.memory_space<vmem>>, %arg5: memref<1x128xf32, #tpu.memory_space<vmem>>, %arg6: memref<1x128xf32, #tpu.memory_space<vmem>>, %arg7: memref<1x128xf32, #tpu.memory_space<vmem>>, %arg8: memref<3x1152x128xf32, #tpu.memory_space<vmem>>, %arg9: memref<3x128xf32, #tpu.memory_space<vmem>>, %arg10: memref<3x128xf32, #tpu.memory_space<vmem>>, %arg11: memref<3x128xf32, #tpu.memory_space<vmem>>, %arg12: memref<512x128xf32, #tpu.memory_space<vmem>>, %arg13: memref<1x128xf32, #tpu.memory_space<vmem>>, %arg14: memref<1x128xf32, #tpu.memory_space<vmem>>, %arg15: memref<1x1x128x128xf32, #tpu.memory_space<vmem>>, %arg16: memref<2x44x52x128xf32, #tpu.memory_space<vmem>>, %arg17: memref<8x16x1152xf32, #tpu.memory_space<vmem>>, %arg18: memref<128x512xf32, #tpu.memory_space<vmem>>, %arg19: memref<2x!tpu.dma_semaphore, #tpu.memory_space<semaphore_mem>>) attributes {dimension_semantics = [#tpu.dimension_semantics<parallel>, #tpu.dimension_semantics<arbitrary>], iteration_bounds = array<i64: 2, 2>, scalar_prefetch = 0 : i64, scratch_operands = 4 : i64, tpu.core_type = #tpu.core_type<tc>, window_params = [{transform_indices = @transform_0, window_bounds = array<i64: 1, 1, 128>}, {}, {pipeline_mode = #tpu.pipeline_mode<synchronous>, transform_indices = @transform_2, window_bounds = array<i64: 128, 128>}, {pipeline_mode = #tpu.pipeline_mode<synchronous>, transform_indices = @transform_3, window_bounds = array<i64: 1, 128>}, {pipeline_mode = #tpu.pipeline_mode<synchronous>, transform_indices = @transform_4, window_bounds = array<i64: 1, 128>}, {pipeline_mode = #tpu.pipeline_mode<synchronous>, transform_indices = @transform_5, window_bounds = array<i64: 1, 128>}, {pipeline_mode = #tpu.pipeline_mode<synchronous>, transform_indices = @transform_6, window_bounds = array<i64: 3, 1152, 128>}, {pipeline_mode = #tpu.pipeline_mode<synchronous>, transform_indices = @transform_7, window_bounds = array<i64: 3, 128>}, {pipeline_mode = #tpu.pipeline_mode<synchronous>, transform_indices = @transform_8, window_bounds = array<i64: 3, 128>}, {pipeline_mode = #tpu.pipeline_mode<synchronous>, transform_indices = @transform_9, window_bounds = array<i64: 3, 128>}, {pipeline_mode = #tpu.pipeline_mode<synchronous>, transform_indices = @transform_10, window_bounds = array<i64: 512, 128>}, {pipeline_mode = #tpu.pipeline_mode<synchronous>, transform_indices = @transform_11, window_bounds = array<i64: 1, 128>}, {pipeline_mode = #tpu.pipeline_mode<synchronous>, transform_indices = @transform_12, window_bounds = array<i64: 1, 128>}, {transform_indices = @transform_13, window_bounds = array<i64: 1, 1, 128, 128>}]} {
    %c2_i32 = arith.constant 2 : i32
    %c0_i32 = arith.constant 0 : i32
    %0 = arith.cmpi eq, %c2_i32, %c0_i32 : i32
    %c1_i32 = arith.constant 1 : i32
    %1 = arith.select %0, %c1_i32, %c2_i32 : i32
    %2 = arith.remsi %arg1, %1 : i32
    %c0_i32_0 = arith.constant 0 : i32
    %3 = arith.cmpi ne, %2, %c0_i32_0 : i32
    %c0_i32_1 = arith.constant 0 : i32
    %4 = arith.cmpi slt, %2, %c0_i32_1 : i32
    %c0_i32_2 = arith.constant 0 : i32
    %5 = arith.cmpi slt, %1, %c0_i32_2 : i32
    %6 = arith.xori %4, %5 : i1
    %7 = arith.andi %6, %3 : i1
    %8 = arith.addi %2, %1 : i32
    %9 = arith.select %7, %8, %2 : i32
    %c0_i32_3 = arith.constant 0 : i32
    %10 = arith.cmpi eq, %arg1, %c0_i32_3 : i32
    %11 = arith.extui %10 : i1 to i32
    %c0_i32_4 = arith.constant 0 : i32
    %12 = arith.cmpi ne, %11, %c0_i32_4 : i32
    scf.if %12 {
      %c0_i32_222 = arith.constant 0 : i32
      %c0_i32_223 = arith.constant 0 : i32
      %c0_i32_224 = arith.constant 0 : i32
      %c0_i32_225 = arith.constant 0 : i32
      %c0_i32_226 = arith.constant 0 : i32
      %208 = tpu.memref_slice %arg3[%arg0, %c0_i32_224, %c0_i32_225, %c0_i32_226] : memref<2x52x52x128xf32, #tpu.memory_space<any>> -> memref<1x44x52x128xf32, #tpu.memory_space<any>>
      %209 = tpu.memref_squeeze %208 : memref<1x44x52x128xf32, #tpu.memory_space<any>> -> memref<44x52x128xf32, #tpu.memory_space<any>>
      %c0_i32_227 = arith.constant 0 : i32
      %c0_i32_228 = arith.constant 0 : i32
      %c0_i32_229 = arith.constant 0 : i32
      %210 = tpu.memref_slice %arg16[%c0_i32_222, %c0_i32_227, %c0_i32_228, %c0_i32_229] : memref<2x44x52x128xf32, #tpu.memory_space<vmem>> -> memref<1x44x52x128xf32, #tpu.memory_space<vmem>>
      %211 = tpu.memref_squeeze %210 : memref<1x44x52x128xf32, #tpu.memory_space<vmem>> -> memref<44x52x128xf32, #tpu.memory_space<vmem>>
      %212 = tpu.memref_slice %arg19[%c0_i32_223] : memref<2x!tpu.dma_semaphore, #tpu.memory_space<semaphore_mem>> -> memref<1x!tpu.dma_semaphore, #tpu.memory_space<semaphore_mem>>
      %213 = tpu.memref_squeeze %212 : memref<1x!tpu.dma_semaphore, #tpu.memory_space<semaphore_mem>> -> memref<!tpu.dma_semaphore, #tpu.memory_space<semaphore_mem>>
      tpu.enqueue_dma source(%209 : memref<44x52x128xf32, #tpu.memory_space<any>>) target(%211 : memref<44x52x128xf32, #tpu.memory_space<vmem>>) target_semaphore(%213 : memref<!tpu.dma_semaphore, #tpu.memory_space<semaphore_mem>>)
    } else {
    }
    %c1_i32_5 = arith.constant 1 : i32
    %13 = arith.addi %arg1, %c1_i32_5 : i32
    %c2_i32_6 = arith.constant 2 : i32
    %14 = arith.cmpi slt, %13, %c2_i32_6 : i32
    %15 = arith.extui %14 : i1 to i32
    %c0_i32_7 = arith.constant 0 : i32
    %16 = arith.cmpi ne, %15, %c0_i32_7 : i32
    scf.if %16 {
      %c1_i32_222 = arith.constant 1 : i32
      %208 = arith.addi %arg1, %c1_i32_222 : i32
      %c1_i32_223 = arith.constant 1 : i32
      %209 = arith.addi %arg1, %c1_i32_223 : i32
      %c2_i32_224 = arith.constant 2 : i32
      %c0_i32_225 = arith.constant 0 : i32
      %210 = arith.cmpi eq, %c2_i32_224, %c0_i32_225 : i32
      %c1_i32_226 = arith.constant 1 : i32
      %211 = arith.select %210, %c1_i32_226, %c2_i32_224 : i32
      %212 = arith.remsi %209, %211 : i32
      %c0_i32_227 = arith.constant 0 : i32
      %213 = arith.cmpi ne, %212, %c0_i32_227 : i32
      %c0_i32_228 = arith.constant 0 : i32
      %214 = arith.cmpi slt, %212, %c0_i32_228 : i32
      %c0_i32_229 = arith.constant 0 : i32
      %215 = arith.cmpi slt, %211, %c0_i32_229 : i32
      %216 = arith.xori %214, %215 : i1
      %217 = arith.andi %216, %213 : i1
      %218 = arith.addi %212, %211 : i32
      %219 = arith.select %217, %218, %212 : i32
      %c8_i32_230 = arith.constant 8 : i32
      %220 = arith.muli %208, %c8_i32_230 : i32
      %c0_i32_231 = arith.constant 0 : i32
      %c0_i32_232 = arith.constant 0 : i32
      %221 = tpu.memref_slice %arg3[%arg0, %220, %c0_i32_231, %c0_i32_232] : memref<2x52x52x128xf32, #tpu.memory_space<any>> -> memref<1x44x52x128xf32, #tpu.memory_space<any>>
      %222 = tpu.memref_squeeze %221 : memref<1x44x52x128xf32, #tpu.memory_space<any>> -> memref<44x52x128xf32, #tpu.memory_space<any>>
      %c0_i32_233 = arith.constant 0 : i32
      %c0_i32_234 = arith.constant 0 : i32
      %c0_i32_235 = arith.constant 0 : i32
      %223 = tpu.memref_slice %arg16[%219, %c0_i32_233, %c0_i32_234, %c0_i32_235] : memref<2x44x52x128xf32, #tpu.memory_space<vmem>> -> memref<1x44x52x128xf32, #tpu.memory_space<vmem>>
      %224 = tpu.memref_squeeze %223 : memref<1x44x52x128xf32, #tpu.memory_space<vmem>> -> memref<44x52x128xf32, #tpu.memory_space<vmem>>
      %225 = tpu.memref_slice %arg19[%219] : memref<2x!tpu.dma_semaphore, #tpu.memory_space<semaphore_mem>> -> memref<1x!tpu.dma_semaphore, #tpu.memory_space<semaphore_mem>>
      %226 = tpu.memref_squeeze %225 : memref<1x!tpu.dma_semaphore, #tpu.memory_space<semaphore_mem>> -> memref<!tpu.dma_semaphore, #tpu.memory_space<semaphore_mem>>
      tpu.enqueue_dma source(%222 : memref<44x52x128xf32, #tpu.memory_space<any>>) target(%224 : memref<44x52x128xf32, #tpu.memory_space<vmem>>) target_semaphore(%226 : memref<!tpu.dma_semaphore, #tpu.memory_space<semaphore_mem>>)
    } else {
    }
    %c8_i32 = arith.constant 8 : i32
    %17 = arith.muli %arg1, %c8_i32 : i32
    %c0_i32_8 = arith.constant 0 : i32
    %c0_i32_9 = arith.constant 0 : i32
    %18 = tpu.memref_slice %arg3[%arg0, %17, %c0_i32_8, %c0_i32_9] : memref<2x52x52x128xf32, #tpu.memory_space<any>> -> memref<1x44x52x128xf32, #tpu.memory_space<any>>
    %19 = tpu.memref_squeeze %18 : memref<1x44x52x128xf32, #tpu.memory_space<any>> -> memref<44x52x128xf32, #tpu.memory_space<any>>
    %c0_i32_10 = arith.constant 0 : i32
    %c0_i32_11 = arith.constant 0 : i32
    %c0_i32_12 = arith.constant 0 : i32
    %20 = tpu.memref_slice %arg16[%9, %c0_i32_10, %c0_i32_11, %c0_i32_12] : memref<2x44x52x128xf32, #tpu.memory_space<vmem>> -> memref<1x44x52x128xf32, #tpu.memory_space<vmem>>
    %21 = tpu.memref_squeeze %20 : memref<1x44x52x128xf32, #tpu.memory_space<vmem>> -> memref<44x52x128xf32, #tpu.memory_space<vmem>>
    %22 = tpu.memref_slice %arg19[%9] : memref<2x!tpu.dma_semaphore, #tpu.memory_space<semaphore_mem>> -> memref<1x!tpu.dma_semaphore, #tpu.memory_space<semaphore_mem>>
    %23 = tpu.memref_squeeze %22 : memref<1x!tpu.dma_semaphore, #tpu.memory_space<semaphore_mem>> -> memref<!tpu.dma_semaphore, #tpu.memory_space<semaphore_mem>>
    tpu.wait_dma2 semaphore(%23 : memref<!tpu.dma_semaphore, #tpu.memory_space<semaphore_mem>>) src(%19 : memref<44x52x128xf32, #tpu.memory_space<any>>) dst(%21 : memref<44x52x128xf32, #tpu.memory_space<vmem>>)
    %24 = arith.index_cast %9 : i32 to index
    %c18 = arith.constant 18 : index
    %c18_13 = arith.constant 18 : index
    %c0 = arith.constant 0 : index
    %25 = vector.load %arg16[%24, %c18, %c18_13, %c0] : memref<2x44x52x128xf32, #tpu.memory_space<vmem>>, vector<1x8x16x128xf32>
    %26 = vector.shape_cast %25 : vector<1x8x16x128xf32> to vector<8x16x128xf32>
    %c0_14 = arith.constant 0 : index
    %c0_15 = arith.constant 0 : index
    %c512 = arith.constant 512 : index
    %27 = vector.load %arg17[%c0_14, %c0_15, %c512] : memref<8x16x1152xf32, #tpu.memory_space<vmem>>, vector<8x16x128xf32>
    tpu.vector_store %arg17[%c0_14, %c0_15, %c512], %26 {strides = array<i32>} : memref<8x16x1152xf32, #tpu.memory_space<vmem>>, vector<8x16x128xf32>,
    %28 = vector.shape_cast %26 : vector<8x16x128xf32> to vector<128x128xf32>
    %c0_16 = arith.constant 0 : index
    %c0_17 = arith.constant 0 : index
    %29 = vector.load %arg4[%c0_16, %c0_17] : memref<128x128xf32, #tpu.memory_space<vmem>>, vector<128x128xf32>
    %cst = arith.constant dense<0.000000e+00> : vector<128x128xf32>
    %30 = tpu.matmul %28, %29, %cst {dimension_numbers = #tpu.dot_dimension_numbers<[1], [0], [0], [1], [0, 0, 1, 1], [], []>} : vector<128x128xf32>, vector<128x128xf32>, vector<128x128xf32> -> vector<128x128xf32>
    %c0_18 = arith.constant 0 : index
    %c0_19 = arith.constant 0 : index
    %31 = vector.load %arg5[%c0_18, %c0_19] : memref<1x128xf32, #tpu.memory_space<vmem>>, vector<1x128xf32>
    %32 = vector.broadcast %31 : vector<1x128xf32> to vector<128x128xf32>
    %33 = arith.addf %30, %32 : vector<128x128xf32>
    %cst_20 = arith.constant 0.000000e+00 : f32
    %34 = vector.broadcast %cst_20 : f32 to vector<128x128xf32>
    %35 = arith.maximumf %33, %34 : vector<128x128xf32>
    %c0_21 = arith.constant 0 : index
    %c0_22 = arith.constant 0 : index
    %36 = vector.load %arg6[%c0_21, %c0_22] : memref<1x128xf32, #tpu.memory_space<vmem>>, vector<1x128xf32>
    %37 = vector.broadcast %36 : vector<1x128xf32> to vector<128x128xf32>
    %38 = arith.mulf %35, %37 : vector<128x128xf32>
    %c0_23 = arith.constant 0 : index
    %c0_24 = arith.constant 0 : index
    %39 = vector.load %arg7[%c0_23, %c0_24] : memref<1x128xf32, #tpu.memory_space<vmem>>, vector<1x128xf32>
    %40 = vector.broadcast %39 : vector<1x128xf32> to vector<128x128xf32>
    %41 = arith.addf %38, %40 : vector<128x128xf32>
    %c0_25 = arith.constant 0 : index
    %c0_26 = arith.constant 0 : index
    %42 = vector.load %arg18[%c0_25, %c0_26] : memref<128x512xf32, #tpu.memory_space<vmem>>, vector<128x128xf32>
    tpu.vector_store %arg18[%c0_25, %c0_26], %41 {strides = array<i32>} : memref<128x512xf32, #tpu.memory_space<vmem>>, vector<128x128xf32>,
    %43 = arith.index_cast %9 : i32 to index
    %c12 = arith.constant 12 : index
    %c12_27 = arith.constant 12 : index
    %c0_28 = arith.constant 0 : index
    %44 = vector.load %arg16[%43, %c12, %c12_27, %c0_28] : memref<2x44x52x128xf32, #tpu.memory_space<vmem>>, vector<1x8x16x128xf32>
    %45 = vector.shape_cast %44 : vector<1x8x16x128xf32> to vector<8x16x128xf32>
    %c0_29 = arith.constant 0 : index
    %c0_30 = arith.constant 0 : index
    %c0_31 = arith.constant 0 : index
    %46 = vector.load %arg17[%c0_29, %c0_30, %c0_31] : memref<8x16x1152xf32, #tpu.memory_space<vmem>>, vector<8x16x128xf32>
    tpu.vector_store %arg17[%c0_29, %c0_30, %c0_31], %45 {strides = array<i32>} : memref<8x16x1152xf32, #tpu.memory_space<vmem>>, vector<8x16x128xf32>,
    %47 = arith.index_cast %9 : i32 to index
    %c12_32 = arith.constant 12 : index
    %c18_33 = arith.constant 18 : index
    %c0_34 = arith.constant 0 : index
    %48 = vector.load %arg16[%47, %c12_32, %c18_33, %c0_34] : memref<2x44x52x128xf32, #tpu.memory_space<vmem>>, vector<1x8x16x128xf32>
    %49 = vector.shape_cast %48 : vector<1x8x16x128xf32> to vector<8x16x128xf32>
    %c0_35 = arith.constant 0 : index
    %c0_36 = arith.constant 0 : index
    %c128 = arith.constant 128 : index
    %50 = vector.load %arg17[%c0_35, %c0_36, %c128] : memref<8x16x1152xf32, #tpu.memory_space<vmem>>, vector<8x16x128xf32>
    tpu.vector_store %arg17[%c0_35, %c0_36, %c128], %49 {strides = array<i32>} : memref<8x16x1152xf32, #tpu.memory_space<vmem>>, vector<8x16x128xf32>,
    %51 = arith.index_cast %9 : i32 to index
    %c12_37 = arith.constant 12 : index
    %c24 = arith.constant 24 : index
    %c0_38 = arith.constant 0 : index
    %52 = vector.load %arg16[%51, %c12_37, %c24, %c0_38] : memref<2x44x52x128xf32, #tpu.memory_space<vmem>>, vector<1x8x16x128xf32>
    %53 = vector.shape_cast %52 : vector<1x8x16x128xf32> to vector<8x16x128xf32>
    %c0_39 = arith.constant 0 : index
    %c0_40 = arith.constant 0 : index
    %c256 = arith.constant 256 : index
    %54 = vector.load %arg17[%c0_39, %c0_40, %c256] : memref<8x16x1152xf32, #tpu.memory_space<vmem>>, vector<8x16x128xf32>
    tpu.vector_store %arg17[%c0_39, %c0_40, %c256], %53 {strides = array<i32>} : memref<8x16x1152xf32, #tpu.memory_space<vmem>>, vector<8x16x128xf32>,
    %55 = arith.index_cast %9 : i32 to index
    %c18_41 = arith.constant 18 : index
    %c12_42 = arith.constant 12 : index
    %c0_43 = arith.constant 0 : index
    %56 = vector.load %arg16[%55, %c18_41, %c12_42, %c0_43] : memref<2x44x52x128xf32, #tpu.memory_space<vmem>>, vector<1x8x16x128xf32>
    %57 = vector.shape_cast %56 : vector<1x8x16x128xf32> to vector<8x16x128xf32>
    %c0_44 = arith.constant 0 : index
    %c0_45 = arith.constant 0 : index
    %c384 = arith.constant 384 : index
    %58 = vector.load %arg17[%c0_44, %c0_45, %c384] : memref<8x16x1152xf32, #tpu.memory_space<vmem>>, vector<8x16x128xf32>
    tpu.vector_store %arg17[%c0_44, %c0_45, %c384], %57 {strides = array<i32>} : memref<8x16x1152xf32, #tpu.memory_space<vmem>>, vector<8x16x128xf32>,
    %59 = arith.index_cast %9 : i32 to index
    %c18_46 = arith.constant 18 : index
    %c24_47 = arith.constant 24 : index
    %c0_48 = arith.constant 0 : index
    %60 = vector.load %arg16[%59, %c18_46, %c24_47, %c0_48] : memref<2x44x52x128xf32, #tpu.memory_space<vmem>>, vector<1x8x16x128xf32>
    %61 = vector.shape_cast %60 : vector<1x8x16x128xf32> to vector<8x16x128xf32>
    %c0_49 = arith.constant 0 : index
    %c0_50 = arith.constant 0 : index
    %c640 = arith.constant 640 : index
    %62 = vector.load %arg17[%c0_49, %c0_50, %c640] : memref<8x16x1152xf32, #tpu.memory_space<vmem>>, vector<8x16x128xf32>
    tpu.vector_store %arg17[%c0_49, %c0_50, %c640], %61 {strides = array<i32>} : memref<8x16x1152xf32, #tpu.memory_space<vmem>>, vector<8x16x128xf32>,
    %63 = arith.index_cast %9 : i32 to index
    %c24_51 = arith.constant 24 : index
    %c12_52 = arith.constant 12 : index
    %c0_53 = arith.constant 0 : index
    %64 = vector.load %arg16[%63, %c24_51, %c12_52, %c0_53] : memref<2x44x52x128xf32, #tpu.memory_space<vmem>>, vector<1x8x16x128xf32>
    %65 = vector.shape_cast %64 : vector<1x8x16x128xf32> to vector<8x16x128xf32>
    %c0_54 = arith.constant 0 : index
    %c0_55 = arith.constant 0 : index
    %c768 = arith.constant 768 : index
    %66 = vector.load %arg17[%c0_54, %c0_55, %c768] : memref<8x16x1152xf32, #tpu.memory_space<vmem>>, vector<8x16x128xf32>
    tpu.vector_store %arg17[%c0_54, %c0_55, %c768], %65 {strides = array<i32>} : memref<8x16x1152xf32, #tpu.memory_space<vmem>>, vector<8x16x128xf32>,
    %67 = arith.index_cast %9 : i32 to index
    %c24_56 = arith.constant 24 : index
    %c18_57 = arith.constant 18 : index
    %c0_58 = arith.constant 0 : index
    %68 = vector.load %arg16[%67, %c24_56, %c18_57, %c0_58] : memref<2x44x52x128xf32, #tpu.memory_space<vmem>>, vector<1x8x16x128xf32>
    %69 = vector.shape_cast %68 : vector<1x8x16x128xf32> to vector<8x16x128xf32>
    %c0_59 = arith.constant 0 : index
    %c0_60 = arith.constant 0 : index
    %c896 = arith.constant 896 : index
    %70 = vector.load %arg17[%c0_59, %c0_60, %c896] : memref<8x16x1152xf32, #tpu.memory_space<vmem>>, vector<8x16x128xf32>
    tpu.vector_store %arg17[%c0_59, %c0_60, %c896], %69 {strides = array<i32>} : memref<8x16x1152xf32, #tpu.memory_space<vmem>>, vector<8x16x128xf32>,
    %71 = arith.index_cast %9 : i32 to index
    %c24_61 = arith.constant 24 : index
    %c24_62 = arith.constant 24 : index
    %c0_63 = arith.constant 0 : index
    %72 = vector.load %arg16[%71, %c24_61, %c24_62, %c0_63] : memref<2x44x52x128xf32, #tpu.memory_space<vmem>>, vector<1x8x16x128xf32>
    %73 = vector.shape_cast %72 : vector<1x8x16x128xf32> to vector<8x16x128xf32>
    %c0_64 = arith.constant 0 : index
    %c0_65 = arith.constant 0 : index
    %c1024 = arith.constant 1024 : index
    %74 = vector.load %arg17[%c0_64, %c0_65, %c1024] : memref<8x16x1152xf32, #tpu.memory_space<vmem>>, vector<8x16x128xf32>
    tpu.vector_store %arg17[%c0_64, %c0_65, %c1024], %73 {strides = array<i32>} : memref<8x16x1152xf32, #tpu.memory_space<vmem>>, vector<8x16x128xf32>,
    %c0_66 = arith.constant 0 : index
    %c0_67 = arith.constant 0 : index
    %c0_68 = arith.constant 0 : index
    %75 = vector.load %arg17[%c0_66, %c0_67, %c0_68] : memref<8x16x1152xf32, #tpu.memory_space<vmem>>, vector<8x16x1152xf32>
    %76 = vector.shape_cast %75 : vector<8x16x1152xf32> to vector<128x1152xf32>
    %c0_69 = arith.constant 0 : index
    %c0_70 = arith.constant 0 : index
    %c0_71 = arith.constant 0 : index
    %77 = vector.load %arg8[%c0_69, %c0_70, %c0_71] : memref<3x1152x128xf32, #tpu.memory_space<vmem>>, vector<1x1152x128xf32>
    %78 = vector.shape_cast %77 : vector<1x1152x128xf32> to vector<1152x128xf32>
    %cst_72 = arith.constant dense<0.000000e+00> : vector<128x128xf32>
    %79 = tpu.matmul %76, %78, %cst_72 {dimension_numbers = #tpu.dot_dimension_numbers<[1], [0], [0], [1], [0, 0, 1, 1], [], []>} : vector<128x1152xf32>, vector<1152x128xf32>, vector<128x128xf32> -> vector<128x128xf32>
    %c0_73 = arith.constant 0 : index
    %c0_74 = arith.constant 0 : index
    %80 = vector.load %arg9[%c0_73, %c0_74] : memref<3x128xf32, #tpu.memory_space<vmem>>, vector<1x128xf32>
    %81 = vector.broadcast %80 : vector<1x128xf32> to vector<128x128xf32>
    %82 = arith.addf %79, %81 : vector<128x128xf32>
    %cst_75 = arith.constant 0.000000e+00 : f32
    %83 = vector.broadcast %cst_75 : f32 to vector<128x128xf32>
    %84 = arith.maximumf %82, %83 : vector<128x128xf32>
    %c0_76 = arith.constant 0 : index
    %c0_77 = arith.constant 0 : index
    %85 = vector.load %arg10[%c0_76, %c0_77] : memref<3x128xf32, #tpu.memory_space<vmem>>, vector<1x128xf32>
    %86 = vector.broadcast %85 : vector<1x128xf32> to vector<128x128xf32>
    %87 = arith.mulf %84, %86 : vector<128x128xf32>
    %c0_78 = arith.constant 0 : index
    %c0_79 = arith.constant 0 : index
    %88 = vector.load %arg11[%c0_78, %c0_79] : memref<3x128xf32, #tpu.memory_space<vmem>>, vector<1x128xf32>
    %89 = vector.broadcast %88 : vector<1x128xf32> to vector<128x128xf32>
    %90 = arith.addf %87, %89 : vector<128x128xf32>
    %c0_80 = arith.constant 0 : index
    %c128_81 = arith.constant 128 : index
    %91 = vector.load %arg18[%c0_80, %c128_81] : memref<128x512xf32, #tpu.memory_space<vmem>>, vector<128x128xf32>
    tpu.vector_store %arg18[%c0_80, %c128_81], %90 {strides = array<i32>} : memref<128x512xf32, #tpu.memory_space<vmem>>, vector<128x128xf32>,
    %92 = arith.index_cast %9 : i32 to index
    %c6 = arith.constant 6 : index
    %c6_82 = arith.constant 6 : index
    %c0_83 = arith.constant 0 : index
    %93 = vector.load %arg16[%92, %c6, %c6_82, %c0_83] : memref<2x44x52x128xf32, #tpu.memory_space<vmem>>, vector<1x8x16x128xf32>
    %94 = vector.shape_cast %93 : vector<1x8x16x128xf32> to vector<8x16x128xf32>
    %c0_84 = arith.constant 0 : index
    %c0_85 = arith.constant 0 : index
    %c0_86 = arith.constant 0 : index
    %95 = vector.load %arg17[%c0_84, %c0_85, %c0_86] : memref<8x16x1152xf32, #tpu.memory_space<vmem>>, vector<8x16x128xf32>
    tpu.vector_store %arg17[%c0_84, %c0_85, %c0_86], %94 {strides = array<i32>} : memref<8x16x1152xf32, #tpu.memory_space<vmem>>, vector<8x16x128xf32>,
    %96 = arith.index_cast %9 : i32 to index
    %c6_87 = arith.constant 6 : index
    %c18_88 = arith.constant 18 : index
    %c0_89 = arith.constant 0 : index
    %97 = vector.load %arg16[%96, %c6_87, %c18_88, %c0_89] : memref<2x44x52x128xf32, #tpu.memory_space<vmem>>, vector<1x8x16x128xf32>
    %98 = vector.shape_cast %97 : vector<1x8x16x128xf32> to vector<8x16x128xf32>
    %c0_90 = arith.constant 0 : index
    %c0_91 = arith.constant 0 : index
    %c128_92 = arith.constant 128 : index
    %99 = vector.load %arg17[%c0_90, %c0_91, %c128_92] : memref<8x16x1152xf32, #tpu.memory_space<vmem>>, vector<8x16x128xf32>
    tpu.vector_store %arg17[%c0_90, %c0_91, %c128_92], %98 {strides = array<i32>} : memref<8x16x1152xf32, #tpu.memory_space<vmem>>, vector<8x16x128xf32>,
    %100 = arith.index_cast %9 : i32 to index
    %c6_93 = arith.constant 6 : index
    %c30 = arith.constant 30 : index
    %c0_94 = arith.constant 0 : index
    %101 = vector.load %arg16[%100, %c6_93, %c30, %c0_94] : memref<2x44x52x128xf32, #tpu.memory_space<vmem>>, vector<1x8x16x128xf32>
    %102 = vector.shape_cast %101 : vector<1x8x16x128xf32> to vector<8x16x128xf32>
    %c0_95 = arith.constant 0 : index
    %c0_96 = arith.constant 0 : index
    %c256_97 = arith.constant 256 : index
    %103 = vector.load %arg17[%c0_95, %c0_96, %c256_97] : memref<8x16x1152xf32, #tpu.memory_space<vmem>>, vector<8x16x128xf32>
    tpu.vector_store %arg17[%c0_95, %c0_96, %c256_97], %102 {strides = array<i32>} : memref<8x16x1152xf32, #tpu.memory_space<vmem>>, vector<8x16x128xf32>,
    %104 = arith.index_cast %9 : i32 to index
    %c18_98 = arith.constant 18 : index
    %c6_99 = arith.constant 6 : index
    %c0_100 = arith.constant 0 : index
    %105 = vector.load %arg16[%104, %c18_98, %c6_99, %c0_100] : memref<2x44x52x128xf32, #tpu.memory_space<vmem>>, vector<1x8x16x128xf32>
    %106 = vector.shape_cast %105 : vector<1x8x16x128xf32> to vector<8x16x128xf32>
    %c0_101 = arith.constant 0 : index
    %c0_102 = arith.constant 0 : index
    %c384_103 = arith.constant 384 : index
    %107 = vector.load %arg17[%c0_101, %c0_102, %c384_103] : memref<8x16x1152xf32, #tpu.memory_space<vmem>>, vector<8x16x128xf32>
    tpu.vector_store %arg17[%c0_101, %c0_102, %c384_103], %106 {strides = array<i32>} : memref<8x16x1152xf32, #tpu.memory_space<vmem>>, vector<8x16x128xf32>,
    %108 = arith.index_cast %9 : i32 to index
    %c18_104 = arith.constant 18 : index
    %c30_105 = arith.constant 30 : index
    %c0_106 = arith.constant 0 : index
    %109 = vector.load %arg16[%108, %c18_104, %c30_105, %c0_106] : memref<2x44x52x128xf32, #tpu.memory_space<vmem>>, vector<1x8x16x128xf32>
    %110 = vector.shape_cast %109 : vector<1x8x16x128xf32> to vector<8x16x128xf32>
    %c0_107 = arith.constant 0 : index
    %c0_108 = arith.constant 0 : index
    %c640_109 = arith.constant 640 : index
    %111 = vector.load %arg17[%c0_107, %c0_108, %c640_109] : memref<8x16x1152xf32, #tpu.memory_space<vmem>>, vector<8x16x128xf32>
    tpu.vector_store %arg17[%c0_107, %c0_108, %c640_109], %110 {strides = array<i32>} : memref<8x16x1152xf32, #tpu.memory_space<vmem>>, vector<8x16x128xf32>,
    %112 = arith.index_cast %9 : i32 to index
    %c30_110 = arith.constant 30 : index
    %c6_111 = arith.constant 6 : index
    %c0_112 = arith.constant 0 : index
    %113 = vector.load %arg16[%112, %c30_110, %c6_111, %c0_112] : memref<2x44x52x128xf32, #tpu.memory_space<vmem>>, vector<1x8x16x128xf32>
    %114 = vector.shape_cast %113 : vector<1x8x16x128xf32> to vector<8x16x128xf32>
    %c0_113 = arith.constant 0 : index
    %c0_114 = arith.constant 0 : index
    %c768_115 = arith.constant 768 : index
    %115 = vector.load %arg17[%c0_113, %c0_114, %c768_115] : memref<8x16x1152xf32, #tpu.memory_space<vmem>>, vector<8x16x128xf32>
    tpu.vector_store %arg17[%c0_113, %c0_114, %c768_115], %114 {strides = array<i32>} : memref<8x16x1152xf32, #tpu.memory_space<vmem>>, vector<8x16x128xf32>,
    %116 = arith.index_cast %9 : i32 to index
    %c30_116 = arith.constant 30 : index
    %c18_117 = arith.constant 18 : index
    %c0_118 = arith.constant 0 : index
    %117 = vector.load %arg16[%116, %c30_116, %c18_117, %c0_118] : memref<2x44x52x128xf32, #tpu.memory_space<vmem>>, vector<1x8x16x128xf32>
    %118 = vector.shape_cast %117 : vector<1x8x16x128xf32> to vector<8x16x128xf32>
    %c0_119 = arith.constant 0 : index
    %c0_120 = arith.constant 0 : index
    %c896_121 = arith.constant 896 : index
    %119 = vector.load %arg17[%c0_119, %c0_120, %c896_121] : memref<8x16x1152xf32, #tpu.memory_space<vmem>>, vector<8x16x128xf32>
    tpu.vector_store %arg17[%c0_119, %c0_120, %c896_121], %118 {strides = array<i32>} : memref<8x16x1152xf32, #tpu.memory_space<vmem>>, vector<8x16x128xf32>,
    %120 = arith.index_cast %9 : i32 to index
    %c30_122 = arith.constant 30 : index
    %c30_123 = arith.constant 30 : index
    %c0_124 = arith.constant 0 : index
    %121 = vector.load %arg16[%120, %c30_122, %c30_123, %c0_124] : memref<2x44x52x128xf32, #tpu.memory_space<vmem>>, vector<1x8x16x128xf32>
    %122 = vector.shape_cast %121 : vector<1x8x16x128xf32> to vector<8x16x128xf32>
    %c0_125 = arith.constant 0 : index
    %c0_126 = arith.constant 0 : index
    %c1024_127 = arith.constant 1024 : index
    %123 = vector.load %arg17[%c0_125, %c0_126, %c1024_127] : memref<8x16x1152xf32, #tpu.memory_space<vmem>>, vector<8x16x128xf32>
    tpu.vector_store %arg17[%c0_125, %c0_126, %c1024_127], %122 {strides = array<i32>} : memref<8x16x1152xf32, #tpu.memory_space<vmem>>, vector<8x16x128xf32>,
    %c0_128 = arith.constant 0 : index
    %c0_129 = arith.constant 0 : index
    %c0_130 = arith.constant 0 : index
    %124 = vector.load %arg17[%c0_128, %c0_129, %c0_130] : memref<8x16x1152xf32, #tpu.memory_space<vmem>>, vector<8x16x1152xf32>
    %125 = vector.shape_cast %124 : vector<8x16x1152xf32> to vector<128x1152xf32>
    %c1 = arith.constant 1 : index
    %c0_131 = arith.constant 0 : index
    %c0_132 = arith.constant 0 : index
    %126 = vector.load %arg8[%c1, %c0_131, %c0_132] : memref<3x1152x128xf32, #tpu.memory_space<vmem>>, vector<1x1152x128xf32>
    %127 = vector.shape_cast %126 : vector<1x1152x128xf32> to vector<1152x128xf32>
    %cst_133 = arith.constant dense<0.000000e+00> : vector<128x128xf32>
    %128 = tpu.matmul %125, %127, %cst_133 {dimension_numbers = #tpu.dot_dimension_numbers<[1], [0], [0], [1], [0, 0, 1, 1], [], []>} : vector<128x1152xf32>, vector<1152x128xf32>, vector<128x128xf32> -> vector<128x128xf32>
    %c1_134 = arith.constant 1 : index
    %c0_135 = arith.constant 0 : index
    %129 = vector.load %arg9[%c1_134, %c0_135] : memref<3x128xf32, #tpu.memory_space<vmem>>, vector<1x128xf32>
    %130 = vector.broadcast %129 : vector<1x128xf32> to vector<128x128xf32>
    %131 = arith.addf %128, %130 : vector<128x128xf32>
    %cst_136 = arith.constant 0.000000e+00 : f32
    %132 = vector.broadcast %cst_136 : f32 to vector<128x128xf32>
    %133 = arith.maximumf %131, %132 : vector<128x128xf32>
    %c1_137 = arith.constant 1 : index
    %c0_138 = arith.constant 0 : index
    %134 = vector.load %arg10[%c1_137, %c0_138] : memref<3x128xf32, #tpu.memory_space<vmem>>, vector<1x128xf32>
    %135 = vector.broadcast %134 : vector<1x128xf32> to vector<128x128xf32>
    %136 = arith.mulf %133, %135 : vector<128x128xf32>
    %c1_139 = arith.constant 1 : index
    %c0_140 = arith.constant 0 : index
    %137 = vector.load %arg11[%c1_139, %c0_140] : memref<3x128xf32, #tpu.memory_space<vmem>>, vector<1x128xf32>
    %138 = vector.broadcast %137 : vector<1x128xf32> to vector<128x128xf32>
    %139 = arith.addf %136, %138 : vector<128x128xf32>
    %c0_141 = arith.constant 0 : index
    %c256_142 = arith.constant 256 : index
    %140 = vector.load %arg18[%c0_141, %c256_142] : memref<128x512xf32, #tpu.memory_space<vmem>>, vector<128x128xf32>
    tpu.vector_store %arg18[%c0_141, %c256_142], %139 {strides = array<i32>} : memref<128x512xf32, #tpu.memory_space<vmem>>, vector<128x128xf32>,
    %141 = arith.index_cast %9 : i32 to index
    %c0_143 = arith.constant 0 : index
    %c0_144 = arith.constant 0 : index
    %c0_145 = arith.constant 0 : index
    %142 = vector.load %arg16[%141, %c0_143, %c0_144, %c0_145] : memref<2x44x52x128xf32, #tpu.memory_space<vmem>>, vector<1x8x16x128xf32>
    %143 = vector.shape_cast %142 : vector<1x8x16x128xf32> to vector<8x16x128xf32>
    %c0_146 = arith.constant 0 : index
    %c0_147 = arith.constant 0 : index
    %c0_148 = arith.constant 0 : index
    %144 = vector.load %arg17[%c0_146, %c0_147, %c0_148] : memref<8x16x1152xf32, #tpu.memory_space<vmem>>, vector<8x16x128xf32>
    tpu.vector_store %arg17[%c0_146, %c0_147, %c0_148], %143 {strides = array<i32>} : memref<8x16x1152xf32, #tpu.memory_space<vmem>>, vector<8x16x128xf32>,
    %145 = arith.index_cast %9 : i32 to index
    %c0_149 = arith.constant 0 : index
    %c18_150 = arith.constant 18 : index
    %c0_151 = arith.constant 0 : index
    %146 = vector.load %arg16[%145, %c0_149, %c18_150, %c0_151] : memref<2x44x52x128xf32, #tpu.memory_space<vmem>>, vector<1x8x16x128xf32>
    %147 = vector.shape_cast %146 : vector<1x8x16x128xf32> to vector<8x16x128xf32>
    %c0_152 = arith.constant 0 : index
    %c0_153 = arith.constant 0 : index
    %c128_154 = arith.constant 128 : index
    %148 = vector.load %arg17[%c0_152, %c0_153, %c128_154] : memref<8x16x1152xf32, #tpu.memory_space<vmem>>, vector<8x16x128xf32>
    tpu.vector_store %arg17[%c0_152, %c0_153, %c128_154], %147 {strides = array<i32>} : memref<8x16x1152xf32, #tpu.memory_space<vmem>>, vector<8x16x128xf32>,
    %149 = arith.index_cast %9 : i32 to index
    %c0_155 = arith.constant 0 : index
    %c36 = arith.constant 36 : index
    %c0_156 = arith.constant 0 : index
    %150 = vector.load %arg16[%149, %c0_155, %c36, %c0_156] : memref<2x44x52x128xf32, #tpu.memory_space<vmem>>, vector<1x8x16x128xf32>
    %151 = vector.shape_cast %150 : vector<1x8x16x128xf32> to vector<8x16x128xf32>
    %c0_157 = arith.constant 0 : index
    %c0_158 = arith.constant 0 : index
    %c256_159 = arith.constant 256 : index
    %152 = vector.load %arg17[%c0_157, %c0_158, %c256_159] : memref<8x16x1152xf32, #tpu.memory_space<vmem>>, vector<8x16x128xf32>
    tpu.vector_store %arg17[%c0_157, %c0_158, %c256_159], %151 {strides = array<i32>} : memref<8x16x1152xf32, #tpu.memory_space<vmem>>, vector<8x16x128xf32>,
    %153 = arith.index_cast %9 : i32 to index
    %c18_160 = arith.constant 18 : index
    %c0_161 = arith.constant 0 : index
    %c0_162 = arith.constant 0 : index
    %154 = vector.load %arg16[%153, %c18_160, %c0_161, %c0_162] : memref<2x44x52x128xf32, #tpu.memory_space<vmem>>, vector<1x8x16x128xf32>
    %155 = vector.shape_cast %154 : vector<1x8x16x128xf32> to vector<8x16x128xf32>
    %c0_163 = arith.constant 0 : index
    %c0_164 = arith.constant 0 : index
    %c384_165 = arith.constant 384 : index
    %156 = vector.load %arg17[%c0_163, %c0_164, %c384_165] : memref<8x16x1152xf32, #tpu.memory_space<vmem>>, vector<8x16x128xf32>
    tpu.vector_store %arg17[%c0_163, %c0_164, %c384_165], %155 {strides = array<i32>} : memref<8x16x1152xf32, #tpu.memory_space<vmem>>, vector<8x16x128xf32>,
    %157 = arith.index_cast %9 : i32 to index
    %c18_166 = arith.constant 18 : index
    %c36_167 = arith.constant 36 : index
    %c0_168 = arith.constant 0 : index
    %158 = vector.load %arg16[%157, %c18_166, %c36_167, %c0_168] : memref<2x44x52x128xf32, #tpu.memory_space<vmem>>, vector<1x8x16x128xf32>
    %159 = vector.shape_cast %158 : vector<1x8x16x128xf32> to vector<8x16x128xf32>
    %c0_169 = arith.constant 0 : index
    %c0_170 = arith.constant 0 : index
    %c640_171 = arith.constant 640 : index
    %160 = vector.load %arg17[%c0_169, %c0_170, %c640_171] : memref<8x16x1152xf32, #tpu.memory_space<vmem>>, vector<8x16x128xf32>
    tpu.vector_store %arg17[%c0_169, %c0_170, %c640_171], %159 {strides = array<i32>} : memref<8x16x1152xf32, #tpu.memory_space<vmem>>, vector<8x16x128xf32>,
    %161 = arith.index_cast %9 : i32 to index
    %c36_172 = arith.constant 36 : index
    %c0_173 = arith.constant 0 : index
    %c0_174 = arith.constant 0 : index
    %162 = vector.load %arg16[%161, %c36_172, %c0_173, %c0_174] : memref<2x44x52x128xf32, #tpu.memory_space<vmem>>, vector<1x8x16x128xf32>
    %163 = vector.shape_cast %162 : vector<1x8x16x128xf32> to vector<8x16x128xf32>
    %c0_175 = arith.constant 0 : index
    %c0_176 = arith.constant 0 : index
    %c768_177 = arith.constant 768 : index
    %164 = vector.load %arg17[%c0_175, %c0_176, %c768_177] : memref<8x16x1152xf32, #tpu.memory_space<vmem>>, vector<8x16x128xf32>
    tpu.vector_store %arg17[%c0_175, %c0_176, %c768_177], %163 {strides = array<i32>} : memref<8x16x1152xf32, #tpu.memory_space<vmem>>, vector<8x16x128xf32>,
    %165 = arith.index_cast %9 : i32 to index
    %c36_178 = arith.constant 36 : index
    %c18_179 = arith.constant 18 : index
    %c0_180 = arith.constant 0 : index
    %166 = vector.load %arg16[%165, %c36_178, %c18_179, %c0_180] : memref<2x44x52x128xf32, #tpu.memory_space<vmem>>, vector<1x8x16x128xf32>
    %167 = vector.shape_cast %166 : vector<1x8x16x128xf32> to vector<8x16x128xf32>
    %c0_181 = arith.constant 0 : index
    %c0_182 = arith.constant 0 : index
    %c896_183 = arith.constant 896 : index
    %168 = vector.load %arg17[%c0_181, %c0_182, %c896_183] : memref<8x16x1152xf32, #tpu.memory_space<vmem>>, vector<8x16x128xf32>
    tpu.vector_store %arg17[%c0_181, %c0_182, %c896_183], %167 {strides = array<i32>} : memref<8x16x1152xf32, #tpu.memory_space<vmem>>, vector<8x16x128xf32>,
    %169 = arith.index_cast %9 : i32 to index
    %c36_184 = arith.constant 36 : index
    %c36_185 = arith.constant 36 : index
    %c0_186 = arith.constant 0 : index
    %170 = vector.load %arg16[%169, %c36_184, %c36_185, %c0_186] : memref<2x44x52x128xf32, #tpu.memory_space<vmem>>, vector<1x8x16x128xf32>
    %171 = vector.shape_cast %170 : vector<1x8x16x128xf32> to vector<8x16x128xf32>
    %c0_187 = arith.constant 0 : index
    %c0_188 = arith.constant 0 : index
    %c1024_189 = arith.constant 1024 : index
    %172 = vector.load %arg17[%c0_187, %c0_188, %c1024_189] : memref<8x16x1152xf32, #tpu.memory_space<vmem>>, vector<8x16x128xf32>
    tpu.vector_store %arg17[%c0_187, %c0_188, %c1024_189], %171 {strides = array<i32>} : memref<8x16x1152xf32, #tpu.memory_space<vmem>>, vector<8x16x128xf32>,
    %c0_190 = arith.constant 0 : index
    %c0_191 = arith.constant 0 : index
    %c0_192 = arith.constant 0 : index
    %173 = vector.load %arg17[%c0_190, %c0_191, %c0_192] : memref<8x16x1152xf32, #tpu.memory_space<vmem>>, vector<8x16x1152xf32>
    %174 = vector.shape_cast %173 : vector<8x16x1152xf32> to vector<128x1152xf32>
    %c2 = arith.constant 2 : index
    %c0_193 = arith.constant 0 : index
    %c0_194 = arith.constant 0 : index
    %175 = vector.load %arg8[%c2, %c0_193, %c0_194] : memref<3x1152x128xf32, #tpu.memory_space<vmem>>, vector<1x1152x128xf32>
    %176 = vector.shape_cast %175 : vector<1x1152x128xf32> to vector<1152x128xf32>
    %cst_195 = arith.constant dense<0.000000e+00> : vector<128x128xf32>
    %177 = tpu.matmul %174, %176, %cst_195 {dimension_numbers = #tpu.dot_dimension_numbers<[1], [0], [0], [1], [0, 0, 1, 1], [], []>} : vector<128x1152xf32>, vector<1152x128xf32>, vector<128x128xf32> -> vector<128x128xf32>
    %c2_196 = arith.constant 2 : index
    %c0_197 = arith.constant 0 : index
    %178 = vector.load %arg9[%c2_196, %c0_197] : memref<3x128xf32, #tpu.memory_space<vmem>>, vector<1x128xf32>
    %179 = vector.broadcast %178 : vector<1x128xf32> to vector<128x128xf32>
    %180 = arith.addf %177, %179 : vector<128x128xf32>
    %cst_198 = arith.constant 0.000000e+00 : f32
    %181 = vector.broadcast %cst_198 : f32 to vector<128x128xf32>
    %182 = arith.maximumf %180, %181 : vector<128x128xf32>
    %c2_199 = arith.constant 2 : index
    %c0_200 = arith.constant 0 : index
    %183 = vector.load %arg10[%c2_199, %c0_200] : memref<3x128xf32, #tpu.memory_space<vmem>>, vector<1x128xf32>
    %184 = vector.broadcast %183 : vector<1x128xf32> to vector<128x128xf32>
    %185 = arith.mulf %182, %184 : vector<128x128xf32>
    %c2_201 = arith.constant 2 : index
    %c0_202 = arith.constant 0 : index
    %186 = vector.load %arg11[%c2_201, %c0_202] : memref<3x128xf32, #tpu.memory_space<vmem>>, vector<1x128xf32>
    %187 = vector.broadcast %186 : vector<1x128xf32> to vector<128x128xf32>
    %188 = arith.addf %185, %187 : vector<128x128xf32>
    %c0_203 = arith.constant 0 : index
    %c384_204 = arith.constant 384 : index
    %189 = vector.load %arg18[%c0_203, %c384_204] : memref<128x512xf32, #tpu.memory_space<vmem>>, vector<128x128xf32>
    tpu.vector_store %arg18[%c0_203, %c384_204], %188 {strides = array<i32>} : memref<128x512xf32, #tpu.memory_space<vmem>>, vector<128x128xf32>,
    %c0_205 = arith.constant 0 : index
    %c0_206 = arith.constant 0 : index
    %190 = vector.load %arg18[%c0_205, %c0_206] : memref<128x512xf32, #tpu.memory_space<vmem>>, vector<128x512xf32>
    %c0_207 = arith.constant 0 : index
    %c0_208 = arith.constant 0 : index
    %191 = vector.load %arg12[%c0_207, %c0_208] : memref<512x128xf32, #tpu.memory_space<vmem>>, vector<512x128xf32>
    %cst_209 = arith.constant dense<0.000000e+00> : vector<128x128xf32>
    %192 = tpu.matmul %190, %191, %cst_209 {dimension_numbers = #tpu.dot_dimension_numbers<[1], [0], [0], [1], [0, 0, 1, 1], [], []>} : vector<128x512xf32>, vector<512x128xf32>, vector<128x128xf32> -> vector<128x128xf32>
    %c0_210 = arith.constant 0 : index
    %c0_211 = arith.constant 0 : index
    %c0_212 = arith.constant 0 : index
    %193 = vector.load %arg2[%c0_210, %c0_211, %c0_212] : memref<1x1x128xf32, #tpu.memory_space<vmem>>, vector<1x1x128xf32>
    %194 = vector.shape_cast %193 : vector<1x1x128xf32> to vector<1x128xf32>
    %195 = vector.broadcast %194 : vector<1x128xf32> to vector<128x128xf32>
    %196 = arith.addf %192, %195 : vector<128x128xf32>
    %cst_213 = arith.constant 0.000000e+00 : f32
    %197 = vector.broadcast %cst_213 : f32 to vector<128x128xf32>
    %198 = arith.maximumf %196, %197 : vector<128x128xf32>
    %c0_214 = arith.constant 0 : index
    %c0_215 = arith.constant 0 : index
    %199 = vector.load %arg13[%c0_214, %c0_215] : memref<1x128xf32, #tpu.memory_space<vmem>>, vector<1x128xf32>
    %200 = vector.broadcast %199 : vector<1x128xf32> to vector<128x128xf32>
    %201 = arith.mulf %198, %200 : vector<128x128xf32>
    %c0_216 = arith.constant 0 : index
    %c0_217 = arith.constant 0 : index
    %202 = vector.load %arg14[%c0_216, %c0_217] : memref<1x128xf32, #tpu.memory_space<vmem>>, vector<1x128xf32>
    %203 = vector.broadcast %202 : vector<1x128xf32> to vector<128x128xf32>
    %204 = arith.addf %201, %203 : vector<128x128xf32>
    %c0_218 = arith.constant 0 : index
    %c0_219 = arith.constant 0 : index
    %c0_220 = arith.constant 0 : index
    %c0_221 = arith.constant 0 : index
    %205 = vector.load %arg15[%c0_218, %c0_219, %c0_220, %c0_221] : memref<1x1x128x128xf32, #tpu.memory_space<vmem>>, vector<1x1x128x128xf32>
    %206 = vector.shape_cast %205 : vector<1x1x128x128xf32> to vector<128x128xf32>
    %207 = vector.shape_cast %204 : vector<128x128xf32> to vector<1x1x128x128xf32>
    tpu.vector_store %arg15[%c0_218, %c0_219, %c0_220, %c0_221], %207 {strides = array<i32>} : memref<1x1x128x128xf32, #tpu.memory_space<vmem>>, vector<1x1x128x128xf32>,
    return
  }
  func.func @transform_0(%arg0: i32, %arg1: i32) -> (i32, i32, i32) {
    %c0_i32 = arith.constant 0 : i32
    %c0_i32_0 = arith.constant 0 : i32
    %c0_i32_1 = arith.constant 0 : i32
    return %arg0, %c0_i32, %c0_i32_0 : i32, i32, i32
  }
  func.func @transform_2(%arg0: i32, %arg1: i32) -> (i32, i32) {
    %c0_i32 = arith.constant 0 : i32
    %c0_i32_0 = arith.constant 0 : i32
    %c0_i32_1 = arith.constant 0 : i32
    return %c0_i32, %c0_i32_0 : i32, i32
  }
  func.func @transform_3(%arg0: i32, %arg1: i32) -> (i32, i32) {
    %c0_i32 = arith.constant 0 : i32
    %c0_i32_0 = arith.constant 0 : i32
    %c0_i32_1 = arith.constant 0 : i32
    return %c0_i32, %c0_i32_0 : i32, i32
  }
  func.func @transform_4(%arg0: i32, %arg1: i32) -> (i32, i32) {
    %c0_i32 = arith.constant 0 : i32
    %c0_i32_0 = arith.constant 0 : i32
    %c0_i32_1 = arith.constant 0 : i32
    return %c0_i32, %c0_i32_0 : i32, i32
  }
  func.func @transform_5(%arg0: i32, %arg1: i32) -> (i32, i32) {
    %c0_i32 = arith.constant 0 : i32
    %c0_i32_0 = arith.constant 0 : i32
    %c0_i32_1 = arith.constant 0 : i32
    return %c0_i32, %c0_i32_0 : i32, i32
  }
  func.func @transform_6(%arg0: i32, %arg1: i32) -> (i32, i32, i32) {
    %c0_i32 = arith.constant 0 : i32
    %c0_i32_0 = arith.constant 0 : i32
    %c0_i32_1 = arith.constant 0 : i32
    %c0_i32_2 = arith.constant 0 : i32
    return %c0_i32, %c0_i32_0, %c0_i32_1 : i32, i32, i32
  }
  func.func @transform_7(%arg0: i32, %arg1: i32) -> (i32, i32) {
    %c0_i32 = arith.constant 0 : i32
    %c0_i32_0 = arith.constant 0 : i32
    %c0_i32_1 = arith.constant 0 : i32
    return %c0_i32, %c0_i32_0 : i32, i32
  }
  func.func @transform_8(%arg0: i32, %arg1: i32) -> (i32, i32) {
    %c0_i32 = arith.constant 0 : i32
    %c0_i32_0 = arith.constant 0 : i32
    %c0_i32_1 = arith.constant 0 : i32
    return %c0_i32, %c0_i32_0 : i32, i32
  }
  func.func @transform_9(%arg0: i32, %arg1: i32) -> (i32, i32) {
    %c0_i32 = arith.constant 0 : i32
    %c0_i32_0 = arith.constant 0 : i32
    %c0_i32_1 = arith.constant 0 : i32
    return %c0_i32, %c0_i32_0 : i32, i32
  }
  func.func @transform_10(%arg0: i32, %arg1: i32) -> (i32, i32) {
    %c0_i32 = arith.constant 0 : i32
    %c0_i32_0 = arith.constant 0 : i32
    %c0_i32_1 = arith.constant 0 : i32
    return %c0_i32, %c0_i32_0 : i32, i32
  }
  func.func @transform_11(%arg0: i32, %arg1: i32) -> (i32, i32) {
    %c0_i32 = arith.constant 0 : i32
    %c0_i32_0 = arith.constant 0 : i32
    %c0_i32_1 = arith.constant 0 : i32
    return %c0_i32, %c0_i32_0 : i32, i32
  }
  func.func @transform_12(%arg0: i32, %arg1: i32) -> (i32, i32) {
    %c0_i32 = arith.constant 0 : i32
    %c0_i32_0 = arith.constant 0 : i32
    %c0_i32_1 = arith.constant 0 : i32
    return %c0_i32, %c0_i32_0 : i32, i32
  }
  func.func @transform_13(%arg0: i32, %arg1: i32) -> (i32, i32, i32, i32) {
    %c0_i32 = arith.constant 0 : i32
    %c0_i32_0 = arith.constant 0 : i32
    %c0_i32_1 = arith.constant 0 : i32
    return %arg0, %arg1, %c0_i32, %c0_i32_0 : i32, i32, i32, i32
  }
}

</mosaic_0001>

<bundles_post_ra>
// kernel: tpu_custom_call.1
= control target key start
LH: loop header
LB: loop body
LE: loop exit
PB: predicated region body
PF: predicated region fallthrough
CT: control target
= control target key end

     0   :  { %s14072_s0 = inlined_call_operand.vmem [shape: f32[2,1,128], index: 0, kind: input, shape index: {}]   ;;  %s14073_s1 = inlined_call_operand.vmem [shape: f32[2,52,52,128], index: 1, kind: input, shape index: {}]   ;;  %s14074_s2 = inlined_call_operand.vmem [shape: f32[128,128], index: 2, kind: input, shape index: {}]   ;;  %s14075_s3 = inlined_call_operand.vmem [shape: f32[1,128], index: 3, kind: input, shape index: {}]   ;;  %s14076_s4 = inlined_call_operand.vmem [shape: f32[1,128], index: 4, kind: input, shape index: {}]   ;;  %s14077_s5 = inlined_call_operand.vmem [shape: f32[1,128], index: 5, kind: input, shape index: {}]   ;;  %s14078_s6 = inlined_call_operand.vmem [shape: f32[3,1152,128], index: 6, kind: input, shape index: {}]   ;;  %s14079_s7 = inlined_call_operand.vmem [shape: f32[3,128], index: 7, kind: input, shape index: {}]   ;;  %s14080_s8 = inlined_call_operand.vmem [shape: f32[3,128], index: 8, kind: input, shape index: {}]   ;;  %s14081_s9 = inlined_call_operand.vmem [shape: f32[3,128], index: 9, kind: input, shape index: {}]   ;;  %s14082_s10 = inlined_call_operand.vmem [shape: f32[512,128], index: 10, kind: input, shape index: {}]   ;;  %s14083_s11 = inlined_call_operand.vmem [shape: f32[1,128], index: 11, kind: input, shape index: {}]   ;;  %s14084_s12 = inlined_call_operand.vmem [shape: f32[1,128], index: 12, kind: input, shape index: {}]   ;;  %s14085_s13 = inlined_call_operand.hbm [shape: f32[2,2,128,128], index: 13, kind: output, shape index: {}]  }
   0x1   :  { %14099 = sst [smem:[#allocation72_spill]] %s14085_s13 }
   0x2   :  { %18 = vsyncpa [#allocation7], 0 }
   0x3   :  { %20 = vsyncpa [#allocation7 + $0x1], 0  ;;  %s9844_s25 = smov 0   ;;  %s9846_s26 = smov 0  }
   0x4   :  { %s9848_s27 = smov 0   ;;  %s9850_s28 = smov 0  }
   0x5   :  { %s9852_s29 = smov 0   ;;  %s9854_s30 = smov 0  }
   0x6   :  { %s9856_s14 = smov 0   ;;  %s9858_s15 = smov 0  }
   0x7 LB: > { %14100 = sst [smem:[#allocation12_spill]] %s9741_s25  ;;  %s6980_s16 = sadd.s32 4294967295, %s9769_s15   ;;  %s9769_s15 = sphi %s9858_s15, %s26_s15   ;;  %s9765_s14 = sphi %s9856_s14, %s14237_s14   ;;  %s9761_s30 = sphi %s9854_s30, %s14236_s30   ;;  %s9757_s29 = sphi %s9852_s29, %s14235_s29   ;;  %s9753_s28 = sphi %s9850_s28, %s14234_s28   ;;  %s9749_s27 = sphi %s9848_s27, %s14233_s27   ;;  %s9745_s26 = sphi %s9846_s26, %s14239_s26   ;;  %s9741_s25 = sphi %s9844_s25, %s14238_s25  }
   0x8   : > { %14101 = sst [smem:[#allocation13_spill]] %s9749_s27  ;;  %s6981_s17 = sadd.s32 4294967294, %s9769_s15  }
   0x9   : > { %14102 = sst [smem:[#allocation14_spill]] %s9761_s30  ;;  %s35_s18 = sadd.s32 1, %s9761_s30 }
   0xa   : > { %14103 = sst [smem:[#allocation15_spill]] %s9765_s14  ;;  %p36_p0 = scmp.ge.s32.totalorder %s35_s18, 2 }
   0xb   : > { %14104 = sst [smem:[#allocation16_spill]] %s9769_s15  ;;  %s38_s19 = sadd.s32 1, %s9765_s14 }
   0xc   : > { %p314_p1 = scmp.ne.s32.totalorder %s9749_s27, %s9745_s26  ;;  %p315_p2 = scmp.eq.s32.totalorder %s6980_s16, 3 }
   0xd   : > { %s14241_s18 = smov (%p36_p0, %s35_s18), 0  ;;  %s14243_s19 = smov (!%p36_p0, %s38_s19), %s9765_s14 }
   0xe   : > { %14105 = sst [smem:[#allocation17_spill]] %s14241_s18  ;;  %s300_s20 = ssub.s32 %s9761_s30, %s14241_s18 }
   0xf   : > { %p9895_p3 = por %p315_p2, %p314_p1  ;;  %p40_p4 = scmp.ge.s32.totalorder %s14243_s19, 2 }
  0x10   : > { %p320_p5 = scmp.ne.s32.totalorder %s9745_s26, %s9741_s25  ;;  %p321_p6 = scmp.eq.s32.totalorder %s6981_s17, 3 }
  0x11   : > { %s14106_s21 = scalar_select %p9895_p3, 1, 0 }
  0x12   : > { %p6984_p7 = scmp.ge.s32.totalorder %s9769_s15, 1  ;;  %s14245_s19 = smov (%p40_p4, %s14243_s19), 0 }
  0x13   : > { %14107 = sst [smem:[#allocation18_spill]] %s14106_s21  ;;  %p9904_p8 = por %p321_p6, %p320_p5 }
  0x14   : > { %14108 = sst [smem:[#allocation19_spill]] %s14245_s19  ;;  %p378_p9 = scmp.lt.s32.totalorder %s9769_s15, 5 }
  0x15   : > { %s14109_s22 = scalar_select %p9904_p8, 1, 0 }
  0x16   : > { %s299_s23 = ssub.s32 %s9765_s14, %s14245_s19  ;;  %s304_s24 = sadd.s32 1, %s9749_s27 }
  0x17   : > { %14110 = sst [smem:[#allocation20_spill]] %s14109_s22  ;;  %s301_s16 = sor.u32 %s300_s20, %s299_s23 }
  0x18   : > { %p379_p10 = pnand %p6984_p7, %p378_p9  ;;  %p302_p11 = scmp.eq.s32.totalorder %s301_s16, 0 }
  0x1a   : > { %s9913_s18 = scalar_select %p302_p11, %s9749_s27, %s304_s24  }
  0x1b   : > { %382 = sbr.rel (%p379_p10) target bundleno = 1338 (0x53a), region = 68 }
  0x1c   : > { %14111 = sst [smem:[#allocation21_spill]] %s9913_s18 }
  0x20   : > { %s14093_s17 = sand.u32 1, %s9745_s26   ;;  %p418_p12 = scmp.lt.s32.totalorder %s9757_s29, 1 }
  0x21   : > { %s6985_s30 = sshll.u32 %s14093_s17, 7  ;;  %p421_p13 = scmp.lt.s32.totalorder %s9753_s28, 0 }
  0x22   : > { %s422_s19 = ssub.s32 0, %s9753_s28  ;;  %s9931_s25 = scalar_lea.vmem [#allocation6], %s6985_s30 }
  0x23   : > { %s9922_s14 = scalar_select %p418_p12, %s9757_s29, 1 }
  0x24   : > { %s6986_s20 = smin.u32 %s9753_s28, %s422_s19  ;;  %p6989_p1 = scmp.ne.s32.totalorder %s9753_s28, 0 }
  0x25   : > { %s424_s18 = sand.u32 1, %s6986_s20   ;;  %s437_s17 = smul.u32 (!%p6989_p1), 2912, %s9757_s29 }
  0x26   : > { %s425_s27 = ssub.s32 0, %s424_s18  ;;  %436 = sbr.rel (%p6989_p1) target bundleno = 206 (0xce), region = 72 }
  0x27   : > { %s14247_s27 = smov (!%p421_p13, %s425_s27), %s424_s18  ;;  %s9938_s13 = scalar_lea.vmem (!%p6989_p1), %s14073_s1, %s437_s17 }
  0x28   : > { %p6988_p0 = scmp.lt.s32.totalorder %s14247_s27, 0  ;;  %s431_s22 = sadd.s32 2, %s14247_s27 }
  0x2a   : > { %s14249_s22 = smov (!%p6988_p0, %s431_s22), %s14247_s27 }
  0x2b   : > { %v563_v0 = vld [vmem:[%s9938_s13] sm:$0xff]  ;;  %v565_v1 = vld [vmem:[%s9938_s13 + $0x8] sm:$0xff]  ;;  %v567_v2 = vld [vmem:[%s9938_s13 + $0x10] sm:$0xff] }
  0x2c   : > { %564 = vst [vmem:[#allocation2] sm:$0xff] %v563_v0  ;;  %566 = vst [vmem:[#allocation2 + $0x8] sm:$0xff] %v565_v1  ;;  %v569_v3 = vld [vmem:[%s9938_s13 + $0x18] sm:$0xff]  ;;  %v571_v4 = vld [vmem:[%s9938_s13 + $0x20] sm:$0xff] }
  0x2d   : > { %568 = vst [vmem:[#allocation2 + $0x10] sm:$0xff] %v567_v2  ;;  %v573_v5 = vld [vmem:[%s9938_s13 + $0x28] sm:$0xff]  ;;  %570 = vst [vmem:[#allocation2 + $0x18] sm:$0xff] %v569_v3  ;;  %v575_v6 = vld [vmem:[%s9938_s13 + $0x38] sm:$0xff] }
  0x2e   : > { %572 = vst [vmem:[#allocation2 + $0x20] sm:$0xff] %v571_v4  ;;  %574 = vst [vmem:[#allocation2 + $0x28] sm:$0xff] %v573_v5  ;;  %v577_v7 = vld [vmem:[%s9938_s13 + $0x40] sm:$0xff]  ;;  %v579_v8 = vld [vmem:[%s9938_s13 + $0x48] sm:$0xff] }
  0x2f   : > { %576 = vst [vmem:[#allocation2 + $0x38] sm:$0xff] %v575_v6  ;;  %578 = vst [vmem:[#allocation2 + $0x40] sm:$0xff] %v577_v7  ;;  %v581_v9 = vld [vmem:[%s9938_s13 + $0x50] sm:$0xff]  ;;  %v583_v10 = vld [vmem:[%s9938_s13 + $0x58] sm:$0xff] }
  0x30   : > { %580 = vst [vmem:[#allocation2 + $0x48] sm:$0xff] %v579_v8  ;;  %v585_v11 = vld [vmem:[%s9938_s13 + $0x60] sm:$0xff]  ;;  %582 = vst [vmem:[#allocation2 + $0x50] sm:$0xff] %v581_v9  ;;  %v587_v12 = vld [vmem:[%s9938_s13 + $0x70] sm:$0xff] }
  0x31   : > { %584 = vst [vmem:[#allocation2 + $0x58] sm:$0xff] %v583_v10  ;;  %586 = vst [vmem:[#allocation2 + $0x60] sm:$0xff] %v585_v11  ;;  %v589_v13 = vld [vmem:[%s9938_s13 + $0x78] sm:$0xff]  ;;  %v591_v14 = vld [vmem:[%s9938_s13 + $0x80] sm:$0xff] }
  0x32   : > { %588 = vst [vmem:[#allocation2 + $0x70] sm:$0xff] %v587_v12  ;;  %590 = vst [vmem:[#allocation2 + $0x78] sm:$0xff] %v589_v13  ;;  %v593_v15 = vld [vmem:[%s9938_s13 + $0x88] sm:$0xff]  ;;  %v595_v16 = vld [vmem:[%s9938_s13 + $0x90] sm:$0xff] }
  0x33   : > { %592 = vst [vmem:[#allocation2 + $0x80] sm:$0xff] %v591_v14  ;;  %v597_v17 = vld [vmem:[%s9938_s13 + $0x98] sm:$0xff]  ;;  %594 = vst [vmem:[#allocation2 + $0x88] sm:$0xff] %v593_v15  ;;  %v599_v18 = vld [vmem:[%s9938_s13 + $0xa8] sm:$0xff] }
  0x34   : > { %596 = vst [vmem:[#allocation2 + $0x90] sm:$0xff] %v595_v16  ;;  %598 = vst [vmem:[#allocation2 + $0x98] sm:$0xff] %v597_v17  ;;  %v601_v19 = vld [vmem:[%s9938_s13 + $0xb0] sm:$0xff]  ;;  %v603_v20 = vld [vmem:[%s9938_s13 + $0xb8] sm:$0xff] }
  0x35   : > { %600 = vst [vmem:[#allocation2 + $0xa8] sm:$0xff] %v599_v18  ;;  %602 = vst [vmem:[#allocation2 + $0xb0] sm:$0xff] %v601_v19  ;;  %v605_v21 = vld [vmem:[%s9938_s13 + $0xc0] sm:$0xff]  ;;  %v607_v22 = vld [vmem:[%s9938_s13 + $0xc8] sm:$0xff] }
  0x36   : > { %604 = vst [vmem:[#allocation2 + $0xb8] sm:$0xff] %v603_v20  ;;  %v609_v23 = vld [vmem:[%s9938_s13 + $0xd0] sm:$0xff]  ;;  %606 = vst [vmem:[#allocation2 + $0xc0] sm:$0xff] %v605_v21  ;;  %v611_v24 = vld [vmem:[%s9938_s13 + $0xe0] sm:$0xff] }
  0x37   : > { %608 = vst [vmem:[#allocation2 + $0xc8] sm:$0xff] %v607_v22  ;;  %610 = vst [vmem:[#allocation2 + $0xd0] sm:$0xff] %v609_v23  ;;  %v613_v25 = vld [vmem:[%s9938_s13 + $0xe8] sm:$0xff]  ;;  %v615_v26 = vld [vmem:[%s9938_s13 + $0xf0] sm:$0xff] }
  0x38   : > { %612 = vst [vmem:[#allocation2 + $0xe0] sm:$0xff] %v611_v24  ;;  %614 = vst [vmem:[#allocation2 + $0xe8] sm:$0xff] %v613_v25  ;;  %v617_v27 = vld [vmem:[%s9938_s13 + $0xf8] sm:$0xff]  ;;  %v619_v28 = vld [vmem:[%s9938_s13 + $0x100] sm:$0xff] }
  0x39   : > { %616 = vst [vmem:[#allocation2 + $0xf0] sm:$0xff] %v615_v26  ;;  %v621_v29 = vld [vmem:[%s9938_s13 + $0x108] sm:$0xff]  ;;  %618 = vst [vmem:[#allocation2 + $0xf8] sm:$0xff] %v617_v27  ;;  %v623_v30 = vld [vmem:[%s9938_s13 + $0x118] sm:$0xff] }
  0x3a   : > { %620 = vst [vmem:[#allocation2 + $0x100] sm:$0xff] %v619_v28  ;;  %622 = vst [vmem:[#allocation2 + $0x108] sm:$0xff] %v621_v29  ;;  %v625_v31 = vld [vmem:[%s9938_s13 + $0x120] sm:$0xff]  ;;  %v627_v32 = vld [vmem:[%s9938_s13 + $0x128] sm:$0xff] }
  0x3b   : > { %624 = vst [vmem:[#allocation2 + $0x118] sm:$0xff] %v623_v30  ;;  %626 = vst [vmem:[#allocation2 + $0x120] sm:$0xff] %v625_v31  ;;  %v629_v33 = vld [vmem:[%s9938_s13 + $0x130] sm:$0xff]  ;;  %v631_v34 = vld [vmem:[%s9938_s13 + $0x138] sm:$0xff] }
  0x3c   : > { %628 = vst [vmem:[#allocation2 + $0x128] sm:$0xff] %v627_v32  ;;  %v633_v35 = vld [vmem:[%s9938_s13 + $0x140] sm:$0xff]  ;;  %630 = vst [vmem:[#allocation2 + $0x130] sm:$0xff] %v629_v33  ;;  %v635_v36 = vld [vmem:[%s9938_s13 + $0x150] sm:$0xff] }
  0x3d   : > { %632 = vst [vmem:[#allocation2 + $0x138] sm:$0xff] %v631_v34  ;;  %634 = vst [vmem:[#allocation2 + $0x140] sm:$0xff] %v633_v35  ;;  %v637_v37 = vld [vmem:[%s9938_s13 + $0x158] sm:$0xff]  ;;  %v639_v38 = vld [vmem:[%s9938_s13 + $0x160] sm:$0xff] }
  0x3e   : > { %636 = vst [vmem:[#allocation2 + $0x150] sm:$0xff] %v635_v36  ;;  %638 = vst [vmem:[#allocation2 + $0x158] sm:$0xff] %v637_v37  ;;  %v641_v39 = vld [vmem:[%s9938_s13 + $0x168] sm:$0xff]  ;;  %v643_v40 = vld [vmem:[%s9938_s13 + $0x170] sm:$0xff] }
  0x3f   : > { %640 = vst [vmem:[#allocation2 + $0x160] sm:$0xff] %v639_v38  ;;  %v645_v41 = vld [vmem:[%s9938_s13 + $0x178] sm:$0xff]  ;;  %642 = vst [vmem:[#allocation2 + $0x168] sm:$0xff] %v641_v39  ;;  %v647_v42 = vld [vmem:[%s9938_s13 + $0x188] sm:$0xff] }
  0x40   : > { %644 = vst [vmem:[#allocation2 + $0x170] sm:$0xff] %v643_v40  ;;  %646 = vst [vmem:[#allocation2 + $0x178] sm:$0xff] %v645_v41  ;;  %v649_v43 = vld [vmem:[%s9938_s13 + $0x190] sm:$0xff]  ;;  %v651_v44 = vld [vmem:[%s9938_s13 + $0x198] sm:$0xff] }
  0x41   : > { %648 = vst [vmem:[#allocation2 + $0x188] sm:$0xff] %v647_v42  ;;  %650 = vst [vmem:[#allocation2 + $0x190] sm:$0xff] %v649_v43  ;;  %v653_v45 = vld [vmem:[%s9938_s13 + $0x1a0] sm:$0xff]  ;;  %v655_v46 = vld [vmem:[%s9938_s13 + $0x1a8] sm:$0xff] }
  0x42   : > { %652 = vst [vmem:[#allocation2 + $0x198] sm:$0xff] %v651_v44  ;;  %v657_v47 = vld [vmem:[%s9938_s13 + $0x1b0] sm:$0xff]  ;;  %654 = vst [vmem:[#allocation2 + $0x1a0] sm:$0xff] %v653_v45  ;;  %v659_v48 = vld [vmem:[%s9938_s13 + $0x1c0] sm:$0xff] }
  0x43   : > { %656 = vst [vmem:[#allocation2 + $0x1a8] sm:$0xff] %v655_v46  ;;  %658 = vst [vmem:[#allocation2 + $0x1b0] sm:$0xff] %v657_v47  ;;  %v661_v49 = vld [vmem:[%s9938_s13 + $0x1c8] sm:$0xff]  ;;  %v663_v50 = vld [vmem:[%s9938_s13 + $0x1d0] sm:$0xff] }
  0x44   : > { %660 = vst [vmem:[#allocation2 + $0x1c0] sm:$0xff] %v659_v48  ;;  %662 = vst [vmem:[#allocation2 + $0x1c8] sm:$0xff] %v661_v49  ;;  %v665_v51 = vld [vmem:[%s9938_s13 + $0x1d8] sm:$0xff]  ;;  %v667_v52 = vld [vmem:[%s9938_s13 + $0x1e0] sm:$0xff] }
  0x45   : > { %664 = vst [vmem:[#allocation2 + $0x1d0] sm:$0xff] %v663_v50  ;;  %v669_v53 = vld [vmem:[%s9938_s13 + $0x1e8] sm:$0xff]  ;;  %666 = vst [vmem:[#allocation2 + $0x1d8] sm:$0xff] %v665_v51  ;;  %v671_v54 = vld [vmem:[%s9938_s13 + $0x1f8] sm:$0xff] }
  0x46   : > { %668 = vst [vmem:[#allocation2 + $0x1e0] sm:$0xff] %v667_v52  ;;  %670 = vst [vmem:[#allocation2 + $0x1e8] sm:$0xff] %v669_v53  ;;  %v673_v55 = vld [vmem:[%s9938_s13 + $0x200] sm:$0xff]  ;;  %v675_v56 = vld [vmem:[%s9938_s13 + $0x208] sm:$0xff] }
  0x47   : > { %672 = vst [vmem:[#allocation2 + $0x1f8] sm:$0xff] %v671_v54  ;;  %674 = vst [vmem:[#allocation2 + $0x200] sm:$0xff] %v673_v55  ;;  %v677_v57 = vld [vmem:[%s9938_s13 + $0x210] sm:$0xff]  ;;  %v679_v58 = vld [vmem:[%s9938_s13 + $0x218] sm:$0xff] }
  0x48   : > { %676 = vst [vmem:[#allocation2 + $0x208] sm:$0xff] %v675_v56  ;;  %v681_v59 = vld [vmem:[%s9938_s13 + $0x220] sm:$0xff]  ;;  %678 = vst [vmem:[#allocation2 + $0x210] sm:$0xff] %v677_v57  ;;  %v683_v60 = vld [vmem:[%s9938_s13 + $0x230] sm:$0xff] }
  0x49   : > { %680 = vst [vmem:[#allocation2 + $0x218] sm:$0xff] %v679_v58  ;;  %682 = vst [vmem:[#allocation2 + $0x220] sm:$0xff] %v681_v59  ;;  %v685_v61 = vld [vmem:[%s9938_s13 + $0x238] sm:$0xff]  ;;  %v687_v62 = vld [vmem:[%s9938_s13 + $0x240] sm:$0xff] }
  0x4a   : > { %684 = vst [vmem:[#allocation2 + $0x230] sm:$0xff] %v683_v60  ;;  %686 = vst [vmem:[#allocation2 + $0x238] sm:$0xff] %v685_v61  ;;  %v689_v63 = vld [vmem:[%s9938_s13 + $0x248] sm:$0xff]  ;;  %v691_v0 = vld [vmem:[%s9938_s13 + $0x250] sm:$0xff] }
  0x4b   : > { %688 = vst [vmem:[#allocation2 + $0x240] sm:$0xff] %v687_v62  ;;  %v693_v1 = vld [vmem:[%s9938_s13 + $0x258] sm:$0xff]  ;;  %690 = vst [vmem:[#allocation2 + $0x248] sm:$0xff] %v689_v63  ;;  %v695_v2 = vld [vmem:[%s9938_s13 + $0x268] sm:$0xff] }
  0x4c   : > { %692 = vst [vmem:[#allocation2 + $0x250] sm:$0xff] %v691_v0  ;;  %694 = vst [vmem:[#allocation2 + $0x258] sm:$0xff] %v693_v1  ;;  %v697_v3 = vld [vmem:[%s9938_s13 + $0x270] sm:$0xff]  ;;  %v699_v4 = vld [vmem:[%s9938_s13 + $0x278] sm:$0xff] }
  0x4d   : > { %696 = vst [vmem:[#allocation2 + $0x268] sm:$0xff] %v695_v2  ;;  %698 = vst [vmem:[#allocation2 + $0x270] sm:$0xff] %v697_v3  ;;  %v701_v5 = vld [vmem:[%s9938_s13 + $0x280] sm:$0xff]  ;;  %v703_v6 = vld [vmem:[%s9938_s13 + $0x288] sm:$0xff] }
  0x4e   : > { %700 = vst [vmem:[#allocation2 + $0x278] sm:$0xff] %v699_v4  ;;  %v705_v7 = vld [vmem:[%s9938_s13 + $0x290] sm:$0xff]  ;;  %702 = vst [vmem:[#allocation2 + $0x280] sm:$0xff] %v701_v5  ;;  %v707_v8 = vld [vmem:[%s9938_s13 + $0x2a0] sm:$0xff] }
  0x4f   : > { %704 = vst [vmem:[#allocation2 + $0x288] sm:$0xff] %v703_v6  ;;  %706 = vst [vmem:[#allocation2 + $0x290] sm:$0xff] %v705_v7  ;;  %v709_v9 = vld [vmem:[%s9938_s13 + $0x2a8] sm:$0xff]  ;;  %v711_v10 = vld [vmem:[%s9938_s13 + $0x2b0] sm:$0xff] }
  0x50   : > { %708 = vst [vmem:[#allocation2 + $0x2a0] sm:$0xff] %v707_v8  ;;  %710 = vst [vmem:[#allocation2 + $0x2a8] sm:$0xff] %v709_v9  ;;  %v713_v11 = vld [vmem:[%s9938_s13 + $0x2b8] sm:$0xff]  ;;  %v715_v12 = vld [vmem:[%s9938_s13 + $0x2c0] sm:$0xff] }
  0x51   : > { %712 = vst [vmem:[#allocation2 + $0x2b0] sm:$0xff] %v711_v10  ;;  %v717_v13 = vld [vmem:[%s9938_s13 + $0x2c8] sm:$0xff]  ;;  %714 = vst [vmem:[#allocation2 + $0x2b8] sm:$0xff] %v713_v11  ;;  %v719_v14 = vld [vmem:[%s9938_s13 + $0x2d8] sm:$0xff] }
  0x52   : > { %716 = vst [vmem:[#allocation2 + $0x2c0] sm:$0xff] %v715_v12  ;;  %718 = vst [vmem:[#allocation2 + $0x2c8] sm:$0xff] %v717_v13  ;;  %v721_v15 = vld [vmem:[%s9938_s13 + $0x2e0] sm:$0xff]  ;;  %v723_v16 = vld [vmem:[%s9938_s13 + $0x2e8] sm:$0xff] }
  0x53   : > { %720 = vst [vmem:[#allocation2 + $0x2d8] sm:$0xff] %v719_v14  ;;  %722 = vst [vmem:[#allocation2 + $0x2e0] sm:$0xff] %v721_v15  ;;  %v725_v17 = vld [vmem:[%s9938_s13 + $0x2f0] sm:$0xff]  ;;  %v727_v18 = vld [vmem:[%s9938_s13 + $0x2f8] sm:$0xff] }
  0x54   : > { %724 = vst [vmem:[#allocation2 + $0x2e8] sm:$0xff] %v723_v16  ;;  %v729_v19 = vld [vmem:[%s9938_s13 + $0x300] sm:$0xff]  ;;  %726 = vst [vmem:[#allocation2 + $0x2f0] sm:$0xff] %v725_v17  ;;  %v731_v20 = vld [vmem:[%s9938_s13 + $0x310] sm:$0xff] }
  0x55   : > { %728 = vst [vmem:[#allocation2 + $0x2f8] sm:$0xff] %v727_v18  ;;  %730 = vst [vmem:[#allocation2 + $0x300] sm:$0xff] %v729_v19  ;;  %v733_v21 = vld [vmem:[%s9938_s13 + $0x318] sm:$0xff]  ;;  %v735_v22 = vld [vmem:[%s9938_s13 + $0x320] sm:$0xff] }
  0x56   : > { %732 = vst [vmem:[#allocation2 + $0x310] sm:$0xff] %v731_v20  ;;  %734 = vst [vmem:[#allocation2 + $0x318] sm:$0xff] %v733_v21  ;;  %v737_v23 = vld [vmem:[%s9938_s13 + $0x328] sm:$0xff]  ;;  %v739_v24 = vld [vmem:[%s9938_s13 + $0x330] sm:$0xff] }
  0x57   : > { %736 = vst [vmem:[#allocation2 + $0x320] sm:$0xff] %v735_v22  ;;  %v741_v25 = vld [vmem:[%s9938_s13 + $0x338] sm:$0xff]  ;;  %738 = vst [vmem:[#allocation2 + $0x328] sm:$0xff] %v737_v23  ;;  %v743_v26 = vld [vmem:[%s9938_s13 + $0x348] sm:$0xff] }
  0x58   : > { %740 = vst [vmem:[#allocation2 + $0x330] sm:$0xff] %v739_v24  ;;  %742 = vst [vmem:[#allocation2 + $0x338] sm:$0xff] %v741_v25  ;;  %v745_v27 = vld [vmem:[%s9938_s13 + $0x350] sm:$0xff]  ;;  %v747_v28 = vld [vmem:[%s9938_s13 + $0x358] sm:$0xff] }
  0x59   : > { %744 = vst [vmem:[#allocation2 + $0x348] sm:$0xff] %v743_v26  ;;  %746 = vst [vmem:[#allocation2 + $0x350] sm:$0xff] %v745_v27  ;;  %v749_v29 = vld [vmem:[%s9938_s13 + $0x360] sm:$0xff]  ;;  %v751_v30 = vld [vmem:[%s9938_s13 + $0x368] sm:$0xff] }
  0x5a   : > { %748 = vst [vmem:[#allocation2 + $0x358] sm:$0xff] %v747_v28  ;;  %v753_v31 = vld [vmem:[%s9938_s13 + $0x370] sm:$0xff]  ;;  %750 = vst [vmem:[#allocation2 + $0x360] sm:$0xff] %v749_v29  ;;  %v755_v32 = vld [vmem:[%s9938_s13 + $0x380] sm:$0xff] }
  0x5b   : > { %752 = vst [vmem:[#allocation2 + $0x368] sm:$0xff] %v751_v30  ;;  %754 = vst [vmem:[#allocation2 + $0x370] sm:$0xff] %v753_v31  ;;  %v757_v33 = vld [vmem:[%s9938_s13 + $0x388] sm:$0xff]  ;;  %v759_v34 = vld [vmem:[%s9938_s13 + $0x390] sm:$0xff] }
  0x5c   : > { %756 = vst [vmem:[#allocation2 + $0x380] sm:$0xff] %v755_v32  ;;  %758 = vst [vmem:[#allocation2 + $0x388] sm:$0xff] %v757_v33  ;;  %v761_v35 = vld [vmem:[%s9938_s13 + $0x398] sm:$0xff]  ;;  %v763_v36 = vld [vmem:[%s9938_s13 + $0x3a0] sm:$0xff] }
  0x5d   : > { %760 = vst [vmem:[#allocation2 + $0x390] sm:$0xff] %v759_v34  ;;  %v765_v37 = vld [vmem:[%s9938_s13 + $0x3a8] sm:$0xff]  ;;  %762 = vst [vmem:[#allocation2 + $0x398] sm:$0xff] %v761_v35  ;;  %v767_v38 = vld [vmem:[%s9938_s13 + $0x3b8] sm:$0xff] }
  0x5e   : > { %764 = vst [vmem:[#allocation2 + $0x3a0] sm:$0xff] %v763_v36  ;;  %766 = vst [vmem:[#allocation2 + $0x3a8] sm:$0xff] %v765_v37  ;;  %v769_v39 = vld [vmem:[%s9938_s13 + $0x3c0] sm:$0xff]  ;;  %v771_v40 = vld [vmem:[%s9938_s13 + $0x3c8] sm:$0xff] }
  0x5f   : > { %768 = vst [vmem:[#allocation2 + $0x3b8] sm:$0xff] %v767_v38  ;;  %770 = vst [vmem:[#allocation2 + $0x3c0] sm:$0xff] %v769_v39  ;;  %v773_v41 = vld [vmem:[%s9938_s13 + $0x3d0] sm:$0xff]  ;;  %v775_v42 = vld [vmem:[%s9938_s13 + $0x3d8] sm:$0xff] }
  0x60   : > { %772 = vst [vmem:[#allocation2 + $0x3c8] sm:$0xff] %v771_v40  ;;  %v777_v43 = vld [vmem:[%s9938_s13 + $0x3e0] sm:$0xff]  ;;  %774 = vst [vmem:[#allocation2 + $0x3d0] sm:$0xff] %v773_v41  ;;  %v779_v44 = vld [vmem:[%s9938_s13 + $0x3f0] sm:$0xff] }
  0x61   : > { %776 = vst [vmem:[#allocation2 + $0x3d8] sm:$0xff] %v775_v42  ;;  %778 = vst [vmem:[#allocation2 + $0x3e0] sm:$0xff] %v777_v43  ;;  %v781_v45 = vld [vmem:[%s9938_s13 + $0x3f8] sm:$0xff]  ;;  %v783_v46 = vld [vmem:[%s9938_s13 + $0x400] sm:$0xff] }
  0x62   : > { %780 = vst [vmem:[#allocation2 + $0x3f0] sm:$0xff] %v779_v44  ;;  %782 = vst [vmem:[#allocation2 + $0x3f8] sm:$0xff] %v781_v45  ;;  %v785_v47 = vld [vmem:[%s9938_s13 + $0x408] sm:$0xff]  ;;  %v787_v48 = vld [vmem:[%s9938_s13 + $0x410] sm:$0xff] }
  0x63   : > { %784 = vst [vmem:[#allocation2 + $0x400] sm:$0xff] %v783_v46  ;;  %v789_v49 = vld [vmem:[%s9938_s13 + $0x418] sm:$0xff]  ;;  %786 = vst [vmem:[#allocation2 + $0x408] sm:$0xff] %v785_v47  ;;  %v791_v50 = vld [vmem:[%s9938_s13 + $0x428] sm:$0xff] }
  0x64   : > { %788 = vst [vmem:[#allocation2 + $0x410] sm:$0xff] %v787_v48  ;;  %790 = vst [vmem:[#allocation2 + $0x418] sm:$0xff] %v789_v49  ;;  %v793_v51 = vld [vmem:[%s9938_s13 + $0x430] sm:$0xff]  ;;  %v795_v52 = vld [vmem:[%s9938_s13 + $0x438] sm:$0xff] }
  0x65   : > { %792 = vst [vmem:[#allocation2 + $0x428] sm:$0xff] %v791_v50  ;;  %794 = vst [vmem:[#allocation2 + $0x430] sm:$0xff] %v793_v51  ;;  %v797_v53 = vld [vmem:[%s9938_s13 + $0x440] sm:$0xff]  ;;  %v799_v54 = vld [vmem:[%s9938_s13 + $0x448] sm:$0xff] }
  0x66   : > { %796 = vst [vmem:[#allocation2 + $0x438] sm:$0xff] %v795_v52  ;;  %v801_v55 = vld [vmem:[%s9938_s13 + $0x450] sm:$0xff]  ;;  %798 = vst [vmem:[#allocation2 + $0x440] sm:$0xff] %v797_v53  ;;  %v803_v56 = vld [vmem:[%s9938_s13 + $0x460] sm:$0xff] }
  0x67   : > { %800 = vst [vmem:[#allocation2 + $0x448] sm:$0xff] %v799_v54  ;;  %802 = vst [vmem:[#allocation2 + $0x450] sm:$0xff] %v801_v55  ;;  %v805_v57 = vld [vmem:[%s9938_s13 + $0x468] sm:$0xff]  ;;  %v807_v58 = vld [vmem:[%s9938_s13 + $0x470] sm:$0xff] }
  0x68   : > { %804 = vst [vmem:[#allocation2 + $0x460] sm:$0xff] %v803_v56  ;;  %806 = vst [vmem:[#allocation2 + $0x468] sm:$0xff] %v805_v57  ;;  %v809_v59 = vld [vmem:[%s9938_s13 + $0x478] sm:$0xff]  ;;  %v811_v60 = vld [vmem:[%s9938_s13 + $0x480] sm:$0xff] }
  0x69   : > { %808 = vst [vmem:[#allocation2 + $0x470] sm:$0xff] %v807_v58  ;;  %v813_v61 = vld [vmem:[%s9938_s13 + $0x488] sm:$0xff]  ;;  %810 = vst [vmem:[#allocation2 + $0x478] sm:$0xff] %v809_v59  ;;  %v815_v62 = vld [vmem:[%s9938_s13 + $0x498] sm:$0xff] }
  0x6a   : > { %812 = vst [vmem:[#allocation2 + $0x480] sm:$0xff] %v811_v60  ;;  %814 = vst [vmem:[#allocation2 + $0x488] sm:$0xff] %v813_v61  ;;  %v817_v63 = vld [vmem:[%s9938_s13 + $0x4a0] sm:$0xff]  ;;  %v819_v0 = vld [vmem:[%s9938_s13 + $0x4a8] sm:$0xff] }
  0x6b   : > { %816 = vst [vmem:[#allocation2 + $0x498] sm:$0xff] %v815_v62  ;;  %818 = vst [vmem:[#allocation2 + $0x4a0] sm:$0xff] %v817_v63  ;;  %v821_v1 = vld [vmem:[%s9938_s13 + $0x4b0] sm:$0xff]  ;;  %v823_v2 = vld [vmem:[%s9938_s13 + $0x4b8] sm:$0xff] }
  0x6c   : > { %820 = vst [vmem:[#allocation2 + $0x4a8] sm:$0xff] %v819_v0  ;;  %v825_v3 = vld [vmem:[%s9938_s13 + $0x4c0] sm:$0xff]  ;;  %822 = vst [vmem:[#allocation2 + $0x4b0] sm:$0xff] %v821_v1  ;;  %v827_v4 = vld [vmem:[%s9938_s13 + $0x4d0] sm:$0xff] }
  0x6d   : > { %824 = vst [vmem:[#allocation2 + $0x4b8] sm:$0xff] %v823_v2  ;;  %826 = vst [vmem:[#allocation2 + $0x4c0] sm:$0xff] %v825_v3  ;;  %v829_v5 = vld [vmem:[%s9938_s13 + $0x4d8] sm:$0xff]  ;;  %v831_v6 = vld [vmem:[%s9938_s13 + $0x4e0] sm:$0xff] }
  0x6e   : > { %828 = vst [vmem:[#allocation2 + $0x4d0] sm:$0xff] %v827_v4  ;;  %830 = vst [vmem:[#allocation2 + $0x4d8] sm:$0xff] %v829_v5  ;;  %v833_v7 = vld [vmem:[%s9938_s13 + $0x4e8] sm:$0xff]  ;;  %v835_v8 = vld [vmem:[%s9938_s13 + $0x4f0] sm:$0xff] }
  0x6f   : > { %832 = vst [vmem:[#allocation2 + $0x4e0] sm:$0xff] %v831_v6  ;;  %v837_v9 = vld [vmem:[%s9938_s13 + $0x4f8] sm:$0xff]  ;;  %834 = vst [vmem:[#allocation2 + $0x4e8] sm:$0xff] %v833_v7  ;;  %v839_v10 = vld [vmem:[%s9938_s13 + $0x508] sm:$0xff] }
  0x70   : > { %836 = vst [vmem:[#allocation2 + $0x4f0] sm:$0xff] %v835_v8  ;;  %838 = vst [vmem:[#allocation2 + $0x4f8] sm:$0xff] %v837_v9  ;;  %v841_v11 = vld [vmem:[%s9938_s13 + $0x510] sm:$0xff]  ;;  %v843_v12 = vld [vmem:[%s9938_s13 + $0x518] sm:$0xff] }
  0x71   : > { %840 = vst [vmem:[#allocation2 + $0x508] sm:$0xff] %v839_v10  ;;  %842 = vst [vmem:[#allocation2 + $0x510] sm:$0xff] %v841_v11  ;;  %v845_v13 = vld [vmem:[%s9938_s13 + $0x520] sm:$0xff]  ;;  %v847_v14 = vld [vmem:[%s9938_s13 + $0x528] sm:$0xff] }
  0x72   : > { %844 = vst [vmem:[#allocation2 + $0x518] sm:$0xff] %v843_v12  ;;  %v849_v15 = vld [vmem:[%s9938_s13 + $0x530] sm:$0xff]  ;;  %846 = vst [vmem:[#allocation2 + $0x520] sm:$0xff] %v845_v13  ;;  %v851_v16 = vld [vmem:[%s9938_s13 + $0x540] sm:$0xff] }
  0x73   : > { %848 = vst [vmem:[#allocation2 + $0x528] sm:$0xff] %v847_v14  ;;  %850 = vst [vmem:[#allocation2 + $0x530] sm:$0xff] %v849_v15  ;;  %v853_v17 = vld [vmem:[%s9938_s13 + $0x548] sm:$0xff]  ;;  %v855_v18 = vld [vmem:[%s9938_s13 + $0x550] sm:$0xff] }
  0x74   : > { %852 = vst [vmem:[#allocation2 + $0x540] sm:$0xff] %v851_v16  ;;  %854 = vst [vmem:[#allocation2 + $0x548] sm:$0xff] %v853_v17  ;;  %v857_v19 = vld [vmem:[%s9938_s13 + $0x558] sm:$0xff]  ;;  %v859_v20 = vld [vmem:[%s9938_s13 + $0x560] sm:$0xff] }
  0x75   : > { %856 = vst [vmem:[#allocation2 + $0x550] sm:$0xff] %v855_v18  ;;  %v861_v21 = vld [vmem:[%s9938_s13 + $0x568] sm:$0xff]  ;;  %858 = vst [vmem:[#allocation2 + $0x558] sm:$0xff] %v857_v19  ;;  %v863_v22 = vld [vmem:[%s9938_s13 + $0x578] sm:$0xff] }
  0x76   : > { %860 = vst [vmem:[#allocation2 + $0x560] sm:$0xff] %v859_v20  ;;  %862 = vst [vmem:[#allocation2 + $0x568] sm:$0xff] %v861_v21  ;;  %v865_v23 = vld [vmem:[%s9938_s13 + $0x580] sm:$0xff]  ;;  %v867_v24 = vld [vmem:[%s9938_s13 + $0x588] sm:$0xff] }
  0x77   : > { %864 = vst [vmem:[#allocation2 + $0x578] sm:$0xff] %v863_v22  ;;  %866 = vst [vmem:[#allocation2 + $0x580] sm:$0xff] %v865_v23  ;;  %v869_v25 = vld [vmem:[%s9938_s13 + $0x590] sm:$0xff]  ;;  %v871_v26 = vld [vmem:[%s9938_s13 + $0x598] sm:$0xff] }
  0x78   : > { %868 = vst [vmem:[#allocation2 + $0x588] sm:$0xff] %v867_v24  ;;  %v873_v27 = vld [vmem:[%s9938_s13 + $0x5a0] sm:$0xff]  ;;  %870 = vst [vmem:[#allocation2 + $0x590] sm:$0xff] %v869_v25  ;;  %v875_v28 = vld [vmem:[%s9938_s13 + $0x5b0] sm:$0xff] }
  0x79   : > { %872 = vst [vmem:[#allocation2 + $0x598] sm:$0xff] %v871_v26  ;;  %874 = vst [vmem:[#allocation2 + $0x5a0] sm:$0xff] %v873_v27  ;;  %v877_v29 = vld [vmem:[%s9938_s13 + $0x5b8] sm:$0xff]  ;;  %v879_v30 = vld [vmem:[%s9938_s13 + $0x5c0] sm:$0xff] }
  0x7a   : > { %876 = vst [vmem:[#allocation2 + $0x5b0] sm:$0xff] %v875_v28  ;;  %878 = vst [vmem:[#allocation2 + $0x5b8] sm:$0xff] %v877_v29  ;;  %v881_v31 = vld [vmem:[%s9938_s13 + $0x5c8] sm:$0xff]  ;;  %v883_v32 = vld [vmem:[%s9938_s13 + $0x5d0] sm:$0xff] }
  0x7b   : > { %880 = vst [vmem:[#allocation2 + $0x5c0] sm:$0xff] %v879_v30  ;;  %v885_v33 = vld [vmem:[%s9938_s13 + $0x5d8] sm:$0xff]  ;;  %882 = vst [vmem:[#allocation2 + $0x5c8] sm:$0xff] %v881_v31  ;;  %v887_v34 = vld [vmem:[%s9938_s13 + $0x5e8] sm:$0xff] }
  0x7c   : > { %884 = vst [vmem:[#allocation2 + $0x5d0] sm:$0xff] %v883_v32  ;;  %886 = vst [vmem:[#allocation2 + $0x5d8] sm:$0xff] %v885_v33  ;;  %v889_v35 = vld [vmem:[%s9938_s13 + $0x5f0] sm:$0xff]  ;;  %v891_v36 = vld [vmem:[%s9938_s13 + $0x5f8] sm:$0xff] }
  0x7d   : > { %888 = vst [vmem:[#allocation2 + $0x5e8] sm:$0xff] %v887_v34  ;;  %890 = vst [vmem:[#allocation2 + $0x5f0] sm:$0xff] %v889_v35  ;;  %v893_v37 = vld [vmem:[%s9938_s13 + $0x600] sm:$0xff]  ;;  %v895_v38 = vld [vmem:[%s9938_s13 + $0x608] sm:$0xff] }
  0x7e   : > { %892 = vst [vmem:[#allocation2 + $0x5f8] sm:$0xff] %v891_v36  ;;  %v897_v39 = vld [vmem:[%s9938_s13 + $0x610] sm:$0xff]  ;;  %894 = vst [vmem:[#allocation2 + $0x600] sm:$0xff] %v893_v37  ;;  %v899_v40 = vld [vmem:[%s9938_s13 + $0x620] sm:$0xff] }
  0x7f   : > { %896 = vst [vmem:[#allocation2 + $0x608] sm:$0xff] %v895_v38  ;;  %898 = vst [vmem:[#allocation2 + $0x610] sm:$0xff] %v897_v39  ;;  %v901_v41 = vld [vmem:[%s9938_s13 + $0x628] sm:$0xff]  ;;  %v903_v42 = vld [vmem:[%s9938_s13 + $0x630] sm:$0xff] }
  0x80   : > { %900 = vst [vmem:[#allocation2 + $0x620] sm:$0xff] %v899_v40  ;;  %902 = vst [vmem:[#allocation2 + $0x628] sm:$0xff] %v901_v41  ;;  %v905_v43 = vld [vmem:[%s9938_s13 + $0x638] sm:$0xff]  ;;  %v907_v44 = vld [vmem:[%s9938_s13 + $0x640] sm:$0xff] }
  0x81   : > { %904 = vst [vmem:[#allocation2 + $0x630] sm:$0xff] %v903_v42  ;;  %v909_v45 = vld [vmem:[%s9938_s13 + $0x648] sm:$0xff]  ;;  %906 = vst [vmem:[#allocation2 + $0x638] sm:$0xff] %v905_v43  ;;  %v911_v46 = vld [vmem:[%s9938_s13 + $0x658] sm:$0xff] }
  0x82   : > { %908 = vst [vmem:[#allocation2 + $0x640] sm:$0xff] %v907_v44  ;;  %910 = vst [vmem:[#allocation2 + $0x648] sm:$0xff] %v909_v45  ;;  %v913_v47 = vld [vmem:[%s9938_s13 + $0x660] sm:$0xff]  ;;  %v915_v48 = vld [vmem:[%s9938_s13 + $0x668] sm:$0xff] }
  0x83   : > { %912 = vst [vmem:[#allocation2 + $0x658] sm:$0xff] %v911_v46  ;;  %914 = vst [vmem:[#allocation2 + $0x660] sm:$0xff] %v913_v47  ;;  %v917_v49 = vld [vmem:[%s9938_s13 + $0x670] sm:$0xff]  ;;  %v919_v50 = vld [vmem:[%s9938_s13 + $0x678] sm:$0xff] }
  0x84   : > { %916 = vst [vmem:[#allocation2 + $0x668] sm:$0xff] %v915_v48  ;;  %v921_v51 = vld [vmem:[%s9938_s13 + $0x680] sm:$0xff]  ;;  %918 = vst [vmem:[#allocation2 + $0x670] sm:$0xff] %v917_v49  ;;  %v923_v52 = vld [vmem:[%s9938_s13 + $0x690] sm:$0xff] }
  0x85   : > { %920 = vst [vmem:[#allocation2 + $0x678] sm:$0xff] %v919_v50  ;;  %922 = vst [vmem:[#allocation2 + $0x680] sm:$0xff] %v921_v51  ;;  %v925_v53 = vld [vmem:[%s9938_s13 + $0x698] sm:$0xff]  ;;  %v927_v54 = vld [vmem:[%s9938_s13 + $0x6a0] sm:$0xff] }
  0x86   : > { %924 = vst [vmem:[#allocation2 + $0x690] sm:$0xff] %v923_v52  ;;  %926 = vst [vmem:[#allocation2 + $0x698] sm:$0xff] %v925_v53  ;;  %v929_v55 = vld [vmem:[%s9938_s13 + $0x6a8] sm:$0xff]  ;;  %v931_v56 = vld [vmem:[%s9938_s13 + $0x6b0] sm:$0xff] }
  0x87   : > { %928 = vst [vmem:[#allocation2 + $0x6a0] sm:$0xff] %v927_v54  ;;  %v933_v57 = vld [vmem:[%s9938_s13 + $0x6b8] sm:$0xff]  ;;  %930 = vst [vmem:[#allocation2 + $0x6a8] sm:$0xff] %v929_v55  ;;  %v935_v58 = vld [vmem:[%s9938_s13 + $0x6c8] sm:$0xff] }
  0x88   : > { %932 = vst [vmem:[#allocation2 + $0x6b0] sm:$0xff] %v931_v56  ;;  %934 = vst [vmem:[#allocation2 + $0x6b8] sm:$0xff] %v933_v57  ;;  %v937_v59 = vld [vmem:[%s9938_s13 + $0x6d0] sm:$0xff]  ;;  %v939_v60 = vld [vmem:[%s9938_s13 + $0x6d8] sm:$0xff] }
  0x89   : > { %936 = vst [vmem:[#allocation2 + $0x6c8] sm:$0xff] %v935_v58  ;;  %938 = vst [vmem:[#allocation2 + $0x6d0] sm:$0xff] %v937_v59  ;;  %v941_v61 = vld [vmem:[%s9938_s13 + $0x6e0] sm:$0xff]  ;;  %v943_v62 = vld [vmem:[%s9938_s13 + $0x6e8] sm:$0xff] }
  0x8a   : > { %940 = vst [vmem:[#allocation2 + $0x6d8] sm:$0xff] %v939_v60  ;;  %v945_v63 = vld [vmem:[%s9938_s13 + $0x6f0] sm:$0xff]  ;;  %942 = vst [vmem:[#allocation2 + $0x6e0] sm:$0xff] %v941_v61  ;;  %v947_v0 = vld [vmem:[%s9938_s13 + $0x700] sm:$0xff] }
  0x8b   : > { %944 = vst [vmem:[#allocation2 + $0x6e8] sm:$0xff] %v943_v62  ;;  %946 = vst [vmem:[#allocation2 + $0x6f0] sm:$0xff] %v945_v63  ;;  %v949_v1 = vld [vmem:[%s9938_s13 + $0x708] sm:$0xff]  ;;  %v951_v2 = vld [vmem:[%s9938_s13 + $0x710] sm:$0xff] }
  0x8c   : > { %948 = vst [vmem:[#allocation2 + $0x700] sm:$0xff] %v947_v0  ;;  %950 = vst [vmem:[#allocation2 + $0x708] sm:$0xff] %v949_v1  ;;  %v953_v3 = vld [vmem:[%s9938_s13 + $0x718] sm:$0xff]  ;;  %v955_v4 = vld [vmem:[%s9938_s13 + $0x720] sm:$0xff] }
  0x8d   : > { %952 = vst [vmem:[#allocation2 + $0x710] sm:$0xff] %v951_v2  ;;  %v957_v5 = vld [vmem:[%s9938_s13 + $0x728] sm:$0xff]  ;;  %954 = vst [vmem:[#allocation2 + $0x718] sm:$0xff] %v953_v3  ;;  %v959_v6 = vld [vmem:[%s9938_s13 + $0x738] sm:$0xff] }
  0x8e   : > { %956 = vst [vmem:[#allocation2 + $0x720] sm:$0xff] %v955_v4  ;;  %958 = vst [vmem:[#allocation2 + $0x728] sm:$0xff] %v957_v5  ;;  %v961_v7 = vld [vmem:[%s9938_s13 + $0x740] sm:$0xff]  ;;  %v963_v8 = vld [vmem:[%s9938_s13 + $0x748] sm:$0xff] }
  0x8f   : > { %960 = vst [vmem:[#allocation2 + $0x738] sm:$0xff] %v959_v6  ;;  %962 = vst [vmem:[#allocation2 + $0x740] sm:$0xff] %v961_v7  ;;  %v965_v9 = vld [vmem:[%s9938_s13 + $0x750] sm:$0xff]  ;;  %v967_v10 = vld [vmem:[%s9938_s13 + $0x758] sm:$0xff] }
  0x90   : > { %964 = vst [vmem:[#allocation2 + $0x748] sm:$0xff] %v963_v8  ;;  %v969_v11 = vld [vmem:[%s9938_s13 + $0x760] sm:$0xff]  ;;  %966 = vst [vmem:[#allocation2 + $0x750] sm:$0xff] %v965_v9  ;;  %v971_v12 = vld [vmem:[%s9938_s13 + $0x770] sm:$0xff] }
  0x91   : > { %968 = vst [vmem:[#allocation2 + $0x758] sm:$0xff] %v967_v10  ;;  %970 = vst [vmem:[#allocation2 + $0x760] sm:$0xff] %v969_v11  ;;  %v973_v13 = vld [vmem:[%s9938_s13 + $0x778] sm:$0xff]  ;;  %v975_v14 = vld [vmem:[%s9938_s13 + $0x780] sm:$0xff] }
  0x92   : > { %972 = vst [vmem:[#allocation2 + $0x770] sm:$0xff] %v971_v12  ;;  %974 = vst [vmem:[#allocation2 + $0x778] sm:$0xff] %v973_v13  ;;  %v977_v15 = vld [vmem:[%s9938_s13 + $0x788] sm:$0xff]  ;;  %v979_v16 = vld [vmem:[%s9938_s13 + $0x790] sm:$0xff] }
  0x93   : > { %976 = vst [vmem:[#allocation2 + $0x780] sm:$0xff] %v975_v14  ;;  %v981_v17 = vld [vmem:[%s9938_s13 + $0x798] sm:$0xff]  ;;  %978 = vst [vmem:[#allocation2 + $0x788] sm:$0xff] %v977_v15  ;;  %v983_v18 = vld [vmem:[%s9938_s13 + $0x7a8] sm:$0xff] }
  0x94   : > { %980 = vst [vmem:[#allocation2 + $0x790] sm:$0xff] %v979_v16  ;;  %982 = vst [vmem:[#allocation2 + $0x798] sm:$0xff] %v981_v17  ;;  %v985_v19 = vld [vmem:[%s9938_s13 + $0x7b0] sm:$0xff]  ;;  %v987_v20 = vld [vmem:[%s9938_s13 + $0x7b8] sm:$0xff] }
  0x95   : > { %984 = vst [vmem:[#allocation2 + $0x7a8] sm:$0xff] %v983_v18  ;;  %986 = vst [vmem:[#allocation2 + $0x7b0] sm:$0xff] %v985_v19  ;;  %v989_v21 = vld [vmem:[%s9938_s13 + $0x7c0] sm:$0xff]  ;;  %v991_v22 = vld [vmem:[%s9938_s13 + $0x7c8] sm:$0xff] }
  0x96   : > { %988 = vst [vmem:[#allocation2 + $0x7b8] sm:$0xff] %v987_v20  ;;  %v993_v23 = vld [vmem:[%s9938_s13 + $0x7d0] sm:$0xff]  ;;  %990 = vst [vmem:[#allocation2 + $0x7c0] sm:$0xff] %v989_v21  ;;  %v995_v24 = vld [vmem:[%s9938_s13 + $0x7e0] sm:$0xff] }
  0x97   : > { %992 = vst [vmem:[#allocation2 + $0x7c8] sm:$0xff] %v991_v22  ;;  %994 = vst [vmem:[#allocation2 + $0x7d0] sm:$0xff] %v993_v23  ;;  %v997_v25 = vld [vmem:[%s9938_s13 + $0x7e8] sm:$0xff]  ;;  %v999_v26 = vld [vmem:[%s9938_s13 + $0x7f0] sm:$0xff] }
  0x98   : > { %996 = vst [vmem:[#allocation2 + $0x7e0] sm:$0xff] %v995_v24  ;;  %998 = vst [vmem:[#allocation2 + $0x7e8] sm:$0xff] %v997_v25  ;;  %v1001_v27 = vld [vmem:[%s9938_s13 + $0x7f8] sm:$0xff]  ;;  %v1003_v28 = vld [vmem:[%s9938_s13 + $0x800] sm:$0xff] }
  0x99   : > { %1000 = vst [vmem:[#allocation2 + $0x7f0] sm:$0xff] %v999_v26  ;;  %v1005_v29 = vld [vmem:[%s9938_s13 + $0x808] sm:$0xff]  ;;  %1002 = vst [vmem:[#allocation2 + $0x7f8] sm:$0xff] %v1001_v27  ;;  %v1007_v30 = vld [vmem:[%s9938_s13 + $0x818] sm:$0xff] }
  0x9a   : > { %1004 = vst [vmem:[#allocation2 + $0x800] sm:$0xff] %v1003_v28  ;;  %1006 = vst [vmem:[#allocation2 + $0x808] sm:$0xff] %v1005_v29  ;;  %v1009_v31 = vld [vmem:[%s9938_s13 + $0x820] sm:$0xff]  ;;  %v1011_v32 = vld [vmem:[%s9938_s13 + $0x828] sm:$0xff] }
  0x9b   : > { %1008 = vst [vmem:[#allocation2 + $0x818] sm:$0xff] %v1007_v30  ;;  %1010 = vst [vmem:[#allocation2 + $0x820] sm:$0xff] %v1009_v31  ;;  %v1013_v33 = vld [vmem:[%s9938_s13 + $0x830] sm:$0xff]  ;;  %v1015_v34 = vld [vmem:[%s9938_s13 + $0x838] sm:$0xff] }
  0x9c   : > { %1012 = vst [vmem:[#allocation2 + $0x828] sm:$0xff] %v1011_v32  ;;  %v1017_v35 = vld [vmem:[%s9938_s13 + $0x840] sm:$0xff]  ;;  %1014 = vst [vmem:[#allocation2 + $0x830] sm:$0xff] %v1013_v33  ;;  %v1019_v36 = vld [vmem:[%s9938_s13 + $0x850] sm:$0xff] }
  0x9d   : > { %1016 = vst [vmem:[#allocation2 + $0x838] sm:$0xff] %v1015_v34  ;;  %1018 = vst [vmem:[#allocation2 + $0x840] sm:$0xff] %v1017_v35  ;;  %v1021_v37 = vld [vmem:[%s9938_s13 + $0x858] sm:$0xff]  ;;  %v1023_v38 = vld [vmem:[%s9938_s13 + $0x860] sm:$0xff] }
  0x9e   : > { %1020 = vst [vmem:[#allocation2 + $0x850] sm:$0xff] %v1019_v36  ;;  %1022 = vst [vmem:[#allocation2 + $0x858] sm:$0xff] %v1021_v37  ;;  %v1025_v39 = vld [vmem:[%s9938_s13 + $0x868] sm:$0xff]  ;;  %v1027_v40 = vld [vmem:[%s9938_s13 + $0x870] sm:$0xff] }
  0x9f   : > { %1024 = vst [vmem:[#allocation2 + $0x860] sm:$0xff] %v1023_v38  ;;  %v1029_v41 = vld [vmem:[%s9938_s13 + $0x878] sm:$0xff]  ;;  %1026 = vst [vmem:[#allocation2 + $0x868] sm:$0xff] %v1025_v39  ;;  %v1031_v42 = vld [vmem:[%s9938_s13 + $0x888] sm:$0xff] }
  0xa0   : > { %1028 = vst [vmem:[#allocation2 + $0x870] sm:$0xff] %v1027_v40  ;;  %1030 = vst [vmem:[#allocation2 + $0x878] sm:$0xff] %v1029_v41  ;;  %v1033_v43 = vld [vmem:[%s9938_s13 + $0x890] sm:$0xff]  ;;  %v1035_v44 = vld [vmem:[%s9938_s13 + $0x898] sm:$0xff] }
  0xa1   : > { %1032 = vst [vmem:[#allocation2 + $0x888] sm:$0xff] %v1031_v42  ;;  %1034 = vst [vmem:[#allocation2 + $0x890] sm:$0xff] %v1033_v43  ;;  %v1037_v45 = vld [vmem:[%s9938_s13 + $0x8a0] sm:$0xff]  ;;  %v1039_v46 = vld [vmem:[%s9938_s13 + $0x8a8] sm:$0xff] }
  0xa2   : > { %1036 = vst [vmem:[#allocation2 + $0x898] sm:$0xff] %v1035_v44  ;;  %v1041_v47 = vld [vmem:[%s9938_s13 + $0x8b0] sm:$0xff]  ;;  %1038 = vst [vmem:[#allocation2 + $0x8a0] sm:$0xff] %v1037_v45  ;;  %v1043_v48 = vld [vmem:[%s9938_s13 + $0x8c0] sm:$0xff] }
  0xa3   : > { %1040 = vst [vmem:[#allocation2 + $0x8a8] sm:$0xff] %v1039_v46  ;;  %1042 = vst [vmem:[#allocation2 + $0x8b0] sm:$0xff] %v1041_v47  ;;  %v1045_v49 = vld [vmem:[%s9938_s13 + $0x8c8] sm:$0xff]  ;;  %v1047_v50 = vld [vmem:[%s9938_s13 + $0x8d0] sm:$0xff] }
  0xa4   : > { %1044 = vst [vmem:[#allocation2 + $0x8c0] sm:$0xff] %v1043_v48  ;;  %1046 = vst [vmem:[#allocation2 + $0x8c8] sm:$0xff] %v1045_v49  ;;  %v1049_v51 = vld [vmem:[%s9938_s13 + $0x8d8] sm:$0xff]  ;;  %v1051_v52 = vld [vmem:[%s9938_s13 + $0x8e0] sm:$0xff] }
  0xa5   : > { %1048 = vst [vmem:[#allocation2 + $0x8d0] sm:$0xff] %v1047_v50  ;;  %v1053_v53 = vld [vmem:[%s9938_s13 + $0x8e8] sm:$0xff]  ;;  %1050 = vst [vmem:[#allocation2 + $0x8d8] sm:$0xff] %v1049_v51  ;;  %v1055_v54 = vld [vmem:[%s9938_s13 + $0x8f8] sm:$0xff] }
  0xa6   : > { %1052 = vst [vmem:[#allocation2 + $0x8e0] sm:$0xff] %v1051_v52  ;;  %1054 = vst [vmem:[#allocation2 + $0x8e8] sm:$0xff] %v1053_v53  ;;  %v1057_v55 = vld [vmem:[%s9938_s13 + $0x900] sm:$0xff]  ;;  %v1059_v56 = vld [vmem:[%s9938_s13 + $0x908] sm:$0xff] }
  0xa7   : > { %1056 = vst [vmem:[#allocation2 + $0x8f8] sm:$0xff] %v1055_v54  ;;  %1058 = vst [vmem:[#allocation2 + $0x900] sm:$0xff] %v1057_v55  ;;  %v1061_v57 = vld [vmem:[%s9938_s13 + $0x910] sm:$0xff]  ;;  %v1063_v58 = vld [vmem:[%s9938_s13 + $0x918] sm:$0xff] }
  0xa8   : > { %1060 = vst [vmem:[#allocation2 + $0x908] sm:$0xff] %v1059_v56  ;;  %v1065_v59 = vld [vmem:[%s9938_s13 + $0x920] sm:$0xff]  ;;  %1062 = vst [vmem:[#allocation2 + $0x910] sm:$0xff] %v1061_v57  ;;  %v1067_v60 = vld [vmem:[%s9938_s13 + $0x930] sm:$0xff] }
  0xa9   : > { %1064 = vst [vmem:[#allocation2 + $0x918] sm:$0xff] %v1063_v58  ;;  %1066 = vst [vmem:[#allocation2 + $0x920] sm:$0xff] %v1065_v59  ;;  %v1069_v61 = vld [vmem:[%s9938_s13 + $0x938] sm:$0xff]  ;;  %v1071_v62 = vld [vmem:[%s9938_s13 + $0x940] sm:$0xff] }
  0xaa   : > { %1068 = vst [vmem:[#allocation2 + $0x930] sm:$0xff] %v1067_v60  ;;  %1070 = vst [vmem:[#allocation2 + $0x938] sm:$0xff] %v1069_v61  ;;  %v1073_v63 = vld [vmem:[%s9938_s13 + $0x948] sm:$0xff]  ;;  %v1075_v0 = vld [vmem:[%s9938_s13 + $0x950] sm:$0xff] }
  0xab   : > { %1072 = vst [vmem:[#allocation2 + $0x940] sm:$0xff] %v1071_v62  ;;  %v1077_v1 = vld [vmem:[%s9938_s13 + $0x958] sm:$0xff]  ;;  %1074 = vst [vmem:[#allocation2 + $0x948] sm:$0xff] %v1073_v63  ;;  %v1079_v2 = vld [vmem:[%s9938_s13 + $0x968] sm:$0xff] }
  0xac   : > { %1076 = vst [vmem:[#allocation2 + $0x950] sm:$0xff] %v1075_v0  ;;  %1078 = vst [vmem:[#allocation2 + $0x958] sm:$0xff] %v1077_v1  ;;  %v1081_v3 = vld [vmem:[%s9938_s13 + $0x970] sm:$0xff]  ;;  %v1083_v4 = vld [vmem:[%s9938_s13 + $0x978] sm:$0xff] }
  0xad   : > { %1080 = vst [vmem:[#allocation2 + $0x968] sm:$0xff] %v1079_v2  ;;  %1082 = vst [vmem:[#allocation2 + $0x970] sm:$0xff] %v1081_v3  ;;  %v1085_v5 = vld [vmem:[%s9938_s13 + $0x980] sm:$0xff]  ;;  %v1087_v6 = vld [vmem:[%s9938_s13 + $0x988] sm:$0xff] }
  0xae   : > { %1084 = vst [vmem:[#allocation2 + $0x978] sm:$0xff] %v1083_v4  ;;  %v1089_v7 = vld [vmem:[%s9938_s13 + $0x990] sm:$0xff]  ;;  %1086 = vst [vmem:[#allocation2 + $0x980] sm:$0xff] %v1085_v5  ;;  %v6991_v9 = vld [vmem:[%s9938_s13 + $0x68] sm:$0xf] }
  0xaf   : > { %1088 = vst [vmem:[#allocation2 + $0x988] sm:$0xff] %v1087_v6  ;;  %1090 = vst [vmem:[#allocation2 + $0x990] sm:$0xff] %v1089_v7  ;;  %v6990_v8 = vld [vmem:[%s9938_s13 + $0x30] sm:$0xf]  ;;  %v6992_v10 = vld [vmem:[%s9938_s13 + $0xa0] sm:$0xf] }
  0xb0   : > { %1102 = vst [vmem:[#allocation2 + $0x30] sm:$0xf] %v6990_v8  ;;  %1104 = vst [vmem:[#allocation2 + $0x68] sm:$0xf] %v6991_v9  ;;  %v6993_v11 = vld [vmem:[%s9938_s13 + $0xd8] sm:$0xf] }
  0xb1   : > { %1106 = vst [vmem:[#allocation2 + $0xa0] sm:$0xf] %v6992_v10  ;;  %v6994_v12 = vld [vmem:[%s9938_s13 + $0x110] sm:$0xf]  ;;  %v6995_v13 = vld [vmem:[%s9938_s13 + $0x148] sm:$0xf] }
  0xb2   : > { %1108 = vst [vmem:[#allocation2 + $0xd8] sm:$0xf] %v6993_v11  ;;  %1110 = vst [vmem:[#allocation2 + $0x110] sm:$0xf] %v6994_v12  ;;  %v6996_v14 = vld [vmem:[%s9938_s13 + $0x180] sm:$0xf] }
  0xb3   : > { %1112 = vst [vmem:[#allocation2 + $0x148] sm:$0xf] %v6995_v13  ;;  %v6997_v15 = vld [vmem:[%s9938_s13 + $0x1b8] sm:$0xf]  ;;  %v6998_v16 = vld [vmem:[%s9938_s13 + $0x1f0] sm:$0xf] }
  0xb4   : > { %1114 = vst [vmem:[#allocation2 + $0x180] sm:$0xf] %v6996_v14  ;;  %1116 = vst [vmem:[#allocation2 + $0x1b8] sm:$0xf] %v6997_v15  ;;  %v6999_v17 = vld [vmem:[%s9938_s13 + $0x228] sm:$0xf] }
  0xb5   : > { %1118 = vst [vmem:[#allocation2 + $0x1f0] sm:$0xf] %v6998_v16  ;;  %v7000_v18 = vld [vmem:[%s9938_s13 + $0x260] sm:$0xf]  ;;  %v7001_v19 = vld [vmem:[%s9938_s13 + $0x298] sm:$0xf] }
  0xb6   : > { %1120 = vst [vmem:[#allocation2 + $0x228] sm:$0xf] %v6999_v17  ;;  %1122 = vst [vmem:[#allocation2 + $0x260] sm:$0xf] %v7000_v18  ;;  %v7002_v20 = vld [vmem:[%s9938_s13 + $0x2d0] sm:$0xf] }
  0xb7   : > { %1124 = vst [vmem:[#allocation2 + $0x298] sm:$0xf] %v7001_v19  ;;  %v7003_v21 = vld [vmem:[%s9938_s13 + $0x308] sm:$0xf]  ;;  %v7004_v22 = vld [vmem:[%s9938_s13 + $0x340] sm:$0xf] }
  0xb8   : > { %1126 = vst [vmem:[#allocation2 + $0x2d0] sm:$0xf] %v7002_v20  ;;  %1128 = vst [vmem:[#allocation2 + $0x308] sm:$0xf] %v7003_v21  ;;  %v7005_v23 = vld [vmem:[%s9938_s13 + $0x378] sm:$0xf] }
  0xb9   : > { %1130 = vst [vmem:[#allocation2 + $0x340] sm:$0xf] %v7004_v22  ;;  %v7006_v24 = vld [vmem:[%s9938_s13 + $0x3b0] sm:$0xf]  ;;  %v7007_v25 = vld [vmem:[%s9938_s13 + $0x3e8] sm:$0xf] }
  0xba   : > { %1132 = vst [vmem:[#allocation2 + $0x378] sm:$0xf] %v7005_v23  ;;  %1134 = vst [vmem:[#allocation2 + $0x3b0] sm:$0xf] %v7006_v24  ;;  %v7008_v26 = vld [vmem:[%s9938_s13 + $0x420] sm:$0xf] }
  0xbb   : > { %1136 = vst [vmem:[#allocation2 + $0x3e8] sm:$0xf] %v7007_v25  ;;  %v7009_v27 = vld [vmem:[%s9938_s13 + $0x458] sm:$0xf]  ;;  %v7010_v28 = vld [vmem:[%s9938_s13 + $0x490] sm:$0xf] }
  0xbc   : > { %1138 = vst [vmem:[#allocation2 + $0x420] sm:$0xf] %v7008_v26  ;;  %1140 = vst [vmem:[#allocation2 + $0x458] sm:$0xf] %v7009_v27  ;;  %v7011_v29 = vld [vmem:[%s9938_s13 + $0x4c8] sm:$0xf] }
  0xbd   : > { %1142 = vst [vmem:[#allocation2 + $0x490] sm:$0xf] %v7010_v28  ;;  %v7012_v30 = vld [vmem:[%s9938_s13 + $0x500] sm:$0xf]  ;;  %v7013_v31 = vld [vmem:[%s9938_s13 + $0x538] sm:$0xf] }
  0xbe   : > { %1144 = vst [vmem:[#allocation2 + $0x4c8] sm:$0xf] %v7011_v29  ;;  %1146 = vst [vmem:[#allocation2 + $0x500] sm:$0xf] %v7012_v30  ;;  %v7014_v32 = vld [vmem:[%s9938_s13 + $0x570] sm:$0xf] }
  0xbf   : > { %1148 = vst [vmem:[#allocation2 + $0x538] sm:$0xf] %v7013_v31  ;;  %v7015_v33 = vld [vmem:[%s9938_s13 + $0x5a8] sm:$0xf]  ;;  %v7016_v34 = vld [vmem:[%s9938_s13 + $0x5e0] sm:$0xf] }
  0xc0   : > { %1150 = vst [vmem:[#allocation2 + $0x570] sm:$0xf] %v7014_v32  ;;  %1152 = vst [vmem:[#allocation2 + $0x5a8] sm:$0xf] %v7015_v33  ;;  %v7017_v35 = vld [vmem:[%s9938_s13 + $0x618] sm:$0xf] }
  0xc1   : > { %1154 = vst [vmem:[#allocation2 + $0x5e0] sm:$0xf] %v7016_v34  ;;  %v7018_v36 = vld [vmem:[%s9938_s13 + $0x650] sm:$0xf]  ;;  %v7019_v37 = vld [vmem:[%s9938_s13 + $0x688] sm:$0xf] }
  0xc2   : > { %1156 = vst [vmem:[#allocation2 + $0x618] sm:$0xf] %v7017_v35  ;;  %1158 = vst [vmem:[#allocation2 + $0x650] sm:$0xf] %v7018_v36  ;;  %v7020_v38 = vld [vmem:[%s9938_s13 + $0x6c0] sm:$0xf] }
  0xc3   : > { %1160 = vst [vmem:[#allocation2 + $0x688] sm:$0xf] %v7019_v37  ;;  %v7021_v39 = vld [vmem:[%s9938_s13 + $0x6f8] sm:$0xf]  ;;  %v7022_v40 = vld [vmem:[%s9938_s13 + $0x730] sm:$0xf] }
  0xc4   : > { %1162 = vst [vmem:[#allocation2 + $0x6c0] sm:$0xf] %v7020_v38  ;;  %1164 = vst [vmem:[#allocation2 + $0x6f8] sm:$0xf] %v7021_v39  ;;  %v7023_v41 = vld [vmem:[%s9938_s13 + $0x768] sm:$0xf] }
  0xc5   : > { %1166 = vst [vmem:[#allocation2 + $0x730] sm:$0xf] %v7022_v40  ;;  %v7024_v42 = vld [vmem:[%s9938_s13 + $0x7a0] sm:$0xf]  ;;  %v7025_v43 = vld [vmem:[%s9938_s13 + $0x7d8] sm:$0xf] }
  0xc6   : > { %1168 = vst [vmem:[#allocation2 + $0x768] sm:$0xf] %v7023_v41  ;;  %1170 = vst [vmem:[#allocation2 + $0x7a0] sm:$0xf] %v7024_v42  ;;  %v7026_v44 = vld [vmem:[%s9938_s13 + $0x810] sm:$0xf] }
  0xc7   : > { %1172 = vst [vmem:[#allocation2 + $0x7d8] sm:$0xf] %v7025_v43  ;;  %v7027_v45 = vld [vmem:[%s9938_s13 + $0x848] sm:$0xf]  ;;  %v7028_v46 = vld [vmem:[%s9938_s13 + $0x880] sm:$0xf] }
  0xc8   : > { %1174 = vst [vmem:[#allocation2 + $0x810] sm:$0xf] %v7026_v44  ;;  %1176 = vst [vmem:[#allocation2 + $0x848] sm:$0xf] %v7027_v45  ;;  %v7029_v47 = vld [vmem:[%s9938_s13 + $0x8b8] sm:$0xf] }
  0xc9   : > { %1178 = vst [vmem:[#allocation2 + $0x880] sm:$0xf] %v7028_v46  ;;  %v7030_v48 = vld [vmem:[%s9938_s13 + $0x8f0] sm:$0xf]  ;;  %v7031_v49 = vld [vmem:[%s9938_s13 + $0x928] sm:$0xf] }
  0xca   : > { %1180 = vst [vmem:[#allocation2 + $0x8b8] sm:$0xf] %v7029_v47  ;;  %1182 = vst [vmem:[#allocation2 + $0x8f0] sm:$0xf] %v7030_v48  ;;  %v7032_v50 = vld [vmem:[%s9938_s13 + $0x960] sm:$0xf] }
  0xcb   : > { %1184 = vst [vmem:[#allocation2 + $0x928] sm:$0xf] %v7031_v49  ;;  %v7033_v51 = vld [vmem:[%s9938_s13 + $0x998] sm:$0xf]  ;;  %1186 = vst [vmem:[#allocation2 + $0x960] sm:$0xf] %v7032_v50 }
  0xcc   : > { %1188 = vst [vmem:[#allocation2 + $0x998] sm:$0xf] %v7033_v51 }
  0xcd   : > { %1192 = vsyncadd [#allocation5], 36608 }
  0xce PF: > { %s1193_s27 = sadd.s32 1, %s9753_s28 }
  0xcf   : > { %p7034_p2 = scmp.ge.s32.totalorder %s1193_s27, 2 }
  0xd0   : > { %p1198_p4 = scmp.lt.s32.totalorder (!%p7034_p2), %s1193_s27, 0  ;;  %s1199_s30 = ssub.s32 (!%p7034_p2), 0, %s1193_s27 }
  0xd1   : > { %1197 = sbr.rel (%p7034_p2) target bundleno = 378 (0x17a), region = 113  ;;  %s7035_s15 = smin.u32 (!%p7034_p2), %s1199_s30, %s1193_s27 }
  0xd2   : > { %s6881_s18 = smul.u32 (!%p7034_p2), 448, %s9753_s28  ;;  %s1201_s17 = sand.u32 (!%p7034_p2), 1, %s7035_s15  }
  0xd3   : > { %s6882_s20 = smul.u32 (!%p7034_p2), 2912, %s9757_s29  ;;  %s1202_s23 = ssub.s32 (!%p7034_p2), 0, %s1201_s17 }
  0xd5   : > { %s6883_s24 = sadd.s32 (!%p7034_p2), %s6882_s20, %s6881_s18 }
  0xd6   : > { %s14251_s23 = smov (!%p1198_p4, %s1202_s23), %s1201_s17  ;;  %s10254_s21 = scalar_lea.vmem %s14073_s1, %s6883_s24 }
  0xd7   : > { %p7037_p5 = scmp.lt.s32.totalorder %s14251_s23, 0  ;;  %s1208_s13 = sadd.s32 2, %s14251_s23  ;;  %v7039_v52 = vld [vmem:[%s10254_s21 + $0x1c0] sm:$0xff]  ;;  %v7040_v53 = vld [vmem:[%s10254_s21 + $0x1c8] sm:$0xff]  ;;  %v7041_v54 = vld [vmem:[%s10254_s21 + $0x1d0] sm:$0xff] }
  0xd8   : > { %v7042_v55 = vld [vmem:[%s10254_s21 + $0x1d8] sm:$0xff]  ;;  %v7043_v56 = vld [vmem:[%s10254_s21 + $0x1e0] sm:$0xff]  ;;  %v7044_v57 = vld [vmem:[%s10254_s21 + $0x1e8] sm:$0xff] }
  0xd9   : > { %s14253_s13 = smov (!%p7037_p5, %s1208_s13), %s14251_s23  ;;  %v7045_v58 = vld [vmem:[%s10254_s21 + $0x1f8] sm:$0xff]  ;;  %v7046_v59 = vld [vmem:[%s10254_s21 + $0x200] sm:$0xff]  ;;  %v7047_v60 = vld [vmem:[%s10254_s21 + $0x208] sm:$0xff] }
  0xda   : > { %s1215_s16 = smul.u32 2464, %s14253_s13  ;;  %v7048_v61 = vld [vmem:[%s10254_s21 + $0x210] sm:$0xff]  ;;  %v7049_v62 = vld [vmem:[%s10254_s21 + $0x218] sm:$0xff]  ;;  %v7050_v63 = vld [vmem:[%s10254_s21 + $0x220] sm:$0xff]  ;;  %s1217_s30 = scalar_lea.sflag [#allocation5], %s14253_s13 }
  0xdb   : > { %v7051_v0 = vld [vmem:[%s10254_s21 + $0x230] sm:$0xff]  ;;  %v7052_v1 = vld [vmem:[%s10254_s21 + $0x238] sm:$0xff]  ;;  %v7053_v2 = vld [vmem:[%s10254_s21 + $0x240] sm:$0xff] }
  0xdc   : > { %s10274_s27 = scalar_lea.vmem [#allocation2], %s1215_s16  ;;  %v7054_v3 = vld [vmem:[%s10254_s21 + $0x248] sm:$0xff]  ;;  %v7055_v4 = vld [vmem:[%s10254_s21 + $0x250] sm:$0xff]  ;;  %v7056_v5 = vld [vmem:[%s10254_s21 + $0x258] sm:$0xff] }
  0xdd   : > { %1343 = vst [vmem:[%s10274_s27] sm:$0xff] %v7039_v52  ;;  %1345 = vst [vmem:[%s10274_s27 + $0x8] sm:$0xff] %v7040_v53  ;;  %v7057_v6 = vld [vmem:[%s10254_s21 + $0x268] sm:$0xff]  ;;  %v7058_v7 = vld [vmem:[%s10254_s21 + $0x270] sm:$0xff] }
  0xde   : > { %1347 = vst [vmem:[%s10274_s27 + $0x10] sm:$0xff] %v7041_v54  ;;  %1349 = vst [vmem:[%s10274_s27 + $0x18] sm:$0xff] %v7042_v55  ;;  %v7059_v8 = vld [vmem:[%s10254_s21 + $0x278] sm:$0xff]  ;;  %v7060_v9 = vld [vmem:[%s10254_s21 + $0x280] sm:$0xff] }
  0xdf   : > { %1351 = vst [vmem:[%s10274_s27 + $0x20] sm:$0xff] %v7043_v56  ;;  %1353 = vst [vmem:[%s10274_s27 + $0x28] sm:$0xff] %v7044_v57  ;;  %v7061_v10 = vld [vmem:[%s10254_s21 + $0x288] sm:$0xff]  ;;  %v7062_v11 = vld [vmem:[%s10254_s21 + $0x290] sm:$0xff] }
  0xe0   : > { %1355 = vst [vmem:[%s10274_s27 + $0x38] sm:$0xff] %v7045_v58  ;;  %1357 = vst [vmem:[%s10274_s27 + $0x40] sm:$0xff] %v7046_v59  ;;  %v7063_v12 = vld [vmem:[%s10254_s21 + $0x2a0] sm:$0xff]  ;;  %v7064_v13 = vld [vmem:[%s10254_s21 + $0x2a8] sm:$0xff] }
  0xe1   : > { %1359 = vst [vmem:[%s10274_s27 + $0x48] sm:$0xff] %v7047_v60  ;;  %1361 = vst [vmem:[%s10274_s27 + $0x50] sm:$0xff] %v7048_v61  ;;  %v7065_v14 = vld [vmem:[%s10254_s21 + $0x2b0] sm:$0xff]  ;;  %v7066_v15 = vld [vmem:[%s10254_s21 + $0x2b8] sm:$0xff] }
  0xe2   : > { %1363 = vst [vmem:[%s10274_s27 + $0x58] sm:$0xff] %v7049_v62  ;;  %1365 = vst [vmem:[%s10274_s27 + $0x60] sm:$0xff] %v7050_v63  ;;  %v7067_v16 = vld [vmem:[%s10254_s21 + $0x2c0] sm:$0xff]  ;;  %v7068_v17 = vld [vmem:[%s10254_s21 + $0x2c8] sm:$0xff] }
  0xe3   : > { %1367 = vst [vmem:[%s10274_s27 + $0x70] sm:$0xff] %v7051_v0  ;;  %1369 = vst [vmem:[%s10274_s27 + $0x78] sm:$0xff] %v7052_v1  ;;  %v7069_v18 = vld [vmem:[%s10254_s21 + $0x2d8] sm:$0xff]  ;;  %v7070_v19 = vld [vmem:[%s10254_s21 + $0x2e0] sm:$0xff] }
  0xe4   : > { %1371 = vst [vmem:[%s10274_s27 + $0x80] sm:$0xff] %v7053_v2  ;;  %1373 = vst [vmem:[%s10274_s27 + $0x88] sm:$0xff] %v7054_v3  ;;  %v7071_v20 = vld [vmem:[%s10254_s21 + $0x2e8] sm:$0xff]  ;;  %v7072_v21 = vld [vmem:[%s10254_s21 + $0x2f0] sm:$0xff] }
  0xe5   : > { %1375 = vst [vmem:[%s10274_s27 + $0x90] sm:$0xff] %v7055_v4  ;;  %1377 = vst [vmem:[%s10274_s27 + $0x98] sm:$0xff] %v7056_v5  ;;  %v7073_v22 = vld [vmem:[%s10254_s21 + $0x2f8] sm:$0xff]  ;;  %v7074_v23 = vld [vmem:[%s10254_s21 + $0x300] sm:$0xff] }
  0xe6   : > { %1379 = vst [vmem:[%s10274_s27 + $0xa8] sm:$0xff] %v7057_v6  ;;  %1381 = vst [vmem:[%s10274_s27 + $0xb0] sm:$0xff] %v7058_v7  ;;  %v7075_v24 = vld [vmem:[%s10254_s21 + $0x310] sm:$0xff]  ;;  %v7076_v25 = vld [vmem:[%s10254_s21 + $0x318] sm:$0xff] }
  0xe7   : > { %1383 = vst [vmem:[%s10274_s27 + $0xb8] sm:$0xff] %v7059_v8  ;;  %1385 = vst [vmem:[%s10274_s27 + $0xc0] sm:$0xff] %v7060_v9  ;;  %v7077_v26 = vld [vmem:[%s10254_s21 + $0x320] sm:$0xff]  ;;  %v7078_v27 = vld [vmem:[%s10254_s21 + $0x328] sm:$0xff] }
  0xe8   : > { %1387 = vst [vmem:[%s10274_s27 + $0xc8] sm:$0xff] %v7061_v10  ;;  %1389 = vst [vmem:[%s10274_s27 + $0xd0] sm:$0xff] %v7062_v11  ;;  %v7079_v28 = vld [vmem:[%s10254_s21 + $0x330] sm:$0xff]  ;;  %v7080_v29 = vld [vmem:[%s10254_s21 + $0x338] sm:$0xff] }
  0xe9   : > { %1391 = vst [vmem:[%s10274_s27 + $0xe0] sm:$0xff] %v7063_v12  ;;  %1393 = vst [vmem:[%s10274_s27 + $0xe8] sm:$0xff] %v7064_v13  ;;  %v7081_v30 = vld [vmem:[%s10254_s21 + $0x348] sm:$0xff]  ;;  %v7082_v31 = vld [vmem:[%s10254_s21 + $0x350] sm:$0xff] }
  0xea   : > { %1395 = vst [vmem:[%s10274_s27 + $0xf0] sm:$0xff] %v7065_v14  ;;  %1397 = vst [vmem:[%s10274_s27 + $0xf8] sm:$0xff] %v7066_v15  ;;  %v7083_v32 = vld [vmem:[%s10254_s21 + $0x358] sm:$0xff]  ;;  %v7084_v33 = vld [vmem:[%s10254_s21 + $0x360] sm:$0xff] }
  0xeb   : > { %1399 = vst [vmem:[%s10274_s27 + $0x100] sm:$0xff] %v7067_v16  ;;  %1401 = vst [vmem:[%s10274_s27 + $0x108] sm:$0xff] %v7068_v17  ;;  %v7085_v34 = vld [vmem:[%s10254_s21 + $0x368] sm:$0xff]  ;;  %v7086_v35 = vld [vmem:[%s10254_s21 + $0x370] sm:$0xff] }
  0xec   : > { %1403 = vst [vmem:[%s10274_s27 + $0x118] sm:$0xff] %v7069_v18  ;;  %1405 = vst [vmem:[%s10274_s27 + $0x120] sm:$0xff] %v7070_v19  ;;  %v7087_v36 = vld [vmem:[%s10254_s21 + $0x380] sm:$0xff]  ;;  %v7088_v37 = vld [vmem:[%s10254_s21 + $0x388] sm:$0xff] }
  0xed   : > { %1407 = vst [vmem:[%s10274_s27 + $0x128] sm:$0xff] %v7071_v20  ;;  %1409 = vst [vmem:[%s10274_s27 + $0x130] sm:$0xff] %v7072_v21  ;;  %v7089_v38 = vld [vmem:[%s10254_s21 + $0x390] sm:$0xff]  ;;  %v7090_v39 = vld [vmem:[%s10254_s21 + $0x398] sm:$0xff] }
  0xee   : > { %1411 = vst [vmem:[%s10274_s27 + $0x138] sm:$0xff] %v7073_v22  ;;  %1413 = vst [vmem:[%s10274_s27 + $0x140] sm:$0xff] %v7074_v23  ;;  %v7091_v40 = vld [vmem:[%s10254_s21 + $0x3a0] sm:$0xff]  ;;  %v7092_v41 = vld [vmem:[%s10254_s21 + $0x3a8] sm:$0xff] }
  0xef   : > { %1415 = vst [vmem:[%s10274_s27 + $0x150] sm:$0xff] %v7075_v24  ;;  %1417 = vst [vmem:[%s10274_s27 + $0x158] sm:$0xff] %v7076_v25  ;;  %v7093_v42 = vld [vmem:[%s10254_s21 + $0x3b8] sm:$0xff]  ;;  %v7094_v43 = vld [vmem:[%s10254_s21 + $0x3c0] sm:$0xff] }
  0xf0   : > { %1419 = vst [vmem:[%s10274_s27 + $0x160] sm:$0xff] %v7077_v26  ;;  %1421 = vst [vmem:[%s10274_s27 + $0x168] sm:$0xff] %v7078_v27  ;;  %v7095_v44 = vld [vmem:[%s10254_s21 + $0x3c8] sm:$0xff]  ;;  %v7096_v45 = vld [vmem:[%s10254_s21 + $0x3d0] sm:$0xff] }
  0xf1   : > { %1423 = vst [vmem:[%s10274_s27 + $0x170] sm:$0xff] %v7079_v28  ;;  %1425 = vst [vmem:[%s10274_s27 + $0x178] sm:$0xff] %v7080_v29  ;;  %v7097_v46 = vld [vmem:[%s10254_s21 + $0x3d8] sm:$0xff]  ;;  %v7098_v47 = vld [vmem:[%s10254_s21 + $0x3e0] sm:$0xff] }
  0xf2   : > { %1427 = vst [vmem:[%s10274_s27 + $0x188] sm:$0xff] %v7081_v30  ;;  %1429 = vst [vmem:[%s10274_s27 + $0x190] sm:$0xff] %v7082_v31  ;;  %v7099_v48 = vld [vmem:[%s10254_s21 + $0x3f0] sm:$0xff]  ;;  %v7100_v49 = vld [vmem:[%s10254_s21 + $0x3f8] sm:$0xff] }
  0xf3   : > { %1431 = vst [vmem:[%s10274_s27 + $0x198] sm:$0xff] %v7083_v32  ;;  %1433 = vst [vmem:[%s10274_s27 + $0x1a0] sm:$0xff] %v7084_v33  ;;  %v7101_v50 = vld [vmem:[%s10254_s21 + $0x400] sm:$0xff]  ;;  %v7102_v51 = vld [vmem:[%s10254_s21 + $0x408] sm:$0xff] }
  0xf4   : > { %1435 = vst [vmem:[%s10274_s27 + $0x1a8] sm:$0xff] %v7085_v34  ;;  %1437 = vst [vmem:[%s10274_s27 + $0x1b0] sm:$0xff] %v7086_v35  ;;  %v7103_v52 = vld [vmem:[%s10254_s21 + $0x410] sm:$0xff]  ;;  %v7104_v53 = vld [vmem:[%s10254_s21 + $0x418] sm:$0xff] }
  0xf5   : > { %1439 = vst [vmem:[%s10274_s27 + $0x1c0] sm:$0xff] %v7087_v36  ;;  %1441 = vst [vmem:[%s10274_s27 + $0x1c8] sm:$0xff] %v7088_v37  ;;  %v7105_v54 = vld [vmem:[%s10254_s21 + $0x428] sm:$0xff]  ;;  %v7106_v55 = vld [vmem:[%s10254_s21 + $0x430] sm:$0xff] }
  0xf6   : > { %1443 = vst [vmem:[%s10274_s27 + $0x1d0] sm:$0xff] %v7089_v38  ;;  %1445 = vst [vmem:[%s10274_s27 + $0x1d8] sm:$0xff] %v7090_v39  ;;  %v7107_v56 = vld [vmem:[%s10254_s21 + $0x438] sm:$0xff]  ;;  %v7108_v57 = vld [vmem:[%s10254_s21 + $0x440] sm:$0xff] }
  0xf7   : > { %1447 = vst [vmem:[%s10274_s27 + $0x1e0] sm:$0xff] %v7091_v40  ;;  %1449 = vst [vmem:[%s10274_s27 + $0x1e8] sm:$0xff] %v7092_v41  ;;  %v7109_v58 = vld [vmem:[%s10254_s21 + $0x448] sm:$0xff]  ;;  %v7110_v59 = vld [vmem:[%s10254_s21 + $0x450] sm:$0xff] }
  0xf8   : > { %1451 = vst [vmem:[%s10274_s27 + $0x1f8] sm:$0xff] %v7093_v42  ;;  %1453 = vst [vmem:[%s10274_s27 + $0x200] sm:$0xff] %v7094_v43  ;;  %v7111_v60 = vld [vmem:[%s10254_s21 + $0x460] sm:$0xff]  ;;  %v7112_v61 = vld [vmem:[%s10254_s21 + $0x468] sm:$0xff] }
  0xf9   : > { %1455 = vst [vmem:[%s10274_s27 + $0x208] sm:$0xff] %v7095_v44  ;;  %1457 = vst [vmem:[%s10274_s27 + $0x210] sm:$0xff] %v7096_v45  ;;  %v7113_v62 = vld [vmem:[%s10254_s21 + $0x470] sm:$0xff]  ;;  %v7114_v63 = vld [vmem:[%s10254_s21 + $0x478] sm:$0xff] }
  0xfa   : > { %1459 = vst [vmem:[%s10274_s27 + $0x218] sm:$0xff] %v7097_v46  ;;  %1461 = vst [vmem:[%s10274_s27 + $0x220] sm:$0xff] %v7098_v47  ;;  %v7115_v0 = vld [vmem:[%s10254_s21 + $0x480] sm:$0xff]  ;;  %v7116_v1 = vld [vmem:[%s10254_s21 + $0x488] sm:$0xff] }
  0xfb   : > { %1463 = vst [vmem:[%s10274_s27 + $0x230] sm:$0xff] %v7099_v48  ;;  %1465 = vst [vmem:[%s10274_s27 + $0x238] sm:$0xff] %v7100_v49  ;;  %v7117_v2 = vld [vmem:[%s10254_s21 + $0x498] sm:$0xff]  ;;  %v7118_v3 = vld [vmem:[%s10254_s21 + $0x4a0] sm:$0xff] }
  0xfc   : > { %1467 = vst [vmem:[%s10274_s27 + $0x240] sm:$0xff] %v7101_v50  ;;  %1469 = vst [vmem:[%s10274_s27 + $0x248] sm:$0xff] %v7102_v51  ;;  %v7119_v4 = vld [vmem:[%s10254_s21 + $0x4a8] sm:$0xff]  ;;  %v7120_v5 = vld [vmem:[%s10254_s21 + $0x4b0] sm:$0xff] }
  0xfd   : > { %1471 = vst [vmem:[%s10274_s27 + $0x250] sm:$0xff] %v7103_v52  ;;  %1473 = vst [vmem:[%s10274_s27 + $0x258] sm:$0xff] %v7104_v53  ;;  %v7121_v6 = vld [vmem:[%s10254_s21 + $0x4b8] sm:$0xff]  ;;  %v7122_v7 = vld [vmem:[%s10254_s21 + $0x4c0] sm:$0xff] }
  0xfe   : > { %1475 = vst [vmem:[%s10274_s27 + $0x268] sm:$0xff] %v7105_v54  ;;  %1477 = vst [vmem:[%s10274_s27 + $0x270] sm:$0xff] %v7106_v55  ;;  %v7123_v8 = vld [vmem:[%s10254_s21 + $0x4d0] sm:$0xff]  ;;  %v7124_v9 = vld [vmem:[%s10254_s21 + $0x4d8] sm:$0xff] }
  0xff   : > { %1479 = vst [vmem:[%s10274_s27 + $0x278] sm:$0xff] %v7107_v56  ;;  %1481 = vst [vmem:[%s10274_s27 + $0x280] sm:$0xff] %v7108_v57  ;;  %v7125_v10 = vld [vmem:[%s10254_s21 + $0x4e0] sm:$0xff]  ;;  %v7126_v11 = vld [vmem:[%s10254_s21 + $0x4e8] sm:$0xff] }
 0x100   : > { %1483 = vst [vmem:[%s10274_s27 + $0x288] sm:$0xff] %v7109_v58  ;;  %1485 = vst [vmem:[%s10274_s27 + $0x290] sm:$0xff] %v7110_v59  ;;  %v7127_v12 = vld [vmem:[%s10254_s21 + $0x4f0] sm:$0xff]  ;;  %v7128_v13 = vld [vmem:[%s10254_s21 + $0x4f8] sm:$0xff] }
 0x101   : > { %1487 = vst [vmem:[%s10274_s27 + $0x2a0] sm:$0xff] %v7111_v60  ;;  %1489 = vst [vmem:[%s10274_s27 + $0x2a8] sm:$0xff] %v7112_v61  ;;  %v7129_v14 = vld [vmem:[%s10254_s21 + $0x508] sm:$0xff]  ;;  %v7130_v15 = vld [vmem:[%s10254_s21 + $0x510] sm:$0xff] }
 0x102   : > { %1491 = vst [vmem:[%s10274_s27 + $0x2b0] sm:$0xff] %v7113_v62  ;;  %1493 = vst [vmem:[%s10274_s27 + $0x2b8] sm:$0xff] %v7114_v63  ;;  %v7131_v16 = vld [vmem:[%s10254_s21 + $0x518] sm:$0xff]  ;;  %v7132_v17 = vld [vmem:[%s10254_s21 + $0x520] sm:$0xff] }
 0x103   : > { %1495 = vst [vmem:[%s10274_s27 + $0x2c0] sm:$0xff] %v7115_v0  ;;  %1497 = vst [vmem:[%s10274_s27 + $0x2c8] sm:$0xff] %v7116_v1  ;;  %v7133_v18 = vld [vmem:[%s10254_s21 + $0x528] sm:$0xff]  ;;  %v7134_v19 = vld [vmem:[%s10254_s21 + $0x530] sm:$0xff] }
 0x104   : > { %1499 = vst [vmem:[%s10274_s27 + $0x2d8] sm:$0xff] %v7117_v2  ;;  %1501 = vst [vmem:[%s10274_s27 + $0x2e0] sm:$0xff] %v7118_v3  ;;  %v7135_v20 = vld [vmem:[%s10254_s21 + $0x540] sm:$0xff]  ;;  %v7136_v21 = vld [vmem:[%s10254_s21 + $0x548] sm:$0xff] }
 0x105   : > { %1503 = vst [vmem:[%s10274_s27 + $0x2e8] sm:$0xff] %v7119_v4  ;;  %1505 = vst [vmem:[%s10274_s27 + $0x2f0] sm:$0xff] %v7120_v5  ;;  %v7137_v22 = vld [vmem:[%s10254_s21 + $0x550] sm:$0xff]  ;;  %v7138_v23 = vld [vmem:[%s10254_s21 + $0x558] sm:$0xff] }
 0x106   : > { %1507 = vst [vmem:[%s10274_s27 + $0x2f8] sm:$0xff] %v7121_v6  ;;  %1509 = vst [vmem:[%s10274_s27 + $0x300] sm:$0xff] %v7122_v7  ;;  %v7139_v24 = vld [vmem:[%s10254_s21 + $0x560] sm:$0xff]  ;;  %v7140_v25 = vld [vmem:[%s10254_s21 + $0x568] sm:$0xff] }
 0x107   : > { %1511 = vst [vmem:[%s10274_s27 + $0x310] sm:$0xff] %v7123_v8  ;;  %1513 = vst [vmem:[%s10274_s27 + $0x318] sm:$0xff] %v7124_v9  ;;  %v7141_v26 = vld [vmem:[%s10254_s21 + $0x578] sm:$0xff]  ;;  %v7142_v27 = vld [vmem:[%s10254_s21 + $0x580] sm:$0xff] }
 0x108   : > { %1515 = vst [vmem:[%s10274_s27 + $0x320] sm:$0xff] %v7125_v10  ;;  %1517 = vst [vmem:[%s10274_s27 + $0x328] sm:$0xff] %v7126_v11  ;;  %v7143_v28 = vld [vmem:[%s10254_s21 + $0x588] sm:$0xff]  ;;  %v7144_v29 = vld [vmem:[%s10254_s21 + $0x590] sm:$0xff] }
 0x109   : > { %1519 = vst [vmem:[%s10274_s27 + $0x330] sm:$0xff] %v7127_v12  ;;  %1521 = vst [vmem:[%s10274_s27 + $0x338] sm:$0xff] %v7128_v13  ;;  %v7145_v30 = vld [vmem:[%s10254_s21 + $0x598] sm:$0xff]  ;;  %v7146_v31 = vld [vmem:[%s10254_s21 + $0x5a0] sm:$0xff] }
 0x10a   : > { %1523 = vst [vmem:[%s10274_s27 + $0x348] sm:$0xff] %v7129_v14  ;;  %1525 = vst [vmem:[%s10274_s27 + $0x350] sm:$0xff] %v7130_v15  ;;  %v7147_v32 = vld [vmem:[%s10254_s21 + $0x5b0] sm:$0xff]  ;;  %v7148_v33 = vld [vmem:[%s10254_s21 + $0x5b8] sm:$0xff] }
 0x10b   : > { %1527 = vst [vmem:[%s10274_s27 + $0x358] sm:$0xff] %v7131_v16  ;;  %1529 = vst [vmem:[%s10274_s27 + $0x360] sm:$0xff] %v7132_v17  ;;  %v7149_v34 = vld [vmem:[%s10254_s21 + $0x5c0] sm:$0xff]  ;;  %v7150_v35 = vld [vmem:[%s10254_s21 + $0x5c8] sm:$0xff] }
 0x10c   : > { %1531 = vst [vmem:[%s10274_s27 + $0x368] sm:$0xff] %v7133_v18  ;;  %1533 = vst [vmem:[%s10274_s27 + $0x370] sm:$0xff] %v7134_v19  ;;  %v7151_v36 = vld [vmem:[%s10254_s21 + $0x5d0] sm:$0xff]  ;;  %v7152_v37 = vld [vmem:[%s10254_s21 + $0x5d8] sm:$0xff] }
 0x10d   : > { %1535 = vst [vmem:[%s10274_s27 + $0x380] sm:$0xff] %v7135_v20  ;;  %1537 = vst [vmem:[%s10274_s27 + $0x388] sm:$0xff] %v7136_v21  ;;  %v7153_v38 = vld [vmem:[%s10254_s21 + $0x5e8] sm:$0xff]  ;;  %v7154_v39 = vld [vmem:[%s10254_s21 + $0x5f0] sm:$0xff] }
 0x10e   : > { %1539 = vst [vmem:[%s10274_s27 + $0x390] sm:$0xff] %v7137_v22  ;;  %1541 = vst [vmem:[%s10274_s27 + $0x398] sm:$0xff] %v7138_v23  ;;  %v7155_v40 = vld [vmem:[%s10254_s21 + $0x5f8] sm:$0xff]  ;;  %v7156_v41 = vld [vmem:[%s10254_s21 + $0x600] sm:$0xff] }
 0x10f   : > { %1543 = vst [vmem:[%s10274_s27 + $0x3a0] sm:$0xff] %v7139_v24  ;;  %1545 = vst [vmem:[%s10274_s27 + $0x3a8] sm:$0xff] %v7140_v25  ;;  %v7157_v42 = vld [vmem:[%s10254_s21 + $0x608] sm:$0xff]  ;;  %v7158_v43 = vld [vmem:[%s10254_s21 + $0x610] sm:$0xff] }
 0x110   : > { %1547 = vst [vmem:[%s10274_s27 + $0x3b8] sm:$0xff] %v7141_v26  ;;  %1549 = vst [vmem:[%s10274_s27 + $0x3c0] sm:$0xff] %v7142_v27  ;;  %v7159_v44 = vld [vmem:[%s10254_s21 + $0x620] sm:$0xff]  ;;  %v7160_v45 = vld [vmem:[%s10254_s21 + $0x628] sm:$0xff] }
 0x111   : > { %1551 = vst [vmem:[%s10274_s27 + $0x3c8] sm:$0xff] %v7143_v28  ;;  %1553 = vst [vmem:[%s10274_s27 + $0x3d0] sm:$0xff] %v7144_v29  ;;  %v7161_v46 = vld [vmem:[%s10254_s21 + $0x630] sm:$0xff]  ;;  %v7162_v47 = vld [vmem:[%s10254_s21 + $0x638] sm:$0xff] }
 0x112   : > { %1555 = vst [vmem:[%s10274_s27 + $0x3d8] sm:$0xff] %v7145_v30  ;;  %1557 = vst [vmem:[%s10274_s27 + $0x3e0] sm:$0xff] %v7146_v31  ;;  %v7163_v48 = vld [vmem:[%s10254_s21 + $0x640] sm:$0xff]  ;;  %v7164_v49 = vld [vmem:[%s10254_s21 + $0x648] sm:$0xff] }
 0x113   : > { %1559 = vst [vmem:[%s10274_s27 + $0x3f0] sm:$0xff] %v7147_v32  ;;  %1561 = vst [vmem:[%s10274_s27 + $0x3f8] sm:$0xff] %v7148_v33  ;;  %v7165_v50 = vld [vmem:[%s10254_s21 + $0x658] sm:$0xff]  ;;  %v7166_v51 = vld [vmem:[%s10254_s21 + $0x660] sm:$0xff] }
 0x114   : > { %1563 = vst [vmem:[%s10274_s27 + $0x400] sm:$0xff] %v7149_v34  ;;  %1565 = vst [vmem:[%s10274_s27 + $0x408] sm:$0xff] %v7150_v35  ;;  %v7167_v52 = vld [vmem:[%s10254_s21 + $0x668] sm:$0xff]  ;;  %v7168_v53 = vld [vmem:[%s10254_s21 + $0x670] sm:$0xff] }
 0x115   : > { %1567 = vst [vmem:[%s10274_s27 + $0x410] sm:$0xff] %v7151_v36  ;;  %1569 = vst [vmem:[%s10274_s27 + $0x418] sm:$0xff] %v7152_v37  ;;  %v7169_v54 = vld [vmem:[%s10254_s21 + $0x678] sm:$0xff]  ;;  %v7170_v55 = vld [vmem:[%s10254_s21 + $0x680] sm:$0xff] }
 0x116   : > { %1571 = vst [vmem:[%s10274_s27 + $0x428] sm:$0xff] %v7153_v38  ;;  %1573 = vst [vmem:[%s10274_s27 + $0x430] sm:$0xff] %v7154_v39  ;;  %v7171_v56 = vld [vmem:[%s10254_s21 + $0x690] sm:$0xff]  ;;  %v7172_v57 = vld [vmem:[%s10254_s21 + $0x698] sm:$0xff] }
 0x117   : > { %1575 = vst [vmem:[%s10274_s27 + $0x438] sm:$0xff] %v7155_v40  ;;  %1577 = vst [vmem:[%s10274_s27 + $0x440] sm:$0xff] %v7156_v41  ;;  %v7173_v58 = vld [vmem:[%s10254_s21 + $0x6a0] sm:$0xff]  ;;  %v7174_v59 = vld [vmem:[%s10254_s21 + $0x6a8] sm:$0xff] }
 0x118   : > { %1579 = vst [vmem:[%s10274_s27 + $0x448] sm:$0xff] %v7157_v42  ;;  %1581 = vst [vmem:[%s10274_s27 + $0x450] sm:$0xff] %v7158_v43  ;;  %v7175_v60 = vld [vmem:[%s10254_s21 + $0x6b0] sm:$0xff]  ;;  %v7176_v61 = vld [vmem:[%s10254_s21 + $0x6b8] sm:$0xff] }
 0x119   : > { %1583 = vst [vmem:[%s10274_s27 + $0x460] sm:$0xff] %v7159_v44  ;;  %1585 = vst [vmem:[%s10274_s27 + $0x468] sm:$0xff] %v7160_v45  ;;  %v7177_v62 = vld [vmem:[%s10254_s21 + $0x6c8] sm:$0xff]  ;;  %v7178_v63 = vld [vmem:[%s10254_s21 + $0x6d0] sm:$0xff] }
 0x11a   : > { %1587 = vst [vmem:[%s10274_s27 + $0x470] sm:$0xff] %v7161_v46  ;;  %1589 = vst [vmem:[%s10274_s27 + $0x478] sm:$0xff] %v7162_v47  ;;  %v7179_v0 = vld [vmem:[%s10254_s21 + $0x6d8] sm:$0xff]  ;;  %v7180_v1 = vld [vmem:[%s10254_s21 + $0x6e0] sm:$0xff] }
 0x11b   : > { %1591 = vst [vmem:[%s10274_s27 + $0x480] sm:$0xff] %v7163_v48  ;;  %1593 = vst [vmem:[%s10274_s27 + $0x488] sm:$0xff] %v7164_v49  ;;  %v7181_v2 = vld [vmem:[%s10254_s21 + $0x6e8] sm:$0xff]  ;;  %v7182_v3 = vld [vmem:[%s10254_s21 + $0x6f0] sm:$0xff] }
 0x11c   : > { %1595 = vst [vmem:[%s10274_s27 + $0x498] sm:$0xff] %v7165_v50  ;;  %1597 = vst [vmem:[%s10274_s27 + $0x4a0] sm:$0xff] %v7166_v51  ;;  %v7183_v4 = vld [vmem:[%s10254_s21 + $0x700] sm:$0xff]  ;;  %v7184_v5 = vld [vmem:[%s10254_s21 + $0x708] sm:$0xff] }
 0x11d   : > { %1599 = vst [vmem:[%s10274_s27 + $0x4a8] sm:$0xff] %v7167_v52  ;;  %1601 = vst [vmem:[%s10274_s27 + $0x4b0] sm:$0xff] %v7168_v53  ;;  %v7185_v6 = vld [vmem:[%s10254_s21 + $0x710] sm:$0xff]  ;;  %v7186_v7 = vld [vmem:[%s10254_s21 + $0x718] sm:$0xff] }
 0x11e   : > { %1603 = vst [vmem:[%s10274_s27 + $0x4b8] sm:$0xff] %v7169_v54  ;;  %1605 = vst [vmem:[%s10274_s27 + $0x4c0] sm:$0xff] %v7170_v55  ;;  %v7187_v8 = vld [vmem:[%s10254_s21 + $0x720] sm:$0xff]  ;;  %v7188_v9 = vld [vmem:[%s10254_s21 + $0x728] sm:$0xff] }
 0x11f   : > { %1607 = vst [vmem:[%s10274_s27 + $0x4d0] sm:$0xff] %v7171_v56  ;;  %1609 = vst [vmem:[%s10274_s27 + $0x4d8] sm:$0xff] %v7172_v57  ;;  %v7189_v10 = vld [vmem:[%s10254_s21 + $0x738] sm:$0xff]  ;;  %v7190_v11 = vld [vmem:[%s10254_s21 + $0x740] sm:$0xff] }
 0x120   : > { %1611 = vst [vmem:[%s10274_s27 + $0x4e0] sm:$0xff] %v7173_v58  ;;  %1613 = vst [vmem:[%s10274_s27 + $0x4e8] sm:$0xff] %v7174_v59  ;;  %v7191_v12 = vld [vmem:[%s10254_s21 + $0x748] sm:$0xff]  ;;  %v7192_v13 = vld [vmem:[%s10254_s21 + $0x750] sm:$0xff] }
 0x121   : > { %1615 = vst [vmem:[%s10274_s27 + $0x4f0] sm:$0xff] %v7175_v60  ;;  %1617 = vst [vmem:[%s10274_s27 + $0x4f8] sm:$0xff] %v7176_v61  ;;  %v7193_v14 = vld [vmem:[%s10254_s21 + $0x758] sm:$0xff]  ;;  %v7194_v15 = vld [vmem:[%s10254_s21 + $0x760] sm:$0xff] }
 0x122   : > { %1619 = vst [vmem:[%s10274_s27 + $0x508] sm:$0xff] %v7177_v62  ;;  %1621 = vst [vmem:[%s10274_s27 + $0x510] sm:$0xff] %v7178_v63  ;;  %v7195_v16 = vld [vmem:[%s10254_s21 + $0x770] sm:$0xff]  ;;  %v7196_v17 = vld [vmem:[%s10254_s21 + $0x778] sm:$0xff] }
 0x123   : > { %1623 = vst [vmem:[%s10274_s27 + $0x518] sm:$0xff] %v7179_v0  ;;  %1625 = vst [vmem:[%s10274_s27 + $0x520] sm:$0xff] %v7180_v1  ;;  %v7197_v18 = vld [vmem:[%s10254_s21 + $0x780] sm:$0xff]  ;;  %v7198_v19 = vld [vmem:[%s10254_s21 + $0x788] sm:$0xff] }
 0x124   : > { %1627 = vst [vmem:[%s10274_s27 + $0x528] sm:$0xff] %v7181_v2  ;;  %1629 = vst [vmem:[%s10274_s27 + $0x530] sm:$0xff] %v7182_v3  ;;  %v7199_v20 = vld [vmem:[%s10254_s21 + $0x790] sm:$0xff]  ;;  %v7200_v21 = vld [vmem:[%s10254_s21 + $0x798] sm:$0xff] }
 0x125   : > { %1631 = vst [vmem:[%s10274_s27 + $0x540] sm:$0xff] %v7183_v4  ;;  %1633 = vst [vmem:[%s10274_s27 + $0x548] sm:$0xff] %v7184_v5  ;;  %v7201_v22 = vld [vmem:[%s10254_s21 + $0x7a8] sm:$0xff]  ;;  %v7202_v23 = vld [vmem:[%s10254_s21 + $0x7b0] sm:$0xff] }
 0x126   : > { %1635 = vst [vmem:[%s10274_s27 + $0x550] sm:$0xff] %v7185_v6  ;;  %1637 = vst [vmem:[%s10274_s27 + $0x558] sm:$0xff] %v7186_v7  ;;  %v7203_v24 = vld [vmem:[%s10254_s21 + $0x7b8] sm:$0xff]  ;;  %v7204_v25 = vld [vmem:[%s10254_s21 + $0x7c0] sm:$0xff] }
 0x127   : > { %1639 = vst [vmem:[%s10274_s27 + $0x560] sm:$0xff] %v7187_v8  ;;  %1641 = vst [vmem:[%s10274_s27 + $0x568] sm:$0xff] %v7188_v9  ;;  %v7205_v26 = vld [vmem:[%s10254_s21 + $0x7c8] sm:$0xff]  ;;  %v7206_v27 = vld [vmem:[%s10254_s21 + $0x7d0] sm:$0xff] }
 0x128   : > { %1643 = vst [vmem:[%s10274_s27 + $0x578] sm:$0xff] %v7189_v10  ;;  %1645 = vst [vmem:[%s10274_s27 + $0x580] sm:$0xff] %v7190_v11  ;;  %v7207_v28 = vld [vmem:[%s10254_s21 + $0x7e0] sm:$0xff]  ;;  %v7208_v29 = vld [vmem:[%s10254_s21 + $0x7e8] sm:$0xff] }
 0x129   : > { %1647 = vst [vmem:[%s10274_s27 + $0x588] sm:$0xff] %v7191_v12  ;;  %1649 = vst [vmem:[%s10274_s27 + $0x590] sm:$0xff] %v7192_v13  ;;  %v7209_v30 = vld [vmem:[%s10254_s21 + $0x7f0] sm:$0xff]  ;;  %v7210_v31 = vld [vmem:[%s10254_s21 + $0x7f8] sm:$0xff] }
 0x12a   : > { %1651 = vst [vmem:[%s10274_s27 + $0x598] sm:$0xff] %v7193_v14  ;;  %1653 = vst [vmem:[%s10274_s27 + $0x5a0] sm:$0xff] %v7194_v15  ;;  %v7211_v32 = vld [vmem:[%s10254_s21 + $0x800] sm:$0xff]  ;;  %v7212_v33 = vld [vmem:[%s10254_s21 + $0x808] sm:$0xff] }
 0x12b   : > { %1655 = vst [vmem:[%s10274_s27 + $0x5b0] sm:$0xff] %v7195_v16  ;;  %1657 = vst [vmem:[%s10274_s27 + $0x5b8] sm:$0xff] %v7196_v17  ;;  %v7213_v34 = vld [vmem:[%s10254_s21 + $0x818] sm:$0xff]  ;;  %v7214_v35 = vld [vmem:[%s10254_s21 + $0x820] sm:$0xff] }
 0x12c   : > { %1659 = vst [vmem:[%s10274_s27 + $0x5c0] sm:$0xff] %v7197_v18  ;;  %1661 = vst [vmem:[%s10274_s27 + $0x5c8] sm:$0xff] %v7198_v19  ;;  %v7215_v36 = vld [vmem:[%s10254_s21 + $0x828] sm:$0xff]  ;;  %v7216_v37 = vld [vmem:[%s10254_s21 + $0x830] sm:$0xff] }
 0x12d   : > { %1663 = vst [vmem:[%s10274_s27 + $0x5d0] sm:$0xff] %v7199_v20  ;;  %1665 = vst [vmem:[%s10274_s27 + $0x5d8] sm:$0xff] %v7200_v21  ;;  %v7217_v38 = vld [vmem:[%s10254_s21 + $0x838] sm:$0xff]  ;;  %v7218_v39 = vld [vmem:[%s10254_s21 + $0x840] sm:$0xff] }
 0x12e   : > { %1667 = vst [vmem:[%s10274_s27 + $0x5e8] sm:$0xff] %v7201_v22  ;;  %1669 = vst [vmem:[%s10274_s27 + $0x5f0] sm:$0xff] %v7202_v23  ;;  %v7219_v40 = vld [vmem:[%s10254_s21 + $0x850] sm:$0xff]  ;;  %v7220_v41 = vld [vmem:[%s10254_s21 + $0x858] sm:$0xff] }
 0x12f   : > { %1671 = vst [vmem:[%s10274_s27 + $0x5f8] sm:$0xff] %v7203_v24  ;;  %1673 = vst [vmem:[%s10274_s27 + $0x600] sm:$0xff] %v7204_v25  ;;  %v7221_v42 = vld [vmem:[%s10254_s21 + $0x860] sm:$0xff]  ;;  %v7222_v43 = vld [vmem:[%s10254_s21 + $0x868] sm:$0xff] }
 0x130   : > { %1675 = vst [vmem:[%s10274_s27 + $0x608] sm:$0xff] %v7205_v26  ;;  %1677 = vst [vmem:[%s10274_s27 + $0x610] sm:$0xff] %v7206_v27  ;;  %v7223_v44 = vld [vmem:[%s10254_s21 + $0x870] sm:$0xff]  ;;  %v7224_v45 = vld [vmem:[%s10254_s21 + $0x878] sm:$0xff] }
 0x131   : > { %1679 = vst [vmem:[%s10274_s27 + $0x620] sm:$0xff] %v7207_v28  ;;  %1681 = vst [vmem:[%s10274_s27 + $0x628] sm:$0xff] %v7208_v29  ;;  %v7225_v46 = vld [vmem:[%s10254_s21 + $0x888] sm:$0xff]  ;;  %v7226_v47 = vld [vmem:[%s10254_s21 + $0x890] sm:$0xff] }
 0x132   : > { %1683 = vst [vmem:[%s10274_s27 + $0x630] sm:$0xff] %v7209_v30  ;;  %1685 = vst [vmem:[%s10274_s27 + $0x638] sm:$0xff] %v7210_v31  ;;  %v7227_v48 = vld [vmem:[%s10254_s21 + $0x898] sm:$0xff]  ;;  %v7228_v49 = vld [vmem:[%s10254_s21 + $0x8a0] sm:$0xff] }
 0x133   : > { %1687 = vst [vmem:[%s10274_s27 + $0x640] sm:$0xff] %v7211_v32  ;;  %1689 = vst [vmem:[%s10274_s27 + $0x648] sm:$0xff] %v7212_v33  ;;  %v7229_v50 = vld [vmem:[%s10254_s21 + $0x8a8] sm:$0xff]  ;;  %v7230_v51 = vld [vmem:[%s10254_s21 + $0x8b0] sm:$0xff] }
 0x134   : > { %1691 = vst [vmem:[%s10274_s27 + $0x658] sm:$0xff] %v7213_v34  ;;  %1693 = vst [vmem:[%s10274_s27 + $0x660] sm:$0xff] %v7214_v35  ;;  %v7231_v52 = vld [vmem:[%s10254_s21 + $0x8c0] sm:$0xff]  ;;  %v7232_v53 = vld [vmem:[%s10254_s21 + $0x8c8] sm:$0xff] }
 0x135   : > { %1695 = vst [vmem:[%s10274_s27 + $0x668] sm:$0xff] %v7215_v36  ;;  %1697 = vst [vmem:[%s10274_s27 + $0x670] sm:$0xff] %v7216_v37  ;;  %v7233_v54 = vld [vmem:[%s10254_s21 + $0x8d0] sm:$0xff]  ;;  %v7234_v55 = vld [vmem:[%s10254_s21 + $0x8d8] sm:$0xff] }
 0x136   : > { %1699 = vst [vmem:[%s10274_s27 + $0x678] sm:$0xff] %v7217_v38  ;;  %1701 = vst [vmem:[%s10274_s27 + $0x680] sm:$0xff] %v7218_v39  ;;  %v7235_v56 = vld [vmem:[%s10254_s21 + $0x8e0] sm:$0xff]  ;;  %v7236_v57 = vld [vmem:[%s10254_s21 + $0x8e8] sm:$0xff] }
 0x137   : > { %1703 = vst [vmem:[%s10274_s27 + $0x690] sm:$0xff] %v7219_v40  ;;  %1705 = vst [vmem:[%s10274_s27 + $0x698] sm:$0xff] %v7220_v41  ;;  %v7237_v58 = vld [vmem:[%s10254_s21 + $0x8f8] sm:$0xff]  ;;  %v7238_v59 = vld [vmem:[%s10254_s21 + $0x900] sm:$0xff] }
 0x138   : > { %1707 = vst [vmem:[%s10274_s27 + $0x6a0] sm:$0xff] %v7221_v42  ;;  %1709 = vst [vmem:[%s10274_s27 + $0x6a8] sm:$0xff] %v7222_v43  ;;  %v7239_v60 = vld [vmem:[%s10254_s21 + $0x908] sm:$0xff]  ;;  %v7240_v61 = vld [vmem:[%s10254_s21 + $0x910] sm:$0xff] }
 0x139   : > { %1711 = vst [vmem:[%s10274_s27 + $0x6b0] sm:$0xff] %v7223_v44  ;;  %1713 = vst [vmem:[%s10274_s27 + $0x6b8] sm:$0xff] %v7224_v45  ;;  %v7241_v62 = vld [vmem:[%s10254_s21 + $0x918] sm:$0xff]  ;;  %v7242_v63 = vld [vmem:[%s10254_s21 + $0x920] sm:$0xff] }
 0x13a   : > { %1715 = vst [vmem:[%s10274_s27 + $0x6c8] sm:$0xff] %v7225_v46  ;;  %1717 = vst [vmem:[%s10274_s27 + $0x6d0] sm:$0xff] %v7226_v47  ;;  %v7243_v0 = vld [vmem:[%s10254_s21 + $0x930] sm:$0xff]  ;;  %v7244_v1 = vld [vmem:[%s10254_s21 + $0x938] sm:$0xff] }
 0x13b   : > { %1719 = vst [vmem:[%s10274_s27 + $0x6d8] sm:$0xff] %v7227_v48  ;;  %1721 = vst [vmem:[%s10274_s27 + $0x6e0] sm:$0xff] %v7228_v49  ;;  %v7245_v2 = vld [vmem:[%s10254_s21 + $0x940] sm:$0xff]  ;;  %v7246_v3 = vld [vmem:[%s10254_s21 + $0x948] sm:$0xff] }
 0x13c   : > { %1723 = vst [vmem:[%s10274_s27 + $0x6e8] sm:$0xff] %v7229_v50  ;;  %1725 = vst [vmem:[%s10274_s27 + $0x6f0] sm:$0xff] %v7230_v51  ;;  %v7247_v4 = vld [vmem:[%s10254_s21 + $0x950] sm:$0xff]  ;;  %v7248_v5 = vld [vmem:[%s10254_s21 + $0x958] sm:$0xff] }
 0x13d   : > { %1727 = vst [vmem:[%s10274_s27 + $0x700] sm:$0xff] %v7231_v52  ;;  %1729 = vst [vmem:[%s10274_s27 + $0x708] sm:$0xff] %v7232_v53  ;;  %v7249_v6 = vld [vmem:[%s10254_s21 + $0x968] sm:$0xff]  ;;  %v7250_v7 = vld [vmem:[%s10254_s21 + $0x970] sm:$0xff] }
 0x13e   : > { %1731 = vst [vmem:[%s10274_s27 + $0x710] sm:$0xff] %v7233_v54  ;;  %1733 = vst [vmem:[%s10274_s27 + $0x718] sm:$0xff] %v7234_v55  ;;  %v7251_v8 = vld [vmem:[%s10254_s21 + $0x978] sm:$0xff]  ;;  %v7252_v9 = vld [vmem:[%s10254_s21 + $0x980] sm:$0xff] }
 0x13f   : > { %1735 = vst [vmem:[%s10274_s27 + $0x720] sm:$0xff] %v7235_v56  ;;  %1737 = vst [vmem:[%s10274_s27 + $0x728] sm:$0xff] %v7236_v57  ;;  %v7253_v10 = vld [vmem:[%s10254_s21 + $0x988] sm:$0xff]  ;;  %v7254_v11 = vld [vmem:[%s10254_s21 + $0x990] sm:$0xff] }
 0x140   : > { %1739 = vst [vmem:[%s10274_s27 + $0x738] sm:$0xff] %v7237_v58  ;;  %1741 = vst [vmem:[%s10274_s27 + $0x740] sm:$0xff] %v7238_v59  ;;  %v7255_v12 = vld [vmem:[%s10254_s21 + $0x9a0] sm:$0xff]  ;;  %v7256_v13 = vld [vmem:[%s10254_s21 + $0x9a8] sm:$0xff] }
 0x141   : > { %1743 = vst [vmem:[%s10274_s27 + $0x748] sm:$0xff] %v7239_v60  ;;  %1745 = vst [vmem:[%s10274_s27 + $0x750] sm:$0xff] %v7240_v61  ;;  %v7257_v14 = vld [vmem:[%s10254_s21 + $0x9b0] sm:$0xff]  ;;  %v7258_v15 = vld [vmem:[%s10254_s21 + $0x9b8] sm:$0xff] }
 0x142   : > { %1747 = vst [vmem:[%s10274_s27 + $0x758] sm:$0xff] %v7241_v62  ;;  %1749 = vst [vmem:[%s10274_s27 + $0x760] sm:$0xff] %v7242_v63  ;;  %v7259_v16 = vld [vmem:[%s10254_s21 + $0x9c0] sm:$0xff]  ;;  %v7260_v17 = vld [vmem:[%s10254_s21 + $0x9c8] sm:$0xff] }
 0x143   : > { %1751 = vst [vmem:[%s10274_s27 + $0x770] sm:$0xff] %v7243_v0  ;;  %1753 = vst [vmem:[%s10274_s27 + $0x778] sm:$0xff] %v7244_v1  ;;  %v7261_v18 = vld [vmem:[%s10254_s21 + $0x9d8] sm:$0xff]  ;;  %v7262_v19 = vld [vmem:[%s10254_s21 + $0x9e0] sm:$0xff] }
 0x144   : > { %1755 = vst [vmem:[%s10274_s27 + $0x780] sm:$0xff] %v7245_v2  ;;  %1757 = vst [vmem:[%s10274_s27 + $0x788] sm:$0xff] %v7246_v3  ;;  %v7263_v20 = vld [vmem:[%s10254_s21 + $0x9e8] sm:$0xff]  ;;  %v7264_v21 = vld [vmem:[%s10254_s21 + $0x9f0] sm:$0xff] }
 0x145   : > { %1759 = vst [vmem:[%s10274_s27 + $0x790] sm:$0xff] %v7247_v4  ;;  %1761 = vst [vmem:[%s10274_s27 + $0x798] sm:$0xff] %v7248_v5  ;;  %v7265_v22 = vld [vmem:[%s10254_s21 + $0x9f8] sm:$0xff]  ;;  %v7266_v23 = vld [vmem:[%s10254_s21 + $0xa00] sm:$0xff] }
 0x146   : > { %1763 = vst [vmem:[%s10274_s27 + $0x7a8] sm:$0xff] %v7249_v6  ;;  %1765 = vst [vmem:[%s10274_s27 + $0x7b0] sm:$0xff] %v7250_v7  ;;  %v7267_v24 = vld [vmem:[%s10254_s21 + $0xa10] sm:$0xff]  ;;  %v7268_v25 = vld [vmem:[%s10254_s21 + $0xa18] sm:$0xff] }
 0x147   : > { %1767 = vst [vmem:[%s10274_s27 + $0x7b8] sm:$0xff] %v7251_v8  ;;  %1769 = vst [vmem:[%s10274_s27 + $0x7c0] sm:$0xff] %v7252_v9  ;;  %v7269_v26 = vld [vmem:[%s10254_s21 + $0xa20] sm:$0xff]  ;;  %v7270_v27 = vld [vmem:[%s10254_s21 + $0xa28] sm:$0xff] }
 0x148   : > { %1771 = vst [vmem:[%s10274_s27 + $0x7c8] sm:$0xff] %v7253_v10  ;;  %1773 = vst [vmem:[%s10274_s27 + $0x7d0] sm:$0xff] %v7254_v11  ;;  %v7271_v28 = vld [vmem:[%s10254_s21 + $0xa30] sm:$0xff]  ;;  %v7272_v29 = vld [vmem:[%s10254_s21 + $0xa38] sm:$0xff] }
 0x149   : > { %1775 = vst [vmem:[%s10274_s27 + $0x7e0] sm:$0xff] %v7255_v12  ;;  %1777 = vst [vmem:[%s10274_s27 + $0x7e8] sm:$0xff] %v7256_v13  ;;  %v7273_v30 = vld [vmem:[%s10254_s21 + $0xa48] sm:$0xff]  ;;  %v7274_v31 = vld [vmem:[%s10254_s21 + $0xa50] sm:$0xff] }
 0x14a   : > { %1779 = vst [vmem:[%s10274_s27 + $0x7f0] sm:$0xff] %v7257_v14  ;;  %1781 = vst [vmem:[%s10274_s27 + $0x7f8] sm:$0xff] %v7258_v15  ;;  %v7275_v32 = vld [vmem:[%s10254_s21 + $0xa58] sm:$0xff]  ;;  %v7276_v33 = vld [vmem:[%s10254_s21 + $0xa60] sm:$0xff] }
 0x14b   : > { %1783 = vst [vmem:[%s10274_s27 + $0x800] sm:$0xff] %v7259_v16  ;;  %1785 = vst [vmem:[%s10274_s27 + $0x808] sm:$0xff] %v7260_v17  ;;  %v7277_v34 = vld [vmem:[%s10254_s21 + $0xa68] sm:$0xff]  ;;  %v7278_v35 = vld [vmem:[%s10254_s21 + $0xa70] sm:$0xff] }
 0x14c   : > { %1787 = vst [vmem:[%s10274_s27 + $0x818] sm:$0xff] %v7261_v18  ;;  %1789 = vst [vmem:[%s10274_s27 + $0x820] sm:$0xff] %v7262_v19  ;;  %v7279_v36 = vld [vmem:[%s10254_s21 + $0xa80] sm:$0xff]  ;;  %v7280_v37 = vld [vmem:[%s10254_s21 + $0xa88] sm:$0xff] }
 0x14d   : > { %1791 = vst [vmem:[%s10274_s27 + $0x828] sm:$0xff] %v7263_v20  ;;  %1793 = vst [vmem:[%s10274_s27 + $0x830] sm:$0xff] %v7264_v21  ;;  %v7281_v38 = vld [vmem:[%s10254_s21 + $0xa90] sm:$0xff]  ;;  %v7282_v39 = vld [vmem:[%s10254_s21 + $0xa98] sm:$0xff] }
 0x14e   : > { %1795 = vst [vmem:[%s10274_s27 + $0x838] sm:$0xff] %v7265_v22  ;;  %1797 = vst [vmem:[%s10274_s27 + $0x840] sm:$0xff] %v7266_v23  ;;  %v7283_v40 = vld [vmem:[%s10254_s21 + $0xaa0] sm:$0xff]  ;;  %v7284_v41 = vld [vmem:[%s10254_s21 + $0xaa8] sm:$0xff] }
 0x14f   : > { %1799 = vst [vmem:[%s10274_s27 + $0x850] sm:$0xff] %v7267_v24  ;;  %1801 = vst [vmem:[%s10274_s27 + $0x858] sm:$0xff] %v7268_v25  ;;  %v7285_v42 = vld [vmem:[%s10254_s21 + $0xab8] sm:$0xff]  ;;  %v7286_v43 = vld [vmem:[%s10254_s21 + $0xac0] sm:$0xff] }
 0x150   : > { %1803 = vst [vmem:[%s10274_s27 + $0x860] sm:$0xff] %v7269_v26  ;;  %1805 = vst [vmem:[%s10274_s27 + $0x868] sm:$0xff] %v7270_v27  ;;  %v7287_v44 = vld [vmem:[%s10254_s21 + $0xac8] sm:$0xff]  ;;  %v7288_v45 = vld [vmem:[%s10254_s21 + $0xad0] sm:$0xff] }
 0x151   : > { %1807 = vst [vmem:[%s10274_s27 + $0x870] sm:$0xff] %v7271_v28  ;;  %1809 = vst [vmem:[%s10274_s27 + $0x878] sm:$0xff] %v7272_v29  ;;  %v7289_v46 = vld [vmem:[%s10254_s21 + $0xad8] sm:$0xff]  ;;  %v7290_v47 = vld [vmem:[%s10254_s21 + $0xae0] sm:$0xff] }
 0x152   : > { %1811 = vst [vmem:[%s10274_s27 + $0x888] sm:$0xff] %v7273_v30  ;;  %1813 = vst [vmem:[%s10274_s27 + $0x890] sm:$0xff] %v7274_v31  ;;  %v7291_v48 = vld [vmem:[%s10254_s21 + $0xaf0] sm:$0xff]  ;;  %v7292_v49 = vld [vmem:[%s10254_s21 + $0xaf8] sm:$0xff] }
 0x153   : > { %1815 = vst [vmem:[%s10274_s27 + $0x898] sm:$0xff] %v7275_v32  ;;  %1817 = vst [vmem:[%s10274_s27 + $0x8a0] sm:$0xff] %v7276_v33  ;;  %v7293_v50 = vld [vmem:[%s10254_s21 + $0xb00] sm:$0xff]  ;;  %v7294_v51 = vld [vmem:[%s10254_s21 + $0xb08] sm:$0xff] }
 0x154   : > { %1819 = vst [vmem:[%s10274_s27 + $0x8a8] sm:$0xff] %v7277_v34  ;;  %1821 = vst [vmem:[%s10274_s27 + $0x8b0] sm:$0xff] %v7278_v35  ;;  %v7295_v52 = vld [vmem:[%s10254_s21 + $0xb10] sm:$0xff]  ;;  %v7296_v53 = vld [vmem:[%s10254_s21 + $0xb18] sm:$0xff] }
 0x155   : > { %1823 = vst [vmem:[%s10274_s27 + $0x8c0] sm:$0xff] %v7279_v36  ;;  %1825 = vst [vmem:[%s10274_s27 + $0x8c8] sm:$0xff] %v7280_v37  ;;  %v7297_v54 = vld [vmem:[%s10254_s21 + $0xb28] sm:$0xff]  ;;  %v7298_v55 = vld [vmem:[%s10254_s21 + $0xb30] sm:$0xff] }
 0x156   : > { %1827 = vst [vmem:[%s10274_s27 + $0x8d0] sm:$0xff] %v7281_v38  ;;  %1829 = vst [vmem:[%s10274_s27 + $0x8d8] sm:$0xff] %v7282_v39  ;;  %v7299_v56 = vld [vmem:[%s10254_s21 + $0xb38] sm:$0xff]  ;;  %v7300_v57 = vld [vmem:[%s10254_s21 + $0xb40] sm:$0xff] }
 0x157   : > { %1831 = vst [vmem:[%s10274_s27 + $0x8e0] sm:$0xff] %v7283_v40  ;;  %1833 = vst [vmem:[%s10274_s27 + $0x8e8] sm:$0xff] %v7284_v41  ;;  %v7301_v58 = vld [vmem:[%s10254_s21 + $0xb48] sm:$0xff]  ;;  %v7302_v59 = vld [vmem:[%s10254_s21 + $0xb50] sm:$0xff] }
 0x158   : > { %1835 = vst [vmem:[%s10274_s27 + $0x8f8] sm:$0xff] %v7285_v42  ;;  %1837 = vst [vmem:[%s10274_s27 + $0x900] sm:$0xff] %v7286_v43  ;;  %v7303_v60 = vld [vmem:[%s10254_s21 + $0x1f0] sm:$0xf]  ;;  %v7305_v61 = vld [vmem:[%s10254_s21 + $0x228] sm:$0xf] }
 0x159   : > { %1839 = vst [vmem:[%s10274_s27 + $0x908] sm:$0xff] %v7287_v44  ;;  %1841 = vst [vmem:[%s10274_s27 + $0x910] sm:$0xff] %v7288_v45  ;;  %v7307_v62 = vld [vmem:[%s10254_s21 + $0x260] sm:$0xf]  ;;  %v7309_v63 = vld [vmem:[%s10254_s21 + $0x298] sm:$0xf] }
 0x15a   : > { %1843 = vst [vmem:[%s10274_s27 + $0x918] sm:$0xff] %v7289_v46  ;;  %1845 = vst [vmem:[%s10274_s27 + $0x920] sm:$0xff] %v7290_v47  ;;  %v7311_v0 = vld [vmem:[%s10254_s21 + $0x2d0] sm:$0xf]  ;;  %v7313_v1 = vld [vmem:[%s10254_s21 + $0x308] sm:$0xf] }
 0x15b   : > { %1847 = vst [vmem:[%s10274_s27 + $0x930] sm:$0xff] %v7291_v48  ;;  %1849 = vst [vmem:[%s10274_s27 + $0x938] sm:$0xff] %v7292_v49  ;;  %v7315_v2 = vld [vmem:[%s10254_s21 + $0x340] sm:$0xf]  ;;  %v7317_v3 = vld [vmem:[%s10254_s21 + $0x378] sm:$0xf] }
 0x15c   : > { %1851 = vst [vmem:[%s10274_s27 + $0x940] sm:$0xff] %v7293_v50  ;;  %1853 = vst [vmem:[%s10274_s27 + $0x948] sm:$0xff] %v7294_v51  ;;  %v7319_v4 = vld [vmem:[%s10254_s21 + $0x3b0] sm:$0xf]  ;;  %v7321_v5 = vld [vmem:[%s10254_s21 + $0x3e8] sm:$0xf] }
 0x15d   : > { %1855 = vst [vmem:[%s10274_s27 + $0x950] sm:$0xff] %v7295_v52  ;;  %1857 = vst [vmem:[%s10274_s27 + $0x958] sm:$0xff] %v7296_v53  ;;  %v7323_v6 = vld [vmem:[%s10254_s21 + $0x420] sm:$0xf]  ;;  %v7325_v7 = vld [vmem:[%s10254_s21 + $0x458] sm:$0xf] }
 0x15e   : > { %1859 = vst [vmem:[%s10274_s27 + $0x968] sm:$0xff] %v7297_v54  ;;  %1861 = vst [vmem:[%s10274_s27 + $0x970] sm:$0xff] %v7298_v55  ;;  %v7327_v8 = vld [vmem:[%s10254_s21 + $0x490] sm:$0xf]  ;;  %v7329_v9 = vld [vmem:[%s10254_s21 + $0x4c8] sm:$0xf] }
 0x15f   : > { %1863 = vst [vmem:[%s10274_s27 + $0x978] sm:$0xff] %v7299_v56  ;;  %1865 = vst [vmem:[%s10274_s27 + $0x980] sm:$0xff] %v7300_v57  ;;  %v7331_v10 = vld [vmem:[%s10254_s21 + $0x500] sm:$0xf]  ;;  %v7333_v11 = vld [vmem:[%s10254_s21 + $0x538] sm:$0xf] }
 0x160   : > { %1867 = vst [vmem:[%s10274_s27 + $0x988] sm:$0xff] %v7301_v58  ;;  %1869 = vst [vmem:[%s10274_s27 + $0x990] sm:$0xff] %v7302_v59  ;;  %v7335_v12 = vld [vmem:[%s10254_s21 + $0x570] sm:$0xf]  ;;  %v7337_v13 = vld [vmem:[%s10254_s21 + $0x5a8] sm:$0xf] }
 0x161   : > { %7304 = vst [vmem:[%s10274_s27 + $0x30] sm:$0xf] %v7303_v60  ;;  %7306 = vst [vmem:[%s10274_s27 + $0x68] sm:$0xf] %v7305_v61  ;;  %v7339_v14 = vld [vmem:[%s10254_s21 + $0x5e0] sm:$0xf] }
 0x162   : > { %7308 = vst [vmem:[%s10274_s27 + $0xa0] sm:$0xf] %v7307_v62  ;;  %7310 = vst [vmem:[%s10274_s27 + $0xd8] sm:$0xf] %v7309_v63  ;;  %v7341_v15 = vld [vmem:[%s10254_s21 + $0x618] sm:$0xf] }
 0x163   : > { %7312 = vst [vmem:[%s10274_s27 + $0x110] sm:$0xf] %v7311_v0  ;;  %7314 = vst [vmem:[%s10274_s27 + $0x148] sm:$0xf] %v7313_v1  ;;  %v7343_v16 = vld [vmem:[%s10254_s21 + $0x650] sm:$0xf] }
 0x164   : > { %7316 = vst [vmem:[%s10274_s27 + $0x180] sm:$0xf] %v7315_v2  ;;  %7318 = vst [vmem:[%s10274_s27 + $0x1b8] sm:$0xf] %v7317_v3  ;;  %v7345_v17 = vld [vmem:[%s10254_s21 + $0x688] sm:$0xf] }
 0x165   : > { %7320 = vst [vmem:[%s10274_s27 + $0x1f0] sm:$0xf] %v7319_v4  ;;  %7322 = vst [vmem:[%s10274_s27 + $0x228] sm:$0xf] %v7321_v5  ;;  %v7347_v18 = vld [vmem:[%s10254_s21 + $0x6c0] sm:$0xf] }
 0x166   : > { %7324 = vst [vmem:[%s10274_s27 + $0x260] sm:$0xf] %v7323_v6  ;;  %7326 = vst [vmem:[%s10274_s27 + $0x298] sm:$0xf] %v7325_v7  ;;  %v7349_v19 = vld [vmem:[%s10254_s21 + $0x6f8] sm:$0xf] }
 0x167   : > { %7328 = vst [vmem:[%s10274_s27 + $0x2d0] sm:$0xf] %v7327_v8  ;;  %7330 = vst [vmem:[%s10274_s27 + $0x308] sm:$0xf] %v7329_v9  ;;  %v7351_v20 = vld [vmem:[%s10254_s21 + $0x730] sm:$0xf] }
 0x168   : > { %7332 = vst [vmem:[%s10274_s27 + $0x340] sm:$0xf] %v7331_v10  ;;  %7334 = vst [vmem:[%s10274_s27 + $0x378] sm:$0xf] %v7333_v11  ;;  %v7353_v21 = vld [vmem:[%s10254_s21 + $0x768] sm:$0xf] }
 0x169   : > { %7336 = vst [vmem:[%s10274_s27 + $0x3b0] sm:$0xf] %v7335_v12  ;;  %7338 = vst [vmem:[%s10274_s27 + $0x3e8] sm:$0xf] %v7337_v13  ;;  %v7355_v22 = vld [vmem:[%s10254_s21 + $0x7a0] sm:$0xf] }
 0x16a   : > { %7340 = vst [vmem:[%s10274_s27 + $0x420] sm:$0xf] %v7339_v14  ;;  %7342 = vst [vmem:[%s10274_s27 + $0x458] sm:$0xf] %v7341_v15  ;;  %v7357_v23 = vld [vmem:[%s10254_s21 + $0x7d8] sm:$0xf] }
 0x16b   : > { %7344 = vst [vmem:[%s10274_s27 + $0x490] sm:$0xf] %v7343_v16  ;;  %7346 = vst [vmem:[%s10274_s27 + $0x4c8] sm:$0xf] %v7345_v17  ;;  %v7359_v24 = vld [vmem:[%s10254_s21 + $0x810] sm:$0xf] }
 0x16c   : > { %7348 = vst [vmem:[%s10274_s27 + $0x500] sm:$0xf] %v7347_v18  ;;  %7350 = vst [vmem:[%s10274_s27 + $0x538] sm:$0xf] %v7349_v19  ;;  %v7361_v25 = vld [vmem:[%s10254_s21 + $0x848] sm:$0xf] }
 0x16d   : > { %7352 = vst [vmem:[%s10274_s27 + $0x570] sm:$0xf] %v7351_v20  ;;  %7354 = vst [vmem:[%s10274_s27 + $0x5a8] sm:$0xf] %v7353_v21  ;;  %v7363_v26 = vld [vmem:[%s10254_s21 + $0x880] sm:$0xf] }
 0x16e   : > { %7356 = vst [vmem:[%s10274_s27 + $0x5e0] sm:$0xf] %v7355_v22  ;;  %7358 = vst [vmem:[%s10274_s27 + $0x618] sm:$0xf] %v7357_v23  ;;  %v7365_v27 = vld [vmem:[%s10254_s21 + $0x8b8] sm:$0xf] }
 0x16f   : > { %7360 = vst [vmem:[%s10274_s27 + $0x650] sm:$0xf] %v7359_v24  ;;  %7362 = vst [vmem:[%s10274_s27 + $0x688] sm:$0xf] %v7361_v25  ;;  %v7367_v28 = vld [vmem:[%s10254_s21 + $0x8f0] sm:$0xf] }
 0x170   : > { %7364 = vst [vmem:[%s10274_s27 + $0x6c0] sm:$0xf] %v7363_v26  ;;  %7366 = vst [vmem:[%s10274_s27 + $0x6f8] sm:$0xf] %v7365_v27  ;;  %v7369_v29 = vld [vmem:[%s10254_s21 + $0x928] sm:$0xf] }
 0x171   : > { %7368 = vst [vmem:[%s10274_s27 + $0x730] sm:$0xf] %v7367_v28  ;;  %v7371_v30 = vld [vmem:[%s10254_s21 + $0x960] sm:$0xf]  ;;  %v7373_v31 = vld [vmem:[%s10254_s21 + $0x998] sm:$0xf] }
 0x172   : > { %7370 = vst [vmem:[%s10274_s27 + $0x768] sm:$0xf] %v7369_v29  ;;  %7372 = vst [vmem:[%s10274_s27 + $0x7a0] sm:$0xf] %v7371_v30  ;;  %v7375_v32 = vld [vmem:[%s10254_s21 + $0x9d0] sm:$0xf] }
 0x173   : > { %7374 = vst [vmem:[%s10274_s27 + $0x7d8] sm:$0xf] %v7373_v31  ;;  %v7377_v33 = vld [vmem:[%s10254_s21 + $0xa08] sm:$0xf]  ;;  %v7379_v34 = vld [vmem:[%s10254_s21 + $0xa40] sm:$0xf] }
 0x174   : > { %7376 = vst [vmem:[%s10274_s27 + $0x810] sm:$0xf] %v7375_v32  ;;  %7378 = vst [vmem:[%s10274_s27 + $0x848] sm:$0xf] %v7377_v33  ;;  %v7381_v35 = vld [vmem:[%s10254_s21 + $0xa78] sm:$0xf] }
 0x175   : > { %7380 = vst [vmem:[%s10274_s27 + $0x880] sm:$0xf] %v7379_v34  ;;  %v7383_v36 = vld [vmem:[%s10254_s21 + $0xab0] sm:$0xf]  ;;  %v7385_v37 = vld [vmem:[%s10254_s21 + $0xae8] sm:$0xf] }
 0x176   : > { %7382 = vst [vmem:[%s10274_s27 + $0x8b8] sm:$0xf] %v7381_v35  ;;  %7384 = vst [vmem:[%s10274_s27 + $0x8f0] sm:$0xf] %v7383_v36  ;;  %v7387_v38 = vld [vmem:[%s10254_s21 + $0xb20] sm:$0xf] }
 0x177   : > { %7386 = vst [vmem:[%s10274_s27 + $0x928] sm:$0xf] %v7385_v37  ;;  %v7389_v39 = vld [vmem:[%s10254_s21 + $0xb58] sm:$0xf]  ;;  %7388 = vst [vmem:[%s10274_s27 + $0x960] sm:$0xf] %v7387_v38 }
 0x178   : > { %7390 = vst [vmem:[%s10274_s27 + $0x998] sm:$0xf] %v7389_v39 }
 0x179   : > { %1971 = vsyncadd %s1217_s30, 36608 }
 0x17a PF: > { %s1972_s15 = scalar_lea.sflag [#allocation5], %s14249_s22 }
 0x17b   : > { %9733 = dma.done.wait %s1972_s15, 36608 }
 0x17c   : > { %9734 = vsyncadd %s1972_s15, 4294930688  ;;  %v2027_v40 = vld [vmem:[%s14074_s2 + $0x78] sm:$0xff]  ;;  %v2026_v43 = vld [vmem:[%s14074_s2 + $0x70] sm:$0xff]  ;;  %s1977_s24 = smul.u32 2464, %s14249_s22  ;;  %s8091_s23 = sshll.u32 %s9753_s28, 4 }
 0x17d   : > { %v2693_v41 = vld [vmem:[%s14078_s6 + $0xf8] sm:$0xff]  ;;  %9346 = vmatprep.subr.mxu0 %v2027_v40  ;;  %v2692_v44 = vld [vmem:[%s14078_s6 + $0xf0] sm:$0xff]  ;;  %v2025_v46 = vld [vmem:[%s14074_s2 + $0x68] sm:$0xff]  ;;  %s8092_s19 = sshll.u32 %s9757_s29, 5  ;;  %s6834_s29 = sshll.u32 %s9931_s25, 4  ;;  %s14015_s29 = int_to_ptr.vmem [resolvable:$true] %s6834_s29 }
 0x17e   : > { %v2677_v42 = vld [vmem:[%s14078_s6 + $0x78] sm:$0xff]  ;;  %8130 = vmatprep.subr.mxu1 %v2693_v41  ;;  %v2676_v45 = vld [vmem:[%s14078_s6 + $0x70] sm:$0xff]  ;;  %9347 = vmatpush3.msra.mxu0 %v2027_v40  ;;  %v2691_v47 = vld [vmem:[%s14078_s6 + $0xe8] sm:$0xff]  ;;  %s11021_s15 = scalar_lea.vmem [#allocation2], %s1977_s24  ;;  %s14224_s24 = scalar_lea.vmem %s14072_s0, %s9922_s14 }
 0x17f   : > { %8131 = vmatpush3.msra.mxu1 %v2677_v42  ;;  %9348 = vmatprep.subr.mxu0 %v2026_v43  ;;  %v2675_v48 = vld [vmem:[%s14078_s6 + $0x68] sm:$0xff]  ;;  %v2024_v49 = vld [vmem:[%s14074_s2 + $0x60] sm:$0xff]  ;;  %v2023_v52 = vld [vmem:[%s14074_s2 + $0x58] sm:$0xff]  ;;  %s6831_s21 = sadd.s32 %s8092_s19, %s8091_s23  ;;  %s14226_s30 = sld [smem:[#allocation72_spill]] }
 0x180   : > { %8132 = vmatprep.subr.mxu1 %v2692_v44  ;;  %9349 = vmatpush3.msra.mxu0 %v2026_v43  ;;  %v2690_v50 = vld [vmem:[%s14078_s6 + $0xe0] sm:$0xff]  ;;  %v2689_v53 = vld [vmem:[%s14078_s6 + $0xd8] sm:$0xff]  ;;  %v2022_v55 = vld [vmem:[%s14074_s2 + $0x50] sm:$0xff]  ;;  %s8093_s28 = sshll.u32 %s6831_s21, 7  ;;  %s9771_s14 = smov [#allocation6]  }
 0x181   : > { %8133 = vmatpush3.msra.mxu1 %v2676_v45  ;;  %9350 = vmatprep.subr.mxu0 %v2025_v46  ;;  %v2674_v51 = vld [vmem:[%s14078_s6 + $0x60] sm:$0xff]  ;;  %v2673_v54 = vld [vmem:[%s14078_s6 + $0x58] sm:$0xff]  ;;  %v2688_v56 = vld [vmem:[%s14078_s6 + $0xd0] sm:$0xff]  ;;  %s9679_s20 = sshll.u32 %s9771_s14, 4  ;;  %s9680_s20 = int_to_ptr.vmem [resolvable:$false] %s9679_s20 }
 0x182   : > { %8134 = vmatprep.subr.mxu1 %v2691_v47  ;;  %9351 = vmatpush3.msra.mxu0 %v2025_v46  ;;  %v2672_v57 = vld [vmem:[%s14078_s6 + $0x50] sm:$0xff]  ;;  %v2021_v58 = vld [vmem:[%s14074_s2 + $0x48] sm:$0xff]  ;;  %v2020_v61 = vld [vmem:[%s14074_s2 + $0x40] sm:$0xff]  ;;  %s9681_s23 = scalar_lea.vmem %s9680_s20, 4096  ;;  %p9682_p10 = scmp.lt.s32.totalorder %s14015_s29, %s9680_s20 }
 0x183   : > { %8135 = vmatpush3.msra.mxu1 %v2675_v48  ;;  %9352 = vmatprep.subr.mxu0 %v2024_v49  ;;  %v2687_v59 = vld [vmem:[%s14078_s6 + $0xc8] sm:$0xff]  ;;  %v2686_v62 = vld [vmem:[%s14078_s6 + $0xc0] sm:$0xff]  ;;  %v2019_v0 = vld [vmem:[%s14074_s2 + $0x38] sm:$0xff] }
 0x184   : > { %8136 = vmatprep.subr.mxu1 %v2690_v50  ;;  %9353 = vmatpush3.msra.mxu0 %v2024_v49  ;;  %v2671_v60 = vld [vmem:[%s14078_s6 + $0x48] sm:$0xff]  ;;  %v2670_v63 = vld [vmem:[%s14078_s6 + $0x40] sm:$0xff]  ;;  %v2685_v1 = vld [vmem:[%s14078_s6 + $0xb8] sm:$0xff] }
 0x185   : > { %8137 = vmatpush3.msra.mxu1 %v2674_v51  ;;  %9354 = vmatprep.subr.mxu0 %v2023_v52  ;;  %v2669_v2 = vld [vmem:[%s14078_s6 + $0x38] sm:$0xff]  ;;  %v2018_v3 = vld [vmem:[%s14074_s2 + $0x30] sm:$0xff]  ;;  %v2017_v6 = vld [vmem:[%s14074_s2 + $0x28] sm:$0xff]  ;;  %s14227_s22 = smov %s14226_s30  ;;  %s14013_s18 = scalar_lea.hbm %s14226_s30, %s8093_s28 }
 0x186   : > { %8138 = vmatprep.subr.mxu1 %v2689_v53  ;;  %9355 = vmatpush3.msra.mxu0 %v2023_v52  ;;  %v2684_v4 = vld [vmem:[%s14078_s6 + $0xb0] sm:$0xff]  ;;  %v2683_v7 = vld [vmem:[%s14078_s6 + $0xa8] sm:$0xff]  ;;  %v2016_v9 = vld [vmem:[%s14074_s2 + $0x20] sm:$0xff] }
 0x187   : > { %8139 = vmatpush3.msra.mxu1 %v2673_v54  ;;  %9356 = vmatprep.subr.mxu0 %v2022_v55  ;;  %v2668_v5 = vld [vmem:[%s14078_s6 + $0x30] sm:$0xff]  ;;  %v2667_v8 = vld [vmem:[%s14078_s6 + $0x28] sm:$0xff]  ;;  %v2682_v10 = vld [vmem:[%s14078_s6 + $0xa0] sm:$0xff] }
 0x188   : > { %8140 = vmatprep.subr.mxu1 %v2688_v56  ;;  %9357 = vmatpush3.msra.mxu0 %v2022_v55  ;;  %v2666_v11 = vld [vmem:[%s14078_s6 + $0x20] sm:$0xff]  ;;  %v2015_v12 = vld [vmem:[%s14074_s2 + $0x18] sm:$0xff]  ;;  %v2014_v15 = vld [vmem:[%s14074_s2 + $0x10] sm:$0xff] }
 0x189   : > { %8141 = vmatpush3.msra.mxu1 %v2672_v57  ;;  %9358 = vmatprep.subr.mxu0 %v2021_v58  ;;  %v2681_v13 = vld [vmem:[%s14078_s6 + $0x98] sm:$0xff]  ;;  %v2680_v16 = vld [vmem:[%s14078_s6 + $0x90] sm:$0xff]  ;;  %v2013_v18 = vld [vmem:[%s14074_s2 + $0x8] sm:$0xff] }
 0x18a   : > { %8142 = vmatprep.subr.mxu1 %v2687_v59  ;;  %9359 = vmatpush3.msra.mxu0 %v2021_v58  ;;  %v2665_v14 = vld [vmem:[%s14078_s6 + $0x18] sm:$0xff]  ;;  %v2664_v17 = vld [vmem:[%s14078_s6 + $0x10] sm:$0xff]  ;;  %v2679_v19 = vld [vmem:[%s14078_s6 + $0x88] sm:$0xff] }
 0x18b   : > { %8143 = vmatpush3.msra.mxu1 %v2671_v60  ;;  %9360 = vmatprep.subr.mxu0 %v2020_v61  ;;  %v2663_v20 = vld [vmem:[%s14078_s6 + $0x8] sm:$0xff]  ;;  %v2012_v21 = vld [vmem:[%s14074_s2] sm:$0xff]  ;;  %v7470_v25 = vld [vmem:[%s11021_s15 + $0x2b2] sm:$0xff] }
 0x18c   : > { %8144 = vmatprep.subr.mxu1 %v2686_v62  ;;  %9361 = vmatpush3.msra.mxu0 %v2020_v61  ;;  %v2678_v22 = vld [vmem:[%s14078_s6 + $0x80] sm:$0xff]  ;;  %v11031_v26 = vld [vmem:[%s11021_s15 + $0x40a] sm:$0xff]  ;;  %v2725_v28 = vld [vmem:[%s14078_s6 + $0x1f8] sm:$0xff] }
 0x18d   : > { %8145 = vmatpush3.msra.mxu1 %v2670_v63  ;;  %9362 = vmatprep.subr.mxu0 %v2019_v0  ;;  %v11024_v23 = vld [vmem:[%s11021_s15 + $0x402] sm:$0xff]  ;;  %v7454_v27 = vld [vmem:[%s11021_s15 + $0x2ac] sm:$0xff]  ;;  %v2757_v29 = vld [vmem:[%s14078_s6 + $0x2f8] sm:$0xff] }
 0x18e   : > { %8146 = vmatprep.subr.mxu1 %v2685_v1  ;;  %9363 = vmatpush3.msra.mxu0 %v2019_v0  ;;  %v2662_v24 = vld [vmem:[%s14078_s6] sm:$0xff]  ;;  %v2709_v30 = vld [vmem:[%s14078_s6 + $0x178] sm:$0xff]  ;;  %v2724_v32 = vld [vmem:[%s14078_s6 + $0x1f0] sm:$0xff] }
 0x18f   : > { %8147 = vmatpush3.msra.mxu1 %v2669_v2  ;;  %9364 = vmatprep.subr.mxu0 %v2018_v3  ;;  %v2741_v31 = vld [vmem:[%s14078_s6 + $0x278] sm:$0xff]  ;;  %v2708_v35 = vld [vmem:[%s14078_s6 + $0x170] sm:$0xff]  ;;  %v11059_v36 = vld [vmem:[%s11021_s15 + $0x442] sm:$0xff] }
 0x190   : > { %8148 = vmatprep.subr.mxu1 %v2684_v4  ;;  %9365 = vmatpush3.msra.mxu0 %v2018_v3  ;;  %v11052_v33 = vld [vmem:[%s11021_s15 + $0x43a] sm:$0xff]  ;;  %v2723_v38 = vld [vmem:[%s14078_s6 + $0x1e8] sm:$0xff]  ;;  %v2756_v39 = vld [vmem:[%s14078_s6 + $0x2f0] sm:$0xff] }
 0x191   : > { %8149 = vmatpush3.msra.mxu1 %v2668_v5  ;;  %9366 = vmatprep.subr.mxu0 %v2017_v6  ;;  %v7471_v34 = vld [vmem:[%s11021_s15 + $0x2ba] sm:$0xff]  ;;  %v2707_v40 = vld [vmem:[%s14078_s6 + $0x168] sm:$0xff]  ;;  %v2740_v41 = vld [vmem:[%s14078_s6 + $0x270] sm:$0xff] }
 0x192   : > { %8150 = vmatprep.subr.mxu1 %v2683_v7  ;;  %9367 = vmatpush3.msra.mxu0 %v2017_v6  ;;  %v7455_v37 = vld [vmem:[%s11021_s15 + $0x2b4] sm:$0xff]  ;;  %v2722_v42 = vld [vmem:[%s14078_s6 + $0x1e0] sm:$0xff]  ;;  %v7472_v44 = vld [vmem:[%s11021_s15 + $0x2ea] sm:$0xff] }
 0x193   : > { %8151 = vmatpush3.msra.mxu1 %v2667_v8  ;;  %9368 = vmatprep.subr.mxu0 %v2016_v9  ;;  %v11080_v43 = vld [vmem:[%s11021_s15 + $0x472] sm:$0xff]  ;;  %v2706_v45 = vld [vmem:[%s14078_s6 + $0x160] sm:$0xff]  ;;  %v2755_v49 = vld [vmem:[%s14078_s6 + $0x2e8] sm:$0xff] }
 0x194   : > { %8152 = vmatprep.subr.mxu1 %v2682_v10  ;;  %9369 = vmatpush3.msra.mxu0 %v2016_v9  ;;  %v11087_v46 = vld [vmem:[%s11021_s15 + $0x47a] sm:$0xff]  ;;  %v7456_v47 = vld [vmem:[%s11021_s15 + $0x2e4] sm:$0xff]  ;;  %v2720_v52 = vld [vmem:[%s14078_s6 + $0x1d0] sm:$0xff] }
 0x195   : > { %8153 = vmatpush3.msra.mxu1 %v2666_v11  ;;  %9370 = vmatprep.subr.mxu0 %v2015_v12  ;;  %v2721_v48 = vld [vmem:[%s14078_s6 + $0x1d8] sm:$0xff]  ;;  %v2739_v51 = vld [vmem:[%s14078_s6 + $0x268] sm:$0xff]  ;;  %v2704_v55 = vld [vmem:[%s14078_s6 + $0x150] sm:$0xff] }
 0x196   : > { %8154 = vmatprep.subr.mxu1 %v2681_v13  ;;  %9371 = vmatpush3.msra.mxu0 %v2015_v12  ;;  %v2705_v50 = vld [vmem:[%s14078_s6 + $0x158] sm:$0xff]  ;;  %v11108_v53 = vld [vmem:[%s11021_s15 + $0x4aa] sm:$0xff]  ;;  %v2754_v59 = vld [vmem:[%s14078_s6 + $0x2e0] sm:$0xff] }
 0x197   : > { %8155 = vmatpush3.msra.mxu1 %v2665_v14  ;;  %9372 = vmatprep.subr.mxu0 %v2014_v15  ;;  %v7473_v54 = vld [vmem:[%s11021_s15 + $0x2f2] sm:$0xff]  ;;  %v2719_v58 = vld [vmem:[%s14078_s6 + $0x1c8] sm:$0xff]  ;;  %v2738_v61 = vld [vmem:[%s14078_s6 + $0x260] sm:$0xff] }
 0x198   : > { %8156 = vmatprep.subr.mxu1 %v2680_v16  ;;  %9373 = vmatpush3.msra.mxu0 %v2014_v15  ;;  %v11115_v56 = vld [vmem:[%s11021_s15 + $0x4b2] sm:$0xff]  ;;  %v2703_v60 = vld [vmem:[%s14078_s6 + $0x148] sm:$0xff]  ;;  %v2718_v62 = vld [vmem:[%s14078_s6 + $0x1c0] sm:$0xff] }
 0x199   : > { %8157 = vmatpush3.msra.mxu1 %v2664_v17  ;;  %9374 = vmatprep.subr.mxu0 %v2013_v18  ;;  %v7457_v57 = vld [vmem:[%s11021_s15 + $0x2ec] sm:$0xff]  ;;  %v11136_v63 = vld [vmem:[%s11021_s15 + $0x4e2] sm:$0xff]  ;;  %v2717_v4 = vld [vmem:[%s14078_s6 + $0x1b8] sm:$0xff] }
 0x19a   : > { %8158 = vmatprep.subr.mxu1 %v2679_v19  ;;  %9375 = vmatpush3.msra.mxu0 %v2013_v18  ;;  %v7474_v0 = vld [vmem:[%s11021_s15 + $0x322] sm:$0xff]  ;;  %v11143_v2 = vld [vmem:[%s11021_s15 + $0x4ea] sm:$0xff]  ;;  %v2753_v5 = vld [vmem:[%s14078_s6 + $0x2d8] sm:$0xff] }
 0x19b   : > { %8159 = vmatpush3.msra.mxu1 %v2663_v20  ;;  %9376 = vmatprep.subr.mxu0 %v2012_v21  ;;  %v2702_v1 = vld [vmem:[%s14078_s6 + $0x140] sm:$0xff]  ;;  %v2701_v6 = vld [vmem:[%s14078_s6 + $0x138] sm:$0xff]  ;;  %v2716_v8 = vld [vmem:[%s14078_s6 + $0x1b0] sm:$0xff] }
 0x19c   : > { %8160 = vmatprep.subr.mxu1 %v2678_v22  ;;  %9377 = vmatpush3.msra.mxu0 %v2012_v21  ;;  %v7458_v3 = vld [vmem:[%s11021_s15 + $0x31c] sm:$0xff]  ;;  %v7475_v10 = vld [vmem:[%s11021_s15 + $0x32a] sm:$0xff]  ;;  %v11192_v19 = vld [vmem:[%s11021_s15 + $0x552] sm:$0xff] }
 0x19d   : > { %9378 = vmatprep.mubr.f32.mxu0 %v11024_v23  ;;  %8161 = vmatpush3.msra.mxu1 %v2662_v24  ;;  %v2737_v7 = vld [vmem:[%s14078_s6 + $0x258] sm:$0xff]  ;;  %v2700_v11 = vld [vmem:[%s14078_s6 + $0x130] sm:$0xff]  ;;  %v11171_v12 = vld [vmem:[%s11021_s15 + $0x522] sm:$0xff] }
 0x19e   : > { %2875 = vmatprep.mubr.f32.mxu1 %v7470_v25  ;;  %9379 = vmatmul.mubr.f32.vlgmr.msra.gmra.mxu0 %v11031_v26  ;;  %v11164_v9 = vld [vmem:[%s11021_s15 + $0x51a] sm:$0xff]  ;;  %v7459_v13 = vld [vmem:[%s11021_s15 + $0x324] sm:$0xff]  ;;  %v2752_v15 = vld [vmem:[%s14078_s6 + $0x2d0] sm:$0xff] }
 0x19f   : > { %2876 = vmatmul.mubr.f32.vlgmr.msra.gmra.mxu1 %v7454_v27  ;;  %8210 = vmatprep.subr.mxu0 %v2725_v28  ;;  %v2715_v14 = vld [vmem:[%s14078_s6 + $0x1a8] sm:$0xff]  ;;  %v2736_v17 = vld [vmem:[%s14078_s6 + $0x250] sm:$0xff]  ;;  %v2714_v18 = vld [vmem:[%s14078_s6 + $0x1a0] sm:$0xff] }
 0x1a0   : > { %8290 = vmatprep.subr.mxu1 %v2757_v29  ;;  %8211 = vmatpush3.msra.mxu0 %v2709_v30  ;;  %v2699_v16 = vld [vmem:[%s14078_s6 + $0x128] sm:$0xff]  ;;  %v7476_v20 = vld [vmem:[%s11021_s15 + $0x35a] sm:$0xff]  ;;  %v2712_v30 = vld [vmem:[%s14078_s6 + $0x190] sm:$0xff] }
 0x1a1   : > { %8291 = vmatpush3.msra.mxu1 %v2741_v31  ;;  %8212 = vmatprep.subr.mxu0 %v2724_v32  ;;  %v2698_v21 = vld [vmem:[%s14078_s6 + $0x120] sm:$0xff]  ;;  %v7460_v24 = vld [vmem:[%s11021_s15 + $0x354] sm:$0xff]  ;;  %v2751_v27 = vld [vmem:[%s14078_s6 + $0x2c8] sm:$0xff] }
 0x1a2   : > { %9381 = vmatprep.mubr.f32.mxu0 %v11052_v33  ;;  %2880 = vmatprep.mubr.f32.mxu1 %v7471_v34  ;;  %v11199_v22 = vld [vmem:[%s11021_s15 + $0x55a] sm:$0xff]  ;;  %v2735_v29 = vld [vmem:[%s14078_s6 + $0x248] sm:$0xff]  ;;  %v2696_v34 = vld [vmem:[%s14078_s6 + $0x110] sm:$0xff] }
 0x1a3   : > { %8213 = vmatpush3.msra.mxu0 %v2708_v35  ;;  %2881 = vmatmul.mubr.f32.gmra.mxu1 %v7455_v37  ;;  %v2713_v25 = vld [vmem:[%s14078_s6 + $0x198] sm:$0xff]  ;;  %v11220_v31 = vld [vmem:[%s11021_s15 + $0x58a] sm:$0xff]  ;;  %v7477_v32 = vld [vmem:[%s11021_s15 + $0x362] sm:$0xff] }
 0x1a4   : > { %9382 = vmatmul.mubr.f32.gmra.mxu0 %v11059_v36  ;;  %8214 = vmatprep.subr.mxu0 %v2723_v38  ;;  %v2697_v28 = vld [vmem:[%s14078_s6 + $0x118] sm:$0xff]  ;;  %v2711_v38 = vld [vmem:[%s14078_s6 + $0x188] sm:$0xff] }
 0x1a5   : > { %8292 = vmatprep.subr.mxu1 %v2756_v39  ;;  %8215 = vmatpush3.msra.mxu0 %v2707_v40  ;;  %v11227_v35 = vld [vmem:[%s11021_s15 + $0x592] sm:$0xff]  ;;  %v7461_v37 = vld [vmem:[%s11021_s15 + $0x35c] sm:$0xff]  ;;  %v2695_v40 = vld [vmem:[%s14078_s6 + $0x108] sm:$0xff] }
 0x1a6   : > { %8293 = vmatpush3.msra.mxu1 %v2740_v41  ;;  %8216 = vmatprep.subr.mxu0 %v2722_v42  ;;  %v2750_v39 = vld [vmem:[%s14078_s6 + $0x2c0] sm:$0xff] }
 0x1a7   : > { %9384 = vmatprep.mubr.f32.mxu0 %v11080_v43  ;;  %2885 = vmatprep.mubr.f32.mxu1 %v7472_v44  ;;  %v2734_v41 = vld [vmem:[%s14078_s6 + $0x240] sm:$0xff]  ;;  %v7478_v44 = vld [vmem:[%s11021_s15 + $0x392] sm:$0xff] }
 0x1a8   : > { %8217 = vmatpush3.msra.mxu0 %v2706_v45  ;;  %2886 = vmatmul.mubr.f32.gmra.mxu1 %v7456_v47  ;;  %v2710_v42 = vld [vmem:[%s14078_s6 + $0x180] sm:$0xff] }
 0x1a9   : > { %9385 = vmatmul.mubr.f32.gmra.mxu0 %v11087_v46  ;;  %8218 = vmatprep.subr.mxu0 %v2721_v48  ;;  %v2694_v45 = vld [vmem:[%s14078_s6 + $0x100] sm:$0xff]  ;;  %v7462_v48 = vld [vmem:[%s11021_s15 + $0x38c] sm:$0xff] }
 0x1aa   : > { %8294 = vmatprep.subr.mxu1 %v2755_v49  ;;  %8219 = vmatpush3.msra.mxu0 %v2705_v50  ;;  %v11252_v47 = vld [vmem:[%s11021_s15 + $0x3fc] sm:$0xff] }
 0x1ab   : > { %8295 = vmatpush3.msra.mxu1 %v2739_v51  ;;  %8220 = vmatprep.subr.mxu0 %v2720_v52  ;;  %v7486_v49 = vld [vmem:[%s11021_s15 + $0x2b8] sm:$0xff] }
 0x1ac   : > { %9387 = vmatprep.mubr.f32.mxu0 %v11108_v53  ;;  %2890 = vmatprep.mubr.f32.mxu1 %v7473_v54  ;;  %v2749_v50 = vld [vmem:[%s14078_s6 + $0x2b8] sm:$0xff]  ;;  %v11265_v54 = vld [vmem:[%s11021_s15 + $0x404] sm:$0xff] }
 0x1ad   : > { %8221 = vmatpush3.msra.mxu0 %v2704_v55  ;;  %2891 = vmatmul.mubr.f32.gmra.mxu1 %v7457_v57  ;;  %v7479_v51 = vld [vmem:[%s11021_s15 + $0x39a] sm:$0xff]  ;;  %v2748_v55 = vld [vmem:[%s14078_s6 + $0x2b0] sm:$0xff] }
 0x1ae   : > { %9388 = vmatmul.mubr.f32.gmra.mxu0 %v11115_v56  ;;  %8222 = vmatprep.subr.mxu0 %v2719_v58  ;;  %v2733_v52 = vld [vmem:[%s14078_s6 + $0x238] sm:$0xff] }
 0x1af   : > { %8296 = vmatprep.subr.mxu1 %v2754_v59  ;;  %8223 = vmatpush3.msra.mxu0 %v2703_v60  ;;  %v2789_v57 = vld [vmem:[%s14078_s6 + $0x3f8] sm:$0xff]  ;;  %v7487_v59 = vld [vmem:[%s11021_s15 + $0x2c0] sm:$0xff]  ;;  %v2732_v60 = vld [vmem:[%s14078_s6 + $0x230] sm:$0xff] }
 0x1b0   : > { %8297 = vmatpush3.msra.mxu1 %v2738_v61  ;;  %8224 = vmatprep.subr.mxu0 %v2718_v62  ;;  %v7463_v58 = vld [vmem:[%s11021_s15 + $0x394] sm:$0xff]  ;;  %v7480_v61 = vld [vmem:[%s11021_s15 + $0x3ca] sm:$0xff] }
 0x1b1   : > { %9390 = vmatprep.mubr.f32.mxu0 %v11136_v63  ;;  %2895 = vmatprep.mubr.f32.mxu1 %v7474_v0  ;;  %v11281_v62 = vld [vmem:[%s11021_s15 + $0x434] sm:$0xff]  ;;  %v2747_v0 = vld [vmem:[%s14078_s6 + $0x2a8] sm:$0xff] }
 0x1b2   : > { %8225 = vmatpush3.msra.mxu0 %v2702_v1  ;;  %2896 = vmatmul.mubr.f32.gmra.mxu1 %v7458_v3  ;;  %v2731_v1 = vld [vmem:[%s14078_s6 + $0x228] sm:$0xff]  ;;  %v2773_v3 = vld [vmem:[%s14078_s6 + $0x378] sm:$0xff] }
 0x1b3   : > { %9391 = vmatmul.mubr.f32.gmra.mxu0 %v11143_v2  ;;  %8226 = vmatprep.subr.mxu0 %v2717_v4  ;;  %v7464_v4 = vld [vmem:[%s11021_s15 + $0x3c4] sm:$0xff] }
 0x1b4   : > { %8298 = vmatprep.subr.mxu1 %v2753_v5  ;;  %8227 = vmatpush3.msra.mxu0 %v2701_v6  ;;  %v7488_v5 = vld [vmem:[%s11021_s15 + $0x2f0] sm:$0xff] }
 0x1b5   : > { %8299 = vmatpush3.msra.mxu1 %v2737_v7  ;;  %8228 = vmatprep.subr.mxu0 %v2716_v8  ;;  %v7481_v6 = vld [vmem:[%s11021_s15 + $0x3d2] sm:$0xff]  ;;  %v11297_v7 = vld [vmem:[%s11021_s15 + $0x43c] sm:$0xff] }
 0x1b6   : > { %9393 = vmatprep.mubr.f32.mxu0 %v11164_v9  ;;  %2900 = vmatprep.mubr.f32.mxu1 %v7475_v10  ;;  %v2746_v8 = vld [vmem:[%s14078_s6 + $0x2a0] sm:$0xff]  ;;  %v2788_v10 = vld [vmem:[%s14078_s6 + $0x3f0] sm:$0xff] }
 0x1b7   : > { %8229 = vmatpush3.msra.mxu0 %v2700_v11  ;;  %2901 = vmatmul.mubr.f32.gmra.mxu1 %v7459_v13  ;;  %v2730_v11 = vld [vmem:[%s14078_s6 + $0x220] sm:$0xff]  ;;  %v2772_v13 = vld [vmem:[%s14078_s6 + $0x370] sm:$0xff] }
 0x1b8   : > { %9394 = vmatmul.mubr.f32.gmra.mxu0 %v11171_v12  ;;  %8230 = vmatprep.subr.mxu0 %v2715_v14  ;;  %v7465_v14 = vld [vmem:[%s11021_s15 + $0x3cc] sm:$0xff] }
 0x1b9   : > { %8300 = vmatprep.subr.mxu1 %v2752_v15  ;;  %8231 = vmatpush3.msra.mxu0 %v2699_v16  ;;  %v7489_v15 = vld [vmem:[%s11021_s15 + $0x2f8] sm:$0xff]  ;;  %v7506_v16 = vld [vmem:[%s11021_s15 + $0x46c] sm:$0xff] }
 0x1ba   : > { %8301 = vmatpush3.msra.mxu1 %v2736_v17  ;;  %8232 = vmatprep.subr.mxu0 %v2714_v18  ;;  %v2745_v17 = vld [vmem:[%s14078_s6 + $0x298] sm:$0xff]  ;;  %v2787_v18 = vld [vmem:[%s14078_s6 + $0x3e8] sm:$0xff] }
 0x1bb   : > { %9396 = vmatprep.mubr.f32.mxu0 %v11192_v19  ;;  %2905 = vmatprep.mubr.f32.mxu1 %v7476_v20  ;;  %v2729_v20 = vld [vmem:[%s14078_s6 + $0x218] sm:$0xff] }
 0x1bc   : > { %8233 = vmatpush3.msra.mxu0 %v2698_v21  ;;  %2906 = vmatmul.mubr.f32.gmra.mxu1 %v7460_v24  ;;  %v2771_v21 = vld [vmem:[%s14078_s6 + $0x368] sm:$0xff] }
 0x1bd   : > { %9397 = vmatmul.mubr.f32.gmra.mxu0 %v11199_v22  ;;  %8234 = vmatprep.subr.mxu0 %v2713_v25  ;;  %v7490_v24 = vld [vmem:[%s11021_s15 + $0x328] sm:$0xff]  ;;  %v7507_v25 = vld [vmem:[%s11021_s15 + $0x474] sm:$0xff] }
 0x1be   : > { %8302 = vmatprep.subr.mxu1 %v2751_v27  ;;  %8235 = vmatpush3.msra.mxu0 %v2697_v28  ;;  %v2744_v27 = vld [vmem:[%s14078_s6 + $0x290] sm:$0xff]  ;;  %v2786_v28 = vld [vmem:[%s14078_s6 + $0x3e0] sm:$0xff] }
 0x1bf   : > { %8303 = vmatpush3.msra.mxu1 %v2735_v29  ;;  %8236 = vmatprep.subr.mxu0 %v2712_v30  ;;  %v2728_v29 = vld [vmem:[%s14078_s6 + $0x210] sm:$0xff]  ;;  %v2770_v30 = vld [vmem:[%s14078_s6 + $0x360] sm:$0xff] }
 0x1c0   : > { %9399 = vmatprep.mubr.f32.mxu0 %v11220_v31  ;;  %2910 = vmatprep.mubr.f32.mxu1 %v7477_v32  ;;  %v7491_v32 = vld [vmem:[%s11021_s15 + $0x330] sm:$0xff] }
 0x1c1   : > { %8237 = vmatpush3.msra.mxu0 %v2696_v34  ;;  %2911 = vmatmul.mubr.f32.gmra.mxu1 %v7461_v37  ;;  %v7508_v34 = vld [vmem:[%s11021_s15 + $0x4a4] sm:$0xff] }
 0x1c2   : > { %9400 = vmatmul.mubr.f32.gmra.mxu0 %v11227_v35  ;;  %8238 = vmatprep.subr.mxu0 %v2711_v38  ;;  %v2743_v37 = vld [vmem:[%s14078_s6 + $0x288] sm:$0xff]  ;;  %v2785_v38 = vld [vmem:[%s14078_s6 + $0x3d8] sm:$0xff] }
 0x1c3   : > { %8304 = vmatprep.subr.mxu1 %v2750_v39  ;;  %8239 = vmatpush3.msra.mxu0 %v2695_v40  ;;  %v2727_v39 = vld [vmem:[%s14078_s6 + $0x208] sm:$0xff]  ;;  %v2769_v40 = vld [vmem:[%s14078_s6 + $0x358] sm:$0xff] }
 0x1c4   : > { %8305 = vmatpush3.msra.mxu1 %v2734_v41  ;;  %8240 = vmatprep.subr.mxu0 %v2710_v42  ;;  %v7492_v41 = vld [vmem:[%s11021_s15 + $0x360] sm:$0xff]  ;;  %v7509_v42 = vld [vmem:[%s11021_s15 + $0x4ac] sm:$0xff] }
 0x1c5   : > { %2915 = vmatprep.mubr.f32.mxu1 %v7478_v44  ;;  %8241 = vmatpush3.msra.mxu0 %v2694_v45  ;;  %v2742_v44 = vld [vmem:[%s14078_s6 + $0x280] sm:$0xff]  ;;  %v2784_v45 = vld [vmem:[%s14078_s6 + $0x3d0] sm:$0xff] }
 0x1c6   : > { %3020 = vmatprep.mubr.f32.mxu0 %v11252_v47  ;;  %2916 = vmatmul.mubr.f32.gmra.mxu1 %v7462_v48  ;;  %v2768_v48 = vld [vmem:[%s14078_s6 + $0x350] sm:$0xff] }
 0x1c7   : > { %3021 = vmatmul.mubr.f32.vlgmr.msra.gmra.mxu0 %v7486_v49  ;;  %8306 = vmatprep.subr.mxu1 %v2749_v50  ;;  %v7493_v49 = vld [vmem:[%s11021_s15 + $0x368] sm:$0xff]  ;;  %v7510_v50 = vld [vmem:[%s11021_s15 + $0x4dc] sm:$0xff] }
 0x1c8   : > { %2920 = vmatprep.mubr.f32.mxu1 %v7479_v51  ;;  %8307 = vmatpush3.msra.mxu1 %v2733_v52  ;;  %v11379_v51 = vld [vmem:[%s11021_s15 + $0x408] sm:$0xff]  ;;  %v2805_v52 = vld [vmem:[%s14078_s6 + $0x478] sm:$0xff] }
 0x1c9   : > { %3025 = vmatprep.mubr.f32.mxu0 %v11265_v54  ;;  %8308 = vmatprep.subr.mxu1 %v2748_v55  ;;  %v2767_v55 = vld [vmem:[%s14078_s6 + $0x348] sm:$0xff] }
 0x1ca   : > { %8370 = vmatprep.subr.mxu0 %v2789_v57  ;;  %2921 = vmatmul.mubr.f32.gmra.mxu1 %v7463_v58  ;;  %v7494_v57 = vld [vmem:[%s11021_s15 + $0x398] sm:$0xff]  ;;  %v7511_v58 = vld [vmem:[%s11021_s15 + $0x4e4] sm:$0xff] }
 0x1cb   : > { %3026 = vmatmul.mubr.f32.gmra.mxu0 %v7487_v59  ;;  %8309 = vmatpush3.msra.mxu1 %v2732_v60  ;;  %v11395_v59 = vld [vmem:[%s11021_s15 + $0x410] sm:$0xff] }
 0x1cc   : > { %2925 = vmatprep.mubr.f32.mxu1 %v7480_v61  ;;  %3030 = vmatprep.mubr.f32.mxu0 %v11281_v62  ;;  %v2804_v60 = vld [vmem:[%s14078_s6 + $0x470] sm:$0xff]  ;;  %v2782_v61 = vld [vmem:[%s14078_s6 + $0x3c0] sm:$0xff] }
 0x1cd   : > { %8310 = vmatprep.subr.mxu1 %v2747_v0  ;;  %8371 = vmatpush3.msra.mxu0 %v2773_v3  ;;  %v7512_v0 = vld [vmem:[%s11021_s15 + $0x514] sm:$0xff]  ;;  %v2766_v3 = vld [vmem:[%s14078_s6 + $0x340] sm:$0xff] }
 0x1ce   : > { %8311 = vmatpush3.msra.mxu1 %v2731_v1  ;;  %8372 = vmatprep.subr.mxu0 %v2788_v10  ;;  %v11408_v1 = vld [vmem:[%s11021_s15 + $0x440] sm:$0xff]  ;;  %v2780_v10 = vld [vmem:[%s14078_s6 + $0x3b0] sm:$0xff] }
 0x1cf   : > { %2926 = vmatmul.mubr.f32.gmra.mxu1 %v7464_v4  ;;  %3031 = vmatmul.mubr.f32.gmra.mxu0 %v7488_v5  ;;  %v2781_v4 = vld [vmem:[%s14078_s6 + $0x3b8] sm:$0xff]  ;;  %v7496_v5 = vld [vmem:[%s11021_s15 + $0x3d0] sm:$0xff] }
 0x1d0   : > { %2930 = vmatprep.mubr.f32.mxu1 %v7481_v6  ;;  %3035 = vmatprep.mubr.f32.mxu0 %v11297_v7  ;;  %v7513_v6 = vld [vmem:[%s11021_s15 + $0x51c] sm:$0xff] }
 0x1d1   : > { %8312 = vmatprep.subr.mxu1 %v2746_v8  ;;  %8373 = vmatpush3.msra.mxu0 %v2772_v13  ;;  %v2765_v8 = vld [vmem:[%s14078_s6 + $0x338] sm:$0xff]  ;;  %v11439_v13 = vld [vmem:[%s11021_s15 + $0x54c] sm:$0xff] }
 0x1d2   : > { %8313 = vmatpush3.msra.mxu1 %v2730_v11  ;;  %8374 = vmatprep.subr.mxu0 %v2787_v18  ;;  %v7497_v11 = vld [vmem:[%s11021_s15 + $0x3d8] sm:$0xff]  ;;  %v7523_v18 = vld [vmem:[%s11021_s15 + $0x480] sm:$0xff] }
 0x1d3   : > { %2931 = vmatmul.mubr.f32.gmra.mxu1 %v7465_v14  ;;  %3036 = vmatmul.mubr.f32.gmra.mxu0 %v7489_v15  ;;  %v7522_v14 = vld [vmem:[%s11021_s15 + $0x478] sm:$0xff]  ;;  %v2764_v15 = vld [vmem:[%s14078_s6 + $0x330] sm:$0xff] }
 0x1d4   : > { %2935 = vmatprep.mubr.f32.mxu1 %v11024_v23  ;;  %3040 = vmatprep.mubr.f32.mxu0 %v7506_v16  ;;  %v2779_v16 = vld [vmem:[%s14078_s6 + $0x3a8] sm:$0xff] }
 0x1d5   : > { %8314 = vmatprep.subr.mxu1 %v2745_v17  ;;  %8375 = vmatpush3.msra.mxu0 %v2771_v21  ;;  %v11454_v17 = vld [vmem:[%s11021_s15 + $0x554] sm:$0xff]  ;;  %v2778_v21 = vld [vmem:[%s14078_s6 + $0x3a0] sm:$0xff] }
 0x1d6   : > { %8315 = vmatpush3.msra.mxu1 %v2729_v20  ;;  %8376 = vmatprep.subr.mxu0 %v2786_v28  ;;  %v2763_v20 = vld [vmem:[%s14078_s6 + $0x328] sm:$0xff]  ;;  %v2777_v28 = vld [vmem:[%s14078_s6 + $0x398] sm:$0xff] }
 0x1d7   : > { %2936 = vmatmul.mubr.f32.gmra.mxu1 %v11252_v47  ;;  %3041 = vmatmul.mubr.f32.gmra.mxu0 %v7490_v24  ;;  %v2726_v47 = vld [vmem:[%s14078_s6 + $0x200] sm:$0xff] }
 0x1d8   : > { %2940 = vmatprep.mubr.f32.mxu1 %v11031_v26  ;;  %3045 = vmatprep.mubr.f32.mxu0 %v7507_v25  ;;  %v11470_v24 = vld [vmem:[%s11021_s15 + $0x584] sm:$0xff]  ;;  %v7524_v25 = vld [vmem:[%s11021_s15 + $0x4b0] sm:$0xff] }
 0x1d9   : > { %8316 = vmatprep.subr.mxu1 %v2744_v27  ;;  %8377 = vmatpush3.msra.mxu0 %v2770_v30  ;;  %v2799_v27 = vld [vmem:[%s14078_s6 + $0x448] sm:$0xff] }
 0x1da   : > { %8317 = vmatpush3.msra.mxu1 %v2728_v29  ;;  %8378 = vmatprep.subr.mxu0 %v2785_v38  ;;  %v2761_v29 = vld [vmem:[%s14078_s6 + $0x318] sm:$0xff]  ;;  %v11489_v30 = vld [vmem:[%s11021_s15 + $0x58c] sm:$0xff] }
 0x1db   : > { %2941 = vmatmul.mubr.f32.gmra.mxu1 %v11265_v54  ;;  %3046 = vmatmul.mubr.f32.gmra.mxu0 %v7491_v32  ;;  %v2783_v54 = vld [vmem:[%s14078_s6 + $0x3c8] sm:$0xff]  ;;  %v7525_v32 = vld [vmem:[%s11021_s15 + $0x4b8] sm:$0xff] }
 0x1dc   : > { %2945 = vmatprep.mubr.f32.mxu1 %v11052_v33  ;;  %3050 = vmatprep.mubr.f32.mxu0 %v7508_v34  ;;  %v2760_v34 = vld [vmem:[%s14078_s6 + $0x310] sm:$0xff]  ;;  %v2775_v38 = vld [vmem:[%s14078_s6 + $0x388] sm:$0xff] }
 0x1dd   : > { %8318 = vmatprep.subr.mxu1 %v2743_v37  ;;  %8379 = vmatpush3.msra.mxu0 %v2769_v40  ;;  %v2798_v37 = vld [vmem:[%s14078_s6 + $0x440] sm:$0xff] }
 0x1de   : > { %8319 = vmatpush3.msra.mxu1 %v2727_v39  ;;  %8380 = vmatprep.subr.mxu0 %v2784_v45  ;;  %v7526_v39 = vld [vmem:[%s11021_s15 + $0x4e8] sm:$0xff]  ;;  %v2774_v40 = vld [vmem:[%s14078_s6 + $0x380] sm:$0xff]  ;;  %v7744_v45 = vld [vmem:[%s14078_s6 + $0x578] sm:$0xff] }
 0x1df   : > { %2946 = vmatmul.mubr.f32.gmra.mxu1 %v11281_v62  ;;  %3051 = vmatmul.mubr.f32.gmra.mxu0 %v7492_v41  ;;  %v7495_v62 = vld [vmem:[%s11021_s15 + $0x3a0] sm:$0xff] }
 0x1e0   : > { %2950 = vmatprep.mubr.f32.mxu1 %v11059_v36  ;;  %3055 = vmatprep.mubr.f32.mxu0 %v7509_v42  ;;  %v2758_v41 = vld [vmem:[%s14078_s6 + $0x300] sm:$0xff]  ;;  %v2797_v42 = vld [vmem:[%s14078_s6 + $0x438] sm:$0xff] }
 0x1e1   : > { %8320 = vmatprep.subr.mxu1 %v2742_v44  ;;  %8381 = vmatpush3.msra.mxu0 %v2768_v48  ;;  %v2796_v44 = vld [vmem:[%s14078_s6 + $0x430] sm:$0xff]  ;;  %v7728_v48 = vld [vmem:[%s14078_s6 + $0x4f8] sm:$0xff] }
 0x1e2   : > { %8321 = vmatpush3.msra.mxu1 %v2726_v47  ;;  %8382 = vmatprep.subr.mxu0 %v2783_v54  ;;  %v7528_v47 = vld [vmem:[%s11021_s15 + $0x520] sm:$0xff] }
 0x1e3   : > { %2951 = vmatmul.mubr.f32.gmra.mxu1 %v11297_v7  ;;  %3056 = vmatmul.mubr.f32.gmra.mxu0 %v7493_v49  ;;  %v11424_v7 = vld [vmem:[%s11021_s15 + $0x448] sm:$0xff]  ;;  %v7743_v49 = vld [vmem:[%s14078_s6 + $0x570] sm:$0xff] }
 0x1e4   : > { %3060 = vmatprep.mubr.f32.mxu0 %v7510_v50  ;;  %3165 = vmatprep.mubr.f32.mxu1 %v11379_v51  ;;  %v2794_v50 = vld [vmem:[%s14078_s6 + $0x420] sm:$0xff] }
 0x1e5   : > { %9402 = vmatprep.subr.mxu1 %v2805_v52  ;;  %8383 = vmatpush3.msra.mxu0 %v2767_v55  ;;  %v7554_v54 = vld [vmem:[%s11021_s15 + $0x5c2] sm:$0xff]  ;;  %v2793_v55 = vld [vmem:[%s14078_s6 + $0x418] sm:$0xff] }
 0x1e6   : > { %8384 = vmatprep.subr.mxu0 %v2782_v61  ;;  %v2792_v61 = vld [vmem:[%s14078_s6 + $0x410] sm:$0xff] }
 0x1e7   : > { %3061 = vmatmul.mubr.f32.gmra.mxu0 %v7494_v57  ;;  %3166 = vmatmul.mubr.f32.vlgmr.msra.gmra.mxu1 %v11024_v23  ;;  %v2803_v23 = vld [vmem:[%s14078_s6 + $0x468] sm:$0xff] }
 0x1e8   : > { %9403 = vmatpush3.msra.mxu1 %v2805_v52  ;;  %3065 = vmatprep.mubr.f32.mxu0 %v7511_v58  ;;  %v7742_v52 = vld [vmem:[%s14078_s6 + $0x568] sm:$0xff]  ;;  %v7741_v58 = vld [vmem:[%s14078_s6 + $0x560] sm:$0xff] }
 0x1e9   : > { %3170 = vmatprep.mubr.f32.mxu1 %v11395_v59  ;;  %9404 = vmatprep.subr.mxu1 %v2804_v60  ;;  %v7726_v57 = vld [vmem:[%s14078_s6 + $0x4e8] sm:$0xff] }
 0x1ea   : > { %9405 = vmatpush3.msra.mxu1 %v2804_v60  ;;  %8385 = vmatpush3.msra.mxu0 %v2766_v3  ;;  %v7555_v60 = vld [vmem:[%s11021_s15 + $0x5ca] sm:$0xff] }
 0x1eb   : > { %3066 = vmatmul.mubr.f32.gmra.mxu0 %v7495_v62  ;;  %3171 = vmatmul.mubr.f32.gmra.mxu1 %v11031_v26  ;;  %v2802_v26 = vld [vmem:[%s14078_s6 + $0x460] sm:$0xff]  ;;  %v2791_v3 = vld [vmem:[%s14078_s6 + $0x408] sm:$0xff] }
 0x1ec   : > { %3070 = vmatprep.mubr.f32.mxu0 %v7512_v0  ;;  %3175 = vmatprep.mubr.f32.mxu1 %v11408_v1  ;;  %v7725_v62 = vld [vmem:[%s14078_s6 + $0x4e0] sm:$0xff]  ;;  %v7740_v0 = vld [vmem:[%s14078_s6 + $0x558] sm:$0xff] }
 0x1ed   : > { %9406 = vmatprep.subr.mxu1 %v2803_v23  ;;  %8386 = vmatprep.subr.mxu0 %v2781_v4  ;;  %v7724_v4 = vld [vmem:[%s14078_s6 + $0x4d8] sm:$0xff] }
 0x1ee   : > { %9407 = vmatpush3.msra.mxu1 %v2803_v23  ;;  %8387 = vmatpush3.msra.mxu0 %v2765_v8  ;;  %v7556_v23 = vld [vmem:[%s11021_s15 + $0x5fa] sm:$0xff]  ;;  %v7723_v8 = vld [vmem:[%s14078_s6 + $0x4d0] sm:$0xff] }
 0x1ef   : > { %3071 = vmatmul.mubr.f32.gmra.mxu0 %v7496_v5  ;;  %3176 = vmatmul.mubr.f32.gmra.mxu1 %v11052_v33  ;;  %v2801_v33 = vld [vmem:[%s14078_s6 + $0x458] sm:$0xff]  ;;  %v7739_v5 = vld [vmem:[%s14078_s6 + $0x550] sm:$0xff] }
 0x1f0   : > { %3075 = vmatprep.mubr.f32.mxu0 %v7513_v6  ;;  %3180 = vmatprep.mubr.f32.mxu1 %v11424_v7  ;;  %v7540_v6 = vld [vmem:[%s11021_s15 + $0x5f4] sm:$0xff] }
 0x1f1   : > { %9408 = vmatprep.subr.mxu1 %v2802_v26  ;;  %8388 = vmatprep.subr.mxu0 %v2780_v10  ;;  %v7738_v10 = vld [vmem:[%s14078_s6 + $0x548] sm:$0xff] }
 0x1f2   : > { %9409 = vmatpush3.msra.mxu1 %v2802_v26  ;;  %8389 = vmatpush3.msra.mxu0 %v2764_v15  ;;  %v2790_v26 = vld [vmem:[%s14078_s6 + $0x400] sm:$0xff]  ;;  %v7760_v15 = vld [vmem:[%s14078_s6 + $0x5f8] sm:$0xff] }
 0x1f3   : > { %3076 = vmatmul.mubr.f32.gmra.mxu0 %v7497_v11  ;;  %3181 = vmatmul.mubr.f32.gmra.mxu1 %v11059_v36  ;;  %v2800_v36 = vld [vmem:[%s14078_s6 + $0x450] sm:$0xff]  ;;  %v7541_v11 = vld [vmem:[%s11021_s15 + $0x5fc] sm:$0xff] }
 0x1f4   : > { %3080 = vmatprep.mubr.f32.mxu0 %v11439_v13  ;;  %3185 = vmatprep.mubr.f32.mxu1 %v7522_v14  ;;  %v7722_v14 = vld [vmem:[%s14078_s6 + $0x4c8] sm:$0xff] }
 0x1f5   : > { %9410 = vmatprep.subr.mxu1 %v2801_v33  ;;  %8390 = vmatprep.subr.mxu0 %v2779_v16  ;;  %v7775_v16 = vld [vmem:[%s14078_s6 + $0x670] sm:$0xff] }
 0x1f6   : > { %9411 = vmatpush3.msra.mxu1 %v2801_v33  ;;  %8391 = vmatpush3.msra.mxu0 %v2763_v20  ;;  %v7737_v33 = vld [vmem:[%s14078_s6 + $0x540] sm:$0xff]  ;;  %v7543_v20 = vld [vmem:[%s11021_s15 + $0x634] sm:$0xff] }
 0x1f7   : > { %3081 = vmatmul.mubr.f32.gmra.mxu0 %v11379_v51  ;;  %3186 = vmatmul.mubr.f32.gmra.mxu1 %v11080_v43  ;;  %v2762_v43 = vld [vmem:[%s14078_s6 + $0x320] sm:$0xff]  ;;  %v7727_v51 = vld [vmem:[%s14078_s6 + $0x4f0] sm:$0xff] }
 0x1f8   : > { %3085 = vmatprep.mubr.f32.mxu0 %v11454_v17  ;;  %3190 = vmatprep.mubr.f32.mxu1 %v7523_v18  ;;  %v7759_v18 = vld [vmem:[%s14078_s6 + $0x5f0] sm:$0xff] }
 0x1f9   : > { %9412 = vmatprep.subr.mxu1 %v2800_v36  ;;  %8392 = vmatprep.subr.mxu0 %v2778_v21  ;;  %v7758_v21 = vld [vmem:[%s14078_s6 + $0x5e8] sm:$0xff] }
 0x1fa   : > { %9413 = vmatpush3.msra.mxu1 %v2800_v36  ;;  %8393 = vmatpush3.msra.mxu0 %v2762_v43  ;;  %v7774_v36 = vld [vmem:[%s14078_s6 + $0x668] sm:$0xff] }
 0x1fb   : > { %3086 = vmatmul.mubr.f32.gmra.mxu0 %v11395_v59  ;;  %3191 = vmatmul.mubr.f32.gmra.mxu1 %v11087_v46  ;;  %v2776_v46 = vld [vmem:[%s14078_s6 + $0x390] sm:$0xff]  ;;  %v7531_v59 = vld [vmem:[%s11021_s15 + $0x560] sm:$0xff]  ;;  %v7570_v43 = vld [vmem:[%s11021_s15 + $0x5c8] sm:$0xff] }
 0x1fc   : > { %3090 = vmatprep.mubr.f32.mxu0 %v11470_v24  ;;  %3195 = vmatprep.mubr.f32.mxu1 %v7524_v25  ;;  %v7560_v25 = vld [vmem:[%s11021_s15 + $0x66a] sm:$0xff] }
 0x1fd   : > { %9414 = vmatprep.subr.mxu1 %v2799_v27  ;;  %8394 = vmatprep.subr.mxu0 %v2777_v28  ;;  %v7571_v28 = vld [vmem:[%s11021_s15 + $0x5d0] sm:$0xff] }
 0x1fe   : > { %9415 = vmatpush3.msra.mxu1 %v2799_v27  ;;  %8395 = vmatpush3.msra.mxu0 %v2761_v29  ;;  %v7757_v27 = vld [vmem:[%s14078_s6 + $0x5e0] sm:$0xff]  ;;  %v7772_v29 = vld [vmem:[%s14078_s6 + $0x658] sm:$0xff] }
 0x1ff   : > { %3091 = vmatmul.mubr.f32.gmra.mxu0 %v11408_v1  ;;  %3196 = vmatmul.mubr.f32.gmra.mxu1 %v11108_v53  ;;  %v2759_v53 = vld [vmem:[%s14078_s6 + $0x308] sm:$0xff] }
 0x200   : > { %3095 = vmatprep.mubr.f32.mxu0 %v11489_v30  ;;  %8396 = vmatprep.subr.mxu0 %v2776_v46  ;;  %v7539_v1 = vld [vmem:[%s11021_s15 + $0x5c4] sm:$0xff]  ;;  %v7756_v46 = vld [vmem:[%s14078_s6 + $0x5d8] sm:$0xff] }
 0x201   : > { %3200 = vmatprep.mubr.f32.mxu1 %v7525_v32  ;;  %8397 = vmatpush3.msra.mxu0 %v2760_v34  ;;  %v7771_v32 = vld [vmem:[%s14078_s6 + $0x650] sm:$0xff] }
 0x202   : > { %9416 = vmatprep.subr.mxu1 %v2798_v37  ;;  %8398 = vmatprep.subr.mxu0 %v2775_v38  ;;  %v7561_v34 = vld [vmem:[%s11021_s15 + $0x672] sm:$0xff] }
 0x203   : > { %3096 = vmatmul.mubr.f32.gmra.mxu0 %v11424_v7  ;;  %3201 = vmatmul.mubr.f32.gmra.mxu1 %v11115_v56  ;;  %v7527_v56 = vld [vmem:[%s11021_s15 + $0x4f0] sm:$0xff]  ;;  %v7557_v7 = vld [vmem:[%s11021_s15 + $0x602] sm:$0xff] }
 0x204   : > { %9417 = vmatpush3.msra.mxu1 %v2798_v37  ;;  %8399 = vmatpush3.msra.mxu0 %v2759_v53  ;;  %v7572_v37 = vld [vmem:[%s11021_s15 + $0x600] sm:$0xff]  ;;  %v7755_v38 = vld [vmem:[%s14078_s6 + $0x5d0] sm:$0xff]  ;;  %v7573_v53 = vld [vmem:[%s11021_s15 + $0x608] sm:$0xff] }
 0x205   : > { %3205 = vmatprep.mubr.f32.mxu1 %v7526_v39  ;;  %8400 = vmatprep.subr.mxu0 %v2774_v40  ;;  %v7770_v39 = vld [vmem:[%s14078_s6 + $0x648] sm:$0xff] }
 0x206   : > { %3310 = vmatprep.mubr.f32.mxu0 %v11192_v19  ;;  %8401 = vmatpush3.msra.mxu0 %v2758_v41  ;;  %v7545_v40 = vld [vmem:[%s11021_s15 + $0x66c] sm:$0xff] }
 0x207   : > { %3206 = vmatmul.mubr.f32.gmra.mxu1 %v11136_v63  ;;  %3311 = vmatmul.mubr.f32.vlgmr.msra.gmra.mxu0 %v11439_v13  ;;  %v2795_v63 = vld [vmem:[%s14078_s6 + $0x428] sm:$0xff]  ;;  %v7776_v13 = vld [vmem:[%s14078_s6 + $0x678] sm:$0xff] }
 0x208   : > { %9418 = vmatprep.subr.mxu1 %v2797_v42  ;;  %3210 = vmatprep.mubr.f32.mxu1 %v7527_v56  ;;  %v7754_v41 = vld [vmem:[%s14078_s6 + $0x5c8] sm:$0xff] }
 0x209   : > { %9419 = vmatpush3.msra.mxu1 %v2797_v42  ;;  %3315 = vmatprep.mubr.f32.mxu0 %v11199_v22  ;;  %v7769_v42 = vld [vmem:[%s14078_s6 + $0x640] sm:$0xff] }
 0x20a   : > { %9420 = vmatprep.subr.mxu1 %v2796_v44  ;;  %8482 = vmatprep.subr.mxu0 %v7744_v45  ;;  %v11681_v56 = vld [vmem:[%s11021_s15 + $0x6a2] sm:$0xff] }
 0x20b   : > { %3211 = vmatmul.mubr.f32.gmra.mxu1 %v11143_v2  ;;  %3316 = vmatmul.mubr.f32.gmra.mxu0 %v11454_v17  ;;  %v7529_v2 = vld [vmem:[%s11021_s15 + $0x528] sm:$0xff]  ;;  %v7559_v17 = vld [vmem:[%s11021_s15 + $0x63a] sm:$0xff] }
 0x20c   : > { %9421 = vmatpush3.msra.mxu1 %v2796_v44  ;;  %3215 = vmatprep.mubr.f32.mxu1 %v7528_v47  ;;  %v7574_v44 = vld [vmem:[%s11021_s15 + $0x638] sm:$0xff]  ;;  %v7721_v45 = vld [vmem:[%s14078_s6 + $0x4c0] sm:$0xff] }
 0x20d   : > { %3320 = vmatprep.mubr.f32.mxu0 %v11220_v31  ;;  %9422 = vmatprep.subr.mxu1 %v2795_v63  ;;  %v7753_v47 = vld [vmem:[%s14078_s6 + $0x5c0] sm:$0xff] }
 0x20e   : > { %8483 = vmatpush3.msra.mxu0 %v7728_v48  ;;  %9423 = vmatpush3.msra.mxu1 %v2795_v63  ;;  %v7736_v63 = vld [vmem:[%s14078_s6 + $0x538] sm:$0xff] }
 0x20f   : > { %3216 = vmatmul.mubr.f32.gmra.mxu1 %v11164_v9  ;;  %8484 = vmatprep.subr.mxu0 %v7743_v49  ;;  %v11560_v9 = vld [vmem:[%s11021_s15 + $0x558] sm:$0xff]  ;;  %v7575_v49 = vld [vmem:[%s11021_s15 + $0x640] sm:$0xff] }
 0x210   : > { %3321 = vmatmul.mubr.f32.gmra.mxu0 %v11470_v24  ;;  %3220 = vmatprep.mubr.f32.mxu1 %v7529_v2  ;;  %v7773_v24 = vld [vmem:[%s14078_s6 + $0x660] sm:$0xff]  ;;  %v7768_v2 = vld [vmem:[%s14078_s6 + $0x638] sm:$0xff] }
 0x211   : > { %3325 = vmatprep.mubr.f32.mxu0 %v11227_v35  ;;  %9424 = vmatprep.subr.mxu1 %v2794_v50  ;;  %v7546_v48 = vld [vmem:[%s11021_s15 + $0x69c] sm:$0xff] }
 0x212   : > { %8485 = vmatpush3.msra.mxu0 %v7727_v51  ;;  %9425 = vmatpush3.msra.mxu1 %v2794_v50  ;;  %v7720_v50 = vld [vmem:[%s14078_s6 + $0x4b8] sm:$0xff] }
 0x213   : > { %3221 = vmatmul.mubr.f32.gmra.mxu1 %v11171_v12  ;;  %8486 = vmatprep.subr.mxu0 %v7742_v52  ;;  %v7538_v12 = vld [vmem:[%s11021_s15 + $0x5bc] sm:$0xff]  ;;  %v7735_v52 = vld [vmem:[%s14078_s6 + $0x530] sm:$0xff] }
 0x214   : > { %3326 = vmatmul.mubr.f32.gmra.mxu0 %v11489_v30  ;;  %3225 = vmatprep.mubr.f32.mxu1 %v11560_v9  ;;  %v7544_v30 = vld [vmem:[%s11021_s15 + $0x664] sm:$0xff]  ;;  %v7752_v51 = vld [vmem:[%s14078_s6 + $0x5b8] sm:$0xff] }
 0x215   : > { %3330 = vmatprep.mubr.f32.mxu0 %v7554_v54  ;;  %9426 = vmatprep.subr.mxu1 %v2793_v55  ;;  %v11712_v54 = vld [vmem:[%s11021_s15 + $0x6aa] sm:$0xff] }
 0x216   : > { %8487 = vmatpush3.msra.mxu0 %v7726_v57  ;;  %9427 = vmatpush3.msra.mxu1 %v2793_v55  ;;  %v7576_v55 = vld [vmem:[%s11021_s15 + $0x670] sm:$0xff] }
 0x217   : > { %3226 = vmatmul.mubr.f32.gmra.mxu1 %v11192_v19  ;;  %8488 = vmatprep.subr.mxu0 %v7741_v58  ;;  %v7532_v19 = vld [vmem:[%s11021_s15 + $0x590] sm:$0xff] }
 0x218   : > { %3331 = vmatmul.mubr.f32.gmra.mxu0 %v7538_v12  ;;  %3230 = vmatprep.mubr.f32.mxu1 %v7531_v59  ;;  %v7719_v57 = vld [vmem:[%s14078_s6 + $0x4b0] sm:$0xff]  ;;  %v7547_v12 = vld [vmem:[%s11021_s15 + $0x6a4] sm:$0xff] }
 0x219   : > { %3335 = vmatprep.mubr.f32.mxu0 %v7555_v60  ;;  %9428 = vmatprep.subr.mxu1 %v2792_v61  ;;  %v7751_v58 = vld [vmem:[%s14078_s6 + $0x5b0] sm:$0xff]  ;;  %v7734_v60 = vld [vmem:[%s14078_s6 + $0x528] sm:$0xff] }
 0x21a   : > { %8489 = vmatpush3.msra.mxu0 %v7725_v62  ;;  %9429 = vmatpush3.msra.mxu1 %v2792_v61  ;;  %v7766_v61 = vld [vmem:[%s14078_s6 + $0x628] sm:$0xff] }
 0x21b   : > { %3231 = vmatmul.mubr.f32.gmra.mxu1 %v11199_v22  ;;  %8490 = vmatprep.subr.mxu0 %v7740_v0  ;;  %v7533_v22 = vld [vmem:[%s11021_s15 + $0x598] sm:$0xff]  ;;  %v7718_v62 = vld [vmem:[%s14078_s6 + $0x4a8] sm:$0xff] }
 0x21c   : > { %3336 = vmatmul.mubr.f32.gmra.mxu0 %v7539_v1  ;;  %3235 = vmatprep.mubr.f32.mxu1 %v7532_v19  ;;  %v7750_v0 = vld [vmem:[%s14078_s6 + $0x5a8] sm:$0xff]  ;;  %v7733_v1 = vld [vmem:[%s14078_s6 + $0x520] sm:$0xff] }
 0x21d   : > { %3340 = vmatprep.mubr.f32.mxu0 %v7556_v23  ;;  %9430 = vmatprep.subr.mxu1 %v2791_v3  ;;  %v11743_v23 = vld [vmem:[%s11021_s15 + $0x6da] sm:$0xff] }
 0x21e   : > { %8491 = vmatpush3.msra.mxu0 %v7724_v4  ;;  %9431 = vmatpush3.msra.mxu1 %v2791_v3  ;;  %v7578_v3 = vld [vmem:[%s11021_s15 + $0x6a8] sm:$0xff]  ;;  %v7717_v4 = vld [vmem:[%s14078_s6 + $0x4a0] sm:$0xff] }
 0x21f   : > { %3236 = vmatmul.mubr.f32.gmra.mxu1 %v11220_v31  ;;  %8492 = vmatprep.subr.mxu0 %v7739_v5  ;;  %v7558_v31 = vld [vmem:[%s11021_s15 + $0x632] sm:$0xff]  ;;  %v7749_v5 = vld [vmem:[%s14078_s6 + $0x5a0] sm:$0xff] }
 0x220   : > { %3341 = vmatmul.mubr.f32.gmra.mxu0 %v7540_v6  ;;  %3240 = vmatprep.mubr.f32.mxu1 %v7533_v22  ;;  %v7548_v6 = vld [vmem:[%s11021_s15 + $0x6d4] sm:$0xff] }
 0x221   : > { %3345 = vmatprep.mubr.f32.mxu0 %v7557_v7  ;;  %9432 = vmatprep.subr.mxu1 %v2790_v26  ;;  %v7732_v7 = vld [vmem:[%s14078_s6 + $0x518] sm:$0xff] }
 0x222   : > { %8493 = vmatpush3.msra.mxu0 %v7723_v8  ;;  %9433 = vmatpush3.msra.mxu1 %v2790_v26  ;;  %v7764_v26 = vld [vmem:[%s14078_s6 + $0x618] sm:$0xff] }
 0x223   : > { %3241 = vmatmul.mubr.f32.gmra.mxu1 %v11227_v35  ;;  %8494 = vmatprep.subr.mxu0 %v7738_v10  ;;  %v7542_v35 = vld [vmem:[%s11021_s15 + $0x62c] sm:$0xff]  ;;  %v7716_v8 = vld [vmem:[%s14078_s6 + $0x498] sm:$0xff] }
 0x224   : > { %3346 = vmatmul.mubr.f32.gmra.mxu0 %v7541_v11  ;;  %9434 = vmatprep.mubr.f32.mxu1 %v11560_v9  ;;  %v7767_v9 = vld [vmem:[%s14078_s6 + $0x630] sm:$0xff]  ;;  %v7748_v10 = vld [vmem:[%s14078_s6 + $0x598] sm:$0xff] }
 0x225   : > { %3350 = vmatprep.mubr.f32.mxu0 %v7558_v31  ;;  %8562 = vmatprep.subr.mxu1 %v7776_v13  ;;  %v7731_v11 = vld [vmem:[%s14078_s6 + $0x510] sm:$0xff]  ;;  %v11774_v13 = vld [vmem:[%s11021_s15 + $0x6e2] sm:$0xff] }
 0x226   : > { %8495 = vmatpush3.msra.mxu0 %v7722_v14  ;;  %v7763_v31 = vld [vmem:[%s14078_s6 + $0x610] sm:$0xff]  ;;  %v7580_v14 = vld [vmem:[%s11021_s15 + $0x6e0] sm:$0xff] }
 0x227   : > { %9435 = vmatmul.mubr.f32.vlgmr.msra.gmra.mxu1 %v7531_v59  ;;  %8496 = vmatprep.subr.mxu0 %v7737_v33  ;;  %v7577_v59 = vld [vmem:[%s11021_s15 + $0x678] sm:$0xff]  ;;  %v7715_v33 = vld [vmem:[%s14078_s6 + $0x490] sm:$0xff] }
 0x228   : > { %3351 = vmatmul.mubr.f32.gmra.mxu0 %v7542_v35  ;;  %8563 = vmatpush3.msra.mxu1 %v7760_v15  ;;  %v7747_v35 = vld [vmem:[%s14078_s6 + $0x590] sm:$0xff]  ;;  %v7549_v15 = vld [vmem:[%s11021_s15 + $0x6dc] sm:$0xff] }
 0x229   : > { %8564 = vmatprep.subr.mxu1 %v7775_v16  ;;  %3355 = vmatprep.mubr.f32.mxu0 %v7559_v17  ;;  %v7581_v16 = vld [vmem:[%s11021_s15 + $0x6e8] sm:$0xff] }
 0x22a   : > { %9437 = vmatprep.mubr.f32.mxu1 %v7532_v19  ;;  %8565 = vmatpush3.msra.mxu1 %v7759_v18  ;;  %v7765_v19 = vld [vmem:[%s14078_s6 + $0x620] sm:$0xff]  ;;  %v7730_v17 = vld [vmem:[%s14078_s6 + $0x508] sm:$0xff] }
 0x22b   : > { %9438 = vmatmul.mubr.f32.gmra.mxu1 %v7533_v22  ;;  %8566 = vmatprep.subr.mxu1 %v7774_v36  ;;  %v7579_v22 = vld [vmem:[%s11021_s15 + $0x6b0] sm:$0xff]  ;;  %v7762_v18 = vld [vmem:[%s14078_s6 + $0x608] sm:$0xff] }
 0x22c   : > { %3356 = vmatmul.mubr.f32.gmra.mxu0 %v7543_v20  ;;  %8567 = vmatpush3.msra.mxu1 %v7758_v21  ;;  %v7714_v36 = vld [vmem:[%s14078_s6 + $0x488] sm:$0xff]  ;;  %v7729_v21 = vld [vmem:[%s14078_s6 + $0x500] sm:$0xff] }
 0x22d   : > { %8568 = vmatprep.subr.mxu1 %v7773_v24  ;;  %3360 = vmatprep.mubr.f32.mxu0 %v7560_v25  ;;  %v7746_v20 = vld [vmem:[%s14078_s6 + $0x588] sm:$0xff]  ;;  %v7761_v24 = vld [vmem:[%s14078_s6 + $0x600] sm:$0xff] }
 0x22e   : > { %9440 = vmatprep.mubr.f32.mxu1 %v7570_v43  ;;  %8569 = vmatpush3.msra.mxu1 %v7757_v27  ;;  %v7713_v25 = vld [vmem:[%s14078_s6 + $0x480] sm:$0xff] }
 0x22f   : > { %9441 = vmatmul.mubr.f32.gmra.mxu1 %v7571_v28  ;;  %8570 = vmatprep.subr.mxu1 %v7772_v29  ;;  %v7601_v43 = vld [vmem:[%s11021_s15 + $0x162] sm:$0xff]  ;;  %v7633_v28 = vld [vmem:[%s11021_s15 + $0x3f6] sm:$0xff] }
 0x230   : > { %3361 = vmatmul.mubr.f32.gmra.mxu0 %v7544_v30  ;;  %8571 = vmatpush3.msra.mxu1 %v7756_v46  ;;  %v7745_v27 = vld [vmem:[%s14078_s6 + $0x580] sm:$0xff]  ;;  %v7585_v29 = vld [vmem:[%s11021_s15 + $0x156] sm:$0xff]  ;;  %v7617_v30 = vld [vmem:[%s11021_s15 + $0x16e] sm:$0xff] }
 0x231   : > { %8572 = vmatprep.subr.mxu1 %v7771_v32  ;;  %3365 = vmatprep.mubr.f32.mxu0 %v7561_v34  ;;  %v7840_v46 = vld [vmem:[%s14078_s6 + $0x878] sm:$0xff]  ;;  %v7602_v34 = vld [vmem:[%s11021_s15 + $0x16a] sm:$0xff] }
 0x232   : > { %9443 = vmatprep.mubr.f32.mxu1 %v7572_v37  ;;  %8573 = vmatpush3.msra.mxu1 %v7755_v38  ;;  %v7824_v32 = vld [vmem:[%s14078_s6 + $0x7f8] sm:$0xff]  ;;  %v7839_v38 = vld [vmem:[%s14078_s6 + $0x870] sm:$0xff] }
 0x233   : > { %9444 = vmatmul.mubr.f32.gmra.mxu1 %v7573_v53  ;;  %8574 = vmatprep.subr.mxu1 %v7770_v39  ;;  %v7634_v37 = vld [vmem:[%s11021_s15 + $0x3fe] sm:$0xff]  ;;  %v7823_v39 = vld [vmem:[%s14078_s6 + $0x7f0] sm:$0xff] }
 0x234   : > { %3366 = vmatmul.mubr.f32.gmra.mxu0 %v7545_v40  ;;  %8575 = vmatpush3.msra.mxu1 %v7754_v41  ;;  %v7586_v53 = vld [vmem:[%s11021_s15 + $0x15e] sm:$0xff]  ;;  %v7618_v40 = vld [vmem:[%s11021_s15 + $0x176] sm:$0xff] }
 0x235   : > { %8576 = vmatprep.subr.mxu1 %v7769_v42  ;;  %3370 = vmatprep.mubr.f32.mxu0 %v11681_v56  ;;  %v7603_v41 = vld [vmem:[%s11021_s15 + $0x19a] sm:$0xff]  ;;  %v7635_v42 = vld [vmem:[%s11021_s15 + $0x42e] sm:$0xff] }
 0x236   : > { %9446 = vmatprep.mubr.f32.mxu1 %v7574_v44  ;;  %8497 = vmatpush3.msra.mxu0 %v7721_v45  ;;  %v7838_v44 = vld [vmem:[%s14078_s6 + $0x868] sm:$0xff] }
 0x237   : > { %8577 = vmatpush3.msra.mxu1 %v7753_v47  ;;  %8498 = vmatprep.subr.mxu0 %v7736_v63  ;;  %v7822_v45 = vld [vmem:[%s14078_s6 + $0x7e8] sm:$0xff]  ;;  %v7808_v47 = vld [vmem:[%s14078_s6 + $0x778] sm:$0xff] }
 0x238   : > { %3371 = vmatmul.mubr.f32.gmra.mxu0 %v7546_v48  ;;  %9447 = vmatmul.mubr.f32.gmra.mxu1 %v7575_v49  ;;  %v7587_v63 = vld [vmem:[%s11021_s15 + $0x18e] sm:$0xff]  ;;  %v7837_v48 = vld [vmem:[%s14078_s6 + $0x860] sm:$0xff] }
 0x239   : > { %8578 = vmatprep.subr.mxu1 %v7768_v2  ;;  %8499 = vmatpush3.msra.mxu0 %v7720_v50  ;;  %v7619_v49 = vld [vmem:[%s11021_s15 + $0x1a6] sm:$0xff]  ;;  %v7636_v50 = vld [vmem:[%s11021_s15 + $0x436] sm:$0xff] }
 0x23a   : > { %8579 = vmatpush3.msra.mxu1 %v7752_v51  ;;  %8500 = vmatprep.subr.mxu0 %v7735_v52  ;;  %v7604_v2 = vld [vmem:[%s11021_s15 + $0x1a2] sm:$0xff]  ;;  %v7836_v52 = vld [vmem:[%s14078_s6 + $0x858] sm:$0xff] }
 0x23b   : > { %8580 = vmatprep.subr.mxu1 %v7767_v9  ;;  %3375 = vmatprep.mubr.f32.mxu0 %v11712_v54  ;;  %v7821_v51 = vld [vmem:[%s14078_s6 + $0x7e0] sm:$0xff]  ;;  %v7792_v9 = vld [vmem:[%s14078_s6 + $0x6f8] sm:$0xff] }
 0x23c   : > { %9449 = vmatprep.mubr.f32.mxu1 %v7576_v55  ;;  %8501 = vmatpush3.msra.mxu0 %v7719_v57  ;;  %v7588_v55 = vld [vmem:[%s11021_s15 + $0x196] sm:$0xff] }
 0x23d   : > { %8581 = vmatpush3.msra.mxu1 %v7751_v58  ;;  %3376 = vmatmul.mubr.f32.gmra.mxu0 %v7547_v12  ;;  %v7820_v57 = vld [vmem:[%s14078_s6 + $0x7d8] sm:$0xff]  ;;  %v7620_v58 = vld [vmem:[%s11021_s15 + $0x1ae] sm:$0xff] }
 0x23e   : > { %9450 = vmatmul.mubr.f32.gmra.mxu1 %v7577_v59  ;;  %8502 = vmatprep.subr.mxu0 %v7734_v60  ;;  %v7605_v12 = vld [vmem:[%s11021_s15 + $0x1d2] sm:$0xff]  ;;  %v7637_v59 = vld [vmem:[%s11021_s15 + $0x466] sm:$0xff] }
 0x23f   : > { %8582 = vmatprep.subr.mxu1 %v7766_v61  ;;  %8503 = vmatpush3.msra.mxu0 %v7718_v62  ;;  %v7835_v60 = vld [vmem:[%s14078_s6 + $0x850] sm:$0xff] }
 0x240   : > { %8583 = vmatpush3.msra.mxu1 %v7750_v0  ;;  %8504 = vmatprep.subr.mxu0 %v7733_v1  ;;  %v7819_v61 = vld [vmem:[%s14078_s6 + $0x7d0] sm:$0xff]  ;;  %v7589_v0 = vld [vmem:[%s11021_s15 + $0x1c6] sm:$0xff] }
 0x241   : > { %8584 = vmatprep.subr.mxu1 %v7765_v19  ;;  %3380 = vmatprep.mubr.f32.mxu0 %v11743_v23  ;;  %v7807_v62 = vld [vmem:[%s14078_s6 + $0x770] sm:$0xff]  ;;  %v7834_v1 = vld [vmem:[%s14078_s6 + $0x848] sm:$0xff]  ;;  %v7621_v19 = vld [vmem:[%s11021_s15 + $0x1de] sm:$0xff] }
 0x242   : > { %9452 = vmatprep.mubr.f32.mxu1 %v7578_v3  ;;  %8505 = vmatpush3.msra.mxu0 %v7717_v4  ;;  %v7606_v3 = vld [vmem:[%s11021_s15 + $0x1da] sm:$0xff]  ;;  %v7638_v4 = vld [vmem:[%s11021_s15 + $0x46e] sm:$0xff] }
 0x243   : > { %8585 = vmatpush3.msra.mxu1 %v7749_v5  ;;  %3381 = vmatmul.mubr.f32.gmra.mxu0 %v7548_v6  ;;  %v7818_v5 = vld [vmem:[%s14078_s6 + $0x7c8] sm:$0xff]  ;;  %v7833_v6 = vld [vmem:[%s14078_s6 + $0x840] sm:$0xff] }
 0x244   : > { %9453 = vmatmul.mubr.f32.gmra.mxu1 %v7579_v22  ;;  %8506 = vmatprep.subr.mxu0 %v7732_v7 }
 0x245   : > { %8586 = vmatprep.subr.mxu1 %v7764_v26  ;;  %8507 = vmatpush3.msra.mxu0 %v7716_v8  ;;  %v7791_v26 = vld [vmem:[%s14078_s6 + $0x6f0] sm:$0xff] }
 0x246   : > { %8587 = vmatpush3.msra.mxu1 %v7748_v10  ;;  %8508 = vmatprep.subr.mxu0 %v7731_v11  ;;  %v7590_v8 = vld [vmem:[%s11021_s15 + $0x1ce] sm:$0xff]  ;;  %v7817_v10 = vld [vmem:[%s14078_s6 + $0x7c0] sm:$0xff] }
 0x247   : > { %8588 = vmatprep.subr.mxu1 %v7763_v31  ;;  %3385 = vmatprep.mubr.f32.mxu0 %v11774_v13  ;;  %v7622_v11 = vld [vmem:[%s11021_s15 + $0x1e6] sm:$0xff] }
 0x248   : > { %9455 = vmatprep.mubr.f32.mxu1 %v7580_v14  ;;  %8509 = vmatpush3.msra.mxu0 %v7715_v33  ;;  %v7607_v31 = vld [vmem:[%s11021_s15 + $0x20a] sm:$0xff] }
 0x249   : > { %8589 = vmatpush3.msra.mxu1 %v7747_v35  ;;  %3386 = vmatmul.mubr.f32.gmra.mxu0 %v7549_v15  ;;  %v7639_v35 = vld [vmem:[%s11021_s15 + $0x49e] sm:$0xff] }
 0x24a   : > { %9456 = vmatmul.mubr.f32.gmra.mxu1 %v7581_v16  ;;  %8510 = vmatprep.subr.mxu0 %v7730_v17  ;;  %v7832_v15 = vld [vmem:[%s14078_s6 + $0x838] sm:$0xff] }
 0x24b   : > { %8590 = vmatprep.subr.mxu1 %v7762_v18  ;;  %8511 = vmatpush3.msra.mxu0 %v7714_v36  ;;  %v7816_v17 = vld [vmem:[%s14078_s6 + $0x7b8] sm:$0xff]  ;;  %v7806_v18 = vld [vmem:[%s14078_s6 + $0x768] sm:$0xff] }
 0x24c   : > { %8591 = vmatpush3.msra.mxu1 %v7746_v20  ;;  %8512 = vmatprep.subr.mxu0 %v7729_v21  ;;  %v7591_v36 = vld [vmem:[%s11021_s15 + $0x1fe] sm:$0xff] }
 0x24d   : > { %8592 = vmatprep.subr.mxu1 %v7761_v24  ;;  %8513 = vmatpush3.msra.mxu0 %v7713_v25  ;;  %v7831_v24 = vld [vmem:[%s14078_s6 + $0x830] sm:$0xff] }
 0x24e   : > { %4228 = vmatprep.mubr.f32.mxu0 %v7601_v43  ;;  %8593 = vmatpush3.msra.mxu1 %v7745_v27  ;;  %v7623_v25 = vld [vmem:[%s11021_s15 + $0x216] sm:$0xff]  ;;  %v7640_v27 = vld [vmem:[%s11021_s15 + $0x4a6] sm:$0xff] }
 0x24f   : > { %4373 = vmatprep.mubr.f32.mxu1 %v7633_v28  ;;  %4229 = vmatmul.mubr.f32.vlgmr.msra.gmra.mxu0 %v7585_v29  ;;  %v7608_v43 = vld [vmem:[%s11021_s15 + $0x212] sm:$0xff]  ;;  %v7790_v28 = vld [vmem:[%s14078_s6 + $0x6e8] sm:$0xff] }
 0x250   : > { %4374 = vmatmul.mubr.f32.vlgmr.msra.gmra.mxu1 %v7617_v30  ;;  %8722 = vmatprep.subr.mxu1 %v7840_v46  ;;  %v7815_v46 = vld [vmem:[%s14078_s6 + $0x7b0] sm:$0xff] }
 0x251   : > { %8723 = vmatpush3.msra.mxu1 %v7824_v32  ;;  %4233 = vmatprep.mubr.f32.mxu0 %v7602_v34  ;;  %v7805_v34 = vld [vmem:[%s14078_s6 + $0x760] sm:$0xff] }
 0x252   : > { %4378 = vmatprep.mubr.f32.mxu1 %v7634_v37  ;;  %8724 = vmatprep.subr.mxu1 %v7839_v38  ;;  %v7592_v37 = vld [vmem:[%s11021_s15 + $0x206] sm:$0xff] }
 0x253   : > { %4234 = vmatmul.mubr.f32.gmra.mxu0 %v7586_v53  ;;  %8725 = vmatpush3.msra.mxu1 %v7823_v39  ;;  %v7830_v38 = vld [vmem:[%s14078_s6 + $0x828] sm:$0xff]  ;;  %v7624_v53 = vld [vmem:[%s11021_s15 + $0x21e] sm:$0xff] }
 0x254   : > { %4379 = vmatmul.mubr.f32.gmra.mxu1 %v7618_v40  ;;  %4238 = vmatprep.mubr.f32.mxu0 %v7603_v41  ;;  %v7609_v39 = vld [vmem:[%s11021_s15 + $0x242] sm:$0xff] }
 0x255   : > { %4383 = vmatprep.mubr.f32.mxu1 %v7635_v42  ;;  %8726 = vmatprep.subr.mxu1 %v7838_v44  ;;  %v7641_v42 = vld [vmem:[%s11021_s15 + $0x4d6] sm:$0xff]  ;;  %v7789_v44 = vld [vmem:[%s14078_s6 + $0x6e0] sm:$0xff] }
 0x256   : > { %8727 = vmatpush3.msra.mxu1 %v7822_v45  ;;  %8642 = vmatprep.subr.mxu0 %v7808_v47  ;;  %v7804_v45 = vld [vmem:[%s14078_s6 + $0x758] sm:$0xff]  ;;  %v7814_v47 = vld [vmem:[%s14078_s6 + $0x7a8] sm:$0xff] }
 0x257   : > { %4239 = vmatmul.mubr.f32.gmra.mxu0 %v7587_v63  ;;  %8728 = vmatprep.subr.mxu1 %v7837_v48 }
 0x258   : > { %4384 = vmatmul.mubr.f32.gmra.mxu1 %v7619_v49  ;;  %4243 = vmatprep.mubr.f32.mxu0 %v7604_v2  ;;  %v7593_v49 = vld [vmem:[%s11021_s15 + $0x236] sm:$0xff] }
 0x259   : > { %4388 = vmatprep.mubr.f32.mxu1 %v7636_v50  ;;  %8729 = vmatpush3.msra.mxu1 %v7821_v51  ;;  %v7829_v50 = vld [vmem:[%s14078_s6 + $0x820] sm:$0xff]  ;;  %v7625_v51 = vld [vmem:[%s11021_s15 + $0x24e] sm:$0xff] }
 0x25a   : > { %8730 = vmatprep.subr.mxu1 %v7836_v52  ;;  %8643 = vmatpush3.msra.mxu0 %v7792_v9  ;;  %v7610_v52 = vld [vmem:[%s11021_s15 + $0x24a] sm:$0xff]  ;;  %v7642_v9 = vld [vmem:[%s11021_s15 + $0x4de] sm:$0xff] }
 0x25b   : > { %4244 = vmatmul.mubr.f32.gmra.mxu0 %v7588_v55  ;;  %8731 = vmatpush3.msra.mxu1 %v7820_v57  ;;  %v7788_v55 = vld [vmem:[%s14078_s6 + $0x6d8] sm:$0xff] }
 0x25c   : > { %4389 = vmatmul.mubr.f32.gmra.mxu1 %v7620_v58  ;;  %4248 = vmatprep.mubr.f32.mxu0 %v7605_v12  ;;  %v7803_v12 = vld [vmem:[%s14078_s6 + $0x750] sm:$0xff] }
 0x25d   : > { %4393 = vmatprep.mubr.f32.mxu1 %v7637_v59  ;;  %8732 = vmatprep.subr.mxu1 %v7835_v60  ;;  %v7813_v59 = vld [vmem:[%s14078_s6 + $0x7a0] sm:$0xff] }
 0x25e   : > { %8733 = vmatpush3.msra.mxu1 %v7819_v61  ;;  %8644 = vmatprep.subr.mxu0 %v7807_v62  ;;  %v11886_v22 = vpop.f32.mrf.mxu0  ;;  %v7594_v60 = vld [vmem:[%s11021_s15 + $0x23e] sm:$0xff] }
 0x25f   : > { %4249 = vmatmul.mubr.f32.gmra.mxu0 %v7589_v0  ;;  %8734 = vmatprep.subr.mxu1 %v7834_v1  ;;  %v8162_v7 = vpop.f32.mrf.mxu1  ;;  %v7828_v0 = vld [vmem:[%s14078_s6 + $0x818] sm:$0xff] }
 0x260   : > { %4394 = vmatmul.mubr.f32.gmra.mxu1 %v7621_v19  ;;  %4253 = vmatprep.mubr.f32.mxu0 %v7606_v3  ;;  %v11897_v14 = vpop.f32.mrf.mxu0  ;;  %v7626_v1 = vld [vmem:[%s11021_s15 + $0x256] sm:$0xff] }
 0x261   : > { %4398 = vmatprep.mubr.f32.mxu1 %v7638_v4  ;;  %8735 = vmatpush3.msra.mxu1 %v7818_v5  ;;  %v8163_v33 = vpop.f32.mrf.mxu1  ;;  %v7611_v19 = vld [vmem:[%s11021_s15 + $0x27a] sm:$0xff]  ;;  %v7643_v4 = vld [vmem:[%s11021_s15 + $0x50e] sm:$0xff] }
 0x262   : > { %8736 = vmatprep.subr.mxu1 %v7833_v6  ;;  %8645 = vmatpush3.msra.mxu0 %v7791_v26  ;;  %v11903_v16 = vadd.f32 %v8163_v33, %v8162_v7  ;;  %v7787_v5 = vld [vmem:[%s14078_s6 + $0x6d0] sm:$0xff]  ;;  %v7802_v6 = vld [vmem:[%s14078_s6 + $0x748] sm:$0xff] }
 0x263   : > { %4254 = vmatmul.mubr.f32.gmra.mxu0 %v7590_v8  ;;  %8737 = vmatpush3.msra.mxu1 %v7817_v10  ;;  %v8165_v21 = vpop.f32.mrf.mxu1  ;;  %v7812_v8 = vld [vmem:[%s14078_s6 + $0x798] sm:$0xff]  ;;  %v7595_v10 = vld [vmem:[%s11021_s15 + $0x26e] sm:$0xff]  ;;  %v7612_v33 = vld [vmem:[%s11021_s15 + $0x282] sm:$0xff] }
 0x264   : > { %4399 = vmatmul.mubr.f32.gmra.mxu1 %v7622_v11  ;;  %4258 = vmatprep.mubr.f32.mxu0 %v7607_v31  ;;  %v11912_v20 = vpop.f32.mrf.mxu0  ;;  %v7827_v11 = vld [vmem:[%s14078_s6 + $0x810] sm:$0xff]  ;;  %v7627_v31 = vld [vmem:[%s11021_s15 + $0x286] sm:$0xff] }
 0x265   : > { %4403 = vmatprep.mubr.f32.mxu1 %v7639_v35  ;;  %8738 = vmatprep.subr.mxu1 %v7832_v15  ;;  %v8166_v30 = vpop.f32.mrf.mxu1 }
 0x266   : > { %8739 = vmatpush3.msra.mxu1 %v7816_v17  ;;  %8646 = vmatprep.subr.mxu0 %v7806_v18  ;;  %v11923_v29 = vpop.f32.mrf.mxu0  ;;  %v11928_v32 = vadd.f32 %v8166_v30, %v8165_v21  ;;  %v7644_v17 = vld [vmem:[%s11021_s15 + $0x516] sm:$0xff]  ;;  %v7786_v18 = vld [vmem:[%s14078_s6 + $0x6c8] sm:$0xff]  ;;  %v7801_v21 = vld [vmem:[%s14078_s6 + $0x740] sm:$0xff] }
 0x267   : > { %4259 = vmatmul.mubr.f32.gmra.mxu0 %v7591_v36  ;;  %8740 = vmatprep.subr.mxu1 %v7831_v24  ;;  %v7811_v24 = vld [vmem:[%s14078_s6 + $0x790] sm:$0xff] }
 0x268   : > { %4404 = vmatmul.mubr.f32.gmra.mxu1 %v7623_v25  ;;  %4263 = vmatprep.mubr.f32.mxu0 %v7608_v43  ;;  %v8168_v41 = vpop.f32.mrf.mxu1  ;;  %v7596_v25 = vld [vmem:[%s11021_s15 + $0x276] sm:$0xff]  ;;  %v7628_v30 = vld [vmem:[%s11021_s15 + $0x28e] sm:$0xff] }
 0x269   : > { %4408 = vmatprep.mubr.f32.mxu1 %v7640_v27  ;;  %8647 = vmatpush3.msra.mxu0 %v7790_v28  ;;  %v11939_v40 = vpop.f32.mrf.mxu0  ;;  %v7826_v28 = vld [vmem:[%s14078_s6 + $0x808] sm:$0xff] }
 0x26a   : > { %8741 = vmatpush3.msra.mxu1 %v7815_v46  ;;  %8648 = vmatprep.subr.mxu0 %v7805_v34  ;;  %v8169_v48 = vpop.f32.mrf.mxu1  ;;  %v7613_v46 = vld [vmem:[%s11021_s15 + $0x2b2] sm:$0xff]  ;;  %v7645_v34 = vld [vmem:[%s11021_s15 + $0x546] sm:$0xff] }
 0x26b   : > { %4264 = vmatmul.mubr.f32.gmra.mxu0 %v7592_v37  ;;  %8742 = vmatprep.subr.mxu1 %v7830_v38  ;;  %v11951_v63 = vpop.f32.mrf.mxu0  ;;  %v11954_v2 = vadd.f32 %v8169_v48, %v8168_v41  ;;  %v7785_v37 = vld [vmem:[%s14078_s6 + $0x6c0] sm:$0xff]  ;;  %v7784_v48 = vld [vmem:[%s14078_s6 + $0x6b8] sm:$0xff] }
 0x26c   : > { %4409 = vmatmul.mubr.f32.gmra.mxu1 %v7624_v53  ;;  %4268 = vmatprep.mubr.f32.mxu0 %v7609_v39  ;;  %v7800_v39 = vld [vmem:[%s14078_s6 + $0x738] sm:$0xff] }
 0x26d   : > { %4413 = vmatprep.mubr.f32.mxu1 %v7641_v42  ;;  %8649 = vmatpush3.msra.mxu0 %v7789_v44  ;;  %v8171_v58 = vpop.f32.mrf.mxu1  ;;  %v7810_v42 = vld [vmem:[%s14078_s6 + $0x788] sm:$0xff] }
 0x26e   : > { %8650 = vmatprep.subr.mxu0 %v7804_v45  ;;  %8743 = vmatpush3.msra.mxu1 %v7814_v47  ;;  %v11965_v57 = vpop.f32.mrf.mxu0  ;;  %v7597_v44 = vld [vmem:[%s11021_s15 + $0x2a6] sm:$0xff]  ;;  %v7629_v47 = vld [vmem:[%s11021_s15 + $0x2be] sm:$0xff] }
 0x26f   : > { %4269 = vmatmul.mubr.f32.gmra.mxu0 %v7593_v49  ;;  %8744 = vmatprep.subr.mxu1 %v7829_v50  ;;  %v8172_v62 = vpop.f32.mrf.mxu1  ;;  %v7825_v45 = vld [vmem:[%s14078_s6 + $0x800] sm:$0xff] }
 0x270   : > { %4414 = vmatmul.mubr.f32.gmra.mxu1 %v7625_v51  ;;  %4273 = vmatprep.mubr.f32.mxu0 %v7610_v52  ;;  %v11974_v61 = vpop.f32.mrf.mxu0  ;;  %v11981_v3 = vadd.f32 %v8172_v62, %v8171_v58  ;;  %v7799_v51 = vld [vmem:[%s14078_s6 + $0x730] sm:$0xff]  ;;  %v7614_v52 = vld [vmem:[%s11021_s15 + $0x2ba] sm:$0xff] }
 0x271   : > { %4418 = vmatprep.mubr.f32.mxu1 %v7642_v9  ;;  %8651 = vmatpush3.msra.mxu0 %v7788_v55  ;;  %v7646_v9 = vld [vmem:[%s11021_s15 + $0x54e] sm:$0xff] }
 0x272   : > { %8652 = vmatprep.subr.mxu0 %v7803_v12  ;;  %8745 = vmatpush3.msra.mxu1 %v7813_v59  ;;  %v8174_v26 = vpop.f32.mrf.mxu1  ;;  %v7783_v55 = vld [vmem:[%s14078_s6 + $0x6b0] sm:$0xff] }
 0x273   : > { %4274 = vmatmul.mubr.f32.gmra.mxu0 %v7594_v60  ;;  %v11990_v7 = vpop.f32.mrf.mxu0  ;;  %8746 = vmatprep.subr.mxu1 %v7828_v0  ;;  %v7598_v59 = vld [vmem:[%s11021_s15 + $0x2ae] sm:$0xff]  ;;  %v7630_v0 = vld [vmem:[%s11021_s15 + $0x2c6] sm:$0xff] }
 0x274   : > { %4419 = vmatmul.mubr.f32.gmra.mxu1 %v7626_v1  ;;  %4278 = vmatprep.mubr.f32.mxu0 %v7611_v19  ;;  %v8175_v15 = vpop.f32.mrf.mxu1  ;;  %v7798_v60 = vld [vmem:[%s14078_s6 + $0x728] sm:$0xff]  ;;  %v7797_v19 = vld [vmem:[%s14078_s6 + $0x720] sm:$0xff] }
 0x275   : > { %4423 = vmatprep.mubr.f32.mxu1 %v7643_v4  ;;  %8653 = vmatpush3.msra.mxu0 %v7787_v5  ;;  %v12001_v35 = vpop.f32.mrf.mxu0  ;;  %v12007_v36 = vadd.f32 %v8175_v15, %v8174_v26  ;;  %v7782_v1 = vld [vmem:[%s14078_s6 + $0x6a8] sm:$0xff]  ;;  %v7647_v26 = vld [vmem:[%s11021_s15 + $0x57e] sm:$0xff]  ;;  %v7631_v15 = vld [vmem:[%s11021_s15 + $0x2f6] sm:$0xff] }
 0x276   : > { %8654 = vmatprep.subr.mxu0 %v7802_v6  ;;  %8747 = vmatpush3.msra.mxu1 %v7812_v8  ;;  %v7615_v4 = vld [vmem:[%s11021_s15 + $0x2ea] sm:$0xff]  ;;  %v7781_v8 = vld [vmem:[%s14078_s6 + $0x6a0] sm:$0xff] }
 0x277   : > { %4279 = vmatmul.mubr.f32.gmra.mxu0 %v7595_v10  ;;  %8748 = vmatprep.subr.mxu1 %v7827_v11  ;;  %v8177_v27 = vpop.f32.mrf.mxu1  ;;  %v7599_v10 = vld [vmem:[%s11021_s15 + $0x2de] sm:$0xff] }
 0x278   : > { %4424 = vmatmul.mubr.f32.gmra.mxu1 %v7627_v31  ;;  %4283 = vmatprep.mubr.f32.mxu0 %v7612_v33  ;;  %v12016_v43 = vpop.f32.mrf.mxu0  ;;  %v7796_v11 = vld [vmem:[%s14078_s6 + $0x718] sm:$0xff] }
 0x279   : > { %4428 = vmatprep.mubr.f32.mxu1 %v7644_v17  ;;  %8655 = vmatpush3.msra.mxu0 %v7786_v18  ;;  %v8178_v53 = vpop.f32.mrf.mxu1  ;;  %v7780_v17 = vld [vmem:[%s14078_s6 + $0x698] sm:$0xff] }
 0x27a   : > { %8656 = vmatprep.subr.mxu0 %v7801_v21  ;;  %8749 = vmatpush3.msra.mxu1 %v7811_v24  ;;  %v12027_v38 = vpop.f32.mrf.mxu0  ;;  %v12032_v41 = vadd.f32 %v8178_v53, %v8177_v27  ;;  %v7795_v21 = vld [vmem:[%s14078_s6 + $0x710] sm:$0xff]  ;;  %v7648_v27 = vld [vmem:[%s11021_s15 + $0x586] sm:$0xff]  ;;  %v7632_v53 = vld [vmem:[%s11021_s15 + $0x2fe] sm:$0xff] }
 0x27b   : > { %4284 = vmatmul.mubr.f32.gmra.mxu0 %v7596_v25  ;;  %8750 = vmatprep.subr.mxu1 %v7826_v28  ;;  %v7616_v24 = vld [vmem:[%s11021_s15 + $0x2f2] sm:$0xff]  ;;  %v12096_v25 = vld [vmem:[%s14079_s7] ss:$0 sm:$0xff] }
 0x27c   : > { %4429 = vmatmul.mubr.f32.gmra.mxu1 %v7628_v30  ;;  %4288 = vmatprep.mubr.f32.mxu0 %v7613_v46  ;;  %v8180_v50 = vpop.f32.mrf.mxu1  ;;  %v7779_v28 = vld [vmem:[%s14078_s6 + $0x690] sm:$0xff] }
 0x27d   : > { %4433 = vmatprep.mubr.f32.mxu1 %v7645_v34  ;;  %8657 = vmatpush3.msra.mxu0 %v7785_v37  ;;  %v12045_v49 = vpop.f32.mrf.mxu0  ;;  %v7600_v34 = vld [vmem:[%s11021_s15 + $0x2e6] sm:$0xff] }
 0x27e   : > { %8658 = vmatprep.subr.mxu0 %v7800_v39  ;;  %8751 = vmatpush3.msra.mxu1 %v7810_v42  ;;  %v8181_v12 = vpop.f32.mrf.mxu1  ;;  %v7794_v37 = vld [vmem:[%s14078_s6 + $0x708] sm:$0xff] }
 0x27f   : > { %4289 = vmatmul.mubr.f32.gmra.mxu0 %v7597_v44  ;;  %v12055_v58 = vpop.f32.mrf.mxu0  ;;  %8752 = vmatprep.subr.mxu1 %v7825_v45  ;;  %v12061_v62 = vadd.f32 %v8181_v12, %v8180_v50  ;;  %v7778_v39 = vld [vmem:[%s14078_s6 + $0x688] sm:$0xff]  ;;  %v2878_v45 = vadd.f32 %v11903_v16, %v12096_v25  ;;  %v7777_v16 = vld [vmem:[%s14078_s6 + $0x680] sm:$0xff] }
 0x280   : > { %4434 = vmatmul.mubr.f32.gmra.mxu1 %v7629_v47  ;;  %8659 = vmatpush3.msra.mxu0 %v7784_v48  ;;  %v7809_v47 = vld [vmem:[%s14078_s6 + $0x780] sm:$0xff] }
 0x281   : > { %8660 = vmatprep.subr.mxu0 %v7799_v51  ;;  %4293 = vmatprep.mubr.f32.mxu0 %v7614_v52  ;;  %v8183_v6 = vpop.f32.mrf.mxu1  ;;  %v7793_v48 = vld [vmem:[%s14078_s6 + $0x700] sm:$0xff]  ;;  %v7649_v52 = vld [vmem:[%s11021_s15 + $0x40e] sm:$0xff] }
 0x282   : > { %4438 = vmatprep.mubr.f32.mxu1 %v7646_v9  ;;  %8661 = vmatpush3.msra.mxu0 %v7783_v55  ;;  %v12071_v5 = vpop.f32.mrf.mxu0 }
 0x283   : > { %14112 = vst [vmem:[#allocation22_spill] sm:$0xff] %v12071_v5  ;;  %4294 = vmatmul.mubr.f32.gmra.mxu0 %v7598_v59  ;;  %8662 = vmatprep.subr.mxu0 %v7798_v60  ;;  %v8184_v33 = vpop.f32.mrf.mxu1  ;;  %v7665_v59 = vld [vmem:[%s11021_s15 + $0x696] sm:$0xff] }
 0x284   : > { %4439 = vmatmul.mubr.f32.gmra.mxu1 %v7630_v0  ;;  %8663 = vmatpush3.msra.mxu0 %v7782_v1  ;;  %v12081_v31 = vpop.f32.mrf.mxu0  ;;  %v12087_v18 = vadd.f32 %v8184_v33, %v8183_v6  ;;  %v7971_v60 = vld [vmem:[%s14078_s6 + $0x9f8] sm:$0xff] }
 0x285   : > { %14113 = vst [vmem:[#allocation23_spill] sm:$0xff] %v12081_v31  ;;  %8664 = vmatprep.subr.mxu0 %v7797_v19  ;;  %4298 = vmatprep.mubr.f32.mxu0 %v7615_v4  ;;  %v2883_v19 = vadd.f32 %v11928_v32, %v12096_v25  ;;  %v7955_v4 = vld [vmem:[%s14078_s6 + $0x978] sm:$0xff]  ;;  %v7970_v32 = vld [vmem:[%s14078_s6 + $0x9f0] sm:$0xff] }
 0x286   : > { %4443 = vmatprep.mubr.f32.mxu1 %v7647_v26  ;;  %8665 = vmatpush3.msra.mxu0 %v7781_v8  ;;  %v8186_v30 = vpop.f32.mrf.mxu1  ;;  %v7650_v6 = vld [vmem:[%s11021_s15 + $0x416] sm:$0xff] }
 0x287   : > { %4299 = vmatmul.mubr.f32.gmra.mxu0 %v7599_v10  ;;  %8666 = vmatprep.subr.mxu0 %v7796_v11  ;;  %v8242_v46 = vpop.f32.mrf.mxu0  ;;  %v9643_v10 = vld [vmem:[%s11021_s15 + $0x402] sm:$0xff] }
 0x288   : > { %4444 = vmatmul.mubr.f32.gmra.mxu1 %v7631_v15  ;;  %8667 = vmatpush3.msra.mxu0 %v7780_v17  ;;  %v8187_v42 = vpop.f32.mrf.mxu1  ;;  %v7954_v15 = vld [vmem:[%s14078_s6 + $0x970] sm:$0xff] }
 0x289   : > { %8668 = vmatprep.subr.mxu0 %v7795_v21  ;;  %4303 = vmatprep.mubr.f32.mxu0 %v7616_v24  ;;  %v8243_v44 = vpop.f32.mrf.mxu0  ;;  %v12118_v50 = vadd.f32 %v8187_v42, %v8186_v30  ;;  %v7651_v21 = vld [vmem:[%s11021_s15 + $0x446] sm:$0xff] }
 0x28a   : > { %4448 = vmatprep.mubr.f32.mxu1 %v7648_v27  ;;  %8669 = vmatpush3.msra.mxu0 %v7779_v28  ;;  %v8244_v51 = vadd.f32 %v8243_v44, %v8242_v46  ;;  %v8189_v9 = vpop.f32.mrf.mxu1  ;;  %v2888_v28 = vadd.f32 %v11954_v2, %v12096_v25  ;;  %v7969_v30 = vld [vmem:[%s14078_s6 + $0x9e8] sm:$0xff]  ;;  %v7968_v44 = vld [vmem:[%s14078_s6 + $0x9e0] sm:$0xff] }
 0x28b   : > { %4304 = vmatmul.mubr.f32.gmra.mxu0 %v7600_v34  ;;  %8670 = vmatprep.subr.mxu0 %v7794_v37  ;;  %v8245_v55 = vpop.f32.mrf.mxu0  ;;  %v9644_v37 = vld [vmem:[%s11021_s15 + $0x40a] sm:$0xff] }
 0x28c   : > { %4449 = vmatmul.mubr.f32.gmra.mxu1 %v7632_v53  ;;  %8671 = vmatpush3.msra.mxu0 %v7778_v39  ;;  %v12124_v12 = vadd.f32 %v8244_v51, %v2878_v45  ;;  %v8190_v0 = vpop.f32.mrf.mxu1  ;;  %v7953_v53 = vld [vmem:[%s14078_s6 + $0x968] sm:$0xff] }
 0x28d   : > { %8753 = vmatpush3.msra.mxu1 %v7809_v47  ;;  %8672 = vmatprep.subr.mxu0 %v7793_v48  ;;  %v8246_v1 = vpop.f32.mrf.mxu0  ;;  %v12136_v26 = vadd.f32 %v8190_v0, %v8189_v9  ;;  %v7667_v45 = vld [vmem:[%s11021_s15 + $0x6ce] sm:$0xff] }
 0x28e   : > { %8673 = vmatpush3.msra.mxu0 %v7777_v16  ;;  %4518 = vmatprep.mubr.f32.mxu0 %v7649_v52  ;;  %v8247_v8 = vadd.f32 %v8246_v1, %v8245_v55  ;;  %v7652_v47 = vld [vmem:[%s11021_s15 + $0x44e] sm:$0xff]  ;;  %v2893_v16 = vadd.f32 %v11981_v3, %v12096_v25  ;;  %v7952_v52 = vld [vmem:[%s14078_s6 + $0x960] sm:$0xff]  ;;  %v7967_v3 = vld [vmem:[%s14078_s6 + $0x9d8] sm:$0xff] }
 0x28f   : > { %4663 = vmatprep.mubr.f32.mxu1 %v11681_v56  ;;  %4519 = vmatmul.mubr.f32.vlgmr.msra.gmra.mxu0 %v9643_v10  ;;  %v8192_v11 = vpop.f32.mrf.mxu1  ;;  %v8248_v33 = vpop.f32.mrf.mxu0  ;;  %v7666_v56 = vld [vmem:[%s11021_s15 + $0x69e] sm:$0xff]  ;;  %v2898_v10 = vadd.f32 %v12007_v36, %v12096_v25  ;;  %v7950_v36 = vld [vmem:[%s14078_s6 + $0x950] sm:$0xff] }
 0x290   : > { %4664 = vmatmul.mubr.f32.vlgmr.msra.gmra.mxu1 %v7665_v59  ;;  %8834 = vmatprep.subr.mxu1 %v7971_v60  ;;  %v12146_v17 = vadd.f32 %v8247_v8, %v2883_v19  ;;  %v7951_v1 = vld [vmem:[%s14078_s6 + $0x958] sm:$0xff] }
 0x291   : > { %8835 = vmatpush3.msra.mxu1 %v7955_v4  ;;  %4523 = vmatprep.mubr.f32.mxu0 %v7650_v6  ;;  %v8193_v24 = vpop.f32.mrf.mxu1  ;;  %v8249_v27 = vpop.f32.mrf.mxu0  ;;  %v7668_v19 = vld [vmem:[%s11021_s15 + $0x6d6] sm:$0xff]  ;;  %v7653_v4 = vld [vmem:[%s11021_s15 + $0x47e] sm:$0xff] }
 0x292   : > { %4668 = vmatprep.mubr.f32.mxu1 %v11712_v54  ;;  %8836 = vmatprep.subr.mxu1 %v7970_v32  ;;  %v12156_v46 = vadd.f32 %v8193_v24, %v8192_v11  ;;  %v8250_v34 = vadd.f32 %v8249_v27, %v8248_v33  ;;  %v7856_v54 = vld [vmem:[%s14078_s6 + $0x8f8] sm:$0xff]  ;;  %v7855_v24 = vld [vmem:[%s14078_s6 + $0x8f0] sm:$0xff] }
 0x293   : > { %4524 = vmatmul.mubr.f32.gmra.mxu0 %v9644_v37  ;;  %8837 = vmatpush3.msra.mxu1 %v7954_v15  ;;  %v8195_v2 = vpop.f32.mrf.mxu1  ;;  %v8251_v39 = vpop.f32.mrf.mxu0  ;;  %v7685_v32 = vld [vmem:[%s11021_s15 + $0x712] sm:$0xff] }
 0x294   : > { %4669 = vmatmul.mubr.f32.gmra.mxu1 %v7666_v56  ;;  %4528 = vmatprep.mubr.f32.mxu0 %v7651_v21  ;;  %v12165_v42 = vadd.f32 %v8250_v34, %v2888_v28  ;;  %v7966_v15 = vld [vmem:[%s14078_s6 + $0x9d0] sm:$0xff]  ;;  %v7965_v28 = vld [vmem:[%s14078_s6 + $0x9c8] sm:$0xff] }
 0x295   : > { %4673 = vmatprep.mubr.f32.mxu1 %v11743_v23  ;;  %8838 = vmatprep.subr.mxu1 %v7969_v30  ;;  %v8196_v48 = vpop.f32.mrf.mxu1  ;;  %v8252_v51 = vpop.f32.mrf.mxu0  ;;  %v9645_v23 = vld [vmem:[%s11021_s15 + $0x43a] sm:$0xff]  ;;  %v7669_v30 = vld [vmem:[%s11021_s15 + $0x706] sm:$0xff] }
 0x296   : > { %8839 = vmatpush3.msra.mxu1 %v7953_v53  ;;  %v12178_v9 = vadd.f32 %v8196_v48, %v8195_v2  ;;  %v8253_v55 = vadd.f32 %v8252_v51, %v8251_v39  ;;  %9458 = vmatprep.subr.mxu0 %v7856_v54  ;;  %v7654_v34 = vld [vmem:[%s11021_s15 + $0x486] sm:$0xff]  ;;  %v2903_v2 = vadd.f32 %v12032_v41, %v12096_v25  ;;  %v7686_v39 = vld [vmem:[%s11021_s15 + $0x71a] sm:$0xff] }
 0x297   : > { %4529 = vmatmul.mubr.f32.gmra.mxu0 %v9645_v23  ;;  %8840 = vmatprep.subr.mxu1 %v7968_v44  ;;  %v8198_v59 = vpop.f32.mrf.mxu1  ;;  %v8254_v60 = vpop.f32.mrf.mxu0  ;;  %v7964_v41 = vld [vmem:[%s14078_s6 + $0x9c0] sm:$0xff]  ;;  %v7655_v23 = vld [vmem:[%s11021_s15 + $0x4b6] sm:$0xff] }
 0x298   : > { %4674 = vmatmul.mubr.f32.gmra.mxu1 %v7667_v45  ;;  %4533 = vmatprep.mubr.f32.mxu0 %v7652_v47  ;;  %v12184_v0 = vadd.f32 %v8253_v55, %v2893_v16  ;;  %v7949_v45 = vld [vmem:[%s14078_s6 + $0x948] sm:$0xff]  ;;  %v9647_v47 = vld [vmem:[%s11021_s15 + $0x472] sm:$0xff] }
 0x299   : > { %4678 = vmatprep.mubr.f32.mxu1 %v11774_v13  ;;  %8841 = vmatpush3.msra.mxu1 %v7952_v52  ;;  %v8199_v6 = vpop.f32.mrf.mxu1  ;;  %v8255_v8 = vpop.f32.mrf.mxu0  ;;  %v9646_v13 = vld [vmem:[%s11021_s15 + $0x442] sm:$0xff]  ;;  %v7670_v55 = vld [vmem:[%s11021_s15 + $0x70e] sm:$0xff] }
 0x29a   : > { %8842 = vmatprep.subr.mxu1 %v7967_v3  ;;  %v12195_v11 = vadd.f32 %v8199_v6, %v8198_v59  ;;  %v8256_v33 = vadd.f32 %v8255_v8, %v8254_v60  ;;  %9459 = vmatpush3.msra.mxu0 %v7856_v54  ;;  %v7948_v52 = vld [vmem:[%s14078_s6 + $0x940] sm:$0xff]  ;;  %v2908_v3 = vadd.f32 %v12061_v62, %v12096_v25  ;;  %v7963_v6 = vld [vmem:[%s14078_s6 + $0x9b8] sm:$0xff] }
 0x29b   : > { %4534 = vmatmul.mubr.f32.gmra.mxu0 %v9646_v13  ;;  %8843 = vmatpush3.msra.mxu1 %v7951_v1  ;;  %v8201_v56 = vpop.f32.mrf.mxu1  ;;  %v8257_v21 = vpop.f32.mrf.mxu0  ;;  %v7687_v1 = vld [vmem:[%s11021_s15 + $0x74a] sm:$0xff]  ;;  %v9648_v8 = vld [vmem:[%s11021_s15 + $0x47a] sm:$0xff] }
 0x29c   : > { %4679 = vmatmul.mubr.f32.gmra.mxu1 %v7668_v19  ;;  %4538 = vmatprep.mubr.f32.mxu0 %v7653_v4  ;;  %v12207_v27 = vadd.f32 %v8256_v33, %v2898_v10  ;;  %v7947_v62 = vld [vmem:[%s14078_s6 + $0x938] sm:$0xff]  ;;  %v7854_v33 = vld [vmem:[%s14078_s6 + $0x8e8] sm:$0xff]  ;;  %v7962_v13 = vld [vmem:[%s14078_s6 + $0x9b0] sm:$0xff] }
 0x29d   : > { %4683 = vmatprep.mubr.f32.mxu1 %v7685_v32  ;;  %8844 = vmatprep.subr.mxu1 %v7966_v15  ;;  %v8202_v37 = vpop.f32.mrf.mxu1  ;;  %v8258_v53 = vpop.f32.mrf.mxu0 }
 0x29e   : > { %8845 = vmatpush3.msra.mxu1 %v7950_v36  ;;  %v12217_v54 = vadd.f32 %v8202_v37, %v8201_v56  ;;  %v8259_v44 = vadd.f32 %v8258_v53, %v8257_v21  ;;  %9460 = vmatprep.subr.mxu0 %v7855_v24  ;;  %v7671_v56 = vld [vmem:[%s11021_s15 + $0x73e] sm:$0xff]  ;;  %v9649_v53 = vld [vmem:[%s11021_s15 + $0x4aa] sm:$0xff] }
 0x29f   : > { %4539 = vmatmul.mubr.f32.gmra.mxu0 %v9647_v47  ;;  %v8204_v48 = vpop.f32.mrf.mxu1  ;;  %v8260_v51 = vpop.f32.mrf.mxu0  ;;  %8846 = vmatprep.subr.mxu1 %v7965_v28  ;;  %v7656_v21 = vld [vmem:[%s11021_s15 + $0x4be] sm:$0xff]  ;;  %v2913_v28 = vadd.f32 %v12087_v18, %v12096_v25  ;;  %v7961_v47 = vld [vmem:[%s14078_s6 + $0x9a8] sm:$0xff] }
 0x2a0   : > { %4684 = vmatmul.mubr.f32.gmra.mxu1 %v7669_v30  ;;  %4543 = vmatprep.mubr.f32.mxu0 %v7654_v34  ;;  %v12226_v16 = vadd.f32 %v8259_v44, %v2903_v2  ;;  %v7688_v30 = vld [vmem:[%s11021_s15 + $0x752] sm:$0xff]  ;;  %v7853_v18 = vld [vmem:[%s14078_s6 + $0x8e0] sm:$0xff] }
 0x2a1   : > { %4688 = vmatprep.mubr.f32.mxu1 %v7686_v39  ;;  %8847 = vmatpush3.msra.mxu1 %v7949_v45  ;;  %v8205_v59 = vpop.f32.mrf.mxu1  ;;  %v8261_v60 = vpop.f32.mrf.mxu0  ;;  %v7946_v44 = vld [vmem:[%s14078_s6 + $0x930] sm:$0xff] }
 0x2a2   : > { %v12236_v19 = vadd.f32 %v8205_v59, %v8204_v48  ;;  %v8262_v4 = vadd.f32 %v8261_v60, %v8260_v51  ;;  %8848 = vmatprep.subr.mxu1 %v7964_v41  ;;  %9461 = vmatpush3.msra.mxu0 %v7855_v24  ;;  %v7672_v48 = vld [vmem:[%s11021_s15 + $0x746] sm:$0xff]  ;;  %v7657_v51 = vld [vmem:[%s11021_s15 + $0x4ee] sm:$0xff] }
 0x2a3   : > { %4544 = vmatmul.mubr.f32.gmra.mxu0 %v9648_v8  ;;  %v8207_v10 = vpop.f32.mrf.mxu1  ;;  %v8263_v32 = vpop.f32.mrf.mxu0  ;;  %8849 = vmatpush3.msra.mxu1 %v7948_v52 }
 0x2a4   : > { %4689 = vmatmul.mubr.f32.gmra.mxu1 %v7670_v55  ;;  %4548 = vmatprep.mubr.f32.mxu0 %v7655_v23  ;;  %v12248_v15 = vadd.f32 %v8262_v4, %v2908_v3  ;;  %v2918_v55 = vadd.f32 %v12118_v50, %v12096_v25  ;;  %v7689_v23 = vld [vmem:[%s11021_s15 + $0x782] sm:$0xff]  ;;  %v9650_v3 = vld [vmem:[%s11021_s15 + $0x4b2] sm:$0xff] }
 0x2a5   : > { %4693 = vmatprep.mubr.f32.mxu1 %v7687_v1  ;;  %v8208_v36 = vpop.f32.mrf.mxu1  ;;  %v8264_v24 = vpop.f32.mrf.mxu0  ;;  %8850 = vmatprep.subr.mxu1 %v7963_v6  ;;  %v7852_v6 = vld [vmem:[%s14078_s6 + $0x8d8] sm:$0xff]  ;;  %v7945_v50 = vld [vmem:[%s14078_s6 + $0x928] sm:$0xff] }
 0x2a6   : > { %v12258_v34 = vadd.f32 %v8208_v36, %v8207_v10  ;;  %v8265_v37 = vadd.f32 %v8264_v24, %v8263_v32  ;;  %8851 = vmatpush3.msra.mxu1 %v7947_v62  ;;  %9462 = vmatprep.subr.mxu0 %v7854_v33  ;;  %v7960_v32 = vld [vmem:[%s14078_s6 + $0x9a0] sm:$0xff]  ;;  %v7673_v62 = vld [vmem:[%s11021_s15 + $0x776] sm:$0xff]  ;;  %v7690_v36 = vld [vmem:[%s11021_s15 + $0x78a] sm:$0xff] }
 0x2a7   : > { %4549 = vmatmul.mubr.f32.gmra.mxu0 %v9649_v53  ;;  %v8266_v2 = vpop.f32.mrf.mxu0  ;;  %v8322_v39 = vpop.f32.mrf.mxu1  ;;  %8852 = vmatprep.subr.mxu1 %v7962_v13  ;;  %v7851_v53 = vld [vmem:[%s14078_s6 + $0x8d0] sm:$0xff] }
 0x2a8   : > { %4694 = vmatmul.mubr.f32.gmra.mxu1 %v7671_v56  ;;  %4553 = vmatprep.mubr.f32.mxu0 %v7656_v21  ;;  %v12267_v45 = vadd.f32 %v8265_v37, %v2913_v28  ;;  %v2923_v21 = vadd.f32 %v12136_v26, %v12096_v25  ;;  %v7944_v26 = vld [vmem:[%s14078_s6 + $0x920] sm:$0xff] }
 0x2a9   : > { %4698 = vmatprep.mubr.f32.mxu1 %v7688_v30  ;;  %v8267_v41 = vpop.f32.mrf.mxu0  ;;  %v8323_v52 = vpop.f32.mrf.mxu1  ;;  %9463 = vmatpush3.msra.mxu0 %v7854_v33  ;;  %v7658_v33 = vld [vmem:[%s11021_s15 + $0x4f6] sm:$0xff] }
 0x2aa   : > { %v8268_v59 = vadd.f32 %v8267_v41, %v8266_v2  ;;  %v8324_v60 = vadd.f32 %v8323_v52, %v8322_v39  ;;  %8853 = vmatpush3.msra.mxu1 %v7946_v44  ;;  %9464 = vmatprep.subr.mxu0 %v7853_v18  ;;  %v7959_v44 = vld [vmem:[%s14078_s6 + $0x998] sm:$0xff]  ;;  %v2928_v41 = vadd.f32 %v12156_v46, %v12096_v25 }
 0x2ab   : > { %4554 = vmatmul.mubr.f32.gmra.mxu0 %v9650_v3  ;;  %v8269_v1 = vpop.f32.mrf.mxu0  ;;  %v8325_v4 = vpop.f32.mrf.mxu1  ;;  %8854 = vmatprep.subr.mxu1 %v7961_v47  ;;  %v7659_v47 = vld [vmem:[%s11021_s15 + $0x526] sm:$0xff]  ;;  %v7691_v52 = vld [vmem:[%s11021_s15 + $0x7ba] sm:$0xff] }
 0x2ac   : > { %4699 = vmatmul.mubr.f32.gmra.mxu1 %v7672_v48  ;;  %4558 = vmatprep.mubr.f32.mxu0 %v7657_v51  ;;  %v12284_v8 = vadd.f32 %v8268_v59, %v2918_v55  ;;  %v12287_v10 = vadd.f32 %v8324_v60, %v12124_v12  ;;  %v9651_v12 = vld [vmem:[%s11021_s15 + $0x4e2] sm:$0xff]  ;;  %v7943_v46 = vld [vmem:[%s14078_s6 + $0x918] sm:$0xff] }
 0x2ad   : > { %4703 = vmatprep.mubr.f32.mxu1 %v7689_v23  ;;  %v8270_v13 = vpop.f32.mrf.mxu0  ;;  %v8326_v56 = vpop.f32.mrf.mxu1  ;;  %9465 = vmatpush3.msra.mxu0 %v7853_v18  ;;  %v7674_v18 = vld [vmem:[%s11021_s15 + $0x77e] sm:$0xff]  ;;  %v7850_v3 = vld [vmem:[%s14078_s6 + $0x8c8] sm:$0xff] }
 0x2ae   : > { %v8271_v24 = vadd.f32 %v8270_v13, %v8269_v1  ;;  %v8327_v28 = vadd.f32 %v8326_v56, %v8325_v4  ;;  %9466 = vmatprep.subr.mxu0 %v7852_v6  ;;  %8855 = vmatpush3.msra.mxu1 %v7945_v50  ;;  %v7675_v50 = vld [vmem:[%s11021_s15 + $0x7ae] sm:$0xff]  ;;  %v2933_v13 = vadd.f32 %v12178_v9, %v12096_v25  ;;  %v7692_v56 = vld [vmem:[%s11021_s15 + $0x7c2] sm:$0xff] }
 0x2af   : > { %4559 = vmatmul.mubr.f32.gmra.mxu0 %v9651_v12  ;;  %v8272_v30 = vpop.f32.mrf.mxu0  ;;  %v8328_v37 = vpop.f32.mrf.mxu1  ;;  %8856 = vmatprep.subr.mxu1 %v7960_v32  ;;  %v7660_v32 = vld [vmem:[%s11021_s15 + $0x52e] sm:$0xff] }
 0x2b0   : > { %4704 = vmatmul.mubr.f32.gmra.mxu1 %v7673_v62  ;;  %4563 = vmatprep.mubr.f32.mxu0 %v7658_v33  ;;  %v12304_v2 = vadd.f32 %v8271_v24, %v2923_v21  ;;  %v12307_v39 = vadd.f32 %v8327_v28, %v12146_v17  ;;  %v9652_v17 = vld [vmem:[%s11021_s15 + $0x4ea] sm:$0xff]  ;;  %v7849_v24 = vld [vmem:[%s14078_s6 + $0x8c0] sm:$0xff] }
 0x2b1   : > { %4708 = vmatprep.mubr.f32.mxu1 %v7690_v36  ;;  %9467 = vmatpush3.msra.mxu0 %v7852_v6  ;;  %v8273_v48 = vpop.f32.mrf.mxu0  ;;  %v8329_v51 = vpop.f32.mrf.mxu1  ;;  %v7958_v6 = vld [vmem:[%s14078_s6 + $0x990] sm:$0xff] }
 0x2b2   : > { %v8274_v55 = vadd.f32 %v8273_v48, %v8272_v30  ;;  %v8330_v23 = vadd.f32 %v8329_v51, %v8328_v37  ;;  %9468 = vmatprep.subr.mxu0 %v7851_v53  ;;  %8857 = vmatpush3.msra.mxu1 %v7944_v26  ;;  %v7942_v9 = vld [vmem:[%s14078_s6 + $0x910] sm:$0xff]  ;;  %v2938_v48 = vadd.f32 %v12195_v11, %v12096_v25  ;;  %v7941_v11 = vld [vmem:[%s14078_s6 + $0x908] sm:$0xff] }
 0x2b3   : > { %4564 = vmatmul.mubr.f32.gmra.mxu0 %v9652_v17  ;;  %v8275_v59 = vpop.f32.mrf.mxu0  ;;  %v8331_v60 = vpop.f32.mrf.mxu1  ;;  %8858 = vmatprep.subr.mxu1 %v7959_v44  ;;  %v7676_v26 = vld [vmem:[%s11021_s15 + $0x7b6] sm:$0xff]  ;;  %v7661_v44 = vld [vmem:[%s11021_s15 + $0x55e] sm:$0xff] }
 0x2b4   : > { %4709 = vmatmul.mubr.f32.gmra.mxu1 %v7674_v18  ;;  %4568 = vmatprep.mubr.f32.mxu0 %v7659_v47  ;;  %v12324_v1 = vadd.f32 %v8274_v55, %v2928_v41  ;;  %v12327_v4 = vadd.f32 %v8330_v23, %v12165_v42  ;;  %v9653_v42 = vld [vmem:[%s11021_s15 + $0x51a] sm:$0xff]  ;;  %v7693_v51 = vld [vmem:[%s11021_s15 + $0x7f2] sm:$0xff] }
 0x2b5   : > { %4713 = vmatprep.mubr.f32.mxu1 %v7691_v52  ;;  %9469 = vmatpush3.msra.mxu0 %v7851_v53  ;;  %v8276_v62 = vpop.f32.mrf.mxu0  ;;  %v8332_v33 = vpop.f32.mrf.mxu1  ;;  %v7957_v53 = vld [vmem:[%s14078_s6 + $0x988] sm:$0xff]  ;;  %v7848_v55 = vld [vmem:[%s14078_s6 + $0x8b8] sm:$0xff] }
 0x2b6   : > { %9470 = vmatprep.subr.mxu0 %v7850_v3  ;;  %v8277_v21 = vadd.f32 %v8276_v62, %v8275_v59  ;;  %v8333_v36 = vadd.f32 %v8332_v33, %v8331_v60  ;;  %8859 = vmatpush3.msra.mxu1 %v7943_v46  ;;  %v7677_v46 = vld [vmem:[%s11021_s15 + $0x7e6] sm:$0xff]  ;;  %v7847_v62 = vld [vmem:[%s14078_s6 + $0x8b0] sm:$0xff] }
 0x2b7   : > { %4569 = vmatmul.mubr.f32.gmra.mxu0 %v9653_v42  ;;  %v8278_v28 = vpop.f32.mrf.mxu0  ;;  %v8334_v12 = vpop.f32.mrf.mxu1  ;;  %8860 = vmatprep.subr.mxu1 %v7958_v6 }
 0x2b8   : > { %4714 = vmatmul.mubr.f32.gmra.mxu1 %v7675_v50  ;;  %4573 = vmatprep.mubr.f32.mxu0 %v7660_v32  ;;  %v12344_v30 = vadd.f32 %v8277_v21, %v2933_v13  ;;  %v12347_v37 = vadd.f32 %v8333_v36, %v12184_v0  ;;  %v9654_v0 = vld [vmem:[%s11021_s15 + $0x522] sm:$0xff]  ;;  %v2943_v32 = vadd.f32 %v12217_v54, %v12096_v25  ;;  %v7694_v21 = vld [vmem:[%s11021_s15 + $0x7fa] sm:$0xff] }
 0x2b9   : > { %4718 = vmatprep.mubr.f32.mxu1 %v7692_v56  ;;  %9471 = vmatpush3.msra.mxu0 %v7850_v3  ;;  %v8279_v18 = vpop.f32.mrf.mxu0  ;;  %v8335_v47 = vpop.f32.mrf.mxu1  ;;  %v7956_v3 = vld [vmem:[%s14078_s6 + $0x980] sm:$0xff]  ;;  %v9655_v56 = vld [vmem:[%s11021_s15 + $0x552] sm:$0xff]  ;;  %v7846_v54 = vld [vmem:[%s14078_s6 + $0x8a8] sm:$0xff] }
 0x2ba   : > { %9472 = vmatprep.subr.mxu0 %v7849_v24  ;;  %v8280_v41 = vadd.f32 %v8279_v18, %v8278_v28  ;;  %v8336_v52 = vadd.f32 %v8335_v47, %v8334_v12  ;;  %8861 = vmatpush3.msra.mxu1 %v7942_v9  ;;  %v7678_v12 = vld [vmem:[%s11021_s15 + $0x7ee] sm:$0xff]  ;;  %v7663_v18 = vld [vmem:[%s11021_s15 + $0x596] sm:$0xff] }
 0x2bb   : > { %4574 = vmatmul.mubr.f32.gmra.mxu0 %v9654_v0  ;;  %v8281_v23 = vpop.f32.mrf.mxu0  ;;  %v8337_v17 = vpop.f32.mrf.mxu1  ;;  %8862 = vmatprep.subr.mxu1 %v7957_v53 }
 0x2bc   : > { %4719 = vmatmul.mubr.f32.gmra.mxu1 %v7676_v26  ;;  %4578 = vmatprep.mubr.f32.mxu0 %v7661_v44  ;;  %v12364_v59 = vadd.f32 %v8280_v41, %v2938_v48  ;;  %v12367_v60 = vadd.f32 %v8336_v52, %v12207_v27  ;;  %v7662_v27 = vld [vmem:[%s11021_s15 + $0x566] sm:$0xff]  ;;  %v2948_v26 = vadd.f32 %v12236_v19, %v12096_v25  ;;  %v9656_v48 = vld [vmem:[%s11021_s15 + $0x55a] sm:$0xff] }
 0x2bd   : > { %4723 = vmatprep.mubr.f32.mxu1 %v7693_v51  ;;  %9473 = vmatpush3.msra.mxu0 %v7849_v24  ;;  %v8282_v6 = vpop.f32.mrf.mxu0  ;;  %v8338_v50 = vpop.f32.mrf.mxu1  ;;  %v7845_v44 = vld [vmem:[%s14078_s6 + $0x8a0] sm:$0xff]  ;;  %v7695_v51 = vld [vmem:[%s11021_s15 + $0x82a] sm:$0xff]  ;;  %v7844_v19 = vld [vmem:[%s14078_s6 + $0x898] sm:$0xff] }
 0x2be   : > { %9474 = vmatprep.subr.mxu0 %v7848_v55  ;;  %v8283_v33 = vadd.f32 %v8282_v6, %v8281_v23  ;;  %v8339_v13 = vadd.f32 %v8338_v50, %v8337_v17  ;;  %8863 = vmatpush3.msra.mxu1 %v7941_v11  ;;  %v7679_v23 = vld [vmem:[%s11021_s15 + $0x81e] sm:$0xff] }
 0x2bf   : > { %4579 = vmatmul.mubr.f32.gmra.mxu0 %v9655_v56  ;;  %v8284_v36 = vpop.f32.mrf.mxu0  ;;  %v8340_v42 = vpop.f32.mrf.mxu1  ;;  %8864 = vmatprep.subr.mxu1 %v7956_v3  ;;  %v2953_v3 = vadd.f32 %v12258_v34, %v12096_v25  ;;  %v7664_v6 = vld [vmem:[%s11021_s15 + $0x59e] sm:$0xff]  ;;  %v7842_v25 = vld [vmem:[%s14078_s6 + $0x888] sm:$0xff] }
 0x2c0   : > { %4724 = vmatmul.mubr.f32.gmra.mxu1 %v7677_v46  ;;  %9475 = vmatpush3.msra.mxu0 %v7848_v55  ;;  %v12384_v24 = vadd.f32 %v8283_v33, %v2943_v32  ;;  %v12387_v28 = vadd.f32 %v8339_v13, %v12226_v16  ;;  %v7843_v46 = vld [vmem:[%s14078_s6 + $0x890] sm:$0xff]  ;;  %v7680_v56 = vld [vmem:[%s11021_s15 + $0x826] sm:$0xff] }
 0x2c1   : > { %9476 = vmatprep.subr.mxu0 %v7847_v62  ;;  %4583 = vmatprep.mubr.f32.mxu0 %v7662_v27  ;;  %v8285_v9 = vpop.f32.mrf.mxu0  ;;  %v8341_v53 = vpop.f32.mrf.mxu1  ;;  %v9657_v32 = vld [vmem:[%s11021_s15 + $0x58a] sm:$0xff] }
 0x2c2   : > { %4728 = vmatprep.mubr.f32.mxu1 %v7694_v21  ;;  %9477 = vmatpush3.msra.mxu0 %v7847_v62  ;;  %v8286_v47 = vadd.f32 %v8285_v9, %v8284_v36  ;;  %v8342_v16 = vadd.f32 %v8341_v53, %v8340_v42  ;;  %v7696_v62 = vld [vmem:[%s11021_s15 + $0x832] sm:$0xff]  ;;  %v7940_v36 = vld [vmem:[%s14078_s6 + $0x900] sm:$0xff] }
 0x2c3   : > { %4584 = vmatmul.mubr.f32.gmra.mxu0 %v9656_v48  ;;  %9478 = vmatprep.subr.mxu0 %v7846_v54  ;;  %v8287_v41 = vpop.f32.mrf.mxu0  ;;  %v8343_v52 = vpop.f32.mrf.mxu1  ;;  %v7841_v42 = vld [vmem:[%s14078_s6 + $0x880] sm:$0xff]  ;;  %v7697_v9 = vld [vmem:[%s11021_s15 + $0x6ae] sm:$0xff] }
 0x2c4   : > { %4729 = vmatmul.mubr.f32.gmra.mxu1 %v7678_v12  ;;  %9479 = vmatpush3.msra.mxu0 %v7846_v54  ;;  %v12401_v0 = vadd.f32 %v8286_v47, %v2948_v26  ;;  %v12404_v55 = vadd.f32 %v8342_v16, %v12248_v15  ;;  %v9658_v12 = vld [vmem:[%s11021_s15 + $0x592] sm:$0xff]  ;;  %v4964_v48 = vld [vmem:[%s11021_s15] sm:$0xff] }
 0x2c5   : > { %9480 = vmatprep.subr.mxu0 %v7845_v44  ;;  %4588 = vmatprep.mubr.f32.mxu0 %v7663_v18  ;;  %v8288_v17 = vpop.f32.mrf.mxu0  ;;  %v8344_v11 = vpop.f32.mrf.mxu1  ;;  %v7698_v18 = vld [vmem:[%s11021_s15 + $0x6b6] sm:$0xff] }
 0x2c6   : > { %4733 = vmatprep.mubr.f32.mxu1 %v7695_v51  ;;  %9481 = vmatpush3.msra.mxu0 %v7845_v44  ;;  %v8289_v50 = vadd.f32 %v8288_v17, %v8287_v41  ;;  %v8345_v15 = vadd.f32 %v8344_v11, %v8343_v52  ;;  %v4996_v44 = vld [vmem:[%s11021_s15 + $0x12] sm:$0xff] }
 0x2c7   : > { %4589 = vmatmul.mubr.f32.gmra.mxu0 %v9657_v32  ;;  %9482 = vmatprep.subr.mxu0 %v7844_v19  ;;  %v8346_v27 = vpop.f32.mrf.mxu1  ;;  %v8402_v13 = vpop.f32.mrf.mxu0  ;;  %v8003_v51 = vld [vmem:[%s14078_s6 + $0xaf8] sm:$0xff]  ;;  %v8002_v11 = vld [vmem:[%s14078_s6 + $0xaf0] sm:$0xff] }
 0x2c8   : > { %4734 = vmatmul.mubr.f32.gmra.mxu1 %v7679_v23  ;;  %9483 = vmatpush3.msra.mxu0 %v7844_v19  ;;  %v12418_v34 = vadd.f32 %v8289_v50, %v2953_v3  ;;  %v12421_v33 = vadd.f32 %v8345_v15, %v12267_v45  ;;  %v7987_v19 = vld [vmem:[%s14078_s6 + $0xa78] sm:$0xff] }
 0x2c9   : > { %9484 = vmatprep.subr.mxu0 %v7843_v46  ;;  %4593 = vmatprep.mubr.f32.mxu0 %v7664_v6  ;;  %v8347_v21 = vpop.f32.mrf.mxu1  ;;  %v8403_v45 = vpop.f32.mrf.mxu0  ;;  %v7699_v6 = vld [vmem:[%s11021_s15 + $0x6e6] sm:$0xff]  ;;  %v4997_v50 = vld [vmem:[%s11021_s15 + $0x1a] sm:$0xff] }
 0x2ca   : > { %4738 = vmatprep.mubr.f32.mxu1 %v7696_v62  ;;  %9485 = vmatpush3.msra.mxu0 %v7843_v46  ;;  %v8348_v54 = vadd.f32 %v8347_v21, %v8346_v27  ;;  %v8404_v53 = vadd.f32 %v8403_v45, %v8402_v13  ;;  %v7986_v62 = vld [vmem:[%s14078_s6 + $0xa70] sm:$0xff]  ;;  %v4965_v27 = vld [vmem:[%s11021_s15 + $0x8] sm:$0xff] }
 0x2cb   : > { %4594 = vmatmul.mubr.f32.gmra.mxu0 %v9658_v12  ;;  %9486 = vmatprep.subr.mxu0 %v7842_v25  ;;  %v8349_v26 = vpop.f32.mrf.mxu1  ;;  %v8405_v16 = vpop.f32.mrf.mxu0  ;;  %v8018_v12 = vld [vmem:[%s14078_s6 + $0xb70] sm:$0xff] }
 0x2cc   : > { %4739 = vmatmul.mubr.f32.gmra.mxu1 %v7680_v56  ;;  %9487 = vmatpush3.msra.mxu0 %v7842_v25  ;;  %v12435_v47 = vadd.f32 %v8348_v54, %v12284_v8  ;;  %v12442_v52 = vadd.f32 %v8404_v53, %v12287_v10  ;;  %v8035_v8 = vld [vmem:[%s14078_s6 + $0xbf8] sm:$0xff]  ;;  %v7700_v56 = vld [vmem:[%s11021_s15 + $0x6ee] sm:$0xff] }
 0x2cd   : > { %8865 = vmatpush3.msra.mxu1 %v7940_v36  ;;  %9488 = vmatprep.subr.mxu0 %v7841_v42  ;;  %v8350_v41 = vpop.f32.mrf.mxu1  ;;  %v8406_v17 = vpop.f32.mrf.mxu0  ;;  %v8019_v10 = vld [vmem:[%s14078_s6 + $0xb78] sm:$0xff] }
 0x2ce   : > { %9489 = vmatpush3.msra.mxu0 %v7841_v42  ;;  %9490 = vmatprep.mubr.f32.mxu0 %v7697_v9  ;;  %v8351_v23 = vadd.f32 %v8350_v41, %v8349_v26  ;;  %v8407_v3 = vadd.f32 %v8406_v17, %v8405_v16  ;;  %v8034_v42 = vld [vmem:[%s14078_s6 + $0xbf0] sm:$0xff]  ;;  %v8000_v9 = vld [vmem:[%s14078_s6 + $0xae0] sm:$0xff]  ;;  %v4966_v41 = vld [vmem:[%s11021_s15 + $0x38] sm:$0xff] }
 0x2cf   : > { %5580 = vmatprep.mubr.f32.mxu1 %v4996_v44  ;;  %9491 = vmatmul.mubr.f32.vlgmr.msra.gmra.mxu0 %v7698_v18  ;;  %v8352_v46 = vpop.f32.mrf.mxu1  ;;  %v7701_v44 = vld [vmem:[%s11021_s15 + $0x71e] sm:$0xff]  ;;  %v4998_v18 = vld [vmem:[%s11021_s15 + $0x4a] sm:$0xff] }
 0x2d0   : > { %5581 = vmatmul.mubr.f32.vlgmr.msra.gmra.mxu1 %v4964_v48  ;;  %8914 = vmatprep.subr.mxu0 %v8003_v51  ;;  %v12459_v15 = vadd.f32 %v8351_v23, %v12304_v2  ;;  %v8408_v32 = vpop.f32.mrf.mxu0  ;;  %v12466_v13 = vadd.f32 %v8407_v3, %v12307_v39  ;;  %v8001_v2 = vld [vmem:[%s14078_s6 + $0xae8] sm:$0xff]  ;;  %v7984_v51 = vld [vmem:[%s14078_s6 + $0xa60] sm:$0xff]  ;;  %v7999_v23 = vld [vmem:[%s14078_s6 + $0xad8] sm:$0xff] }
 0x2d1   : > { %8994 = vmatprep.subr.mxu1 %v8035_v8  ;;  %8915 = vmatpush3.msra.mxu0 %v7987_v19  ;;  %v8353_v25 = vpop.f32.mrf.mxu1  ;;  %v7985_v39 = vld [vmem:[%s14078_s6 + $0xa68] sm:$0xff] }
 0x2d2   : > { %8995 = vmatpush3.msra.mxu1 %v8019_v10  ;;  %8916 = vmatprep.subr.mxu0 %v8002_v11  ;;  %v8354_v21 = vadd.f32 %v8353_v25, %v8352_v46  ;;  %v8409_v36 = vpop.f32.mrf.mxu0  ;;  %v7702_v19 = vld [vmem:[%s11021_s15 + $0x726] sm:$0xff]  ;;  %v7983_v11 = vld [vmem:[%s14078_s6 + $0xa58] sm:$0xff] }
 0x2d3   : > { %9493 = vmatprep.mubr.f32.mxu0 %v7699_v6  ;;  %5585 = vmatprep.mubr.f32.mxu1 %v4997_v50  ;;  %v8410_v54 = vadd.f32 %v8409_v36, %v8408_v32  ;;  %v8355_v45 = vpop.f32.mrf.mxu1  ;;  %v8033_v10 = vld [vmem:[%s14078_s6 + $0xbe8] sm:$0xff]  ;;  %v7998_v50 = vld [vmem:[%s14078_s6 + $0xad0] sm:$0xff] }
 0x2d4   : > { %8917 = vmatpush3.msra.mxu0 %v7986_v62  ;;  %5586 = vmatmul.mubr.f32.gmra.mxu1 %v4965_v27  ;;  %v12485_v53 = vadd.f32 %v8354_v21, %v12324_v1  ;;  %v8411_v26 = vpop.f32.mrf.mxu0  ;;  %v8017_v6 = vld [vmem:[%s14078_s6 + $0xb68] sm:$0xff]  ;;  %v4999_v27 = vld [vmem:[%s11021_s15 + $0x52] sm:$0xff]  ;;  %v4967_v21 = vld [vmem:[%s11021_s15 + $0x40] sm:$0xff] }
 0x2d5   : > { %9494 = vmatmul.mubr.f32.gmra.mxu0 %v7700_v56  ;;  %8918 = vmatprep.subr.mxu0 %v8001_v2  ;;  %v8356_v16 = vpop.f32.mrf.mxu1  ;;  %v12490_v48 = vadd.f32 %v8410_v54, %v12327_v4  ;;  %v7982_v2 = vld [vmem:[%s14078_s6 + $0xa50] sm:$0xff] }
 0x2d6   : > { %8996 = vmatprep.subr.mxu1 %v8034_v42  ;;  %8919 = vmatpush3.msra.mxu0 %v7985_v39  ;;  %v8357_v8 = vadd.f32 %v8356_v16, %v8355_v45  ;;  %v8412_v1 = vpop.f32.mrf.mxu0  ;;  %v7704_v39 = vld [vmem:[%s11021_s15 + $0x75e] sm:$0xff] }
 0x2d7   : > { %8997 = vmatpush3.msra.mxu1 %v8018_v12  ;;  %8920 = vmatprep.subr.mxu0 %v8000_v9  ;;  %v8413_v17 = vadd.f32 %v8412_v1, %v8411_v26  ;;  %v8358_v4 = vpop.f32.mrf.mxu1  ;;  %v8032_v12 = vld [vmem:[%s14078_s6 + $0xbe0] sm:$0xff]  ;;  %v7981_v9 = vld [vmem:[%s14078_s6 + $0xa48] sm:$0xff] }
 0x2d8   : > { %9496 = vmatprep.mubr.f32.mxu0 %v7701_v44  ;;  %5590 = vmatprep.mubr.f32.mxu1 %v4998_v18  ;;  %v12507_v3 = vadd.f32 %v8357_v8, %v12344_v30  ;;  %v8414_v46 = vpop.f32.mrf.mxu0  ;;  %v7703_v30 = vld [vmem:[%s11021_s15 + $0x756] sm:$0xff]  ;;  %v7996_v18 = vld [vmem:[%s14078_s6 + $0xac0] sm:$0xff] }
 0x2d9   : > { %8921 = vmatpush3.msra.mxu0 %v7984_v51  ;;  %5591 = vmatmul.mubr.f32.gmra.mxu1 %v4966_v41  ;;  %v8359_v32 = vpop.f32.mrf.mxu1  ;;  %v12516_v62 = vadd.f32 %v8413_v17, %v12347_v37  ;;  %v7997_v37 = vld [vmem:[%s14078_s6 + $0xac8] sm:$0xff] }
 0x2da   : > { %9497 = vmatmul.mubr.f32.gmra.mxu0 %v7702_v19  ;;  %8922 = vmatprep.subr.mxu0 %v7999_v23  ;;  %v8360_v25 = vadd.f32 %v8359_v32, %v8358_v4  ;;  %v8415_v56 = vpop.f32.mrf.mxu0  ;;  %v7705_v41 = vld [vmem:[%s11021_s15 + $0x78e] sm:$0xff]  ;;  %v5000_v8 = vld [vmem:[%s11021_s15 + $0x82] sm:$0xff] }
 0x2db   : > { %8998 = vmatprep.subr.mxu1 %v8033_v10  ;;  %8923 = vmatpush3.msra.mxu0 %v7983_v11  ;;  %v8416_v36 = vadd.f32 %v8415_v56, %v8414_v46  ;;  %v8361_v42 = vpop.f32.mrf.mxu1  ;;  %v7980_v19 = vld [vmem:[%s14078_s6 + $0xa40] sm:$0xff]  ;;  %v4968_v23 = vld [vmem:[%s11021_s15 + $0x70] sm:$0xff]  ;;  %v7995_v11 = vld [vmem:[%s14078_s6 + $0xab8] sm:$0xff] }
 0x2dc   : > { %8999 = vmatpush3.msra.mxu1 %v8017_v6  ;;  %8924 = vmatprep.subr.mxu0 %v7998_v50  ;;  %v12529_v54 = vadd.f32 %v8360_v25, %v12364_v59  ;;  %v8417_v45 = vpop.f32.mrf.mxu0  ;;  %v8016_v59 = vld [vmem:[%s14078_s6 + $0xb60] sm:$0xff]  ;;  %v7706_v10 = vld [vmem:[%s11021_s15 + $0x796] sm:$0xff] }
 0x2dd   : > { %9499 = vmatprep.mubr.f32.mxu0 %v7703_v30  ;;  %5595 = vmatprep.mubr.f32.mxu1 %v4999_v27  ;;  %v8362_v26 = vpop.f32.mrf.mxu1  ;;  %v12538_v44 = vadd.f32 %v8416_v36, %v12367_v60  ;;  %v7979_v50 = vld [vmem:[%s14078_s6 + $0xa38] sm:$0xff]  ;;  %v7994_v27 = vld [vmem:[%s14078_s6 + $0xab0] sm:$0xff] }
 0x2de   : > { %8925 = vmatpush3.msra.mxu0 %v7982_v2  ;;  %5596 = vmatmul.mubr.f32.gmra.mxu1 %v4967_v21  ;;  %v8363_v16 = vadd.f32 %v8362_v26, %v8361_v42  ;;  %v8418_v51 = vpop.f32.mrf.mxu0  ;;  %v7707_v2 = vld [vmem:[%s11021_s15 + $0x7c6] sm:$0xff] }
 0x2df   : > { %9500 = vmatmul.mubr.f32.gmra.mxu0 %v7704_v39  ;;  %8926 = vmatprep.subr.mxu0 %v7997_v37  ;;  %v8419_v60 = vadd.f32 %v8418_v51, %v8417_v45  ;;  %v8364_v1 = vpop.f32.mrf.mxu1  ;;  %v5001_v21 = vld [vmem:[%s11021_s15 + $0x8a] sm:$0xff]  ;;  %v4969_v37 = vld [vmem:[%s11021_s15 + $0x78] sm:$0xff] }
 0x2e0   : > { %9000 = vmatprep.subr.mxu1 %v8032_v12  ;;  %8927 = vmatpush3.msra.mxu0 %v7981_v9  ;;  %v12553_v17 = vadd.f32 %v8363_v16, %v12384_v24  ;;  %v8420_v4 = vpop.f32.mrf.mxu0  ;;  %v8031_v24 = vld [vmem:[%s14078_s6 + $0xbd8] sm:$0xff]  ;;  %v7978_v39 = vld [vmem:[%s14078_s6 + $0xa30] sm:$0xff] }
 0x2e1   : > { %9001 = vmatpush3.msra.mxu1 %v8016_v59  ;;  %8928 = vmatprep.subr.mxu0 %v7996_v18  ;;  %v8365_v46 = vpop.f32.mrf.mxu1  ;;  %v12560_v6 = vadd.f32 %v8419_v60, %v12387_v28  ;;  %v8015_v28 = vld [vmem:[%s14078_s6 + $0xb58] sm:$0xff]  ;;  %v7708_v9 = vld [vmem:[%s11021_s15 + $0x7ce] sm:$0xff] }
 0x2e2   : > { %9502 = vmatprep.mubr.f32.mxu0 %v7705_v41  ;;  %5600 = vmatprep.mubr.f32.mxu1 %v5000_v8  ;;  %v8366_v32 = vadd.f32 %v8365_v46, %v8364_v1  ;;  %v8421_v30 = vpop.f32.mrf.mxu0  ;;  %v8030_v18 = vld [vmem:[%s14078_s6 + $0xbd0] sm:$0xff]  ;;  %v7992_v8 = vld [vmem:[%s14078_s6 + $0xaa0] sm:$0xff]  ;;  %v4970_v46 = vld [vmem:[%s11021_s15 + $0xa8] sm:$0xff] }
 0x2e3   : > { %8929 = vmatpush3.msra.mxu0 %v7980_v19  ;;  %5601 = vmatmul.mubr.f32.gmra.mxu1 %v4968_v23  ;;  %v8422_v25 = vadd.f32 %v8421_v30, %v8420_v4  ;;  %v8367_v56 = vpop.f32.mrf.mxu1  ;;  %v8014_v41 = vld [vmem:[%s14078_s6 + $0xb50] sm:$0xff]  ;;  %v7709_v23 = vld [vmem:[%s11021_s15 + $0x7fe] sm:$0xff] }
 0x2e4   : > { %9503 = vmatmul.mubr.f32.gmra.mxu0 %v7706_v10  ;;  %8930 = vmatprep.subr.mxu0 %v7995_v11  ;;  %v12577_v36 = vadd.f32 %v8366_v32, %v12401_v0  ;;  %v8423_v42 = vpop.f32.mrf.mxu0  ;;  %v7993_v0 = vld [vmem:[%s14078_s6 + $0xaa8] sm:$0xff]  ;;  %v5002_v4 = vld [vmem:[%s11021_s15 + $0xba] sm:$0xff] }
 0x2e5   : > { %9002 = vmatprep.subr.mxu1 %v8031_v24  ;;  %8931 = vmatpush3.msra.mxu0 %v7979_v50  ;;  %v8368_v45 = vpop.f32.mrf.mxu1  ;;  %v12584_v12 = vadd.f32 %v8422_v25, %v12404_v55  ;;  %v7977_v55 = vld [vmem:[%s14078_s6 + $0xa28] sm:$0xff]  ;;  %v7991_v32 = vld [vmem:[%s14078_s6 + $0xa98] sm:$0xff] }
 0x2e6   : > { %9003 = vmatpush3.msra.mxu1 %v8015_v28  ;;  %8932 = vmatprep.subr.mxu0 %v7994_v27  ;;  %v8369_v26 = vadd.f32 %v8368_v45, %v8367_v56  ;;  %v8424_v59 = vpop.f32.mrf.mxu0  ;;  %v8029_v28 = vld [vmem:[%s14078_s6 + $0xbc8] sm:$0xff] }
 0x2e7   : > { %9505 = vmatprep.mubr.f32.mxu0 %v7707_v2  ;;  %5605 = vmatprep.mubr.f32.mxu1 %v5001_v21  ;;  %v8425_v16 = vadd.f32 %v8424_v59, %v8423_v42  ;;  %v9436_v51 = vpop.f32.mrf.mxu1  ;;  %v8013_v56 = vld [vmem:[%s14078_s6 + $0xb48] sm:$0xff]  ;;  %v7990_v2 = vld [vmem:[%s14078_s6 + $0xa90] sm:$0xff] }
 0x2e8   : > { %8933 = vmatpush3.msra.mxu0 %v7978_v39  ;;  %5606 = vmatmul.mubr.f32.gmra.mxu1 %v4969_v37  ;;  %v12603_v60 = vadd.f32 %v8369_v26, %v12418_v34  ;;  %v8426_v1 = vpop.f32.mrf.mxu0  ;;  %v12606_v19 = vadd.f32 %v9436_v51, %v12466_v13  ;;  %v7976_v34 = vld [vmem:[%s14078_s6 + $0xa20] sm:$0xff]  ;;  %v7973_v51 = vld [vmem:[%s14078_s6 + $0xa08] sm:$0xff] }
 0x2e9   : > { %9506 = vmatmul.mubr.f32.gmra.mxu0 %v7708_v9  ;;  %8934 = vmatprep.subr.mxu0 %v7993_v0  ;;  %v3457_v10 = vpop.f32.mrf.mxu1  ;;  %v12611_v11 = vadd.f32 %v8425_v16, %v12421_v33  ;;  %v7710_v13 = vld [vmem:[%s11021_s15 + $0x806] sm:$0xff]  ;;  %v7974_v9 = vld [vmem:[%s14078_s6 + $0xa10] sm:$0xff] }
 0x2ea   : > { %9004 = vmatprep.subr.mxu1 %v8030_v18  ;;  %8935 = vmatpush3.msra.mxu0 %v7977_v55  ;;  %v8427_v24 = vpop.f32.mrf.mxu0  ;;  %v12618_v50 = vadd.f32 %v3457_v10, %v12442_v52  ;;  %v7975_v52 = vld [vmem:[%s14078_s6 + $0xa18] sm:$0xff]  ;;  %v5003_v39 = vld [vmem:[%s11021_s15 + $0xc2] sm:$0xff]  ;;  %v4971_v0 = vld [vmem:[%s11021_s15 + $0xb0] sm:$0xff] }
 0x2eb   : > { %9005 = vmatpush3.msra.mxu1 %v8014_v41  ;;  %8936 = vmatprep.subr.mxu0 %v7992_v8  ;;  %v8428_v33 = vadd.f32 %v8427_v24, %v8426_v1  ;;  %v9439_v30 = vpop.f32.mrf.mxu1  ;;  %v7989_v18 = vld [vmem:[%s14078_s6 + $0xa88] sm:$0xff]  ;;  %v8028_v16 = vld [vmem:[%s14078_s6 + $0xbc0] sm:$0xff]  ;;  %v5004_v10 = vld [vmem:[%s11021_s15 + $0xf2] sm:$0xff] }
 0x2ec   : > { %9508 = vmatprep.mubr.f32.mxu0 %v7709_v23  ;;  %5610 = vmatprep.mubr.f32.mxu1 %v5002_v4  ;;  %v8429_v27 = vpop.f32.mrf.mxu0  ;;  %v12631_v25 = vadd.f32 %v9439_v30, %v12516_v62  ;;  %v7711_v62 = vld [vmem:[%s11021_s15 + $0x836] sm:$0xff]  ;;  %v7988_v1 = vld [vmem:[%s14078_s6 + $0xa80] sm:$0xff] }
 0x2ed   : > { %8937 = vmatpush3.msra.mxu0 %v7976_v34  ;;  %5611 = vmatmul.mubr.f32.gmra.mxu1 %v4970_v46  ;;  %v3467_v21 = vpop.f32.mrf.mxu1  ;;  %v12640_v42 = vadd.f32 %v8428_v33, %v12435_v47  ;;  %v7712_v47 = vld [vmem:[%s11021_s15 + $0x83e] sm:$0xff]  ;;  %v7860_v24 = vld [vmem:[%s11021_s15 + $0x3f0] sm:$0xff] }
 0x2ee   : > { %9509 = vmatmul.mubr.f32.gmra.mxu0 %v7710_v13  ;;  %8938 = vmatprep.subr.mxu0 %v7991_v32  ;;  %v8430_v37 = vpop.f32.mrf.mxu0  ;;  %v12645_v45 = vadd.f32 %v3467_v21, %v12490_v48  ;;  %v4972_v13 = vld [vmem:[%s11021_s15 + $0xe0] sm:$0xff]  ;;  %v8027_v30 = vld [vmem:[%s14078_s6 + $0xbb8] sm:$0xff] }
 0x2ef   : > { %9006 = vmatprep.subr.mxu1 %v8029_v28  ;;  %8939 = vmatpush3.msra.mxu0 %v7975_v52  ;;  %v8431_v26 = vadd.f32 %v8430_v37, %v8429_v27  ;;  %v9442_v59 = vpop.f32.mrf.mxu1  ;;  %v8011_v27 = vld [vmem:[%s14078_s6 + $0xb38] sm:$0xff] }
 0x2f0   : > { %9007 = vmatpush3.msra.mxu1 %v8013_v56  ;;  %8940 = vmatprep.subr.mxu0 %v7990_v2  ;;  %v8432_v55 = vpop.f32.mrf.mxu0  ;;  %v12656_v48 = vadd.f32 %v9442_v59, %v12560_v6  ;;  %v8012_v6 = vld [vmem:[%s14078_s6 + $0xb40] sm:$0xff]  ;;  %v7861_v21 = vld [vmem:[%s11021_s15 + $0x3f8] sm:$0xff] }
 0x2f1   : > { %9511 = vmatprep.mubr.f32.mxu0 %v7711_v62  ;;  %5615 = vmatprep.mubr.f32.mxu1 %v5003_v39  ;;  %v3477_v41 = vpop.f32.mrf.mxu1  ;;  %v3358_v8 = vadd.f32 %v8431_v26, %v12459_v15  ;;  %v7972_v15 = vld [vmem:[%s14078_s6 + $0xa00] sm:$0xff]  ;;  %v4973_v39 = vld [vmem:[%s11021_s15 + $0xe8] sm:$0xff]  ;;  %v8010_v26 = vld [vmem:[%s14078_s6 + $0xb30] sm:$0xff] }
 0x2f2   : > { %8941 = vmatpush3.msra.mxu0 %v7974_v9  ;;  %5616 = vmatmul.mubr.f32.gmra.mxu1 %v4971_v0  ;;  %v8433_v23 = vpop.f32.mrf.mxu0  ;;  %v12672_v4 = vadd.f32 %v3477_v41, %v12538_v44  ;;  %v5028_v44 = vld [vmem:[%s11021_s15 + $0x24] sm:$0xff]  ;;  %v5029_v0 = vld [vmem:[%s11021_s15 + $0x2c] sm:$0xff] }
 0x2f3   : > { %9512 = vmatmul.mubr.f32.gmra.mxu0 %v7712_v47  ;;  %8942 = vmatprep.subr.mxu0 %v7989_v18  ;;  %v8434_v34 = vadd.f32 %v8433_v23, %v8432_v55  ;;  %v9445_v46 = vpop.f32.mrf.mxu1  ;;  %v5006_v18 = vld [vmem:[%s11021_s15 + $0x12a] sm:$0xff] }
 0x2f4   : > { %9008 = vmatprep.subr.mxu1 %v8028_v16  ;;  %8943 = vmatpush3.msra.mxu0 %v7973_v51  ;;  %v8435_v32 = vpop.f32.mrf.mxu0  ;;  %v12681_v33 = vadd.f32 %v9445_v46, %v12611_v11  ;;  %v5005_v11 = vld [vmem:[%s11021_s15 + $0xfa] sm:$0xff]  ;;  %v7862_v55 = vld [vmem:[%s11021_s15 + $0x428] sm:$0xff]  ;;  %v8066_v23 = vld [vmem:[%s14078_s6 + $0xcf0] sm:$0xff] }
 0x2f5   : > { %9009 = vmatpush3.msra.mxu1 %v8012_v6  ;;  %8944 = vmatprep.subr.mxu0 %v7988_v1  ;;  %v3487_v28 = vpop.f32.mrf.mxu1  ;;  %v12688_v52 = vadd.f32 %v8434_v34, %v12485_v53  ;;  %v8026_v53 = vld [vmem:[%s14078_s6 + $0xbb0] sm:$0xff]  ;;  %v8025_v41 = vld [vmem:[%s14078_s6 + $0xba8] sm:$0xff]  ;;  %v4974_v1 = vld [vmem:[%s11021_s15 + $0x118] sm:$0xff] }
 0x2f6   : > { %5620 = vmatprep.mubr.f32.mxu1 %v5004_v10  ;;  %8945 = vmatpush3.msra.mxu0 %v7972_v15  ;;  %v8436_v56 = vpop.f32.mrf.mxu0  ;;  %v12695_v2 = vadd.f32 %v3487_v28, %v12584_v12  ;;  %v8067_v12 = vld [vmem:[%s14078_s6 + $0xcf8] sm:$0xff]  ;;  %v4975_v28 = vld [vmem:[%s11021_s15 + $0x120] sm:$0xff] }
 0x2f7   : > { %5725 = vmatprep.mubr.f32.mxu0 %v7860_v24  ;;  %5621 = vmatmul.mubr.f32.gmra.mxu1 %v4972_v13  ;;  %v8437_v62 = vadd.f32 %v8436_v56, %v8435_v32  ;;  %v5030_v10 = vld [vmem:[%s11021_s15 + $0x5c] sm:$0xff]  ;;  %v5007_v46 = vld [vmem:[%s11021_s15 + $0x132] sm:$0xff]  ;;  %v8065_v56 = vld [vmem:[%s14078_s6 + $0xce8] sm:$0xff] }
 0x2f8   : > { %5726 = vmatmul.mubr.f32.vlgmr.msra.gmra.mxu0 %v5028_v44  ;;  %9010 = vmatprep.subr.mxu1 %v8027_v30  ;;  %v8438_v37 = vpop.f32.mrf.mxu0  ;;  %v9448_v9 = vpop.f32.mrf.mxu1  ;;  %v7863_v24 = vld [vmem:[%s11021_s15 + $0x430] sm:$0xff]  ;;  %v8024_v32 = vld [vmem:[%s14078_s6 + $0xba0] sm:$0xff] }
 0x2f9   : > { %9011 = vmatpush3.msra.mxu1 %v8011_v27  ;;  %5625 = vmatprep.mubr.f32.mxu1 %v5005_v11  ;;  %v12709_v59 = vadd.f32 %v9448_v9, %v3358_v8  ;;  %v3368_v47 = vadd.f32 %v8437_v62, %v12507_v3  ;;  %v8051_v3 = vld [vmem:[%s14078_s6 + $0xc78] sm:$0xff] }
 0x2fa   : > { %5730 = vmatprep.mubr.f32.mxu0 %v7861_v21  ;;  %9012 = vmatprep.subr.mxu1 %v8026_v53  ;;  %v8439_v16 = vpop.f32.mrf.mxu0  ;;  %v3497_v51 = vpop.f32.mrf.mxu1  ;;  %v5031_v21 = vld [vmem:[%s11021_s15 + $0x64] sm:$0xff] }
 0x2fb   : > { %5626 = vmatmul.mubr.f32.gmra.mxu1 %v4973_v39  ;;  %v8440_v6 = vadd.f32 %v8439_v16, %v8438_v37  ;;  %v12718_v8 = vadd.f32 %v3497_v51, %v12640_v42  ;;  %9074 = vmatprep.subr.mxu0 %v8067_v12  ;;  %v8009_v42 = vld [vmem:[%s14078_s6 + $0xb28] sm:$0xff]  ;;  %v8008_v53 = vld [vmem:[%s14078_s6 + $0xb20] sm:$0xff]  ;;  %v8023_v12 = vld [vmem:[%s14078_s6 + $0xb98] sm:$0xff] }
 0x2fc   : > { %5731 = vmatmul.mubr.f32.gmra.mxu0 %v5029_v0  ;;  %9013 = vmatpush3.msra.mxu1 %v8010_v26  ;;  %v5008_v39 = vld [vmem:[%s11021_s15 + $0x162] sm:$0xff]  ;;  %v4976_v26 = vld [vmem:[%s11021_s15 + $0x150] sm:$0xff] }
 0x2fd   : > { %5630 = vmatprep.mubr.f32.mxu1 %v5006_v18  ;;  %5735 = vmatprep.mubr.f32.mxu0 %v7862_v55  ;;  %v8441_v15 = vpop.f32.mrf.mxu0  ;;  %v3373_v34 = vadd.f32 %v8440_v6, %v12529_v54  ;;  %v8050_v54 = vld [vmem:[%s14078_s6 + $0xc70] sm:$0xff]  ;;  %v7864_v37 = vld [vmem:[%s11021_s15 + $0x460] sm:$0xff]  ;;  %v8007_v55 = vld [vmem:[%s14078_s6 + $0xb18] sm:$0xff] }
 0x2fe   : > { %9014 = vmatprep.subr.mxu1 %v8025_v41  ;;  %v9451_v13 = vpop.f32.mrf.mxu1  ;;  %9075 = vmatpush3.msra.mxu0 %v8051_v3  ;;  %v5032_v18 = vld [vmem:[%s11021_s15 + $0x94] sm:$0xff]  ;;  %v5009_v41 = vld [vmem:[%s11021_s15 + $0x16a] sm:$0xff] }
 0x2ff   : > { %5631 = vmatmul.mubr.f32.gmra.mxu1 %v4974_v1  ;;  %v12737_v44 = vadd.f32 %v9451_v13, %v3368_v47  ;;  %v8442_v30 = vpop.f32.mrf.mxu0  ;;  %9076 = vmatprep.subr.mxu0 %v8066_v23  ;;  %v7865_v6 = vld [vmem:[%s11021_s15 + $0x468] sm:$0xff]  ;;  %v8022_v23 = vld [vmem:[%s14078_s6 + $0xb90] sm:$0xff]  ;;  %v5033_v13 = vld [vmem:[%s11021_s15 + $0x9c] sm:$0xff] }
 0x300   : > { %5736 = vmatmul.mubr.f32.gmra.mxu0 %v5030_v10  ;;  %9015 = vmatpush3.msra.mxu1 %v8009_v42  ;;  %v8443_v27 = vadd.f32 %v8442_v30, %v8441_v15  ;;  %v3507_v11 = vpop.f32.mrf.mxu1  ;;  %v8048_v42 = vld [vmem:[%s14078_s6 + $0xc60] sm:$0xff]  ;;  %v4977_v15 = vld [vmem:[%s11021_s15 + $0x158] sm:$0xff] }
 0x301   : > { %5635 = vmatprep.mubr.f32.mxu1 %v5007_v46  ;;  %5740 = vmatprep.mubr.f32.mxu0 %v7863_v24  ;;  %v12751_v62 = vadd.f32 %v3507_v11, %v12688_v52  ;;  %v8049_v52 = vld [vmem:[%s14078_s6 + $0xc68] sm:$0xff]  ;;  %v8063_v24 = vld [vmem:[%s14078_s6 + $0xcd8] sm:$0xff] }
 0x302   : > { %9016 = vmatprep.subr.mxu1 %v8024_v32  ;;  %v3378_v9 = vadd.f32 %v8443_v27, %v12553_v17  ;;  %9077 = vmatpush3.msra.mxu0 %v8050_v54  ;;  %v8064_v17 = vld [vmem:[%s14078_s6 + $0xce0] sm:$0xff]  ;;  %v7866_v54 = vld [vmem:[%s11021_s15 + $0x498] sm:$0xff] }
 0x303   : > { %5636 = vmatmul.mubr.f32.gmra.mxu1 %v4975_v28  ;;  %v8444_v0 = vpop.f32.mrf.mxu0  ;;  %9078 = vmatprep.subr.mxu0 %v8065_v56  ;;  %v5010_v30 = vld [vmem:[%s11021_s15 + $0x19a] sm:$0xff]  ;;  %v4978_v56 = vld [vmem:[%s11021_s15 + $0x188] sm:$0xff] }
 0x304   : > { %5741 = vmatmul.mubr.f32.gmra.mxu0 %v5031_v21  ;;  %9017 = vmatpush3.msra.mxu1 %v8008_v53  ;;  %v9454_v47 = vpop.f32.mrf.mxu1  ;;  %v8047_v11 = vld [vmem:[%s14078_s6 + $0xc58] sm:$0xff] }
 0x305   : > { %5640 = vmatprep.mubr.f32.mxu1 %v5008_v39  ;;  %5745 = vmatprep.mubr.f32.mxu0 %v7864_v37  ;;  %v12770_v16 = vadd.f32 %v9454_v47, %v3378_v9  ;;  %v8445_v51 = vpop.f32.mrf.mxu0  ;;  %v8062_v39 = vld [vmem:[%s14078_s6 + $0xcd0] sm:$0xff]  ;;  %v8005_v9 = vld [vmem:[%s14078_s6 + $0xb08] sm:$0xff]  ;;  %v8020_v47 = vld [vmem:[%s14078_s6 + $0xb80] sm:$0xff] }
 0x306   : > { %9018 = vmatprep.subr.mxu1 %v8023_v12  ;;  %v8446_v3 = vadd.f32 %v8445_v51, %v8444_v0  ;;  %v3517_v1 = vpop.f32.mrf.mxu1  ;;  %9079 = vmatpush3.msra.mxu0 %v8049_v52  ;;  %v5034_v37 = vld [vmem:[%s11021_s15 + $0xcc] sm:$0xff]  ;;  %v5011_v0 = vld [vmem:[%s11021_s15 + $0x1a2] sm:$0xff] }
 0x307   : > { %5641 = vmatmul.mubr.f32.gmra.mxu1 %v4976_v26  ;;  %v12777_v10 = vadd.f32 %v3517_v1, %v3373_v34  ;;  %9080 = vmatprep.subr.mxu0 %v8064_v17  ;;  %v8006_v34 = vld [vmem:[%s14078_s6 + $0xb10] sm:$0xff]  ;;  %v7867_v52 = vld [vmem:[%s11021_s15 + $0x4a0] sm:$0xff] }
 0x308   : > { %5746 = vmatmul.mubr.f32.gmra.mxu0 %v5032_v18  ;;  %9019 = vmatpush3.msra.mxu1 %v8007_v55  ;;  %v3383_v46 = vadd.f32 %v8446_v3, %v12577_v36  ;;  %v8021_v36 = vld [vmem:[%s14078_s6 + $0xb88] sm:$0xff]  ;;  %v8046_v18 = vld [vmem:[%s14078_s6 + $0xc50] sm:$0xff]  ;;  %v8004_v3 = vld [vmem:[%s14078_s6 + $0xb00] sm:$0xff] }
 0x309   : > { %5645 = vmatprep.mubr.f32.mxu1 %v5009_v41  ;;  %5750 = vmatprep.mubr.f32.mxu0 %v7865_v6  ;;  %v8447_v32 = vpop.f32.mrf.mxu0  ;;  %v4979_v55 = vld [vmem:[%s11021_s15 + $0x190] sm:$0xff]  ;;  %v8061_v41 = vld [vmem:[%s14078_s6 + $0xcc8] sm:$0xff]  ;;  %v12831_v1 = vld [vmem:[%s14079_s7 + $0x1] ss:$0 sm:$0xff] }
 0x30a   : > { %9020 = vmatprep.subr.mxu1 %v8022_v23  ;;  %v9457_v28 = vpop.f32.mrf.mxu1  ;;  %9081 = vmatpush3.msra.mxu0 %v8048_v42  ;;  %v5035_v6 = vld [vmem:[%s11021_s15 + $0xd4] sm:$0xff] }
 0x30b   : > { %5646 = vmatmul.mubr.f32.gmra.mxu1 %v4977_v15  ;;  %v8448_v27 = vpop.f32.mrf.mxu0  ;;  %9082 = vmatprep.subr.mxu0 %v8063_v24  ;;  %v7868_v42 = vld [vmem:[%s11021_s15 + $0x4d0] sm:$0xff] }
 0x30c   : > { %5751 = vmatmul.mubr.f32.gmra.mxu0 %v5033_v13  ;;  %9021 = vmatpush3.msra.mxu1 %v8006_v34  ;;  %v8449_v21 = vadd.f32 %v8448_v27, %v8447_v32  ;;  %v3527_v53 = vpop.f32.mrf.mxu1  ;;  %v7876_v15 = vld [vmem:[%s11021_s15 + $0x414] sm:$0xff]  ;;  %v5036_v27 = vld [vmem:[%s11021_s15 + $0x104] sm:$0xff] }
 0x30d   : > { %5650 = vmatprep.mubr.f32.mxu1 %v5010_v30  ;;  %5755 = vmatprep.mubr.f32.mxu0 %v7866_v54  ;;  %v12807_v12 = vadd.f32 %v3527_v53, %v3383_v46  ;;  %v8083_v13 = vld [vmem:[%s14078_s6 + $0xd78] sm:$0xff]  ;;  %v8045_v30 = vld [vmem:[%s14078_s6 + $0xc48] sm:$0xff] }
 0x30e   : > { %9022 = vmatprep.subr.mxu1 %v8021_v36  ;;  %v3388_v26 = vadd.f32 %v8449_v21, %v12603_v60  ;;  %9083 = vmatpush3.msra.mxu0 %v8047_v11  ;;  %v8060_v36 = vld [vmem:[%s14078_s6 + $0xcc0] sm:$0xff]  ;;  %v7869_v21 = vld [vmem:[%s11021_s15 + $0x4d8] sm:$0xff] }
 0x30f   : > { %14114 = vst [vmem:[#allocation24_spill] sm:$0xff] %v12807_v12  ;;  %5651 = vmatmul.mubr.f32.gmra.mxu1 %v4978_v56  ;;  %v8514_v17 = vpop.f32.mrf.mxu0  ;;  %9084 = vmatprep.subr.mxu0 %v8062_v39  ;;  %v7877_v53 = vld [vmem:[%s11021_s15 + $0x41c] sm:$0xff] }
 0x310   : > { %5756 = vmatmul.mubr.f32.gmra.mxu0 %v5034_v37  ;;  %9023 = vmatpush3.msra.mxu1 %v8005_v9  ;;  %v12819_v51 = vadd.f32 %v9457_v28, %v3388_v26  ;;  %v8594_v60 = vpop.f32.mrf.mxu1  ;;  %v9659_v9 = vld [vmem:[%s11021_s15 + $0x402] sm:$0xff] }
 0x311   : > { %5655 = vmatprep.mubr.f32.mxu1 %v5011_v0  ;;  %5760 = vmatprep.mubr.f32.mxu0 %v7867_v52  ;;  %v8515_v23 = vpop.f32.mrf.mxu0  ;;  %v8082_v0 = vld [vmem:[%s14078_s6 + $0xd70] sm:$0xff] }
 0x312   : > { %14115 = vst [vmem:[#allocation25_spill] sm:$0xff] %v12819_v51  ;;  %9024 = vmatprep.subr.mxu1 %v8020_v47  ;;  %v8516_v46 = vadd.f32 %v8515_v23, %v8514_v17  ;;  %v8595_v24 = vpop.f32.mrf.mxu1  ;;  %9085 = vmatpush3.msra.mxu0 %v8046_v18  ;;  %v8044_v47 = vld [vmem:[%s14078_s6 + $0xc40] sm:$0xff]  ;;  %v7878_v23 = vld [vmem:[%s11021_s15 + $0x44c] sm:$0xff] }
 0x313   : > { %5656 = vmatmul.mubr.f32.gmra.mxu1 %v4979_v55  ;;  %v8596_v34 = vadd.f32 %v8595_v24, %v8594_v60  ;;  %v8517_v32 = vpop.f32.mrf.mxu0  ;;  %9086 = vmatprep.subr.mxu0 %v8061_v41  ;;  %v8059_v55 = vld [vmem:[%s14078_s6 + $0xcb8] sm:$0xff]  ;;  %v5037_v60 = vld [vmem:[%s11021_s15 + $0x10c] sm:$0xff] }
 0x314   : > { %5761 = vmatmul.mubr.f32.gmra.mxu0 %v5035_v6  ;;  %9025 = vmatpush3.msra.mxu1 %v8004_v3  ;;  %v4231_v54 = vadd.f32 %v8516_v46, %v12831_v1  ;;  %v8597_v28 = vpop.f32.mrf.mxu1  ;;  %v7870_v3 = vld [vmem:[%s11021_s15 + $0x508] sm:$0xff] }
 0x315   : > { %5765 = vmatprep.mubr.f32.mxu0 %v7868_v42  ;;  %5870 = vmatprep.mubr.f32.mxu1 %v7876_v15  ;;  %v8518_v11 = vpop.f32.mrf.mxu0  ;;  %v9660_v46 = vld [vmem:[%s11021_s15 + $0x40a] sm:$0xff] }
 0x316   : > { %9514 = vmatprep.subr.mxu1 %v8083_v13  ;;  %v12846_v56 = vadd.f32 %v8596_v34, %v4231_v54  ;;  %v8519_v39 = vadd.f32 %v8518_v11, %v8517_v32  ;;  %v8598_v37 = vpop.f32.mrf.mxu1  ;;  %9087 = vmatpush3.msra.mxu0 %v8045_v30  ;;  %v8081_v24 = vld [vmem:[%s14078_s6 + $0xd68] sm:$0xff]  ;;  %v8043_v32 = vld [vmem:[%s14078_s6 + $0xc38] sm:$0xff] }
 0x317   : > { %5871 = vmatmul.mubr.f32.vlgmr.msra.gmra.mxu1 %v9659_v9  ;;  %v8599_v52 = vadd.f32 %v8598_v37, %v8597_v28  ;;  %v8520_v26 = vpop.f32.mrf.mxu0  ;;  %9088 = vmatprep.subr.mxu0 %v8060_v36  ;;  %v8058_v28 = vld [vmem:[%s14078_s6 + $0xcb0] sm:$0xff]  ;;  %v5038_v36 = vld [vmem:[%s11021_s15 + $0x13c] sm:$0xff] }
 0x318   : > { %5766 = vmatmul.mubr.f32.gmra.mxu0 %v5036_v27  ;;  %9515 = vmatpush3.msra.mxu1 %v8083_v13  ;;  %v4236_v17 = vadd.f32 %v8519_v39, %v12831_v1  ;;  %v8600_v18 = vpop.f32.mrf.mxu1  ;;  %v9661_v9 = vld [vmem:[%s11021_s15 + $0x43a] sm:$0xff] }
 0x319   : > { %5770 = vmatprep.mubr.f32.mxu0 %v7869_v21  ;;  %5875 = vmatprep.mubr.f32.mxu1 %v7877_v53  ;;  %v8521_v41 = vpop.f32.mrf.mxu0  ;;  %v7871_v21 = vld [vmem:[%s11021_s15 + $0x510] sm:$0xff] }
 0x31a   : > { %9516 = vmatprep.subr.mxu1 %v8082_v0  ;;  %v12862_v6 = vadd.f32 %v8599_v52, %v4236_v17  ;;  %v8522_v42 = vadd.f32 %v8521_v41, %v8520_v26  ;;  %v8601_v15 = vpop.f32.mrf.mxu1  ;;  %9089 = vmatpush3.msra.mxu0 %v8044_v47  ;;  %v7879_v53 = vld [vmem:[%s11021_s15 + $0x454] sm:$0xff] }
 0x31b   : > { %5876 = vmatmul.mubr.f32.gmra.mxu1 %v9660_v46  ;;  %v8602_v13 = vadd.f32 %v8601_v15, %v8600_v18  ;;  %v8523_v34 = vpop.f32.mrf.mxu0  ;;  %9090 = vmatprep.subr.mxu0 %v8059_v55  ;;  %v8042_v47 = vld [vmem:[%s14078_s6 + $0xc30] sm:$0xff]  ;;  %v8057_v55 = vld [vmem:[%s14078_s6 + $0xca8] sm:$0xff] }
 0x31c   : > { %5771 = vmatmul.mubr.f32.gmra.mxu0 %v5037_v60  ;;  %9517 = vmatpush3.msra.mxu1 %v8082_v0  ;;  %v4241_v30 = vadd.f32 %v8522_v42, %v12831_v1  ;;  %v8603_v54 = vpop.f32.mrf.mxu1  ;;  %v8080_v0 = vld [vmem:[%s14078_s6 + $0xd60] sm:$0xff] }
 0x31d   : > { %5775 = vmatprep.mubr.f32.mxu0 %v7870_v3  ;;  %5880 = vmatprep.mubr.f32.mxu1 %v7878_v23  ;;  %v8524_v27 = vpop.f32.mrf.mxu0  ;;  %v5039_v60 = vld [vmem:[%s11021_s15 + $0x144] sm:$0xff] }
 0x31e   : > { %9518 = vmatprep.subr.mxu1 %v8081_v24  ;;  %v12878_v11 = vadd.f32 %v8602_v13, %v4241_v30  ;;  %v8525_v39 = vadd.f32 %v8524_v27, %v8523_v34  ;;  %v8604_v37 = vpop.f32.mrf.mxu1  ;;  %9091 = vmatpush3.msra.mxu0 %v8043_v32  ;;  %v7872_v23 = vld [vmem:[%s11021_s15 + $0x540] sm:$0xff]  ;;  %v8079_v13 = vld [vmem:[%s14078_s6 + $0xd58] sm:$0xff]  ;;  %v8041_v30 = vld [vmem:[%s14078_s6 + $0xc28] sm:$0xff] }
 0x31f   : > { %5881 = vmatmul.mubr.f32.gmra.mxu1 %v9661_v9  ;;  %v8605_v52 = vadd.f32 %v8604_v37, %v8603_v54  ;;  %v8526_v26 = vpop.f32.mrf.mxu0  ;;  %9092 = vmatprep.subr.mxu0 %v8058_v28  ;;  %v7880_v42 = vld [vmem:[%s11021_s15 + $0x484] sm:$0xff]  ;;  %v5040_v27 = vld [vmem:[%s11021_s15 + $0x174] sm:$0xff]  ;;  %v7881_v37 = vld [vmem:[%s11021_s15 + $0x48c] sm:$0xff] }
 0x320   : > { %5776 = vmatmul.mubr.f32.gmra.mxu0 %v5038_v36  ;;  %9519 = vmatpush3.msra.mxu1 %v8081_v24  ;;  %v4246_v17 = vadd.f32 %v8525_v39, %v12831_v1  ;;  %v8606_v18 = vpop.f32.mrf.mxu1  ;;  %v9662_v24 = vld [vmem:[%s11021_s15 + $0x442] sm:$0xff] }
 0x321   : > { %5780 = vmatprep.mubr.f32.mxu0 %v7871_v21  ;;  %5885 = vmatprep.mubr.f32.mxu1 %v7879_v53  ;;  %v8527_v41 = vpop.f32.mrf.mxu0  ;;  %v8056_v36 = vld [vmem:[%s14078_s6 + $0xca0] sm:$0xff]  ;;  %v7873_v39 = vld [vmem:[%s11021_s15 + $0x548] sm:$0xff] }
 0x322   : > { %9520 = vmatprep.subr.mxu1 %v8080_v0  ;;  %v12894_v3 = vadd.f32 %v8605_v52, %v4246_v17  ;;  %v8528_v15 = vadd.f32 %v8527_v41, %v8526_v26  ;;  %v8607_v46 = vpop.f32.mrf.mxu1  ;;  %9093 = vmatpush3.msra.mxu0 %v8042_v47  ;;  %v9663_v52 = vld [vmem:[%s11021_s15 + $0x472] sm:$0xff]  ;;  %v8040_v17 = vld [vmem:[%s14078_s6 + $0xc20] sm:$0xff] }
 0x323   : > { %5886 = vmatmul.mubr.f32.gmra.mxu1 %v9662_v24  ;;  %v8608_v34 = vadd.f32 %v8607_v46, %v8606_v18  ;;  %v8529_v32 = vpop.f32.mrf.mxu0  ;;  %9094 = vmatprep.subr.mxu0 %v8057_v55  ;;  %v8078_v26 = vld [vmem:[%s14078_s6 + $0xd50] sm:$0xff]  ;;  %v8055_v41 = vld [vmem:[%s14078_s6 + $0xc98] sm:$0xff] }
 0x324   : > { %5781 = vmatmul.mubr.f32.gmra.mxu0 %v5039_v60  ;;  %9521 = vmatpush3.msra.mxu1 %v8080_v0  ;;  %v4251_v54 = vadd.f32 %v8528_v15, %v12831_v1  ;;  %v8609_v28 = vpop.f32.mrf.mxu1  ;;  %v7874_v46 = vld [vmem:[%s11021_s15 + $0x578] sm:$0xff] }
 0x325   : > { %5785 = vmatprep.mubr.f32.mxu0 %v7872_v23  ;;  %5890 = vmatprep.mubr.f32.mxu1 %v7880_v42  ;;  %v8530_v21 = vpop.f32.mrf.mxu0  ;;  %v5041_v23 = vld [vmem:[%s11021_s15 + $0x17c] sm:$0xff] }
 0x326   : > { %9522 = vmatprep.subr.mxu1 %v8079_v13  ;;  %v12910_v53 = vadd.f32 %v8608_v34, %v4251_v54  ;;  %9095 = vmatpush3.msra.mxu0 %v8041_v30  ;;  %v8531_v9 = vadd.f32 %v8530_v21, %v8529_v32  ;;  %v8610_v0 = vpop.f32.mrf.mxu1  ;;  %v7882_v24 = vld [vmem:[%s11021_s15 + $0x4bc] sm:$0xff]  ;;  %v8077_v30 = vld [vmem:[%s14078_s6 + $0xd48] sm:$0xff]  ;;  %v8054_v21 = vld [vmem:[%s14078_s6 + $0xc90] sm:$0xff] }
 0x327   : > { %5891 = vmatmul.mubr.f32.gmra.mxu1 %v9663_v52  ;;  %v8611_v47 = vadd.f32 %v8610_v0, %v8609_v28  ;;  %9096 = vmatprep.subr.mxu0 %v8056_v36  ;;  %v8532_v18 = vpop.f32.mrf.mxu0  ;;  %v9664_v32 = vld [vmem:[%s11021_s15 + $0x47a] sm:$0xff] }
 0x328   : > { %5786 = vmatmul.mubr.f32.gmra.mxu0 %v5040_v27  ;;  %9523 = vmatpush3.msra.mxu1 %v8079_v13  ;;  %v4256_v55 = vadd.f32 %v8531_v9, %v12831_v1  ;;  %v8612_v60 = vpop.f32.mrf.mxu1  ;;  %v8039_v54 = vld [vmem:[%s14078_s6 + $0xc18] sm:$0xff]  ;;  %v7875_v52 = vld [vmem:[%s11021_s15 + $0x580] sm:$0xff] }
 0x329   : > { %5790 = vmatprep.mubr.f32.mxu0 %v7873_v39  ;;  %5895 = vmatprep.mubr.f32.mxu1 %v7881_v37  ;;  %v8533_v42 = vpop.f32.mrf.mxu0  ;;  %v5042_v37 = vld [vmem:[%s11021_s15 + $0x1ac] sm:$0xff] }
 0x32a   : > { %9524 = vmatprep.subr.mxu1 %v8078_v26  ;;  %v12926_v15 = vadd.f32 %v8611_v47, %v4256_v55  ;;  %9097 = vmatpush3.msra.mxu0 %v8040_v17  ;;  %v8534_v34 = vadd.f32 %v8533_v42, %v8532_v18  ;;  %v8613_v13 = vpop.f32.mrf.mxu1  ;;  %v7883_v47 = vld [vmem:[%s11021_s15 + $0x4c4] sm:$0xff]  ;;  %v8038_v55 = vld [vmem:[%s14078_s6 + $0xc10] sm:$0xff] }
 0x32b   : > { %5896 = vmatmul.mubr.f32.gmra.mxu1 %v9664_v32  ;;  %9098 = vmatprep.subr.mxu0 %v8055_v41  ;;  %v8614_v28 = vadd.f32 %v8613_v13, %v8612_v60  ;;  %v8535_v36 = vpop.f32.mrf.mxu0  ;;  %v9665_v18 = vld [vmem:[%s11021_s15 + $0x4aa] sm:$0xff]  ;;  %v8076_v60 = vld [vmem:[%s14078_s6 + $0xd40] sm:$0xff] }
 0x32c   : > { %5791 = vmatmul.mubr.f32.gmra.mxu0 %v5041_v23  ;;  %9525 = vmatpush3.msra.mxu1 %v8078_v26  ;;  %v4261_v27 = vadd.f32 %v8534_v34, %v12831_v1  ;;  %v8615_v39 = vpop.f32.mrf.mxu1  ;;  %v8053_v42 = vld [vmem:[%s14078_s6 + $0xc88] sm:$0xff]  ;;  %v5043_v34 = vld [vmem:[%s11021_s15 + $0x1b4] sm:$0xff] }
 0x32d   : > { %5795 = vmatprep.mubr.f32.mxu0 %v7874_v46  ;;  %5900 = vmatprep.mubr.f32.mxu1 %v7882_v24  ;;  %v8536_v9 = vpop.f32.mrf.mxu0  ;;  %v8037_v32 = vld [vmem:[%s14078_s6 + $0xc08] sm:$0xff] }
 0x32e   : > { %9526 = vmatprep.subr.mxu1 %v8077_v30  ;;  %9099 = vmatpush3.msra.mxu0 %v8039_v54  ;;  %v12942_v0 = vadd.f32 %v8614_v28, %v4261_v27  ;;  %v8537_v17 = vadd.f32 %v8536_v9, %v8535_v36  ;;  %v8616_v26 = vpop.f32.mrf.mxu1  ;;  %v9666_v27 = vld [vmem:[%s11021_s15 + $0x4b2] sm:$0xff] }
 0x32f   : > { %5901 = vmatmul.mubr.f32.gmra.mxu1 %v9665_v18  ;;  %9100 = vmatprep.subr.mxu0 %v8054_v21  ;;  %v8617_v41 = vadd.f32 %v8616_v26, %v8615_v39  ;;  %v8538_v23 = vpop.f32.mrf.mxu0  ;;  %v8052_v21 = vld [vmem:[%s14078_s6 + $0xc80] sm:$0xff]  ;;  %v7908_v39 = vld [vmem:[%s11021_s15 + $0x7f2] sm:$0xff] }
 0x330   : > { %5796 = vmatmul.mubr.f32.gmra.mxu0 %v5042_v37  ;;  %9527 = vmatpush3.msra.mxu1 %v8077_v30  ;;  %v4266_v46 = vadd.f32 %v8537_v17, %v12831_v1  ;;  %v8618_v24 = vpop.f32.mrf.mxu1  ;;  %v7884_v30 = vld [vmem:[%s11021_s15 + $0x4f4] sm:$0xff]  ;;  %v7892_v26 = vld [vmem:[%s11021_s15 + $0x7e0] sm:$0xff] }
 0x331   : > { %5800 = vmatprep.mubr.f32.mxu0 %v7875_v52  ;;  %5905 = vmatprep.mubr.f32.mxu1 %v7883_v47  ;;  %v8539_v13 = vpop.f32.mrf.mxu0  ;;  %v8036_v52 = vld [vmem:[%s14078_s6 + $0xc00] sm:$0xff]  ;;  %v8075_v18 = vld [vmem:[%s14078_s6 + $0xd38] sm:$0xff] }
 0x332   : > { %9101 = vmatpush3.msra.mxu0 %v8038_v55  ;;  %9528 = vmatprep.subr.mxu1 %v8076_v60  ;;  %v12961_v54 = vadd.f32 %v8617_v41, %v4266_v46  ;;  %v8540_v28 = vadd.f32 %v8539_v13, %v8538_v23  ;;  %v8619_v36 = vpop.f32.mrf.mxu1  ;;  %v7885_v41 = vld [vmem:[%s11021_s15 + $0x4fc] sm:$0xff] }
 0x333   : > { %5906 = vmatmul.mubr.f32.gmra.mxu1 %v9666_v27  ;;  %9102 = vmatprep.subr.mxu0 %v8053_v42  ;;  %v8620_v37 = vadd.f32 %v8619_v36, %v8618_v24  ;;  %v8541_v9 = vpop.f32.mrf.mxu0  ;;  %v9667_v46 = vld [vmem:[%s11021_s15 + $0x4e2] sm:$0xff]  ;;  %v7909_v24 = vld [vmem:[%s11021_s15 + $0x7fa] sm:$0xff] }
 0x334   : > { %5801 = vmatmul.mubr.f32.gmra.mxu0 %v5043_v34  ;;  %9529 = vmatpush3.msra.mxu1 %v8076_v60  ;;  %v4271_v47 = vadd.f32 %v8540_v28, %v12831_v1  ;;  %v8621_v17 = vpop.f32.mrf.mxu1  ;;  %v8074_v34 = vld [vmem:[%s14078_s6 + $0xd30] sm:$0xff]  ;;  %v6410_v36 = vld [vmem:[%s14082_s10 + $0xf8] sm:$0xff]  ;;  %v7893_v27 = vld [vmem:[%s11021_s15 + $0x7e8] sm:$0xff] }
 0x335   : > { %9103 = vmatpush3.msra.mxu0 %v8037_v32  ;;  %5910 = vmatprep.mubr.f32.mxu1 %v7884_v30  ;;  %v8542_v55 = vpop.f32.mrf.mxu0 }
 0x336   : > { %9104 = vmatprep.subr.mxu0 %v8052_v21  ;;  %6015 = vmatprep.mubr.f32.mxu0 %v7908_v39  ;;  %v12977_v60 = vadd.f32 %v8620_v37, %v4271_v47  ;;  %v8543_v23 = vadd.f32 %v8542_v55, %v8541_v9  ;;  %v8622_v42 = vpop.f32.mrf.mxu1  ;;  %v7886_v37 = vld [vmem:[%s11021_s15 + $0x52c] sm:$0xff] }
 0x337   : > { %9105 = vmatpush3.msra.mxu0 %v8036_v52  ;;  %5911 = vmatmul.mubr.f32.gmra.mxu1 %v9667_v46  ;;  %v8623_v13 = vadd.f32 %v8622_v42, %v8621_v17  ;;  %v8544_v32 = vpop.f32.mrf.mxu0  ;;  %v7910_v9 = vld [vmem:[%s11021_s15 + $0x82a] sm:$0xff] }
 0x338   : > { %6016 = vmatmul.mubr.f32.vlgmr.msra.gmra.mxu0 %v7892_v26  ;;  %9530 = vmatprep.subr.mxu1 %v8075_v18  ;;  %v4276_v30 = vadd.f32 %v8543_v23, %v12831_v1  ;;  %v8624_v28 = vpop.f32.mrf.mxu1  ;;  %v9668_v17 = vld [vmem:[%s11021_s15 + $0x4ea] sm:$0xff] }
 0x339   : > { %9531 = vmatpush3.msra.mxu1 %v8075_v18  ;;  %5915 = vmatprep.mubr.f32.mxu1 %v7885_v41  ;;  %v8545_v21 = vpop.f32.mrf.mxu0  ;;  %v8073_v26 = vld [vmem:[%s14078_s6 + $0xd28] sm:$0xff]  ;;  %v6394_v41 = vld [vmem:[%s14082_s10 + $0x78] sm:$0xff]  ;;  %v6409_v46 = vld [vmem:[%s14082_s10 + $0xf0] sm:$0xff] }
 0x33a   : > { %6020 = vmatprep.mubr.f32.mxu0 %v7909_v24  ;;  %9532 = vmatprep.subr.mxu1 %v8074_v34  ;;  %v12990_v39 = vadd.f32 %v8623_v13, %v4276_v30  ;;  %v8546_v52 = vadd.f32 %v8545_v21, %v8544_v32  ;;  %v8625_v47 = vpop.f32.mrf.mxu1  ;;  %v7894_v24 = vld [vmem:[%s11021_s15 + $0x818] sm:$0xff]  ;;  %v8072_v21 = vld [vmem:[%s14078_s6 + $0xd20] sm:$0xff] }
 0x33b   : > { %5916 = vmatmul.mubr.f32.gmra.mxu1 %v9668_v17  ;;  %v8626_v18 = vadd.f32 %v8625_v47, %v8624_v28  ;;  %v8547_v55 = vpop.f32.mrf.mxu0  ;;  %9186 = vmatprep.subr.mxu0 %v6410_v36  ;;  %v7887_v30 = vld [vmem:[%s11021_s15 + $0x534] sm:$0xff] }
 0x33c   : > { %6021 = vmatmul.mubr.f32.gmra.mxu0 %v7893_v27  ;;  %9533 = vmatpush3.msra.mxu1 %v8074_v34  ;;  %v4281_v23 = vadd.f32 %v8546_v52, %v12831_v1  ;;  %v8627_v42 = vpop.f32.mrf.mxu1  ;;  %v7911_v28 = vld [vmem:[%s11021_s15 + $0x832] sm:$0xff]  ;;  %v9669_v34 = vld [vmem:[%s11021_s15 + $0x51a] sm:$0xff] }
 0x33d   : > { %5920 = vmatprep.mubr.f32.mxu1 %v7886_v37  ;;  %6025 = vmatprep.mubr.f32.mxu0 %v7910_v9  ;;  %v8548_v13 = vpop.f32.mrf.mxu0  ;;  %v6393_v52 = vld [vmem:[%s14082_s10 + $0x70] sm:$0xff] }
 0x33e   : > { %9534 = vmatprep.subr.mxu1 %v8073_v26  ;;  %v13006_v32 = vadd.f32 %v8626_v18, %v4281_v23  ;;  %v8549_v36 = vadd.f32 %v8548_v13, %v8547_v55  ;;  %v8628_v27 = vpop.f32.mrf.mxu1  ;;  %9187 = vmatpush3.msra.mxu0 %v6394_v41  ;;  %v6408_v18 = vld [vmem:[%s14082_s10 + $0xe8] sm:$0xff]  ;;  %v7895_v55 = vld [vmem:[%s11021_s15 + $0x820] sm:$0xff] }
 0x33f   : > { %5921 = vmatmul.mubr.f32.gmra.mxu1 %v9669_v34  ;;  %v8629_v37 = vadd.f32 %v8628_v27, %v8627_v42  ;;  %v8550_v9 = vpop.f32.mrf.mxu0  ;;  %9188 = vmatprep.subr.mxu0 %v6409_v46  ;;  %v7888_v42 = vld [vmem:[%s11021_s15 + $0x564] sm:$0xff] }
 0x340   : > { %6026 = vmatmul.mubr.f32.gmra.mxu0 %v7894_v24  ;;  %9535 = vmatpush3.msra.mxu1 %v8073_v26  ;;  %v4286_v47 = vadd.f32 %v8549_v36, %v12831_v1  ;;  %v8630_v17 = vpop.f32.mrf.mxu1  ;;  %v7912_v46 = vld [vmem:[%s11021_s15 + $0x862] sm:$0xff]  ;;  %v8071_v36 = vld [vmem:[%s14078_s6 + $0xd18] sm:$0xff] }
 0x341   : > { %5925 = vmatprep.mubr.f32.mxu1 %v7887_v30  ;;  %6030 = vmatprep.mubr.f32.mxu0 %v7911_v28  ;;  %v8551_v41 = vpop.f32.mrf.mxu0  ;;  %v9670_v26 = vld [vmem:[%s11021_s15 + $0x522] sm:$0xff] }
 0x342   : > { %9536 = vmatprep.subr.mxu1 %v8072_v21  ;;  %v13022_v23 = vadd.f32 %v8629_v37, %v4286_v47  ;;  %v8552_v13 = vadd.f32 %v8551_v41, %v8550_v9  ;;  %v8631_v24 = vpop.f32.mrf.mxu1  ;;  %9189 = vmatpush3.msra.mxu0 %v6393_v52  ;;  %v6392_v27 = vld [vmem:[%s14082_s10 + $0x68] sm:$0xff]  ;;  %v6407_v9 = vld [vmem:[%s14082_s10 + $0xe0] sm:$0xff]  ;;  %v7896_v52 = vld [vmem:[%s11021_s15 + $0x850] sm:$0xff] }
 0x343   : > { %5926 = vmatmul.mubr.f32.gmra.mxu1 %v9670_v26  ;;  %v8632_v30 = vadd.f32 %v8631_v24, %v8630_v17  ;;  %v8553_v28 = vpop.f32.mrf.mxu0  ;;  %9190 = vmatprep.subr.mxu0 %v6408_v18  ;;  %v7889_v18 = vld [vmem:[%s11021_s15 + $0x56c] sm:$0xff]  ;;  %v6391_v26 = vld [vmem:[%s14082_s10 + $0x60] sm:$0xff] }
 0x344   : > { %6031 = vmatmul.mubr.f32.gmra.mxu0 %v7895_v55  ;;  %9537 = vmatpush3.msra.mxu1 %v8072_v21  ;;  %v4291_v34 = vadd.f32 %v8552_v13, %v12831_v1  ;;  %v8633_v37 = vpop.f32.mrf.mxu1  ;;  %v7913_v41 = vld [vmem:[%s11021_s15 + $0x86a] sm:$0xff]  ;;  %v9671_v21 = vld [vmem:[%s11021_s15 + $0x552] sm:$0xff] }
 0x345   : > { %5930 = vmatprep.mubr.f32.mxu1 %v7888_v42  ;;  %6035 = vmatprep.mubr.f32.mxu0 %v7912_v46  ;;  %v8554_v47 = vpop.f32.mrf.mxu0  ;;  %v8070_v13 = vld [vmem:[%s14078_s6 + $0xd10] sm:$0xff] }
 0x346   : > { %9538 = vmatprep.subr.mxu1 %v8071_v36  ;;  %v13038_v17 = vadd.f32 %v8632_v30, %v4291_v34  ;;  %v8555_v24 = vadd.f32 %v8554_v47, %v8553_v28  ;;  %v8634_v55 = vpop.f32.mrf.mxu1  ;;  %9191 = vmatpush3.msra.mxu0 %v6392_v27  ;;  %v6406_v27 = vld [vmem:[%s14082_s10 + $0xd8] sm:$0xff] }
 0x347   : > { %5931 = vmatmul.mubr.f32.gmra.mxu1 %v9671_v21  ;;  %v8635_v42 = vadd.f32 %v8634_v55, %v8633_v37  ;;  %v8556_v46 = vpop.f32.mrf.mxu0  ;;  %9192 = vmatprep.subr.mxu0 %v6407_v9  ;;  %v7897_v34 = vld [vmem:[%s11021_s15 + $0x858] sm:$0xff] }
 0x348   : > { %6036 = vmatmul.mubr.f32.gmra.mxu0 %v7896_v52  ;;  %9539 = vmatpush3.msra.mxu1 %v8071_v36  ;;  %v4296_v30 = vadd.f32 %v8555_v24, %v12831_v1  ;;  %v8636_v28 = vpop.f32.mrf.mxu1  ;;  %v7890_v47 = vld [vmem:[%s11021_s15 + $0x59c] sm:$0xff]  ;;  %v8069_v24 = vld [vmem:[%s14078_s6 + $0xd08] sm:$0xff] }
 0x349   : > { %5935 = vmatprep.mubr.f32.mxu1 %v7889_v18  ;;  %6040 = vmatprep.mubr.f32.mxu0 %v7913_v41  ;;  %v8557_v37 = vpop.f32.mrf.mxu0  ;;  %v7914_v55 = vld [vmem:[%s11021_s15 + $0x89a] sm:$0xff] }
 0x34a   : > { %9540 = vmatprep.subr.mxu1 %v8070_v13  ;;  %v13054_v9 = vadd.f32 %v8635_v42, %v4296_v30  ;;  %v8558_v21 = vadd.f32 %v8557_v37, %v8556_v46  ;;  %v8637_v52 = vpop.f32.mrf.mxu1  ;;  %9193 = vmatpush3.msra.mxu0 %v6391_v26  ;;  %v9672_v36 = vld [vmem:[%s11021_s15 + $0x55a] sm:$0xff]  ;;  %v6405_v30 = vld [vmem:[%s14082_s10 + $0xd0] sm:$0xff] }
 0x34b   : > { %5936 = vmatmul.mubr.f32.gmra.mxu1 %v9672_v36  ;;  %v8638_v18 = vadd.f32 %v8637_v52, %v8636_v28  ;;  %v8559_v41 = vpop.f32.mrf.mxu0  ;;  %9194 = vmatprep.subr.mxu0 %v6406_v27  ;;  %v6390_v42 = vld [vmem:[%s14082_s10 + $0x58] sm:$0xff]  ;;  %v7898_v28 = vld [vmem:[%s11021_s15 + $0x888] sm:$0xff] }
 0x34c   : > { %6041 = vmatmul.mubr.f32.gmra.mxu0 %v7897_v34  ;;  %9541 = vmatpush3.msra.mxu1 %v8070_v13  ;;  %v4301_v46 = vadd.f32 %v8558_v21, %v12831_v1  ;;  %v8639_v26 = vpop.f32.mrf.mxu1  ;;  %v7891_v52 = vld [vmem:[%s11021_s15 + $0x5a4] sm:$0xff] }
 0x34d   : > { %5940 = vmatprep.mubr.f32.mxu1 %v7890_v47  ;;  %6045 = vmatprep.mubr.f32.mxu0 %v7914_v55  ;;  %v8560_v37 = vpop.f32.mrf.mxu0  ;;  %v7915_v36 = vld [vmem:[%s11021_s15 + $0x8a2] sm:$0xff]  ;;  %v9673_v13 = vld [vmem:[%s11021_s15 + $0x58a] sm:$0xff] }
 0x34e   : > { %9542 = vmatprep.subr.mxu1 %v8069_v24  ;;  %v13070_v27 = vadd.f32 %v8638_v18, %v4301_v46  ;;  %v8561_v51 = vadd.f32 %v8560_v37, %v8559_v41  ;;  %v8640_v34 = vpop.f32.mrf.mxu1  ;;  %9195 = vmatpush3.msra.mxu0 %v6390_v42  ;;  %v8068_v21 = vld [vmem:[%s14078_s6 + $0xd00] sm:$0xff]  ;;  %v6389_v18 = vld [vmem:[%s14082_s10 + $0x50] sm:$0xff]  ;;  %v6404_v46 = vld [vmem:[%s14082_s10 + $0xc8] sm:$0xff] }
 0x34f   : > { %5941 = vmatmul.mubr.f32.gmra.mxu1 %v9673_v13  ;;  %v8641_v47 = vadd.f32 %v8640_v34, %v8639_v26  ;;  %v8674_v55 = vpop.f32.mrf.mxu0  ;;  %9196 = vmatprep.subr.mxu0 %v6405_v30  ;;  %v7899_v26 = vld [vmem:[%s11021_s15 + $0x890] sm:$0xff]  ;;  %v7924_v13 = vld [vmem:[%s11021_s15 + $0x804] sm:$0xff] }
 0x350   : > { %6046 = vmatmul.mubr.f32.gmra.mxu0 %v7898_v28  ;;  %9543 = vmatpush3.msra.mxu1 %v8069_v24  ;;  %v4306_v41 = vadd.f32 %v8561_v51, %v12831_v1  ;;  %v8754_v42 = vpop.f32.mrf.mxu1  ;;  %v7916_v34 = vld [vmem:[%s11021_s15 + $0x8d2] sm:$0xff]  ;;  %v6388_v24 = vld [vmem:[%s14082_s10 + $0x48] sm:$0xff] }
 0x351   : > { %5945 = vmatprep.mubr.f32.mxu1 %v7891_v52  ;;  %6050 = vmatprep.mubr.f32.mxu0 %v7915_v36  ;;  %v8675_v37 = vpop.f32.mrf.mxu0  ;;  %v9674_v51 = vld [vmem:[%s11021_s15 + $0x592] sm:$0xff] }
 0x352   : > { %9544 = vmatprep.subr.mxu1 %v8068_v21  ;;  %v13086_v30 = vadd.f32 %v8641_v47, %v4306_v41  ;;  %v8676_v28 = vadd.f32 %v8675_v37, %v8674_v55  ;;  %v8755_v5 = vpop.f32.mrf.mxu1  ;;  %9197 = vmatpush3.msra.mxu0 %v6389_v18  ;;  %v7925_v52 = vld [vmem:[%s11021_s15 + $0x80c] sm:$0xff]  ;;  %v6403_v18 = vld [vmem:[%s14082_s10 + $0xc0] sm:$0xff] }
 0x353   : > { %5946 = vmatmul.mubr.f32.gmra.mxu1 %v9674_v51  ;;  %v8677_v1 = vpop.f32.mrf.mxu0  ;;  %9198 = vmatprep.subr.mxu0 %v6404_v46  ;;  %v8756_v47 = vadd.f32 %v8755_v5, %v8754_v42  ;;  %v7900_v41 = vld [vmem:[%s11021_s15 + $0x8c0] sm:$0xff]  ;;  %v6402_v42 = vld [vmem:[%s14082_s10 + $0xb8] sm:$0xff] }
 0x354   : > { %6051 = vmatmul.mubr.f32.gmra.mxu0 %v7899_v26  ;;  %9545 = vmatpush3.msra.mxu1 %v8068_v21  ;;  %v4521_v36 = vadd.f32 %v8676_v28, %v12846_v56  ;;  %v8757_v55 = vpop.f32.mrf.mxu1  ;;  %v7926_v46 = vld [vmem:[%s11021_s15 + $0x83c] sm:$0xff]  ;;  %v7927_v26 = vld [vmem:[%s11021_s15 + $0x844] sm:$0xff] }
 0x355   : > { %6055 = vmatprep.mubr.f32.mxu0 %v7916_v34  ;;  %9546 = vmatprep.mubr.f32.mxu1 %v7924_v13  ;;  %v8678_v37 = vpop.f32.mrf.mxu0  ;;  %v7917_v51 = vld [vmem:[%s11021_s15 + $0x8da] sm:$0xff] }
 0x356   : > { %v8679_v12 = vadd.f32 %v8678_v37, %v8677_v1  ;;  %v8758_v31 = vpop.f32.mrf.mxu1  ;;  %9199 = vmatpush3.msra.mxu0 %v6388_v24  ;;  %v6387_v5 = vld [vmem:[%s14082_s10 + $0x40] sm:$0xff]  ;;  %v13105_v56 = vadd.f32 %v8756_v47, %v4521_v36  ;;  %v6386_v1 = vld [vmem:[%s14082_s10 + $0x38] sm:$0xff]  ;;  %v7901_v24 = vld [vmem:[%s11021_s15 + $0x8c8] sm:$0xff] }
 0x357   : > { %9547 = vmatmul.mubr.f32.vlgmr.msra.gmra.mxu1 %v7925_v52  ;;  %v8680_v21 = vpop.f32.mrf.mxu0  ;;  %9200 = vmatprep.subr.mxu0 %v6403_v18  ;;  %v8759_v13 = vadd.f32 %v8758_v31, %v8757_v55  ;;  %v7928_v52 = vld [vmem:[%s11021_s15 + $0x874] sm:$0xff]  ;;  %v7918_v47 = vld [vmem:[%s11021_s15 + $0x90a] sm:$0xff] }
 0x358   : > { %6056 = vmatmul.mubr.f32.gmra.mxu0 %v7900_v41  ;;  %9549 = vmatprep.mubr.f32.mxu1 %v7926_v46  ;;  %v4526_v34 = vadd.f32 %v8679_v12, %v12862_v6  ;;  %v8760_v28 = vpop.f32.mrf.mxu1  ;;  %v6401_v31 = vld [vmem:[%s14082_s10 + $0xb0] sm:$0xff]  ;;  %v7929_v41 = vld [vmem:[%s11021_s15 + $0x87c] sm:$0xff] }
 0x359   : > { %6060 = vmatprep.mubr.f32.mxu0 %v7917_v51  ;;  %v8681_v36 = vpop.f32.mrf.mxu0  ;;  %9201 = vmatpush3.msra.mxu0 %v6387_v5  ;;  %v6385_v55 = vld [vmem:[%s14082_s10 + $0x30] sm:$0xff] }
 0x35a   : > { %v8682_v18 = vadd.f32 %v8681_v36, %v8680_v21  ;;  %v8761_v37 = vpop.f32.mrf.mxu1  ;;  %9202 = vmatprep.subr.mxu0 %v6402_v42  ;;  %v13121_v12 = vadd.f32 %v8759_v13, %v4526_v34  ;;  %v6400_v21 = vld [vmem:[%s14082_s10 + $0xa8] sm:$0xff]  ;;  %v7902_v42 = vld [vmem:[%s11021_s15 + $0x8f8] sm:$0xff] }
 0x35b   : > { %9550 = vmatmul.mubr.f32.gmra.mxu1 %v7927_v26  ;;  %v8683_v6 = vpop.f32.mrf.mxu0  ;;  %9203 = vmatpush3.msra.mxu0 %v6386_v1  ;;  %v8762_v51 = vadd.f32 %v8761_v37, %v8760_v28  ;;  %v7930_v26 = vld [vmem:[%s11021_s15 + $0x8ac] sm:$0xff] }
 0x35c   : > { %6061 = vmatmul.mubr.f32.gmra.mxu0 %v7901_v24  ;;  %9552 = vmatprep.mubr.f32.mxu1 %v7928_v52  ;;  %v4531_v46 = vadd.f32 %v8682_v18, %v12878_v11  ;;  %v8763_v5 = vpop.f32.mrf.mxu1  ;;  %v7919_v13 = vld [vmem:[%s11021_s15 + $0x912] sm:$0xff]  ;;  %v6384_v11 = vld [vmem:[%s14082_s10 + $0x28] sm:$0xff]  ;;  %v6399_v52 = vld [vmem:[%s14082_s10 + $0xa0] sm:$0xff] }
 0x35d   : > { %6065 = vmatprep.mubr.f32.mxu0 %v7918_v47  ;;  %v8684_v34 = vpop.f32.mrf.mxu0  ;;  %9204 = vmatprep.subr.mxu0 %v6401_v31  ;;  %v7931_v47 = vld [vmem:[%s11021_s15 + $0x8b4] sm:$0xff] }
 0x35e   : > { %v8685_v1 = vadd.f32 %v8684_v34, %v8683_v6  ;;  %v8764_v36 = vpop.f32.mrf.mxu1  ;;  %9205 = vmatpush3.msra.mxu0 %v6385_v55  ;;  %v13137_v28 = vadd.f32 %v8762_v51, %v4531_v46  ;;  %v6383_v6 = vld [vmem:[%s14082_s10 + $0x20] sm:$0xff] }
 0x35f   : > { %9553 = vmatmul.mubr.f32.gmra.mxu1 %v7929_v41  ;;  %v8686_v24 = vpop.f32.mrf.mxu0  ;;  %9206 = vmatprep.subr.mxu0 %v6400_v21  ;;  %v8765_v37 = vadd.f32 %v8764_v36, %v8763_v5  ;;  %v7903_v55 = vld [vmem:[%s11021_s15 + $0x900] sm:$0xff] }
 0x360   : > { %6066 = vmatmul.mubr.f32.gmra.mxu0 %v7902_v42  ;;  %9555 = vmatprep.mubr.f32.mxu1 %v7930_v26  ;;  %v4536_v18 = vadd.f32 %v8685_v1, %v12894_v3  ;;  %v8766_v31 = vpop.f32.mrf.mxu1  ;;  %v7932_v41 = vld [vmem:[%s11021_s15 + $0x8e4] sm:$0xff]  ;;  %v6398_v3 = vld [vmem:[%s14082_s10 + $0x98] sm:$0xff] }
 0x361   : > { %6070 = vmatprep.mubr.f32.mxu0 %v7919_v13  ;;  %v8687_v46 = vpop.f32.mrf.mxu0  ;;  %9207 = vmatpush3.msra.mxu0 %v6384_v11  ;;  %v7920_v51 = vld [vmem:[%s11021_s15 + $0x942] sm:$0xff]  ;;  %v6382_v26 = vld [vmem:[%s14082_s10 + $0x18] sm:$0xff]  ;;  %v7933_v13 = vld [vmem:[%s11021_s15 + $0x8ec] sm:$0xff] }
 0x362   : > { %v8688_v21 = vadd.f32 %v8687_v46, %v8686_v24  ;;  %v8767_v34 = vpop.f32.mrf.mxu1  ;;  %9208 = vmatprep.subr.mxu0 %v6399_v52  ;;  %v13153_v5 = vadd.f32 %v8765_v37, %v4536_v18  ;;  %v6397_v24 = vld [vmem:[%s14082_s10 + $0x90] sm:$0xff] }
 0x363   : > { %9556 = vmatmul.mubr.f32.gmra.mxu1 %v7931_v47  ;;  %v8689_v42 = vpop.f32.mrf.mxu0  ;;  %9209 = vmatpush3.msra.mxu0 %v6383_v6  ;;  %v8768_v36 = vadd.f32 %v8767_v34, %v8766_v31  ;;  %v7904_v52 = vld [vmem:[%s11021_s15 + $0x930] sm:$0xff]  ;;  %v7934_v47 = vld [vmem:[%s11021_s15 + $0x91c] sm:$0xff] }
 0x364   : > { %6071 = vmatmul.mubr.f32.gmra.mxu0 %v7903_v55  ;;  %9558 = vmatprep.mubr.f32.mxu1 %v7932_v41  ;;  %v4541_v1 = vadd.f32 %v8688_v21, %v12910_v53  ;;  %v8769_v11 = vpop.f32.mrf.mxu1  ;;  %v7921_v37 = vld [vmem:[%s11021_s15 + $0x94a] sm:$0xff]  ;;  %v13174_v55 = vld [vmem:[%s14075_s3] ss:$0 sm:$0xff] }
 0x365   : > { %6075 = vmatprep.mubr.f32.mxu0 %v7920_v51  ;;  %v8690_v18 = vpop.f32.mrf.mxu0  ;;  %9210 = vmatprep.subr.mxu0 %v6398_v3  ;;  %v6381_v53 = vld [vmem:[%s14082_s10 + $0x10] sm:$0xff]  ;;  %v6396_v51 = vld [vmem:[%s14082_s10 + $0x88] sm:$0xff] }
 0x366   : > { %v8691_v6 = vadd.f32 %v8690_v18, %v8689_v42  ;;  %v8770_v46 = vpop.f32.mrf.mxu1  ;;  %9211 = vmatpush3.msra.mxu0 %v6382_v26  ;;  %v13169_v31 = vadd.f32 %v8768_v36, %v4541_v1  ;;  %v7935_v21 = vld [vmem:[%s11021_s15 + $0x924] sm:$0xff]  ;;  %v7936_v1 = vld [vmem:[%s11021_s15 + $0x954] sm:$0xff] }
 0x367   : > { %9559 = vmatmul.mubr.f32.gmra.mxu1 %v7933_v13  ;;  %v8692_v41 = vpop.f32.mrf.mxu0  ;;  %9212 = vmatprep.subr.mxu0 %v6397_v24  ;;  %v8771_v3 = vadd.f32 %v8770_v46, %v8769_v11  ;;  %v6380_v26 = vld [vmem:[%s14082_s10 + $0x8] sm:$0xff]  ;;  %v7905_v13 = vld [vmem:[%s11021_s15 + $0x938] sm:$0xff]  ;;  %v2102_v24 = vadd.f32 %v13174_v55, %v11897_v14  ;;  %v6379_v14 = vld [vmem:[%s14082_s10] sm:$0xff] }
 0x368   : > { %6076 = vmatmul.mubr.f32.gmra.mxu0 %v7904_v52  ;;  %9561 = vmatprep.mubr.f32.mxu1 %v7934_v47  ;;  %v4546_v34 = vadd.f32 %v8691_v6, %v12926_v15  ;;  %v8772_v42 = vpop.f32.mrf.mxu1  ;;  %v7922_v52 = vld [vmem:[%s11021_s15 + $0x97a] sm:$0xff] }
 0x369   : > { %6080 = vmatprep.mubr.f32.mxu0 %v7921_v37  ;;  %v8693_v36 = vpop.f32.mrf.mxu0  ;;  %9213 = vmatpush3.msra.mxu0 %v6381_v53  ;;  %v6395_v15 = vld [vmem:[%s14082_s10 + $0x80] sm:$0xff]  ;;  %v3536_v37 = vmax.f32 %v12618_v50, 0.0  ;;  %v7906_v50 = vld [vmem:[%s11021_s15 + $0x968] sm:$0xff] }
 0x36a   : > { %v8694_v47 = vadd.f32 %v8693_v36, %v8692_v41  ;;  %v8773_v18 = vpop.f32.mrf.mxu1  ;;  %9214 = vmatprep.subr.mxu0 %v6396_v51  ;;  %v13192_v11 = vadd.f32 %v8771_v3, %v4546_v34  ;;  %v7937_v46 = vld [vmem:[%s11021_s15 + $0x95c] sm:$0xff]  ;;  %v2107_v34 = vadd.f32 %v11886_v22, %v13174_v55 }
 0x36b   : > { %9562 = vmatmul.mubr.f32.gmra.mxu1 %v7935_v21  ;;  %v8695_v6 = vpop.f32.mrf.mxu0  ;;  %9215 = vmatpush3.msra.mxu0 %v6380_v26  ;;  %v8774_v41 = vadd.f32 %v8773_v18, %v8772_v42  ;;  %v7938_v21 = vld [vmem:[%s11021_s15 + $0x98c] sm:$0xff]  ;;  %v2180_v26 = vmax.f32 %v2102_v24, 0.0  ;;  %v13215_v22 = vld [vmem:[%s14076_s4] ss:$0 sm:$0xff]  ;;  %v7939_v18 = vld [vmem:[%s11021_s15 + $0x994] sm:$0xff] }
 0x36c   : > { %6081 = vmatmul.mubr.f32.gmra.mxu0 %v7905_v13  ;;  %9564 = vmatprep.mubr.f32.mxu1 %v7936_v1  ;;  %v4551_v53 = vadd.f32 %v8694_v47, %v12942_v0  ;;  %v8775_v51 = vpop.f32.mrf.mxu1  ;;  %v13207_v13 = vld [vmem:[%s14080_s8] ss:$0 sm:$0xff]  ;;  %v7923_v1 = vld [vmem:[%s11021_s15 + $0x982] sm:$0xff] }
 0x36d   : > { %6085 = vmatprep.mubr.f32.mxu0 %v7922_v52  ;;  %v8696_v3 = vpop.f32.mrf.mxu0  ;;  %9216 = vmatprep.subr.mxu0 %v6395_v15  ;;  %v3537_v52 = vmax.f32 %v12606_v19, 0.0  ;;  %v3557_v24 = vmul.f32 %v13207_v13, %v3536_v37  ;;  %v2112_v19 = vadd.f32 %v13174_v55, %v11923_v29  ;;  %v13228_v37 = vld [vmem:[%s14081_s9] ss:$0 sm:$0xff] }
 0x36e   : > { %v8697_v36 = vadd.f32 %v8696_v3, %v8695_v6  ;;  %v8776_v0 = vpop.f32.mrf.mxu1  ;;  %9217 = vmatpush3.msra.mxu0 %v6379_v14  ;;  %v13210_v42 = vadd.f32 %v8774_v41, %v4551_v53  ;;  %v2181_v53 = vmax.f32 %v2107_v34, 0.0  ;;  %v7907_v41 = vld [vmem:[%s11021_s15 + $0x970] sm:$0xff]  ;;  %v3538_v34 = vmax.f32 %v12645_v45, 0.0  ;;  %s9675_s15 = scalar_lea.vmem %s14015_s29, 2048 }
 0x36f   : > { %9565 = vmatmul.mubr.f32.gmra.mxu1 %v7937_v46  ;;  %v8698_v47 = vpop.f32.mrf.mxu0  ;;  %v8777_v6 = vadd.f32 %v8776_v0, %v8775_v51  ;;  %v3558_v51 = vmul.f32 %v13207_v13, %v3537_v52  ;;  %v3578_v29 = vadd.f32 %v13228_v37, %v3557_v24  ;;  %v3539_v24 = vmax.f32 %v12631_v25, 0.0  ;;  %p9676_p6 = scmp.ne.s32.totalorder %s14015_s29, %s9675_s15  ;;  %p9683_p11 = scmp.lt.s32.totalorder %s9681_s23, %s9675_s15 }
 0x370   : > { %14116 = vst [vmem:[#allocation26_spill] sm:$0xff] %v13210_v42  ;;  %6086 = vmatmul.mubr.f32.gmra.mxu0 %v7906_v50  ;;  %9567 = vmatprep.mubr.f32.mxu1 %v7938_v21  ;;  %v4556_v15 = vadd.f32 %v8697_v36, %v12961_v54  ;;  %v8778_v14 = vpop.f32.mrf.mxu1  ;;  %v2203_v42 = vmul.f32 %v13215_v22, %v2180_v26  ;;  %v13235_v54 = vld [vmem:[%s14077_s5] ss:$0 sm:$0xff] }
 0x371   : > { %6090 = vmatprep.mubr.f32.mxu0 %v7923_v1  ;;  %v8699_v3 = vpop.f32.mrf.mxu0  ;;  %v2122_v25 = vadd.f32 %v13174_v55, %v11951_v63  ;;  %v2127_v63 = vadd.f32 %v11939_v40, %v13174_v55  ;;  %p9677_p7 = pnand %p9676_p6, %p9895_p3  ;;  %p9684_p12 = por %p9683_p11, %p9682_p10 }
 0x372   : > { %v8700_v46 = vadd.f32 %v8699_v3, %v8698_v47  ;;  %v8779_v50 = vpop.f32.mrf.mxu1  ;;  %v13230_v21 = vadd.f32 %v8777_v6, %v4556_v15  ;;  %v2204_v47 = vmul.f32 %v13215_v22, %v2181_v53  ;;  %v2117_v15 = vadd.f32 %v11912_v20, %v13174_v55 }
 0x373   : > { %9568 = vmatmul.mubr.f32.gmra.mxu1 %v7939_v18  ;;  %v8701_v26 = vpop.f32.mrf.mxu0  ;;  %v8780_v36 = vadd.f32 %v8779_v50, %v8778_v14  ;;  %v2226_v52 = vadd.f32 %v13235_v54, %v2203_v42  ;;  %v2182_v3 = vmax.f32 %v2112_v19, 0.0  ;;  %v3579_v14 = vadd.f32 %v13228_v37, %v3558_v51  ;;  %p9678_p9 = pneg %p9677_p7 }
 0x374   : > { %14117 = vst [vmem:[#allocation27_spill] sm:$0xff] %v13230_v21  ;;  %6091 = vmatmul.mubr.f32.gmra.mxu0 %v7907_v41  ;;  %v4561_v1 = vadd.f32 %v8700_v46, %v12977_v60  ;;  %v8781_v0 = vpop.f32.mrf.mxu1  ;;  %v3559_v60 = vmul.f32 %v13207_v13, %v3538_v34  ;;  %v2227_v50 = vadd.f32 %v13235_v54, %v2204_v47  ;;  %v2183_v42 = vmax.f32 %v2117_v15, 0.0 }
 0x375   : > { %6514 = vmatprep.mubr.f32.mxu0 %v3578_v29  ;;  %v8702_v6 = vpop.f32.mrf.mxu0  ;;  %v2205_v29 = vmul.f32 %v13215_v22, %v2182_v3  ;;  %v3560_v51 = vmul.f32 %v13207_v13, %v3539_v24  ;;  %p9685_p13 = pnand %p9684_p12, %p9678_p9 }
 0x376   : > { %v8703_v45 = vadd.f32 %v8702_v6, %v8701_v26  ;;  %v8782_v18 = vpop.f32.mrf.mxu1  ;;  %v13245_v21 = vadd.f32 %v8780_v36, %v4561_v1  ;;  %v3580_v36 = vadd.f32 %v13228_v37, %v3559_v60  ;;  %v3541_v60 = vmax.f32 %v12656_v48, 0.0 }
 0x377   : > { %v8704_v41 = vpop.f32.mrf.mxu0  ;;  %v8783_v20 = vadd.f32 %v8782_v18, %v8781_v0  ;;  %v2184_v18 = vmax.f32 %v2122_v25, 0.0  ;;  %v2132_v48 = vadd.f32 %v13174_v55, %v11974_v61 }
 0x378   : > { %6515 = vmatmul.mubr.f32.vlgmr.msra.gmra.mxu0 %v2226_v52  ;;  %v4566_v53 = vadd.f32 %v8703_v45, %v12990_v39  ;;  %v8784_v46 = vpop.f32.mrf.mxu1  ;;  %v3540_v39 = vmax.f32 %v12672_v4, 0.0  ;;  %v2206_v52 = vmul.f32 %v13215_v22, %v2183_v42  ;;  %v2228_v45 = vadd.f32 %v13235_v54, %v2205_v29 }
 0x379   : > { %6519 = vmatprep.mubr.f32.mxu0 %v3579_v14  ;;  %v8705_v19 = vpop.f32.mrf.mxu0  ;;  %v2185_v42 = vmax.f32 %v2127_v63, 0.0  ;;  %v2207_v29 = vmul.f32 %v13215_v22, %v2184_v18 }
 0x37a   : > { %v8706_v26 = vadd.f32 %v8705_v19, %v8704_v41  ;;  %v8785_v34 = vpop.f32.mrf.mxu1  ;;  %v13255_v1 = vadd.f32 %v8783_v20, %v4566_v53  ;;  %v3581_v41 = vadd.f32 %v13228_v37, %v3560_v51  ;;  %v3562_v51 = vmul.f32 %v13207_v13, %v3541_v60  ;;  %v6425_v60 = vld [vmem:[%s14082_s10 + $0x170] sm:$0xff] }
 0x37b   : > { %v8707_v0 = vpop.f32.mrf.mxu0  ;;  %v8786_v15 = vadd.f32 %v8785_v34, %v8784_v46 }
 0x37c   : > { %6520 = vmatmul.mubr.f32.gmra.mxu0 %v2227_v50  ;;  %v4571_v47 = vadd.f32 %v8706_v26, %v13006_v32  ;;  %v8787_v6 = vpop.f32.mrf.mxu1  ;;  %v3561_v32 = vmul.f32 %v13207_v13, %v3540_v39  ;;  %v2229_v50 = vadd.f32 %v13235_v54, %v2206_v52  ;;  %v2208_v52 = vmul.f32 %v13215_v22, %v2185_v42 }
 0x37d   : > { %6524 = vmatprep.mubr.f32.mxu0 %v3580_v36  ;;  %v8708_v3 = vpop.f32.mrf.mxu0 }
 0x37e   : > { %v8709_v24 = vadd.f32 %v8708_v3, %v8707_v0  ;;  %v8788_v4 = vpop.f32.mrf.mxu1  ;;  %v13265_v14 = vadd.f32 %v8786_v15, %v4571_v47  ;;  %v3582_v39 = vadd.f32 %v13228_v37, %v3561_v32  ;;  %v6442_v0 = vld [vmem:[%s14082_s10 + $0x1f8] sm:$0xff]  ;;  %v6441_v3 = vld [vmem:[%s14082_s10 + $0x1f0] sm:$0xff]  ;;  %v2231_v42 = vadd.f32 %v13235_v54, %v2208_v52 }
 0x37f   : > { %v8710_v53 = vpop.f32.mrf.mxu0  ;;  %v8789_v40 = vadd.f32 %v8788_v4, %v8787_v6  ;;  %9266 = vmatprep.subr.mxu1 %v6442_v0  ;;  %v6426_v6 = vld [vmem:[%s14082_s10 + $0x178] sm:$0xff]  ;;  %v3544_v0 = vmax.f32 %v12718_v8, 0.0 }
 0x380   : > { %6525 = vmatmul.mubr.f32.gmra.mxu0 %v2228_v45  ;;  %v4576_v20 = vadd.f32 %v8709_v24, %v13022_v23  ;;  %v8790_v46 = vpop.f32.mrf.mxu1  ;;  %v3542_v23 = vmax.f32 %v12695_v2, 0.0  ;;  %v2137_v2 = vadd.f32 %v11965_v57, %v13174_v55  ;;  %9267 = vmatpush3.msra.mxu1 %v6426_v6  ;;  %v2186_v45 = vmax.f32 %v2132_v48, 0.0  ;;  %v6439_v48 = vld [vmem:[%s14082_s10 + $0x1e0] sm:$0xff] }
 0x381   : > { %6529 = vmatprep.mubr.f32.mxu0 %v3581_v41  ;;  %v8711_v19 = vpop.f32.mrf.mxu0  ;;  %9268 = vmatprep.subr.mxu1 %v6441_v3  ;;  %v3543_v57 = vmax.f32 %v12681_v33, 0.0  ;;  %v3583_v41 = vadd.f32 %v13228_v37, %v3562_v51  ;;  %v6424_v33 = vld [vmem:[%s14082_s10 + $0x168] sm:$0xff] }
 0x382   : > { %v8712_v25 = vadd.f32 %v8711_v19, %v8710_v53  ;;  %v8791_v26 = vpop.f32.mrf.mxu1  ;;  %v13275_v34 = vadd.f32 %v8789_v40, %v4576_v20  ;;  %v3563_v32 = vmul.f32 %v13207_v13, %v3542_v23  ;;  %9269 = vmatpush3.msra.mxu1 %v6425_v60  ;;  %v6440_v20 = vld [vmem:[%s14082_s10 + $0x1e8] sm:$0xff]  ;;  %v2187_v19 = vmax.f32 %v2137_v2, 0.0  ;;  %v6422_v2 = vld [vmem:[%s14082_s10 + $0x158] sm:$0xff] }
 0x383   : > { %v8713_v36 = vpop.f32.mrf.mxu0  ;;  %v8792_v15 = vadd.f32 %v8791_v26, %v8790_v46  ;;  %9270 = vmatprep.subr.mxu1 %v6440_v20  ;;  %v6436_v20 = vld [vmem:[%s14082_s10 + $0x1c8] sm:$0xff] }
 0x384   : > { %6530 = vmatmul.mubr.f32.gmra.mxu0 %v2229_v50  ;;  %v4581_v47 = vadd.f32 %v8712_v25, %v13038_v17  ;;  %v8793_v61 = vpop.f32.mrf.mxu1  ;;  %v2230_v17 = vadd.f32 %v13235_v54, %v2207_v29  ;;  %9271 = vmatpush3.msra.mxu1 %v6424_v33  ;;  %v2209_v25 = vmul.f32 %v13215_v22, %v2186_v45 }
 0x385   : > { %6534 = vmatprep.mubr.f32.mxu0 %v3582_v39  ;;  %v8714_v63 = vpop.f32.mrf.mxu0  ;;  %9272 = vmatprep.subr.mxu1 %v6439_v48  ;;  %v6423_v39 = vld [vmem:[%s14082_s10 + $0x160] sm:$0xff]  ;;  %v2210_v8 = vmul.f32 %v13215_v22, %v2187_v19 }
 0x386   : > { %v8715_v18 = vadd.f32 %v8714_v63, %v8713_v36  ;;  %v8794_v24 = vpop.f32.mrf.mxu1  ;;  %v13294_v4 = vadd.f32 %v8792_v15, %v4581_v47  ;;  %v3564_v36 = vmul.f32 %v13207_v13, %v3543_v57  ;;  %v3584_v47 = vadd.f32 %v13228_v37, %v3563_v32  ;;  %9273 = vmatpush3.msra.mxu1 %v6423_v39  ;;  %v6421_v57 = vld [vmem:[%s14082_s10 + $0x150] sm:$0xff] }
 0x387   : > { %v8716_v53 = vpop.f32.mrf.mxu0  ;;  %v8795_v46 = vadd.f32 %v8794_v24, %v8793_v61  ;;  %v2147_v63 = vadd.f32 %v11990_v7, %v13174_v55  ;;  %v3545_v7 = vmax.f32 %v12709_v59, 0.0  ;;  %v3565_v32 = vmul.f32 %v13207_v13, %v3544_v0  ;;  %v6420_v59 = vld [vmem:[%s14082_s10 + $0x148] sm:$0xff] }
 0x388   : > { %6535 = vmatmul.mubr.f32.gmra.mxu0 %v2230_v17  ;;  %v4586_v40 = vadd.f32 %v8715_v18, %v13054_v9  ;;  %v8796_v50 = vpop.f32.mrf.mxu1  ;;  %v2142_v9 = vadd.f32 %v13174_v55, %v12001_v35  ;;  %v6438_v35 = vld [vmem:[%s14082_s10 + $0x1d8] sm:$0xff]  ;;  %v6437_v17 = vld [vmem:[%s14082_s10 + $0x1d0] sm:$0xff] }
 0x389   : > { %6539 = vmatprep.mubr.f32.mxu0 %v3583_v41  ;;  %v8717_v29 = vpop.f32.mrf.mxu0  ;;  %9274 = vmatprep.subr.mxu1 %v6438_v35  ;;  %v3585_v41 = vadd.f32 %v13228_v37, %v3564_v36  ;;  %v2189_v19 = vmax.f32 %v2147_v63, 0.0  ;;  %v3566_v39 = vmul.f32 %v13207_v13, %v3545_v7  ;;  %v3546_v36 = vmax.f32 %v12751_v62, 0.0  ;;  %v6431_v7 = vld [vmem:[%s14082_s10 + $0x1a0] sm:$0xff] }
 0x38a   : > { %v8718_v26 = vadd.f32 %v8717_v29, %v8716_v53  ;;  %v8797_v51 = vpop.f32.mrf.mxu1  ;;  %v13316_v23 = vadd.f32 %v8795_v46, %v4586_v40  ;;  %9275 = vmatpush3.msra.mxu1 %v6422_v2  ;;  %v2188_v45 = vmax.f32 %v2142_v9, 0.0  ;;  %v3586_v0 = vadd.f32 %v13228_v37, %v3565_v32 }
 0x38b   : > { %v8719_v15 = vpop.f32.mrf.mxu0  ;;  %v8798_v6 = vadd.f32 %v8797_v51, %v8796_v50  ;;  %9276 = vmatprep.subr.mxu1 %v6437_v17  ;;  %v6419_v51 = vld [vmem:[%s14082_s10 + $0x140] sm:$0xff]  ;;  %v2212_v35 = vmul.f32 %v13215_v22, %v2189_v19  ;;  %v3547_v17 = vmax.f32 %v12737_v44, 0.0  ;;  %v6416_v44 = vld [vmem:[%s14082_s10 + $0x128] sm:$0xff] }
 0x38c   : > { %6540 = vmatmul.mubr.f32.gmra.mxu0 %v2231_v42  ;;  %v4591_v61 = vadd.f32 %v8718_v26, %v13070_v27  ;;  %v8799_v52 = vpop.f32.mrf.mxu1  ;;  %v2232_v27 = vadd.f32 %v13235_v54, %v2209_v25  ;;  %9277 = vmatpush3.msra.mxu1 %v6421_v57  ;;  %v2233_v42 = vadd.f32 %v13235_v54, %v2210_v8 }
 0x38d   : > { %6544 = vmatprep.mubr.f32.mxu0 %v3584_v47  ;;  %v8720_v3 = vpop.f32.mrf.mxu0  ;;  %9278 = vmatprep.subr.mxu1 %v6436_v20  ;;  %v2211_v48 = vmul.f32 %v13215_v22, %v2188_v45  ;;  %v3587_v45 = vadd.f32 %v13228_v37, %v3566_v39  ;;  %v2235_v32 = vadd.f32 %v13235_v54, %v2212_v35  ;;  %v14120_v35 = vld [vmem:[#allocation27_spill] sm:$0xff] }
 0x38e   : > { %v8721_v18 = vadd.f32 %v8720_v3, %v8719_v15  ;;  %v8800_v24 = vpop.f32.mrf.mxu1  ;;  %v13338_v60 = vadd.f32 %v8798_v6, %v4591_v61  ;;  %9279 = vmatpush3.msra.mxu1 %v6420_v59  ;;  %v6418_v15 = vld [vmem:[%s14082_s10 + $0x138] sm:$0xff]  ;;  %v6433_v61 = vld [vmem:[%s14082_s10 + $0x1b0] sm:$0xff] }
 0x38f   : > { %v9492_v53 = vpop.f32.mrf.mxu0  ;;  %v8801_v46 = vadd.f32 %v8800_v24, %v8799_v52  ;;  %v2234_v6 = vadd.f32 %v13235_v54, %v2211_v48  ;;  %v2157_v52 = vadd.f32 %v12016_v43, %v13174_v55  ;;  %v6417_v3 = vld [vmem:[%s14082_s10 + $0x130] sm:$0xff]  ;;  %v6432_v43 = vld [vmem:[%s14082_s10 + $0x1a8] sm:$0xff]  ;;  %v2167_v48 = vadd.f32 %v12045_v49, %v13174_v55 }
 0x390   : > { %6545 = vmatmul.mubr.f32.gmra.mxu0 %v2232_v27  ;;  %v4596_v40 = vadd.f32 %v8721_v18, %v13086_v30  ;;  %v13351_v50 = vadd.f32 %v9492_v53, %v13121_v12  ;;  %v8866_v33 = vpop.f32.mrf.mxu1  ;;  %v6435_v30 = vld [vmem:[%s14082_s10 + $0x1c0] sm:$0xff]  ;;  %v2152_v12 = vadd.f32 %v13174_v55, %v12027_v38  ;;  %v6434_v38 = vld [vmem:[%s14082_s10 + $0x1b8] sm:$0xff]  ;;  %v3567_v27 = vmul.f32 %v13207_v13, %v3546_v36  ;;  %v6413_v49 = vld [vmem:[%s14082_s10 + $0x110] sm:$0xff] }
 0x391   : > { %6549 = vmatprep.mubr.f32.mxu0 %v3585_v41  ;;  %v4810_v29 = vpop.f32.mrf.mxu0  ;;  %9280 = vmatprep.subr.mxu1 %v6435_v30  ;;  %v2191_v41 = vmax.f32 %v2157_v52, 0.0 }
 0x392   : > { %v13364_v25 = vadd.f32 %v4810_v29, %v13105_v56  ;;  %v8867_v9 = vpop.f32.mrf.mxu1  ;;  %v13366_v26 = vadd.f32 %v8801_v46, %v4596_v40  ;;  %9281 = vmatpush3.msra.mxu1 %v6419_v51  ;;  %v2190_v2 = vmax.f32 %v2152_v12, 0.0  ;;  %v6415_v40 = vld [vmem:[%s14082_s10 + $0x120] sm:$0xff]  ;;  %v3568_v46 = vmul.f32 %v13207_v13, %v3547_v17  ;;  %v6429_v12 = vld [vmem:[%s14082_s10 + $0x190] sm:$0xff] }
 0x393   : > { %v13374_v47 = vadd.f32 %v8867_v9, %v8866_v33  ;;  %9282 = vmatprep.subr.mxu1 %v6434_v38  ;;  %v3548_v33 = vmax.f32 %v12777_v10, 0.0  ;;  %v3588_v59 = vadd.f32 %v13228_v37, %v3567_v27  ;;  %v6414_v10 = vld [vmem:[%s14082_s10 + $0x118] sm:$0xff]  ;;  %v2214_v9 = vmul.f32 %v13215_v22, %v2191_v41  ;;  %v14122_v27 = vld [vmem:[#allocation23_spill] sm:$0xff] }
 0x394   : > { %6550 = vmatmul.mubr.f32.gmra.mxu0 %v2233_v42  ;;  %v8869_v56 = vpop.f32.mrf.mxu1  ;;  %9283 = vmatpush3.msra.mxu1 %v6418_v15  ;;  %v2213_v53 = vmul.f32 %v13215_v22, %v2190_v2  ;;  %v3589_v38 = vadd.f32 %v13228_v37, %v3568_v46  ;;  %v6428_v15 = vld [vmem:[%s14082_s10 + $0x188] sm:$0xff] }
 0x395   : > { %6554 = vmatprep.mubr.f32.mxu0 %v3586_v0  ;;  %v9495_v62 = vpop.f32.mrf.mxu0  ;;  %9284 = vmatprep.subr.mxu1 %v6433_v61  ;;  %v3549_v0 = vmax.f32 %v12770_v16, 0.0  ;;  %v6412_v16 = vld [vmem:[%s14082_s10 + $0x108] sm:$0xff] }
 0x396   : > { %v13390_v8 = vadd.f32 %v9495_v62, %v13153_v5  ;;  %v8870_v63 = vpop.f32.mrf.mxu1  ;;  %9285 = vmatpush3.msra.mxu1 %v6417_v3  ;;  %v2236_v51 = vadd.f32 %v13235_v54, %v2213_v53  ;;  %v2237_v3 = vadd.f32 %v13235_v54, %v2214_v9 }
 0x397   : > { %v4820_v18 = vpop.f32.mrf.mxu0  ;;  %v13398_v24 = vadd.f32 %v8870_v63, %v8869_v56  ;;  %9286 = vmatprep.subr.mxu1 %v6432_v43  ;;  %v6427_v63 = vld [vmem:[%s14082_s10 + $0x180] sm:$0xff] }
 0x398   : > { %6555 = vmatmul.mubr.f32.gmra.mxu0 %v2234_v6  ;;  %v13404_v5 = vadd.f32 %v4820_v18, %v13137_v28  ;;  %9287 = vmatpush3.msra.mxu1 %v6416_v44  ;;  %v2162_v28 = vadd.f32 %v13174_v55, %v12055_v58  ;;  %v6430_v58 = vld [vmem:[%s14082_s10 + $0x198] sm:$0xff]  ;;  %v2193_v6 = vmax.f32 %v2167_v48, 0.0  ;;  %v14123_v18 = vld [vmem:[#allocation26_spill] sm:$0xff] }
 0x399   : > { %6559 = vmatprep.mubr.f32.mxu0 %v3587_v45  ;;  %v8872_v57 = vpop.f32.mrf.mxu1  ;;  %9288 = vmatprep.subr.mxu1 %v6431_v7  ;;  %v2172_v45 = vadd.f32 %v13174_v55, %v14122_v27  ;;  %v6411_v44 = vld [vmem:[%s14082_s10 + $0x100] sm:$0xff]  ;;  %v14125_v7 = vld [vmem:[#allocation24_spill] sm:$0xff]  ;;  %v14128_v48 = vld [vmem:[#allocation25_spill] sm:$0xff] }
 0x39a   : > { %v9498_v20 = vpop.f32.mrf.mxu0  ;;  %9289 = vmatpush3.msra.mxu1 %v6415_v40  ;;  %v2192_v39 = vmax.f32 %v2162_v28, 0.0 }
 0x39b   : > { %v13423_v42 = vadd.f32 %v9498_v20, %v13192_v11  ;;  %v8873_v19 = vpop.f32.mrf.mxu1  ;;  %9290 = vmatprep.subr.mxu1 %v6430_v58  ;;  %v2216_v20 = vmul.f32 %v13215_v22, %v2193_v6  ;;  %v2194_v58 = vmax.f32 %v2172_v45, 0.0 }
 0x39c   : > { %6560 = vmatmul.mubr.f32.gmra.mxu0 %v2235_v32  ;;  %v4830_v29 = vpop.f32.mrf.mxu0  ;;  %v13428_v30 = vadd.f32 %v8873_v19, %v8872_v57  ;;  %9291 = vmatpush3.msra.mxu1 %v6414_v10  ;;  %v2215_v17 = vmul.f32 %v13215_v22, %v2192_v39  ;;  %v3570_v57 = vmul.f32 %v13207_v13, %v3549_v0  ;;  %v3550_v32 = vmax.f32 %v14125_v7, 0.0 }
 0x39d   : > { %14118 = vst [vmem:[#allocation28_spill] sm:$0xff] %v13423_v42  ;;  %6564 = vmatprep.mubr.f32.mxu0 %v3588_v59  ;;  %v13436_v11 = vadd.f32 %v4830_v29, %v13169_v31  ;;  %9292 = vmatprep.subr.mxu1 %v6429_v12  ;;  %v3569_v31 = vmul.f32 %v13207_v13, %v3548_v33  ;;  %v14127_v59 = vld [vmem:[#allocation22_spill] sm:$0xff]  ;;  %v3551_v12 = vmax.f32 %v14128_v48, 0.0 }
 0x39e   : > { %v8875_v36 = vpop.f32.mrf.mxu1  ;;  %9293 = vmatpush3.msra.mxu1 %v6413_v49  ;;  %v2238_v33 = vadd.f32 %v13235_v54, %v2215_v17  ;;  %v2177_v19 = vadd.f32 %v14127_v59, %v13174_v55  ;;  %v3571_v9 = vmul.f32 %v13207_v13, %v3550_v32  ;;  %v2239_v49 = vadd.f32 %v13235_v54, %v2216_v20 }
 0x39f   : > { %14119 = vst [vmem:[#allocation29_spill] sm:$0xff] %v13436_v11  ;;  %v9501_v56 = vpop.f32.mrf.mxu0  ;;  %9294 = vmatprep.subr.mxu1 %v6428_v15  ;;  %v3590_v41 = vadd.f32 %v13228_v37, %v3569_v31  ;;  %v2217_v0 = vmul.f32 %v13215_v22, %v2194_v58 }
 0x3a0   : > { %6565 = vmatmul.mubr.f32.gmra.mxu0 %v2236_v51  ;;  %v13453_v62 = vadd.f32 %v9501_v56, %v14120_v35  ;;  %v8876_v61 = vpop.f32.mrf.mxu1  ;;  %9295 = vmatpush3.msra.mxu1 %v6412_v16  ;;  %v3591_v51 = vadd.f32 %v13228_v37, %v3570_v57  ;;  %v2195_v55 = vmax.f32 %v2177_v19, 0.0  ;;  %v3592_v56 = vadd.f32 %v13228_v37, %v3571_v9 }
 0x3a1   : > { %6569 = vmatprep.mubr.f32.mxu0 %v3589_v38  ;;  %v4840_v52 = vpop.f32.mrf.mxu0  ;;  %v13458_v2 = vadd.f32 %v8876_v61, %v8875_v36  ;;  %9296 = vmatprep.subr.mxu1 %v6427_v63 }
 0x3a2   : > { %14121 = vst [vmem:[#allocation27_spill] sm:$0xff] %v13453_v62  ;;  %v13468_v43 = vadd.f32 %v4840_v52, %v14123_v18  ;;  %9297 = vmatpush3.msra.mxu1 %v6411_v44  ;;  %v2218_v6 = vmul.f32 %v13215_v22, %v2195_v55  ;;  %v2240_v52 = vadd.f32 %v13235_v54, %v2217_v0 }
 0x3a3   : > { %v8878_v53 = vpop.f32.mrf.mxu1 }
 0x3a4   : > { %14124 = vst [vmem:[#allocation23_spill] sm:$0xff] %v13468_v43  ;;  %6570 = vmatmul.mubr.f32.gmra.mxu0 %v2237_v3  ;;  %v9504_v28 = vpop.f32.mrf.mxu0  ;;  %v2241_v45 = vadd.f32 %v13235_v54, %v2218_v6 }
 0x3a5   : > { %6574 = vmatprep.mubr.f32.mxu0 %v3590_v41  ;;  %v13478_v40 = vadd.f32 %v9504_v28, %v13255_v1  ;;  %v8879_v46 = vpop.f32.mrf.mxu1 }
 0x3a6   : > { %v4850_v29 = vpop.f32.mrf.mxu0  ;;  %v13483_v10 = vadd.f32 %v8879_v46, %v8878_v53 }
 0x3a7   : > { %14126 = vst [vmem:[#allocation26_spill] sm:$0xff] %v13478_v40  ;;  %v13489_v39 = vadd.f32 %v4850_v29, %v13245_v21  ;;  %v3572_v21 = vmul.f32 %v13207_v13, %v3551_v12 }
 0x3a8   : > { %6575 = vmatmul.mubr.f32.gmra.mxu0 %v2238_v33  ;;  %v8881_v1 = vpop.f32.mrf.mxu1 }
 0x3a9   : > { %14129 = vst [vmem:[#allocation24_spill] sm:$0xff] %v13489_v39  ;;  %6579 = vmatprep.mubr.f32.mxu0 %v3591_v51  ;;  %v9507_v36 = vpop.f32.mrf.mxu0  ;;  %v3593_v3 = vadd.f32 %v13228_v37, %v3572_v21 }
 0x3aa   : > { %v13494_v31 = vadd.f32 %v9507_v36, %v13275_v34  ;;  %v8882_v38 = vpop.f32.mrf.mxu1 }
 0x3ab   : > { %v4860_v15 = vpop.f32.mrf.mxu0  ;;  %v13497_v35 = vadd.f32 %v8882_v38, %v8881_v1 }
 0x3ac   : > { %14130 = vst [vmem:[#allocation22_spill] sm:$0xff] %v13494_v31  ;;  %6580 = vmatmul.mubr.f32.gmra.mxu0 %v2239_v49  ;;  %v13501_v61 = vadd.f32 %v4860_v15, %v13265_v14 }
 0x3ad   : > { %6584 = vmatprep.mubr.f32.mxu0 %v3592_v56  ;;  %v8884_v16 = vpop.f32.mrf.mxu1 }
 0x3ae   : > { %14131 = vst [vmem:[#allocation25_spill] sm:$0xff] %v13501_v61  ;;  %v9510_v34 = vpop.f32.mrf.mxu0 }
 0x3af   : > { %v13506_v63 = vadd.f32 %v9510_v34, %v13316_v23  ;;  %v8885_v17 = vpop.f32.mrf.mxu1 }
 0x3b0   : > { %6585 = vmatmul.mubr.f32.gmra.mxu0 %v2240_v52  ;;  %v4870_v27 = vpop.f32.mrf.mxu0  ;;  %v13509_v13 = vadd.f32 %v8885_v17, %v8884_v16 }
 0x3b1   : > { %14132 = vst [vmem:[#allocation30_spill] sm:$0xff] %v13506_v63  ;;  %6589 = vmatprep.mubr.f32.mxu0 %v3593_v3  ;;  %v13512_v14 = vadd.f32 %v4870_v27, %v13294_v4  ;;  %v13526_v4 = vld [vmem:[%s14079_s7 + $0x2] ss:$0 sm:$0xff] }
 0x3b2   : > { %v8887_v22 = vpop.f32.mrf.mxu1  ;;  %v5583_v28 = vadd.f32 %v13374_v47, %v13526_v4 }
 0x3b3   : > { %14133 = vst [vmem:[#allocation31_spill] sm:$0xff] %v13512_v14  ;;  %v9513_v18 = vpop.f32.mrf.mxu0 }
 0x3b4   : > { %v13516_v44 = vadd.f32 %v9513_v18, %v13366_v26  ;;  %6590 = vmatmul.mubr.f32.gmra.mxu0 %v2241_v45  ;;  %v8888_v23 = vpop.f32.mrf.mxu1 }
 0x3b5   : > { %v4880_v57 = vpop.f32.mrf.mxu0  ;;  %v13518_v37 = vadd.f32 %v8888_v23, %v8887_v22 }
 0x3b6   : > { %14134 = vst [vmem:[#allocation32_spill] sm:$0xff] %v13516_v44  ;;  %v13521_v7 = vadd.f32 %v4880_v57, %v13338_v60 }
 0x3b7   : > { %v8890_v32 = vpop.f32.mrf.mxu1 }
 0x3b8   : > { %14135 = vst [vmem:[#allocation33_spill] sm:$0xff] %v13521_v7  ;;  %v8946_v54 = vpop.f32.mrf.mxu0 }
 0x3b9   : > { %v8891_v41 = vpop.f32.mrf.mxu1 }
 0x3ba   : > { %v13528_v53 = vadd.f32 %v8891_v41, %v8890_v32  ;;  %v8947_v26 = vpop.f32.mrf.mxu0 }
 0x3bb   : > { %v8948_v20 = vadd.f32 %v8947_v26, %v8946_v54  ;;  %v8893_v46 = vpop.f32.mrf.mxu1 }
 0x3bc   : > { %14136 = vst [vmem:[#allocation34_spill] sm:$0xff] %v13528_v53  ;;  %v13532_v33 = vpop.f32.mrf.mxu0 }
 0x3bd   : > { %v13534_v60 = vadd.f32 %v8948_v20, %v5583_v28  ;;  %v8894_v59 = vpop.f32.mrf.mxu1 }
 0x3be   : > { %v13536_v19 = vadd.f32 %v8894_v59, %v8893_v46  ;;  %v13538_v58 = vpop.f32.mrf.mxu0 }
 0x3bf   : > { %v8896_v29 = vpop.f32.mrf.mxu1 }
 0x3c0   : > { %14137 = vst [vmem:[#allocation35_spill] sm:$0xff] %v13536_v19  ;;  %v13540_v48 = vpop.f32.mrf.mxu0 }
 0x3c1   : > { %v8897_v12 = vpop.f32.mrf.mxu1 }
 0x3c2   : > { %v13542_v9 = vadd.f32 %v8897_v12, %v8896_v29  ;;  %v13544_v51 = vpop.f32.mrf.mxu0 }
 0x3c3   : > { %v8899_v47 = vpop.f32.mrf.mxu1 }
 0x3c4   : > { %14138 = vst [vmem:[#allocation36_spill] sm:$0xff] %v13542_v9  ;;  %v13546_v1 = vpop.f32.mrf.mxu0 }
 0x3c5   : > { %v8900_v36 = vpop.f32.mrf.mxu1 }
 0x3c6   : > { %v13548_v49 = vadd.f32 %v8900_v36, %v8899_v47  ;;  %v13550_v55 = vpop.f32.mrf.mxu0 }
 0x3c7   : > { %v8902_v0 = vpop.f32.mrf.mxu1 }
 0x3c8   : > { %14139 = vst [vmem:[#allocation37_spill] sm:$0xff] %v13548_v49  ;;  %v13552_v38 = vpop.f32.mrf.mxu0 }
 0x3c9   : > { %v8903_v56 = vpop.f32.mrf.mxu1 }
 0x3ca   : > { %v13554_v15 = vadd.f32 %v8903_v56, %v8902_v0  ;;  %v13556_v21 = vpop.f32.mrf.mxu0 }
 0x3cb   : > { %v8905_v16 = vpop.f32.mrf.mxu1 }
 0x3cc   : > { %14140 = vst [vmem:[#allocation38_spill] sm:$0xff] %v13554_v15  ;;  %v13558_v6 = vpop.f32.mrf.mxu0 }
 0x3cd   : > { %v8906_v52 = vpop.f32.mrf.mxu1 }
 0x3ce   : > { %v13560_v34 = vadd.f32 %v8906_v52, %v8905_v16  ;;  %v13562_v3 = vpop.f32.mrf.mxu0 }
 0x3cf   : > { %v8908_v17 = vpop.f32.mrf.mxu1 }
 0x3d0   : > { %14141 = vst [vmem:[#allocation39_spill] sm:$0xff] %v13560_v34  ;;  %v13564_v27 = vpop.f32.mrf.mxu0 }
 0x3d1   : > { %v8909_v45 = vpop.f32.mrf.mxu1 }
 0x3d2   : > { %v13566_v22 = vadd.f32 %v8909_v45, %v8908_v17  ;;  %v13568_v18 = vpop.f32.mrf.mxu0 }
 0x3d3   : > { %v8911_v23 = vpop.f32.mrf.mxu1 }
 0x3d4   : > { %14142 = vst [vmem:[#allocation40_spill] sm:$0xff] %v13566_v22  ;;  %v13570_v57 = vpop.f32.mrf.mxu0 }
 0x3d5   : > { %v8912_v32 = vpop.f32.mrf.mxu1 }
 0x3d6   : > { %v13572_v54 = vadd.f32 %v8912_v32, %v8911_v23  ;;  %v13574_v41 = vpop.f32.mrf.mxu0 }
 0x3d7   : > { %v13576_v26 = vpop.f32.mrf.mxu1 }
 0x3d8   : > { %14143 = vst [vmem:[#allocation41_spill] sm:$0xff] %v13572_v54  ;;  %v13578_v28 = vpop.f32.mrf.mxu0 }
 0x3d9   : > { %14144 = vst [vmem:[#allocation42_spill] sm:$0xff] %v13578_v28  ;;  %v9027_v20 = vpop.f32.mrf.mxu1 }
 0x3da   : > { %v13580_v46 = vpop.f32.mrf.mxu0  ;;  %v9028_v28 = vadd.f32 %v9027_v20, %v13576_v26 }
 0x3db   : > { %14145 = vst [vmem:[#allocation43_spill] sm:$0xff] %v13580_v46  ;;  %v9029_v59 = vpop.f32.mrf.mxu1 }
 0x3dc   : > { %v13582_v29 = vpop.f32.mrf.mxu0  ;;  %v5873_v26 = vadd.f32 %v9028_v28, %v13534_v60 }
 0x3dd   : > { %14146 = vst [vmem:[#allocation44_spill] sm:$0xff] %v13582_v29  ;;  %v9030_v12 = vpop.f32.mrf.mxu1 }
 0x3de   : > { %v13584_v47 = vpop.f32.mrf.mxu0 }
 0x3df   : > { %14147 = vst [vmem:[#allocation45_spill] sm:$0xff] %v13584_v47  ;;  %v13586_v36 = vpop.f32.mrf.mxu1 }
 0x3e0   : > { %v13588_v0 = vpop.f32.mrf.mxu0 }
 0x3e1   : > { %14148 = vst [vmem:[#allocation46_spill] sm:$0xff] %v13588_v0  ;;  %v13590_v56 = vpop.f32.mrf.mxu1 }
 0x3e2   : > { %v13592_v16 = vpop.f32.mrf.mxu0 }
 0x3e3   : > { %14149 = vst [vmem:[#allocation47_spill] sm:$0xff] %v13592_v16  ;;  %v13594_v52 = vpop.f32.mrf.mxu1 }
 0x3e4   : > { %v13596_v17 = vpop.f32.mrf.mxu0 }
 0x3e5   : > { %14150 = vst [vmem:[#allocation48_spill] sm:$0xff] %v13596_v17  ;;  %v13598_v45 = vpop.f32.mrf.mxu1 }
 0x3e6   : > { %v13600_v23 = vpop.f32.mrf.mxu0 }
 0x3e7   : > { %14151 = vst [vmem:[#allocation49_spill] sm:$0xff] %v13600_v23  ;;  %v13602_v32 = vpop.f32.mrf.mxu1 }
 0x3e8   : > { %v13604_v44 = vpop.f32.mrf.mxu0 }
 0x3e9   : > { %14152 = vst [vmem:[#allocation50_spill] sm:$0xff] %v13604_v44  ;;  %v13606_v7 = vpop.f32.mrf.mxu1 }
 0x3ea   : > { %v13608_v63 = vpop.f32.mrf.mxu0 }
 0x3eb   : > { %14153 = vst [vmem:[#allocation51_spill] sm:$0xff] %v13608_v63  ;;  %v13610_v14 = vpop.f32.mrf.mxu1 }
 0x3ec   : > { %v13612_v31 = vpop.f32.mrf.mxu0 }
 0x3ed   : > { %14154 = vst [vmem:[#allocation52_spill] sm:$0xff] %v13612_v31  ;;  %v13614_v54 = vpop.f32.mrf.mxu1 }
 0x3ee   : > { %v13616_v61 = vpop.f32.mrf.mxu0 }
 0x3ef   : > { %14155 = vst [vmem:[#allocation53_spill] sm:$0xff] %v13616_v61  ;;  %v13618_v22 = vpop.f32.mrf.mxu1 }
 0x3f0   : > { %v13620_v34 = vpop.f32.mrf.mxu0 }
 0x3f1   : > { %14156 = vst [vmem:[#allocation54_spill] sm:$0xff] %v13620_v34  ;;  %v13622_v40 = vpop.f32.mrf.mxu1 }
 0x3f2   : > { %v13624_v15 = vpop.f32.mrf.mxu0 }
 0x3f3   : > { %14157 = vst [vmem:[#allocation55_spill] sm:$0xff] %v13624_v15  ;;  %v13626_v44 = vpop.f32.mrf.mxu1 }
 0x3f4   : > { %v13628_v39 = vpop.f32.mrf.mxu0 }
 0x3f5   : > { %14158 = vst [vmem:[#allocation56_spill] sm:$0xff] %v13628_v39  ;;  %v13630_v63 = vpop.f32.mrf.mxu1 }
 0x3f6   : > { %14159 = vst [vmem:[#allocation57_spill] sm:$0xff] %v13630_v63  ;;  %v13632_v49 = vpop.f32.mrf.mxu0 }
 0x3f7   : > { %14160 = vst [vmem:[#allocation58_spill] sm:$0xff] %v13632_v49  ;;  %v13634_v31 = vpop.f32.mrf.mxu1 }
 0x3f8   : > { %14161 = vst [vmem:[#allocation59_spill] sm:$0xff] %v13634_v31  ;;  %v9106_v23 = vpop.f32.mrf.mxu0 }
 0x3f9   : > { %v13636_v61 = vpop.f32.mrf.mxu1 }
 0x3fa   : > { %14162 = vst [vmem:[#allocation60_spill] sm:$0xff] %v13636_v61  ;;  %v9107_v17 = vpop.f32.mrf.mxu0 }
 0x3fb   : > { %v13638_v62 = vpop.f32.mrf.mxu1 }
 0x3fc   : > { %14163 = vst [vmem:[#allocation61_spill] sm:$0xff] %v13638_v62  ;;  %v9109_v34 = vpop.f32.mrf.mxu0 }
 0x3fd   : > { %v13640_v9 = vpop.f32.mrf.mxu1 }
 0x3fe   : > { %14164 = vst [vmem:[#allocation62_spill] sm:$0xff] %v13640_v9  ;;  %v9110_v15 = vpop.f32.mrf.mxu0 }
 0x3ff   : > { %v13642_v43 = vpop.f32.mrf.mxu1  ;;  %v9111_v63 = vadd.f32 %v9110_v15, %v9109_v34  ;;  %v5598_v15 = vadd.f32 %v13458_v2, %v13526_v4 }
 0x400   : > { %14165 = vst [vmem:[#allocation63_spill] sm:$0xff] %v13642_v43  ;;  %v9112_v16 = vpop.f32.mrf.mxu0 }
 0x401   : > { %v13644_v39 = vpop.f32.mrf.mxu1 }
 0x402   : > { %14166 = vst [vmem:[#allocation64_spill] sm:$0xff] %v13644_v39  ;;  %v9113_v0 = vpop.f32.mrf.mxu0  ;;  %v8951_v39 = vadd.f32 %v13538_v58, %v13532_v33  ;;  %v8954_v33 = vadd.f32 %v13544_v51, %v13540_v48  ;;  %v8957_v58 = vadd.f32 %v13550_v55, %v13546_v1  ;;  %v9034_v48 = vadd.f32 %v13590_v56, %v13586_v36 }
 0x403   : > { %v13646_v19 = vpop.f32.mrf.mxu1  ;;  %v9037_v51 = vadd.f32 %v13598_v45, %v13594_v52  ;;  %v9114_v2 = vadd.f32 %v9113_v0, %v9112_v16  ;;  %v4889_v36 = vmax.f32 %v13364_v25, 0.0  ;;  %v5603_v56 = vadd.f32 %v13483_v10, %v13526_v4  ;;  %v13713_v25 = vld [vmem:[%s14080_s8 + $0x2] ss:$0 sm:$0xff] }
 0x404   : > { %14167 = vst [vmem:[#allocation65_spill] sm:$0xff] %v13646_v19  ;;  %v9115_v49 = vpop.f32.mrf.mxu0  ;;  %v5743_v55 = vadd.f32 %v8957_v58, %v5598_v15  ;;  %v8963_v0 = vadd.f32 %v13562_v3, %v13558_v6  ;;  %v5608_v6 = vadd.f32 %v13497_v35, %v13526_v4  ;;  %v8966_v35 = vadd.f32 %v13568_v18, %v13564_v27 }
 0x405   : > { %v13648_v42 = vpop.f32.mrf.mxu1 }
 0x406   : > { %14168 = vst [vmem:[#allocation66_spill] sm:$0xff] %v13648_v42  ;;  %v9116_v47 = vpop.f32.mrf.mxu0  ;;  %v9031_v42 = vadd.f32 %v9030_v12, %v9029_v59  ;;  %v9108_v59 = vadd.f32 %v9107_v17, %v9106_v23  ;;  %v5888_v23 = vadd.f32 %v9037_v51, %v5743_v55  ;;  %v5753_v55 = vadd.f32 %v8963_v0, %v5608_v6  ;;  %v14176_v6 = vld [vmem:[#allocation43_spill] sm:$0xff] }
 0x407   : > { %v13650_v29 = vpop.f32.mrf.mxu1 }
 0x408   : > { %14169 = vst [vmem:[#allocation67_spill] sm:$0xff] %v13650_v29  ;;  %v9118_v61 = vpop.f32.mrf.mxu0  ;;  %v5588_v29 = vadd.f32 %v13398_v24, %v13526_v4  ;;  %v6018_v28 = vadd.f32 %v9108_v59, %v5873_v26 }
 0x409   : > { %v13652_v62 = vpop.f32.mrf.mxu1 }
 0x40a   : > { %14170 = vst [vmem:[#allocation68_spill] sm:$0xff] %v13652_v62  ;;  %v9119_v31 = vpop.f32.mrf.mxu0 }
 0x40b   : > { %v13654_v9 = vpop.f32.mrf.mxu1  ;;  %v9120_v16 = vadd.f32 %v9119_v31, %v9118_v61 }
 0x40c   : > { %14171 = vst [vmem:[#allocation69_spill] sm:$0xff] %v13654_v9  ;;  %v13656_v53 = vpop.f32.mrf.mxu0  ;;  %v5733_v9 = vadd.f32 %v8951_v39, %v5588_v29  ;;  %v5593_v39 = vadd.f32 %v13428_v30, %v13526_v4  ;;  %v8960_v30 = vadd.f32 %v13556_v21, %v13552_v38  ;;  %v9117_v29 = vadd.f32 %v9116_v47, %v9115_v49 }
 0x40d   : > { %v13658_v43 = vpop.f32.mrf.mxu1  ;;  %v4890_v49 = vmax.f32 %v13351_v50, 0.0 }
 0x40e   : > { %14172 = vst [vmem:[#allocation70_spill] sm:$0xff] %v13658_v43  ;;  %v13662_v19 = vpop.f32.mrf.mxu0  ;;  %v5878_v24 = vadd.f32 %v9031_v42, %v5733_v9  ;;  %v5738_v1 = vadd.f32 %v8954_v33, %v5593_v39  ;;  %v5748_v47 = vadd.f32 %v8960_v30, %v5603_v56  ;;  %v6033_v50 = vadd.f32 %v9117_v29, %v5888_v23 }
 0x40f   : > { %v13664_v11 = vpop.f32.mrf.mxu1  ;;  %v9043_v39 = vadd.f32 %v13614_v54, %v13610_v14  ;;  %v13738_v14 = vld [vmem:[%s14081_s9 + $0x2] ss:$0 sm:$0xff]  ;;  %v13743_v54 = vld [vmem:[%s14081_s9 + $0x1] ss:$0 sm:$0xff] }
 0x410   : > { %14173 = vst [vmem:[#allocation71_spill] sm:$0xff] %v13664_v11  ;;  %v13668_v46 = vpop.f32.mrf.mxu0  ;;  %v6023_v9 = vadd.f32 %v9111_v63, %v5878_v24  ;;  %v9040_v63 = vadd.f32 %v13606_v7, %v13602_v32  ;;  %v5883_v45 = vadd.f32 %v9034_v48, %v5738_v1  ;;  %v13718_v7 = vld [vmem:[%s14080_s8 + $0x1] ss:$0 sm:$0xff]  ;;  %v4891_v1 = vmax.f32 %v13404_v5, 0.0 }
 0x411   : > { %v13670_v62 = vpop.f32.mrf.mxu1  ;;  %v4910_v59 = vmul.f32 %v13718_v7, %v4889_v36  ;;  %v9046_v36 = vadd.f32 %v13622_v40, %v13618_v22 }
 0x412   : > { %v13673_v43 = vpop.f32.mrf.mxu0  ;;  %v6028_v24 = vadd.f32 %v9114_v2, %v5883_v45  ;;  %v5893_v3 = vadd.f32 %v9040_v63, %v5748_v47  ;;  %v4912_v40 = vmul.f32 %v13718_v7, %v4891_v1 }
 0x413   : > { %v13679_v11 = vpop.f32.mrf.mxu1  ;;  %v4931_v18 = vadd.f32 %v13743_v54, %v4910_v59  ;;  %v9126_v22 = vadd.f32 %v13673_v43, %v13668_v46  ;;  %v14175_v59 = vld [vmem:[#allocation42_spill] sm:$0xff] }
 0x414   : > { %v13681_v12 = vpop.f32.mrf.mxu0  ;;  %v6038_v29 = vadd.f32 %v9120_v16, %v5893_v3  ;;  %v8972_v3 = vadd.f32 %v14176_v6, %v14175_v59  ;;  %v14189_v6 = vld [vmem:[#allocation23_spill] sm:$0xff] }
 0x415   : > { %v13687_v34 = vpop.f32.mrf.mxu1 }
 0x416   : > { %v13694_v42 = vpop.f32.mrf.mxu0 }
 0x417   : > { %v9548_v20 = vpop.f32.mrf.mxu1 }
 0x418   : > { %v13698_v17 = vpop.f32.mrf.mxu0  ;;  %v6168_v60 = vadd.f32 %v9548_v20, %v6023_v9  ;;  %v4911_v9 = vmul.f32 %v13718_v7, %v4890_v49  ;;  %v9123_v20 = vadd.f32 %v13662_v19, %v13656_v53 }
 0x419   : > { %v6162_v52 = vpop.f32.mrf.mxu1 }
 0x41a   : > { %v6242_v33 = vmax.f32 %v6168_v60, 0.0  ;;  %v13705_v38 = vpop.f32.mrf.mxu0  ;;  %v6163_v21 = vadd.f32 %v6162_v52, %v6018_v28  ;;  %v5613_v60 = vadd.f32 %v13509_v13, %v13526_v4  ;;  %v5898_v28 = vadd.f32 %v9043_v39, %v5753_v55 }
 0x41b   : > { %v9551_v10 = vpop.f32.mrf.mxu1  ;;  %v4892_v13 = vmax.f32 %v13390_v8, 0.0  ;;  %v4932_v0 = vadd.f32 %v13743_v54, %v4911_v9  ;;  %v14178_v9 = vld [vmem:[#allocation34_spill] sm:$0xff] }
 0x41c   : > { %v6241_v32 = vmax.f32 %v6163_v21, 0.0  ;;  %v13720_v58 = vpop.f32.mrf.mxu0  ;;  %v6263_v26 = vmul.f32 %v13713_v25, %v6242_v33  ;;  %v6178_v31 = vadd.f32 %v9551_v10, %v6033_v50  ;;  %v5758_v23 = vadd.f32 %v8966_v35, %v5613_v60  ;;  %v14179_v35 = vld [vmem:[#allocation59_spill] sm:$0xff]  ;;  %v14182_v60 = vld [vmem:[#allocation45_spill] sm:$0xff] }
 0x41d   : > { %v6172_v15 = vpop.f32.mrf.mxu1  ;;  %v8969_v33 = vadd.f32 %v13574_v41, %v13570_v57  ;;  %v6043_v49 = vadd.f32 %v9123_v20, %v5898_v28  ;;  %v5618_v10 = vadd.f32 %v13518_v37, %v13526_v4  ;;  %v14174_v57 = vld [vmem:[#allocation57_spill] sm:$0xff]  ;;  %v4913_v37 = vmul.f32 %v13718_v7, %v4892_v13  ;;  %v14184_v13 = vld [vmem:[#allocation35_spill] sm:$0xff] }
 0x41e   : > { %v6262_v48 = vmul.f32 %v13713_v25, %v6241_v32  ;;  %v13729_v61 = vpop.f32.mrf.mxu0  ;;  %v6173_v51 = vadd.f32 %v6172_v15, %v6028_v24  ;;  %v6244_v63 = vmax.f32 %v6178_v31, 0.0  ;;  %v6284_v45 = vadd.f32 %v13738_v14, %v6263_v26  ;;  %v14177_v31 = vld [vmem:[#allocation29_spill] sm:$0xff] }
 0x41f   : > { %v9554_v30 = vpop.f32.mrf.mxu1  ;;  %v5903_v16 = vadd.f32 %v9046_v36, %v5758_v23  ;;  %v9049_v41 = vadd.f32 %v14174_v57, %v13626_v44  ;;  %v5763_v46 = vadd.f32 %v8969_v33, %v5618_v10  ;;  %v4933_v15 = vadd.f32 %v13743_v54, %v4912_v40 }
 0x420   : > { %v6243_v2 = vmax.f32 %v6173_v51, 0.0  ;;  %v13747_v5 = vpop.f32.mrf.mxu0  ;;  %v6283_v27 = vadd.f32 %v13738_v14, %v6262_v48  ;;  %v6265_v8 = vmul.f32 %v13713_v25, %v6244_v63  ;;  %v6188_v32 = vadd.f32 %v9554_v30, %v6043_v49  ;;  %v14180_v30 = vld [vmem:[#allocation60_spill] sm:$0xff]  ;;  %v14185_v49 = vld [vmem:[#allocation61_spill] sm:$0xff] }
 0x421   : > { %v6182_v56 = vpop.f32.mrf.mxu1  ;;  %v9129_v44 = vadd.f32 %v13694_v42, %v13681_v12  ;;  %v6048_v26 = vadd.f32 %v9126_v22, %v5903_v16  ;;  %v4893_v51 = vmax.f32 %v14177_v31, 0.0  ;;  %v5623_v1 = vadd.f32 %v14178_v9, %v13526_v4  ;;  %v14181_v42 = vld [vmem:[#allocation44_spill] sm:$0xff]  ;;  %v14191_v31 = vld [vmem:[#allocation63_spill] sm:$0xff] }
 0x422   : > { %v6264_v52 = vmul.f32 %v13713_v25, %v6243_v2  ;;  %v13756_v53 = vpop.f32.mrf.mxu0  ;;  %v6183_v19 = vadd.f32 %v6182_v56, %v6038_v29  ;;  %6659 = vmatprep.mubr.f32.mxu1 %v6283_v27  ;;  %v5908_v55 = vadd.f32 %v9049_v41, %v5763_v46  ;;  %v9052_v20 = vadd.f32 %v14180_v30, %v14179_v35 }
 0x423   : > { %v9557_v21 = vpop.f32.mrf.mxu1  ;;  %6660 = vmatmul.mubr.f32.vlgmr.msra.gmra.mxu1 %v4931_v18  ;;  %v6246_v2 = vmax.f32 %v6188_v32, 0.0  ;;  %v6286_v18 = vadd.f32 %v13738_v14, %v6265_v8  ;;  %v5768_v12 = vadd.f32 %v8972_v3, %v5623_v1  ;;  %v8975_v28 = vadd.f32 %v14182_v60, %v14181_v42 }
 0x424   : > { %v13765_v47 = vpop.f32.mrf.mxu0  ;;  %6664 = vmatprep.mubr.f32.mxu1 %v6284_v45  ;;  %v6245_v50 = vmax.f32 %v6183_v19, 0.0  ;;  %v6285_v43 = vadd.f32 %v13738_v14, %v6264_v52  ;;  %v4934_v63 = vadd.f32 %v13743_v54, %v4913_v37  ;;  %v14183_v52 = vld [vmem:[#allocation28_spill] sm:$0xff]  ;;  %v9132_v45 = vadd.f32 %v13705_v38, %v13698_v17  ;;  %v14188_v17 = vld [vmem:[#allocation47_spill] sm:$0xff] }
 0x425   : > { %v6192_v39 = vpop.f32.mrf.mxu1  ;;  %v4894_v19 = vmax.f32 %v14183_v52, 0.0  ;;  %v6053_v23 = vadd.f32 %v9129_v44, %v5908_v55  ;;  %v4914_v33 = vmul.f32 %v13718_v7, %v4893_v51  ;;  %v5628_v40 = vadd.f32 %v14184_v13, %v13526_v4  ;;  %v14192_v51 = vld [vmem:[#allocation64_spill] sm:$0xff]  ;;  %v14196_v52 = vld [vmem:[#allocation37_spill] sm:$0xff] }
 0x426   : > { %v13773_v24 = vpop.f32.mrf.mxu0  ;;  %v6266_v29 = vmul.f32 %v13713_v25, %v6245_v50  ;;  %v6193_v27 = vadd.f32 %v6192_v39, %v6048_v26  ;;  %v5913_v22 = vadd.f32 %v9052_v20, %v5768_v12  ;;  %v6267_v16 = vmul.f32 %v13713_v25, %v6246_v2  ;;  %v14187_v50 = vld [vmem:[#allocation46_spill] sm:$0xff]  ;;  %v14193_v20 = vld [vmem:[#allocation27_spill] sm:$0xff] }
 0x427   : > { %6665 = vmatmul.mubr.f32.gmra.mxu1 %v4932_v0  ;;  %v9560_v36 = vpop.f32.mrf.mxu1  ;;  %v14186_v0 = vld [vmem:[#allocation62_spill] sm:$0xff]  ;;  %v6198_v57 = vadd.f32 %v9557_v21, %v6053_v23  ;;  %v5773_v32 = vadd.f32 %v8975_v28, %v5628_v40  ;;  %v8978_v38 = vadd.f32 %v14188_v17, %v14187_v50  ;;  %v4915_v59 = vmul.f32 %v13718_v7, %v4894_v19  ;;  %v14197_v23 = vld [vmem:[#allocation65_spill] sm:$0xff]  ;;  %v14201_v17 = vld [vmem:[#allocation51_spill] sm:$0xff] }
 0x428   : > { %v13782_v48 = vpop.f32.mrf.mxu0  ;;  %6669 = vmatprep.mubr.f32.mxu1 %v6285_v43  ;;  %v9055_v10 = vadd.f32 %v14186_v0, %v14185_v49  ;;  %v6247_v41 = vmax.f32 %v6193_v27, 0.0  ;;  %v6287_v8 = vadd.f32 %v13738_v14, %v6266_v29  ;;  %v4895_v3 = vmax.f32 %v14189_v6, 0.0  ;;  %v14195_v29 = vld [vmem:[#allocation49_spill] sm:$0xff]  ;;  %v14200_v50 = vld [vmem:[#allocation50_spill] sm:$0xff]  ;;  %v14203_v6 = vld [vmem:[#allocation52_spill] sm:$0xff] }
 0x429   : > { %v6202_v43 = vpop.f32.mrf.mxu1  ;;  %v9135_v39 = vadd.f32 %v13729_v61, %v13720_v58  ;;  %v6058_v37 = vadd.f32 %v9132_v45, %v5913_v22  ;;  %v4935_v21 = vadd.f32 %v13743_v54, %v4914_v33  ;;  %v9058_v9 = vadd.f32 %v14192_v51, %v14191_v31  ;;  %v14194_v61 = vld [vmem:[#allocation48_spill] sm:$0xff]  ;;  %v14198_v33 = vld [vmem:[#allocation66_spill] sm:$0xff] }
 0x42a   : > { %v13793_v56 = vpop.f32.mrf.mxu0  ;;  %v5918_v26 = vadd.f32 %v9055_v10, %v5773_v32  ;;  %v6248_v1 = vmax.f32 %v6198_v57, 0.0  ;;  %v6268_v55 = vmul.f32 %v13713_v25, %v6247_v41  ;;  %v6288_v30 = vadd.f32 %v13738_v14, %v6267_v16  ;;  %v14207_v51 = vld [vmem:[#allocation26_spill] sm:$0xff] }
 0x42b   : > { %6670 = vmatmul.mubr.f32.gmra.mxu1 %v4933_v15  ;;  %v14190_v15 = vld [vmem:[#allocation36_spill] sm:$0xff]  ;;  %v6203_v35 = vadd.f32 %v6202_v43, %v6058_v37  ;;  %v4896_v2 = vmax.f32 %v14193_v20, 0.0  ;;  %v8981_v27 = vadd.f32 %v14195_v29, %v14194_v61  ;;  %v4916_v42 = vmul.f32 %v13718_v7, %v4895_v3  ;;  %v14202_v43 = vld [vmem:[#allocation38_spill] sm:$0xff]  ;;  %v14204_v3 = vld [vmem:[#allocation53_spill] sm:$0xff] }
 0x42c   : > { %6674 = vmatprep.mubr.f32.mxu1 %v6286_v18  ;;  %v13808_v46 = vpop.f32.mrf.mxu0  ;;  %v5633_v44 = vadd.f32 %v14190_v15, %v13526_v4  ;;  %v9563_v18 = vpop.f32.mrf.mxu1  ;;  %v9138_v60 = vadd.f32 %v13756_v53, %v13747_v5  ;;  %v6063_v28 = vadd.f32 %v9135_v39, %v5918_v26  ;;  %v5638_v19 = vadd.f32 %v14196_v52, %v13526_v4  ;;  %v14212_v52 = vld [vmem:[#allocation55_spill] sm:$0xff] }
 0x42d   : > { %v9061_v13 = vadd.f32 %v14198_v33, %v14197_v23  ;;  %v6269_v40 = vmul.f32 %v13713_v25, %v6248_v1  ;;  %v6249_v49 = vmax.f32 %v6203_v35, 0.0  ;;  %v6289_v0 = vadd.f32 %v13738_v14, %v6268_v55  ;;  %v14208_v1 = vld [vmem:[#allocation39_spill] sm:$0xff]  ;;  %v14209_v35 = vld [vmem:[#allocation69_spill] sm:$0xff] }
 0x42e   : > { %v5778_v58 = vadd.f32 %v8978_v38, %v5633_v44  ;;  %v9146_v12 = vpop.f32.mrf.mxu0  ;;  %v6208_v22 = vadd.f32 %v9560_v36, %v6063_v28  ;;  %v4917_v10 = vmul.f32 %v13718_v7, %v4896_v2  ;;  %v5783_v5 = vadd.f32 %v8981_v27, %v5638_v19  ;;  %v6212_v16 = vpop.f32.mrf.mxu1 }
 0x42f   : > { %6675 = vmatmul.mubr.f32.gmra.mxu1 %v4934_v63  ;;  %v4936_v63 = vadd.f32 %v13743_v54, %v4915_v59  ;;  %v9141_v53 = vadd.f32 %v13773_v24, %v13765_v47  ;;  %v4937_v41 = vadd.f32 %v13743_v54, %v4916_v42  ;;  %v8984_v38 = vadd.f32 %v14201_v17, %v14200_v50  ;;  %v14205_v47 = vld [vmem:[#allocation67_spill] sm:$0xff]  ;;  %v14206_v24 = vld [vmem:[#allocation68_spill] sm:$0xff]  ;;  %v14217_v50 = vld [vmem:[#allocation58_spill] sm:$0xff] }
 0x430   : > { %6679 = vmatprep.mubr.f32.mxu1 %v6287_v8  ;;  %v5923_v45 = vadd.f32 %v9058_v9, %v5778_v58  ;;  %v9148_v57 = vpop.f32.mrf.mxu0  ;;  %v14199_v8 = vld [vmem:[#allocation24_spill] sm:$0xff]  ;;  %v5643_v59 = vadd.f32 %v14202_v43, %v13526_v4  ;;  %v8987_v39 = vadd.f32 %v14204_v3, %v14203_v6  ;;  %v5928_v37 = vadd.f32 %v9061_v13, %v5783_v5  ;;  %v9566_v58 = vpop.f32.mrf.mxu1 }
 0x431   : > { %v4897_v32 = vmax.f32 %v14199_v8, 0.0  ;;  %v6250_v15 = vmax.f32 %v6208_v22, 0.0  ;;  %v6270_v44 = vmul.f32 %v13713_v25, %v6249_v49  ;;  %v6290_v31 = vadd.f32 %v13738_v14, %v6269_v40 }
 0x432   : > { %v6068_v36 = vadd.f32 %v9138_v60, %v5923_v45  ;;  %v4898_v9 = vmax.f32 %v14207_v51, 0.0  ;;  %v5648_v55 = vadd.f32 %v14208_v1, %v13526_v4  ;;  %v6073_v2 = vadd.f32 %v9141_v53, %v5928_v37  ;;  %v9149_v61 = vpop.f32.mrf.mxu0 }
 0x433   : > { %6680 = vmatmul.mubr.f32.gmra.mxu1 %v4935_v21  ;;  %v9064_v21 = vadd.f32 %v14206_v24, %v14205_v47  ;;  %v4938_v29 = vadd.f32 %v13743_v54, %v4917_v10  ;;  %v4918_v27 = vmul.f32 %v13718_v7, %v4897_v32  ;;  %v5788_v42 = vadd.f32 %v8984_v38, %v5643_v59  ;;  %v14216_v32 = vld [vmem:[#allocation56_spill] sm:$0xff] }
 0x434   : > { %6684 = vmatprep.mubr.f32.mxu1 %v6288_v30  ;;  %v6213_v26 = vadd.f32 %v6212_v16, %v6068_v36  ;;  %v14210_v30 = vld [vmem:[#allocation70_spill] sm:$0xff]  ;;  %v9144_v60 = vadd.f32 %v13793_v56, %v13782_v48  ;;  %v5793_v28 = vadd.f32 %v8987_v39, %v5648_v55  ;;  %v6218_v45 = vadd.f32 %v9563_v18, %v6073_v2  ;;  %v6222_v56 = vpop.f32.mrf.mxu1  ;;  %v9151_v5 = vpop.f32.mrf.mxu0  ;;  %v14214_v18 = vld [vmem:[#allocation25_spill] sm:$0xff] }
 0x435   : > { %v9067_v20 = vadd.f32 %v14210_v30, %v14209_v35  ;;  %v9147_v23 = vadd.f32 %v9146_v12, %v13808_v46  ;;  %v5933_v33 = vadd.f32 %v9064_v21, %v5788_v42  ;;  %v6271_v13 = vmul.f32 %v13713_v25, %v6250_v15  ;;  %v14215_v46 = vld [vmem:[#allocation71_spill] sm:$0xff]  ;;  %v14218_v39 = vld [vmem:[#allocation41_spill] sm:$0xff]  ;;  %v14219_v21 = vld [vmem:[#allocation22_spill] sm:$0xff] }
 0x436   : > { %v6251_v40 = vmax.f32 %v6213_v26, 0.0  ;;  %v6291_v22 = vadd.f32 %v13738_v14, %v6270_v44  ;;  %v4919_v49 = vmul.f32 %v13718_v7, %v4898_v9  ;;  %v4939_v53 = vadd.f32 %v13743_v54, %v4918_v27  ;;  %v9569_v47 = vpop.f32.mrf.mxu1  ;;  %v9152_v24 = vpop.f32.mrf.mxu0 }
 0x437   : > { %6685 = vmatmul.mubr.f32.gmra.mxu1 %v4936_v63  ;;  %v14211_v63 = vld [vmem:[#allocation54_spill] sm:$0xff]  ;;  %v5938_v48 = vadd.f32 %v9067_v20, %v5793_v28  ;;  %v4899_v16 = vmax.f32 %v14214_v18, 0.0  ;;  %v9070_v12 = vadd.f32 %v13670_v62, %v14215_v46  ;;  %v8993_v17 = vadd.f32 %v14217_v50, %v14216_v32 }
 0x438   : > { %6689 = vmatprep.mubr.f32.mxu1 %v6289_v0  ;;  %v8990_v19 = vadd.f32 %v14212_v52, %v14211_v63  ;;  %v14213_v0 = vld [vmem:[#allocation40_spill] sm:$0xff]  ;;  %v6252_v38 = vmax.f32 %v6218_v45, 0.0  ;;  %v6272_v43 = vmul.f32 %v13713_v25, %v6251_v40  ;;  %v9150_v59 = vadd.f32 %v9149_v61, %v9148_v57  ;;  %v6232_v30 = vpop.f32.mrf.mxu1  ;;  %v14221_v63 = vld [vmem:[#allocation30_spill] sm:$0xff] }
 0x439   : > { %v5653_v10 = vadd.f32 %v14213_v0, %v13526_v4  ;;  %v6083_v36 = vadd.f32 %v9147_v23, %v5938_v48  ;;  %v6292_v3 = vadd.f32 %v13738_v14, %v6271_v13  ;;  %v5658_v37 = vadd.f32 %v14218_v39, %v13526_v4 }
 0x43a   : > { %v4940_v62 = vadd.f32 %v13743_v54, %v4919_v49  ;;  %v4900_v15 = vmax.f32 %v14219_v21, 0.0  ;;  %v9073_v26 = vadd.f32 %v13687_v34, %v13679_v11  ;;  %v4920_v57 = vmul.f32 %v13718_v7, %v4899_v16  ;;  %v14220_v34 = vld [vmem:[#allocation31_spill] sm:$0xff]  ;;  %v14222_v49 = vld [vmem:[#allocation33_spill] sm:$0xff] }
 0x43b   : > { %6690 = vmatmul.mubr.f32.gmra.mxu1 %v4937_v41  ;;  %v6078_v41 = vadd.f32 %v9144_v60, %v5933_v33  ;;  %v5798_v8 = vadd.f32 %v8990_v19, %v5653_v10  ;;  %v6273_v51 = vmul.f32 %v13713_v25, %v6252_v38  ;;  %v6228_v9 = vadd.f32 %v9566_v58, %v6083_v36 }
 0x43c   : > { %6694 = vmatprep.mubr.f32.mxu1 %v6290_v31  ;;  %v5803_v31 = vadd.f32 %v8993_v17, %v5658_v37  ;;  %v9153_v4 = vadd.f32 %v9152_v24, %v9151_v5  ;;  %v6293_v35 = vadd.f32 %v13738_v14, %v6272_v43  ;;  %v4921_v2 = vmul.f32 %v13718_v7, %v4900_v15  ;;  %v9218_v17 = vpop.f32.mrf.mxu0 }
 0x43d   : > { %v6223_v6 = vadd.f32 %v6222_v56, %v6078_v41  ;;  %v5943_v44 = vadd.f32 %v9070_v12, %v5798_v8  ;;  %v4941_v11 = vadd.f32 %v13743_v54, %v4920_v57  ;;  %v4901_v61 = vmax.f32 %v14220_v34, 0.0 }
 0x43e   : > { %v5948_v20 = vadd.f32 %v9073_v26, %v5803_v31  ;;  %v6254_v27 = vmax.f32 %v6228_v9, 0.0  ;;  %v4942_v28 = vadd.f32 %v13743_v54, %v4921_v2  ;;  %v4902_v52 = vmax.f32 %v14221_v63, 0.0  ;;  %v9219_v38 = vpop.f32.mrf.mxu0 }
 0x43f   : > { %6695 = vmatmul.mubr.f32.gmra.mxu1 %v4938_v29  ;;  %v6253_v1 = vmax.f32 %v6223_v6, 0.0  ;;  %v6088_v55 = vadd.f32 %v9150_v59, %v5943_v44  ;;  %v6294_v29 = vadd.f32 %v13738_v14, %v6273_v51  ;;  %v4922_v19 = vmul.f32 %v13718_v7, %v4901_v61  ;;  %v13918_v44 = vld [vmem:[%s14224_s24] ss:$0 sm:$0xff]  ;;  %s14228_s24 = sand.u32 1, %s9745_s26  }
 0x440   : > { %6699 = vmatprep.mubr.f32.mxu1 %v6291_v22  ;;  %v6093_v42 = vadd.f32 %v9153_v4, %v5948_v20  ;;  %v6275_v45 = vmul.f32 %v13713_v25, %v6254_v27  ;;  %v4923_v40 = vmul.f32 %v13718_v7, %v4902_v52  ;;  %v4903_v0 = vmax.f32 %v14222_v49, 0.0  ;;  %v9221_v36 = vpop.f32.mrf.mxu0  ;;  %v13928_v20 = vld [vmem:[%s14083_s11] ss:$0 sm:$0xff]  ;;  %s14021_s17 = scalar_lea.sflag [#allocation7], %s14228_s24 }
 0x441   : > { %v6274_v58 = vmul.f32 %v13713_v25, %v6253_v1  ;;  %v6233_v60 = vadd.f32 %v6232_v30, %v6088_v55  ;;  %v4943_v22 = vadd.f32 %v13743_v54, %v4922_v19  ;;  %v9220_v15 = vadd.f32 %v9219_v38, %v9218_v17  ;;  %v13936_v27 = vld [vmem:[%s14084_s12] ss:$0 sm:$0xff] }
 0x442   : > { %v6238_v23 = vadd.f32 %v9569_v47, %v6093_v42  ;;  %v6296_v56 = vadd.f32 %v13738_v14, %v6275_v45  ;;  %v4944_v5 = vadd.f32 %v13743_v54, %v4923_v40  ;;  %v4924_v16 = vmul.f32 %v13718_v7, %v4903_v0  ;;  %v9222_v43 = vpop.f32.mrf.mxu0 }
 0x443   : > { %6700 = vmatmul.mubr.f32.gmra.mxu1 %v4939_v53  ;;  %v6255_v33 = vmax.f32 %v6233_v60, 0.0  ;;  %v6295_v13 = vadd.f32 %v13738_v14, %v6274_v58  ;;  %v14223_v53 = vld [vmem:[#allocation32_spill] sm:$0xff]  ;;  %v6517_v51 = vadd.f32 %v9220_v15, %v13918_v44  ;;  %v9223_v9 = vadd.f32 %v9222_v43, %v9221_v36 }
 0x444   : > { %6704 = vmatprep.mubr.f32.mxu1 %v6292_v3  ;;  %v6256_v10 = vmax.f32 %v6238_v23, 0.0  ;;  %v4904_v18 = vmax.f32 %v14223_v53, 0.0  ;;  %v4945_v8 = vadd.f32 %v13743_v54, %v4924_v16  ;;  %v9224_v59 = vpop.f32.mrf.mxu0 }
 0x445   : > { %v6276_v48 = vmul.f32 %v13713_v25, %v6255_v33 }
 0x446   : > { %v6277_v12 = vmul.f32 %v13713_v25, %v6256_v10  ;;  %v4925_v41 = vmul.f32 %v13718_v7, %v4904_v18  ;;  %v9225_v25 = vpop.f32.mrf.mxu0 }
 0x447   : > { %6705 = vmatmul.mubr.f32.gmra.mxu1 %v4940_v62  ;;  %v6297_v46 = vadd.f32 %v13738_v14, %v6276_v48  ;;  %v9226_v30 = vadd.f32 %v9225_v25, %v9224_v59 }
 0x448   : > { %6709 = vmatprep.mubr.f32.mxu1 %v6293_v35  ;;  %v6298_v32 = vadd.f32 %v13738_v14, %v6277_v12  ;;  %v4946_v50 = vadd.f32 %v13743_v54, %v4925_v41  ;;  %v9227_v6 = vpop.f32.mrf.mxu0 }
 0x44a   : > { %v9228_v3 = vpop.f32.mrf.mxu0 }
 0x44b   : > { %6710 = vmatmul.mubr.f32.gmra.mxu1 %v4941_v11  ;;  %v6522_v11 = vadd.f32 %v9223_v9, %v13918_v44  ;;  %v9229_v52 = vadd.f32 %v9228_v3, %v9227_v6 }
 0x44c   : > { %6714 = vmatprep.mubr.f32.mxu1 %v6294_v29  ;;  %v9230_v39 = vpop.f32.mrf.mxu0 }
 0x44d   : > { %v6532_v10 = vadd.f32 %v9229_v52, %v13918_v44 }
 0x44e   : > { %v9231_v7 = vpop.f32.mrf.mxu0 }
 0x44f   : > { %6715 = vmatmul.mubr.f32.gmra.mxu1 %v4942_v28  ;;  %v6527_v28 = vadd.f32 %v9226_v30, %v13918_v44  ;;  %v9232_v49 = vadd.f32 %v9231_v7, %v9230_v39 }
 0x450   : > { %6719 = vmatprep.mubr.f32.mxu1 %v6295_v13  ;;  %v9233_v37 = vpop.f32.mrf.mxu0 }
 0x451   : > { %v6537_v12 = vadd.f32 %v9232_v49, %v13918_v44 }
 0x452   : > { %v9234_v47 = vpop.f32.mrf.mxu0 }
 0x453   : > { %6720 = vmatmul.mubr.f32.gmra.mxu1 %v4943_v22 }
 0x454   : > { %6724 = vmatprep.mubr.f32.mxu1 %v6296_v56  ;;  %v9236_v24 = vpop.f32.mrf.mxu0 }
 0x456   : > { %v9237_v14 = vpop.f32.mrf.mxu0 }
 0x457   : > { %6725 = vmatmul.mubr.f32.gmra.mxu1 %v4944_v5  ;;  %v9238_v25 = vadd.f32 %v9237_v14, %v9236_v24 }
 0x458   : > { %6729 = vmatprep.mubr.f32.mxu1 %v6297_v46  ;;  %v13907_v62 = vpop.f32.mrf.mxu0 }
 0x45a   : > { %v13909_v21 = vpop.f32.mrf.mxu0 }
 0x45b   : > { %6730 = vmatmul.mubr.f32.gmra.mxu1 %v4945_v8  ;;  %v9235_v8 = vadd.f32 %v9234_v47, %v9233_v37  ;;  %v9241_v24 = vadd.f32 %v13909_v21, %v13907_v62 }
 0x45c   : > { %6734 = vmatprep.mubr.f32.mxu1 %v6298_v32  ;;  %v13911_v54 = vpop.f32.mrf.mxu0 }
 0x45d   : > { %v6542_v3 = vadd.f32 %v9235_v8, %v13918_v44 }
 0x45e   : > { %v13920_v26 = vpop.f32.mrf.mxu0 }
 0x45f   : > { %6735 = vmatmul.mubr.f32.gmra.mxu1 %v4946_v50 }
 0x460   : > { %v13923_v4 = vpop.f32.mrf.mxu0 }
 0x462   : > { %v13931_v29 = vpop.f32.mrf.mxu0 }
 0x464   : > { %v13941_v33 = vpop.f32.mrf.mxu0 }
 0x466   : > { %v9249_v53 = vpop.f32.mrf.mxu0 }
 0x468   : > { %v9251_v38 = vpop.f32.mrf.mxu0 }
 0x46a   : > { %v9252_v47 = vpop.f32.mrf.mxu0 }
 0x4e3   : > { %v9298_v57 = vpop.f32.mrf.mxu1 }
 0x4e5   : > { %v9299_v31 = vpop.f32.mrf.mxu1 }
 0x4e6   : > { %v9300_v1 = vadd.f32 %v9299_v31, %v9298_v57 }
 0x4e7   : > { %v9301_v55 = vpop.f32.mrf.mxu1 }
 0x4e8   : > { %v6662_v35 = vadd.f32 %v9300_v1, %v6517_v51  ;;  %v6547_v51 = vadd.f32 %v9238_v25, %v13918_v44 }
 0x4e9   : > { %v9302_v2 = vpop.f32.mrf.mxu1 }
 0x4ea   : > { %v6740_v34 = vmax.f32 %v6662_v35, 0.0  ;;  %v9303_v61 = vadd.f32 %v9302_v2, %v9301_v55  ;;  %v9254_v35 = vpop.f32.mrf.mxu0 }
 0x4eb   : > { %v9304_v58 = vpop.f32.mrf.mxu1 }
 0x4ec   : > { %v6763_v42 = vmul.f32 %v13928_v20, %v6740_v34  ;;  %v6667_v60 = vadd.f32 %v9303_v61, %v6522_v11  ;;  %v9244_v34 = vadd.f32 %v13920_v26, %v13911_v54  ;;  %v9247_v54 = vadd.f32 %v13931_v29, %v13923_v4 }
 0x4ed   : > { %v9305_v63 = vpop.f32.mrf.mxu1 }
 0x4ee   : > { %v6786_v19 = vadd.f32 %v13936_v27, %v6763_v42  ;;  %v6741_v45 = vmax.f32 %v6667_v60, 0.0  ;;  %v9306_v23 = vadd.f32 %v9305_v63, %v9304_v58  ;;  %v6552_v58 = vadd.f32 %v9241_v24, %v13918_v44  ;;  %v9255_v60 = vpop.f32.mrf.mxu0 }
 0x4ef   : > { %v9307_v13 = vpop.f32.mrf.mxu1  ;;  %v9256_v25 = vadd.f32 %v9255_v60, %v9254_v35 }
 0x4f0   : > { %6802 = vst [vmem:[%s9931_s25] sm:$0xff] %v6786_v19  ;;  %v6764_v40 = vmul.f32 %v13928_v20, %v6741_v45  ;;  %v6672_v22 = vadd.f32 %v9306_v23, %v6527_v28  ;;  %v6557_v19 = vadd.f32 %v9244_v34, %v13918_v44 }
 0x4f1   : > { %v9308_v0 = vpop.f32.mrf.mxu1 }
 0x4f2   : > { %v6787_v48 = vadd.f32 %v13936_v27, %v6764_v40  ;;  %v6742_v56 = vmax.f32 %v6672_v22, 0.0  ;;  %v9309_v5 = vadd.f32 %v9308_v0, %v9307_v13  ;;  %v9257_v40 = vpop.f32.mrf.mxu0 }
 0x4f3   : > { %v9310_v18 = vpop.f32.mrf.mxu1 }
 0x4f4   : > { %6803 = vst [vmem:[%s9931_s25 + $0x8] sm:$0xff] %v6787_v48  ;;  %v6765_v16 = vmul.f32 %v13928_v20, %v6742_v56  ;;  %v6677_v46 = vadd.f32 %v9309_v5, %v6532_v10  ;;  %v9250_v10 = vadd.f32 %v9249_v53, %v13941_v33  ;;  %v6562_v56 = vadd.f32 %v9247_v54, %v13918_v44 }
 0x4f5   : > { %v9311_v41 = vpop.f32.mrf.mxu1 }
 0x4f6   : > { %v6788_v32 = vadd.f32 %v13936_v27, %v6765_v16  ;;  %v6743_v50 = vmax.f32 %v6677_v46, 0.0  ;;  %v9312_v17 = vadd.f32 %v9311_v41, %v9310_v18  ;;  %v9258_v18 = vpop.f32.mrf.mxu0  ;;  %v6567_v41 = vadd.f32 %v9250_v10, %v13918_v44 }
 0x4f7   : > { %v9313_v36 = vpop.f32.mrf.mxu1 }
 0x4f8   : > { %6804 = vst [vmem:[%s9931_s25 + $0x10] sm:$0xff] %v6788_v32  ;;  %v6766_v43 = vmul.f32 %v13928_v20, %v6743_v50  ;;  %v6682_v59 = vadd.f32 %v9312_v17, %v6537_v12  ;;  %v9253_v32 = vadd.f32 %v9252_v47, %v9251_v38  ;;  %v9260_v17 = vpop.f32.mrf.mxu0 }
 0x4f9   : > { %v9314_v6 = vpop.f32.mrf.mxu1 }
 0x4fa   : > { %v6789_v39 = vadd.f32 %v13936_v27, %v6766_v43  ;;  %v6744_v7 = vmax.f32 %v6682_v59, 0.0  ;;  %v9315_v37 = vadd.f32 %v9314_v6, %v9313_v36 }
 0x4fb   : > { %v9316_v15 = vpop.f32.mrf.mxu1 }
 0x4fc   : > { %6805 = vst [vmem:[%s9931_s25 + $0x18] sm:$0xff] %v6789_v39  ;;  %v6767_v57 = vmul.f32 %v13928_v20, %v6744_v7  ;;  %v6687_v31 = vadd.f32 %v9315_v37, %v6542_v3  ;;  %v6572_v3 = vadd.f32 %v9253_v32, %v13918_v44  ;;  %v9261_v37 = vpop.f32.mrf.mxu0 }
 0x4fd   : > { %v9317_v9 = vpop.f32.mrf.mxu1 }
 0x4fe   : > { %v6790_v14 = vadd.f32 %v13936_v27, %v6767_v57  ;;  %v6745_v1 = vmax.f32 %v6687_v31, 0.0  ;;  %v9318_v55 = vadd.f32 %v9317_v9, %v9316_v15  ;;  %v6577_v31 = vadd.f32 %v9256_v25, %v13918_v44 }
 0x4ff   : > { %v9319_v30 = vpop.f32.mrf.mxu1  ;;  %v9259_v9 = vadd.f32 %v9258_v18, %v9257_v40 }
 0x500   : > { %6806 = vst [vmem:[%s9931_s25 + $0x20] sm:$0xff] %v6790_v14  ;;  %v6768_v2 = vmul.f32 %v13928_v20, %v6745_v1  ;;  %v6692_v11 = vadd.f32 %v9318_v55, %v6547_v51  ;;  %v9263_v55 = vpop.f32.mrf.mxu0 }
 0x501   : > { %v9320_v61 = vpop.f32.mrf.mxu1 }
 0x502   : > { %v6791_v42 = vadd.f32 %v13936_v27, %v6768_v2  ;;  %v6746_v62 = vmax.f32 %v6692_v11, 0.0  ;;  %v9321_v21 = vadd.f32 %v9320_v61, %v9319_v30  ;;  %v9262_v11 = vadd.f32 %v9261_v37, %v9260_v17 }
 0x503   : > { %v9322_v28 = vpop.f32.mrf.mxu1  ;;  %v6582_v61 = vadd.f32 %v9259_v9, %v13918_v44 }
 0x504   : > { %6807 = vst [vmem:[%s9931_s25 + $0x28] sm:$0xff] %v6791_v42  ;;  %v6769_v63 = vmul.f32 %v13928_v20, %v6746_v62  ;;  %v6697_v52 = vadd.f32 %v9321_v21, %v6552_v58  ;;  %v9264_v21 = vpop.f32.mrf.mxu0 }
 0x505   : > { %v9323_v45 = vpop.f32.mrf.mxu1 }
 0x506   : > { %v6792_v26 = vadd.f32 %v13936_v27, %v6769_v63  ;;  %v6747_v23 = vmax.f32 %v6697_v52, 0.0  ;;  %v9324_v13 = vadd.f32 %v9323_v45, %v9322_v28  ;;  %v6587_v52 = vadd.f32 %v9262_v11, %v13918_v44 }
 0x507   : > { %v9325_v22 = vpop.f32.mrf.mxu1  ;;  %v9265_v45 = vadd.f32 %v9264_v21, %v9263_v55 }
 0x508   : > { %6808 = vst [vmem:[%s9931_s25 + $0x30] sm:$0xff] %v6792_v26  ;;  %v6770_v49 = vmul.f32 %v13928_v20, %v6747_v23  ;;  %v6702_v0 = vadd.f32 %v9324_v13, %v6557_v19 }
 0x509   : > { %v9326_v48 = vpop.f32.mrf.mxu1 }
 0x50a   : > { %v6793_v5 = vadd.f32 %v13936_v27, %v6770_v49  ;;  %v6748_v4 = vmax.f32 %v6702_v0, 0.0  ;;  %v9327_v29 = vadd.f32 %v9326_v48, %v9325_v22  ;;  %v6592_v0 = vadd.f32 %v9265_v45, %v13918_v44 }
 0x50b   : > { %v9328_v16 = vpop.f32.mrf.mxu1 }
 0x50c   : > { %6809 = vst [vmem:[%s9931_s25 + $0x38] sm:$0xff] %v6793_v5  ;;  %v6771_v46 = vmul.f32 %v13928_v20, %v6748_v4  ;;  %v6707_v12 = vadd.f32 %v9327_v29, %v6562_v56 }
 0x50d   : > { %v9329_v8 = vpop.f32.mrf.mxu1 }
 0x50e   : > { %v6794_v33 = vadd.f32 %v13936_v27, %v6771_v46  ;;  %v6749_v53 = vmax.f32 %v6707_v12, 0.0  ;;  %v9330_v50 = vadd.f32 %v9329_v8, %v9328_v16 }
 0x50f   : > { %v9331_v36 = vpop.f32.mrf.mxu1 }
 0x510   : > { %6810 = vst [vmem:[%s9931_s25 + $0x40] sm:$0xff] %v6794_v33  ;;  %v6772_v43 = vmul.f32 %v13928_v20, %v6749_v53  ;;  %v6712_v59 = vadd.f32 %v9330_v50, %v6567_v41 }
 0x511   : > { %v9332_v6 = vpop.f32.mrf.mxu1 }
 0x512   : > { %v6795_v39 = vadd.f32 %v13936_v27, %v6772_v43  ;;  %v6750_v7 = vmax.f32 %v6712_v59, 0.0  ;;  %v9333_v38 = vadd.f32 %v9332_v6, %v9331_v36 }
 0x513   : > { %v9334_v47 = vpop.f32.mrf.mxu1 }
 0x514   : > { %6811 = vst [vmem:[%s9931_s25 + $0x48] sm:$0xff] %v6795_v39  ;;  %v6773_v15 = vmul.f32 %v13928_v20, %v6750_v7  ;;  %v6717_v57 = vadd.f32 %v9333_v38, %v6572_v3 }
 0x515   : > { %v9335_v51 = vpop.f32.mrf.mxu1 }
 0x516   : > { %v6796_v24 = vadd.f32 %v13936_v27, %v6773_v15  ;;  %v6751_v14 = vmax.f32 %v6717_v57, 0.0  ;;  %v9336_v1 = vadd.f32 %v9335_v51, %v9334_v47 }
 0x517   : > { %v9337_v35 = vpop.f32.mrf.mxu1 }
 0x518   : > { %6812 = vst [vmem:[%s9931_s25 + $0x50] sm:$0xff] %v6796_v24  ;;  %v6774_v30 = vmul.f32 %v13928_v20, %v6751_v14  ;;  %v6722_v2 = vadd.f32 %v9336_v1, %v6577_v31 }
 0x519   : > { %v9338_v34 = vpop.f32.mrf.mxu1 }
 0x51a   : > { %v6797_v58 = vadd.f32 %v13936_v27, %v6774_v30  ;;  %v6752_v42 = vmax.f32 %v6722_v2, 0.0  ;;  %v9339_v62 = vadd.f32 %v9338_v34, %v9337_v35 }
 0x51b   : > { %v9340_v60 = vpop.f32.mrf.mxu1 }
 0x51c   : > { %6813 = vst [vmem:[%s9931_s25 + $0x58] sm:$0xff] %v6797_v58  ;;  %v6775_v28 = vmul.f32 %v13928_v20, %v6752_v42  ;;  %v6727_v63 = vadd.f32 %v9339_v62, %v6582_v61 }
 0x51d   : > { %v9341_v19 = vpop.f32.mrf.mxu1 }
 0x51e   : > { %v6798_v54 = vadd.f32 %v13936_v27, %v6775_v28  ;;  %v6753_v26 = vmax.f32 %v6727_v63, 0.0  ;;  %v9342_v23 = vadd.f32 %v9341_v19, %v9340_v60 }
 0x51f   : > { %v9343_v13 = vpop.f32.mrf.mxu1 }
 0x520   : > { %6814 = vst [vmem:[%s9931_s25 + $0x60] sm:$0xff] %v6798_v54  ;;  %v6776_v40 = vmul.f32 %v13928_v20, %v6753_v26  ;;  %v6732_v22 = vadd.f32 %v9342_v23, %v6587_v52 }
 0x521   : > { %v9344_v49 = vpop.f32.mrf.mxu1 }
 0x522   : > { %v6799_v10 = vadd.f32 %v13936_v27, %v6776_v40  ;;  %v6754_v48 = vmax.f32 %v6732_v22, 0.0  ;;  %v9345_v56 = vadd.f32 %v9344_v49, %v9343_v13 }
 0x524   : > { %6815 = vst [vmem:[%s9931_s25 + $0x68] sm:$0xff] %v6799_v10  ;;  %v6777_v5 = vmul.f32 %v13928_v20, %v6754_v48  ;;  %v6737_v4 = vadd.f32 %v9345_v56, %v6592_v0 }
 0x526   : > { %v6800_v29 = vadd.f32 %v13936_v27, %v6777_v5  ;;  %v6755_v18 = vmax.f32 %v6737_v4, 0.0 }
 0x528   : > { %6816 = vst [vmem:[%s9931_s25 + $0x70] sm:$0xff] %v6800_v29  ;;  %v6778_v44 = vmul.f32 %v13928_v20, %v6755_v18 }
 0x52a   : > { %v6801_v16 = vadd.f32 %v13936_v27, %v6778_v44 }
 0x52c   : > { %6817 = vst [vmem:[%s9931_s25 + $0x78] sm:$0xff] %v6801_v16 }
 0x52d   : > { %9688 = shalt.err (!%p9685_p13)
}
 0x52e   : > { %s9689_s25 = scalar_lea.hbm %s14013_s18, 2048  ;;  %s9693_s28 = scalar_lea.hbm %s14227_s22, 8192 }
 0x52f   : > { %p9690_p0 = scmp.ne.s32.totalorder %s14013_s18, %s9689_s25  ;;  %p9694_p4 = scmp.lt.s32.totalorder %s14013_s18, %s14227_s22 }
 0x530   : > { %p9695_p5 = scmp.lt.s32.totalorder %s9693_s28, %s9689_s25 }
 0x531   : > { %p9691_p1 = pnand %p9690_p0, %p9895_p3 }
 0x532   : > { %p9696_p6 = por %p9695_p5, %p9694_p4 }
 0x533   : > { %p9692_p2 = pneg %p9691_p1 }
 0x535   : > { %p9697_p7 = pnand %p9696_p6, %p9692_p2 }
 0x537   : > { %9700 = shalt.err (!%p9697_p7)
}
 0x538   : > { %s9772_s30 = smov 128   ;;  %s9773_s24 = smov 8  }
 0x539   : > { %9570 = dma.vmem_to_hbm [thread:$0]  (%p9895_p3), %s14015_s29, 2048, %s14013_s18, %s14021_s17, %s9772_s30, %s9772_s30, %s9773_s24  }
 0x53a PF: > { %s14229_s15 = sld [smem:[#allocation16_spill]] }
 0x53b   : > { %s14230_s14 = sld [smem:[#allocation12_spill]] }
 0x540   : > { %p9576_p9 = scmp.ge.s32.totalorder %s14229_s15, 2 }
 0x541   : > { %s6849_s23 = sand.u32 1, %s14230_s14  }
 0x542   : > { %p9573_p10 = pnand %p9576_p9, %p9904_p8  ;;  %s6850_s25 = scalar_lea.sflag [#allocation7], %s6849_s23 }
 0x544   : > { %p9574_p11 = pneg %p9573_p10 }
 0x546   : > { %9736 = dma.done.wait (%p9574_p11), %s6850_s25, 2048  }
 0x547   : > { %9738 = vsyncadd (%p9574_p11), %s6850_s25, 4294965248  ;;  %s26_s15 = sadd.s32 1, %s14229_s15   ;;  %s14232_s19 = sld [smem:[#allocation13_spill]] }
 0x548   : > { %p23_p12 = scmp.ge.s32.totalorder %s26_s15, 6   ;;  %s14233_s27 = sld [smem:[#allocation21_spill]] }
 0x549   : > { %s14234_s28 = sld [smem:[#allocation14_spill]]  ;;  %s14238_s25 = smov %s9745_s26 }
 0x54a   : > { %s14235_s29 = sld [smem:[#allocation15_spill]]  ;;  %25 = sbr.rel (!%p23_p12) target bundleno = 7 (0x7), region = 228 }
 0x54b   : > { %s14236_s30 = sld [smem:[#allocation17_spill]] }
 0x54c   : > { %s14237_s14 = sld [smem:[#allocation19_spill]] }
 0x54d   : > { %s14239_s26 = smov %s14232_s19 }
 0x54f   :  { %6855 = vsyncpa [#allocation7], 1 }
 0x550   :  { %6857 = vsyncpa [#allocation7 + $0x1], 1 }
 0x551   :  { %6858 = vsyncmov [#allocation5] }
 0x554   :  { %s6859_s13 = vpop.sfrf %6858 }
 0x555   :  { %p8096_p3 = scmp.ne.s32.totalorder %s6859_s13, 0 }
 0x557   :  { %6863 = shalt.err (%p8096_p3)  }
 0x558   :  { %6865 = vsyncmov [#allocation5 + $0x1] }
 0x55b   :  { %s6866_s18 = vpop.sfrf %6865 }
 0x55c   :  { %p8097_p8 = scmp.ne.s32.totalorder %s6866_s18, 0 }
 0x55e   :  { %6870 = shalt.err (%p8097_p8)  }

</bundles_post_ra>
